<compile_context>
chip_gen: v5e
topology: v5e:2x2
jax: 0.10.0
libtpu: 0.0.40
codegen_flags: <defaults>
</compile_context>

<pallas_src>
import functools

import jax
import jax.numpy as jnp
from jax import lax
from jax.experimental import pallas as pl
from jax.experimental.pallas import tpu as pltpu


# --------------------------------------------------------------------------- #
# Host-side constant builders
# --------------------------------------------------------------------------- #
def centered_dft_matrix(n, inverse):
    """Matrix M s.t. M @ v == fftshift((i)fft(ifftshift(v), norm='ortho'))."""
    eye = jnp.eye(n, dtype=jnp.complex64)
    x = jnp.fft.ifftshift(eye, axes=0)
    if inverse:
        y = jnp.fft.ifft(x, axis=0, norm="ortho")
    else:
        y = jnp.fft.fft(x, axis=0, norm="ortho")
    return jnp.fft.fftshift(y, axes=0)


def block_real_left(m, dtype):
    """B s.t. B @ [Xr; Xi] == [Yr; Yi] for complex Y = M @ X (transform along rows)."""
    return jnp.block([[m.real, -m.imag], [m.imag, m.real]]).astype(dtype)


def block_real_rightT(m, dtype):
    """B s.t. [Xr | Xi] @ B == [Zr | Zi] for complex Z = X @ M^T (transform along lanes)."""
    return jnp.block([[m.real.T, m.imag.T], [-m.imag.T, m.real.T]]).astype(dtype)


# --------------------------------------------------------------------------- #
# Runtime capability / sizing helpers
# --------------------------------------------------------------------------- #
def _single_buffer_supported():
    """True iff pl.Buffered(1) single-buffering of constant inputs works here."""
    try:
        def _k(c_ref, x_ref, o_ref):
            o_ref[...] = x_ref[...] + c_ref[...]

        c = jnp.full((8, 128), 2.0, jnp.float32)
        x = jnp.arange(2 * 8 * 128, dtype=jnp.float32).reshape(2, 8, 128)
        f = pl.pallas_call(
            _k,
            out_shape=jax.ShapeDtypeStruct((2, 8, 128), jnp.float32),
            grid=(2,),
            in_specs=[
                pl.BlockSpec((8, 128), lambda i: (0, 0), pipeline_mode=pl.Buffered(1)),
                pl.BlockSpec((None, 8, 128), lambda i: (i, 0, 0)),
            ],
            out_specs=pl.BlockSpec((None, 8, 128), lambda i: (i, 0, 0)),
        )
        y = jax.block_until_ready(f(c, x))
        return bool(jnp.allclose(y, x + 2.0))
    except Exception:  # any failure -> fall back to default double buffering
        return False


def _vmem_limit_bytes():
    """Per-generation VMEM budget (v7x: 64 MiB, v5e/v6e: 128 MiB) with headroom."""
    try:
        cap = int(pltpu.get_tpu_info().vmem_capacity_bytes)
    except Exception:
        cap = 64 * 1024 * 1024
    return max(16 * 1024 * 1024, min((cap * 3) // 4, 96 * 1024 * 1024))


# --------------------------------------------------------------------------- #
# Fused kernel: one grid step = the full T-iteration CRNN sweep of one batch el.
# --------------------------------------------------------------------------- #
def _make_kernel(H, W, C, HID, T, return_all):
    # Layouts:
    #   K (k-space, recurrent pred):  (2H, C*W)  rows=(ri,h), lanes=(c,w)
    #   Q (per-coil image domain):    (C*H, 2W)  rows=(c,h),  lanes=(ri,w)
    def k2q(x):
        xr, xi = x[:H, :], x[H:, :]
        qr = jnp.concatenate([xr[:, c * W:(c + 1) * W] for c in range(C)], axis=0)
        qi = jnp.concatenate([xi[:, c * W:(c + 1) * W] for c in range(C)], axis=0)
        return jnp.concatenate([qr, qi], axis=1)

    def q2k(q):
        qr, qi = q[:, :W], q[:, W:]
        xr = jnp.concatenate([qr[c * H:(c + 1) * H, :] for c in range(C)], axis=1)
        xi = jnp.concatenate([qi[c * H:(c + 1) * H, :] for c in range(C)], axis=1)
        return jnp.concatenate([xr, xi], axis=0)

    def mml(m, x):   # left DFT matmul; matrix already in the MXU dtype
        return jnp.dot(m, x.astype(m.dtype), preferred_element_type=jnp.float32)

    def mmr(x, m):   # right DFT matmul
        return jnp.dot(x.astype(m.dtype), m, preferred_element_type=jnp.float32)

    # 3x3 conv taps: +-1 row / lane shifts with zero padding.
    # TODO(synk): at production W use pltpu.roll(+-1) + edge masks (pure XLU)
    # instead of the one-lane concat copy; the semantics are identical.
    def shift_rows(x, d):
        if d == 0:
            return x
        z = jnp.zeros((1, x.shape[1]), x.dtype)
        if d > 0:
            return jnp.concatenate([x[1:, :], z], axis=0)
        return jnp.concatenate([z, x[:-1, :]], axis=0)

    def shift_lanes(x, d):
        if d == 0:
            return x
        z = jnp.zeros((x.shape[0], 1), x.dtype)
        if d > 0:
            return jnp.concatenate([x[:, 1:], z], axis=1)
        return jnp.concatenate([z, x[:, :-1]], axis=1)

    def conv3x3(xs, w_ref, b_ref, cout):
        # Weights stay O(9*cin*cout) scalars in SMEM (no W^2-expanded band matrix).
        cin = len(xs)
        accs = [jnp.zeros_like(xs[0]) + b_ref[co] for co in range(cout)]
        for ci in range(cin):
            for kx, dx in enumerate((-1, 0, 1)):
                xl = shift_lanes(xs[ci], dx)
                for ky, dy in enumerate((-1, 0, 1)):
                    tap = shift_rows(xl, dy)
                    for co in range(cout):
                        wv = w_ref[((co * cin + ci) * 3 + ky) * 3 + kx]
                        accs[co] = accs[co] + wv * tap
        return accs

    def kernel(ksp_ref, sens_ref, mdc_ref, bih_ref, biwT_ref, bfh_ref, bfwT_ref,
               w1_ref, b1_ref, w2_ref, b2_ref, out_ref):
        ksp = ksp_ref[...]            # (2H, C*W) reference k-space
        sens = sens_ref[...]          # (C*H, 2W) sensitivity maps (Q layout)
        mdc = mdc_ref[...]            # (2H, C*W) (mask != 0) * dc_weight
        bih, biwT = bih_ref[...], biwT_ref[...]
        bfh, bfwT = bfh_ref[...], bfwT_ref[...]
        sr, si = sens[:, :W], sens[:, W:]

        def iteration(pred):
            # ---- sens_reduce: eta = sum_c conj(S_c) * IFFT2c(pred_c) ------------
            y = mml(bih, pred)        # centered IFFT along H, all coils at once
            q = k2q(y)                # coils -> sublanes
            z = mmr(q, biwT)          # centered IFFT along W, all coils at once
            zr, zi = z[:, :W], z[:, W:]
            pr = zr * sr + zi * si    # complex_mul(z, conj(s)) for every coil
            pi = zi * sr - zr * si
            er, ei = pr[0:H, :], pi[0:H, :]
            for c in range(1, C):     # coil sum over sublane blocks
                rs = slice(c * H, (c + 1) * H)
                er = er + pr[rs, :]
                ei = ei + pi[rs, :]

            # ---- model: Conv3x3 -> ReLU -> Conv3x3, plus residual ---------------
            hcs = conv3x3([er, ei], w1_ref, b1_ref, HID)
            hcs = [jnp.maximum(a, 0.0) for a in hcs]
            e2 = conv3x3(hcs, w2_ref, b2_ref, 2)
            er2 = e2[0] + er
            ei2 = e2[1] + ei

            # ---- sens_expand: FFT2c(eta * S_c), no C-fold eta replication --------
            xrs, xis = [], []
            for c in range(C):
                rs = slice(c * H, (c + 1) * H)
                src, sic = sr[rs, :], si[rs, :]
                xrs.append(er2 * src - ei2 * sic)
                xis.append(er2 * sic + ei2 * src)
            xq = jnp.concatenate([jnp.concatenate(xrs, axis=0),
                                  jnp.concatenate(xis, axis=0)], axis=1)
            u = mmr(xq, bfwT)         # centered FFT along W, all coils at once
            g = mml(bfh, q2k(u))      # centered FFT along H, all coils at once

            # ---- soft data consistency (no_dc=False) -----------------------------
            return pred - mdc * (pred - ksp) - g

        if return_all:
            def body(t, pred):
                new_pred = iteration(pred)
                out_ref[t] = new_pred
                return new_pred
        else:
            def body(t, pred):
                new_pred = iteration(pred)
                out_ref[...] = new_pred   # only the last write reaches HBM
                return new_pred

        lax.fori_loop(0, T, body, ksp)

    return kernel


# --------------------------------------------------------------------------- #
# Wrapper
# --------------------------------------------------------------------------- #
def pallas_forward(ksp_ri, sens_ri, mask, w1, b1, w2, b2, dcw, *,
                   num_iters, mxu_dtype=jnp.bfloat16, single_buffer_consts=False,
                   return_all=True):
    """RecurrentConvolutionalNetBlock.forward (no_dc=False).

    ksp_ri, sens_ri: [B, C, 2, H, W] float32 (axis 2 = real/imag); mask: [H, W].
    Returns list of num_iters arrays [B, C, 2, H, W] (or just the last one when
    return_all=False).
    """
    B, C, _, H, W = ksp_ri.shape
    HID = w1.shape[0]
    T = int(num_iters)

    # K layout (2H, C*W): real/imag stacked on sublanes, coils blocked along lanes.
    ksp_l = ksp_ri.transpose(0, 2, 3, 1, 4).reshape(B, 2 * H, C * W).astype(jnp.float32)
    # Q layout (C*H, 2W): coils blocked on sublanes, real/imag blocked along lanes.
    sens_q = sens_ri.transpose(0, 1, 3, 2, 4).reshape(B, C * H, 2 * W).astype(jnp.float32)
    # soft-DC weight hoisted to the host: where(mask != 0) * dc_weight (binary or not).
    mdc = (jnp.tile((mask != 0).astype(jnp.float32), (2, C)) * dcw[0]).astype(jnp.float32)

    bih = block_real_left(centered_dft_matrix(H, inverse=True), mxu_dtype)
    bfh = block_real_left(centered_dft_matrix(H, inverse=False), mxu_dtype)
    biwT = block_real_rightT(centered_dft_matrix(W, inverse=True), mxu_dtype)
    bfwT = block_real_rightT(centered_dft_matrix(W, inverse=False), mxu_dtype)

    # Conv weights as flat O(9*Cin*Cout) scalar tables (SMEM).
    w1f = w1.astype(jnp.float32).reshape(-1)          # (HID*2*9,)
    w2f = w2.astype(jnp.float32).reshape(-1)          # (2*HID*9,)
    b1f = b1.astype(jnp.float32)
    b2f = b2.astype(jnp.float32)

    kernel = _make_kernel(H, W, C, HID, T, return_all)

    const_kw = dict(pipeline_mode=pl.Buffered(1)) if single_buffer_consts else {}
    smem_spec = pl.BlockSpec(memory_space=pltpu.MemorySpace.SMEM)

    in_specs = [
        pl.BlockSpec((None, 2 * H, C * W), lambda b: (b, 0, 0)),        # ref k-space
        pl.BlockSpec((None, C * H, 2 * W), lambda b: (b, 0, 0)),        # sens maps (Q)
        pl.BlockSpec((2 * H, C * W), lambda b: (0, 0), **const_kw),     # (mask!=0)*dcw
        pl.BlockSpec((2 * H, 2 * H), lambda b: (0, 0), **const_kw),     # inv DFT (H)
        pl.BlockSpec((2 * W, 2 * W), lambda b: (0, 0), **const_kw),     # inv DFT (W)^T
        pl.BlockSpec((2 * H, 2 * H), lambda b: (0, 0), **const_kw),     # fwd DFT (H)
        pl.BlockSpec((2 * W, 2 * W), lambda b: (0, 0), **const_kw),     # fwd DFT (W)^T
        smem_spec,                                                       # conv1 weights
        smem_spec,                                                       # conv1 bias
        smem_spec,                                                       # conv2 weights
        smem_spec,                                                       # conv2 bias
    ]

    if return_all:
        out_shape = jax.ShapeDtypeStruct((B, T, 2 * H, C * W), jnp.float32)
        out_spec = pl.BlockSpec((None, T, 2 * H, C * W), lambda b: (b, 0, 0, 0))
    else:
        out_shape = jax.ShapeDtypeStruct((B, 2 * H, C * W), jnp.float32)
        out_spec = pl.BlockSpec((None, 2 * H, C * W), lambda b: (b, 0, 0))

    out_l = pl.pallas_call(
        kernel,
        out_shape=out_shape,
        grid=(B,),
        in_specs=in_specs,
        out_specs=out_spec,
        compiler_params=pltpu.CompilerParams(
            dimension_semantics=("parallel",),        # batch across TensorCores
            vmem_limit_bytes=_vmem_limit_bytes()),
    )(ksp_l, sens_q, mdc, bih, biwT, bfh, bfwT, w1f, b1f, w2f, b2f)

    if return_all:
        out = out_l.reshape(B, T, 2, H, C, W).transpose(1, 0, 4, 2, 3, 5)
        return [out[t] for t in range(T)]
    return out_l.reshape(B, 2, H, C, W).transpose(0, 3, 1, 2, 4)


# --------------------------------------------------------------------------- #
# Pure-JAX reference (mirrors the PyTorch module semantics)
# --------------------------------------------------------------------------- #
def reference_forward(ksp, sens, mask, w1, b1, w2, b2, dc_w, num_iters):
    def fft2c(x):
        x = jnp.fft.ifftshift(x, axes=(-2, -1))
        x = jnp.fft.fftn(x, axes=(-2, -1), norm="ortho")
        return jnp.fft.fftshift(x, axes=(-2, -1))

    def ifft2c(x):
        x = jnp.fft.ifftshift(x, axes=(-2, -1))
        x = jnp.fft.ifftn(x, axes=(-2, -1), norm="ortho")
        return jnp.fft.fftshift(x, axes=(-2, -1))

    def conv2d(x, w, b):
        y = lax.conv_general_dilated(
            x, w, window_strides=(1, 1), padding=((1, 1), (1, 1)),
            dimension_numbers=("NCHW", "OIHW", "NCHW"))
        return y + b[None, :, None, None]

    def model(eta):  # eta: [B, H, W] complex
        x = jnp.stack([eta.real, eta.imag], axis=1)
        h = jnp.maximum(conv2d(x, w1, b1), 0.0)
        y = conv2d(h, w2, b2)
        return y[:, 0] + 1j * y[:, 1]

    pred = ksp
    preds = []
    mb = mask[None, None, :, :] != 0.0
    for _ in range(num_iters):
        soft_dc = jnp.where(mb, pred - ksp, 0.0 + 0.0j) * dc_w
        eta = (ifft2c(pred) * jnp.conj(sens)).sum(axis=1)
        eta = model(eta) + eta
        eta_k = fft2c(eta[:, None, :, :] * sens)
        pred = pred - soft_dc - eta_k
        preds.append(pred)
    return preds


# --------------------------------------------------------------------------- #
if __name__ == "__main__":
    B, C, H, W, HID = 2, 8, 16, 16, 8      # C*W == C*H == 128 -> lane-dense blocks
    NUM_ITERS = 4

    key = jax.random.PRNGKey(0)
    keys = jax.random.split(key, 9)
    ksp = (jax.random.normal(keys[0], (B, C, H, W))
           + 1j * jax.random.normal(keys[1], (B, C, H, W))).astype(jnp.complex64)
    sens = (0.5 * (jax.random.normal(keys[2], (B, C, H, W))
                   + 1j * jax.random.normal(keys[3], (B, C, H, W)))).astype(jnp.complex64)
    u = jax.random.uniform(keys[4], (H, W))
    mask = jnp.where(u > 0.5, 0.5 + u, 0.0).astype(jnp.float32)   # non-binary sampling mask

    # Deterministic synthetic "model" parameters (Conv(2->HID) -> ReLU -> Conv(HID->2))
    w1 = 0.1 * jax.random.normal(keys[5], (HID, 2, 3, 3), jnp.float32)
    b1 = 0.1 * jax.random.normal(keys[6], (HID,), jnp.float32)
    w2 = 0.1 * jax.random.normal(keys[7], (2, HID, 3, 3), jnp.float32)
    b2 = 0.1 * jax.random.normal(keys[8], (2,), jnp.float32)
    dcw = jnp.ones((1,), jnp.float32)      # self.dc_weight = torch.ones(1)

    ksp_ri = jnp.stack([ksp.real, ksp.imag], axis=2).astype(jnp.float32)   # [B,C,2,H,W]
    sens_ri = jnp.stack([sens.real, sens.imag], axis=2).astype(jnp.float32)

    ref_preds = reference_forward(ksp, sens, mask, w1, b1, w2, b2, dcw[0], NUM_ITERS)
    ref_ri = [jnp.stack([p.real, p.imag], axis=2) for p in ref_preds]

    def max_rel_err(preds):
        errs = [jnp.max(jnp.abs(got - ref)) / (jnp.max(jnp.abs(ref)) + 1e-6)
                for got, ref in zip(preds, ref_ri)]
        return float(jnp.max(jnp.stack(errs)))

    single_buf = _single_buffer_supported()

    # Strict path: f32 MXU operands, must match the reference tightly (all iters).
    fwd_f32 = jax.jit(functools.partial(
        pallas_forward, num_iters=NUM_ITERS, mxu_dtype=jnp.float32,
        single_buffer_consts=single_buf))
    preds_f32 = jax.block_until_ready(fwd_f32(ksp_ri, sens_ri, mask, w1, b1, w2, b2, dcw))
    err_f32 = max_rel_err(preds_f32)
    assert err_f32 < 1e-3, f"f32 mismatch: rel err {err_f32}"

    # Fast path: bf16 MXU operands, f32 accumulation / recurrence (v6e/v7x default).
    # NOTE: error grows with num_iterations; re-validate at production iteration counts.
    fwd_bf16 = jax.jit(functools.partial(
        pallas_forward, num_iters=NUM_ITERS, mxu_dtype=jnp.bfloat16,
        single_buffer_consts=single_buf))
    preds_bf16 = jax.block_until_ready(fwd_bf16(ksp_ri, sens_ri, mask, w1, b1, w2, b2, dcw))
    err_bf16 = max_rel_err(preds_bf16)
    assert err_bf16 < 1e-1, f"bf16 mismatch: rel err {err_bf16}"

    # Final-prediction-only mode (skips T-1 HBM writebacks).
    fwd_last = jax.jit(functools.partial(
        pallas_forward, num_iters=NUM_ITERS, mxu_dtype=jnp.float32,
        single_buffer_consts=single_buf, return_all=False))
    last = jax.block_until_ready(fwd_last(ksp_ri, sens_ri, mask, w1, b1, w2, b2, dcw))
    err_last = float(jnp.max(jnp.abs(last - ref_ri[-1]))
                     / (jnp.max(jnp.abs(ref_ri[-1])) + 1e-6))
    assert err_last < 1e-3, f"final-only mismatch: rel err {err_last}"

    print("KERNEL_OK")
</pallas_src>

<mosaic_0001>
module attributes {stable_mosaic.version = 11 : i64} {
  func.func @_k(%arg0: i32, %arg1: memref<8x128xf32, #tpu.memory_space<vmem>>, %arg2: memref<1x8x128xf32, #tpu.memory_space<vmem>>, %arg3: memref<1x8x128xf32, #tpu.memory_space<vmem>>) attributes {dimension_semantics = [#tpu.dimension_semantics<arbitrary>], iteration_bounds = array<i64: 2>, scalar_prefetch = 0 : i64, scratch_operands = 0 : i64, tpu.core_type = #tpu.core_type<tc>, window_params = [{pipeline_mode = #tpu.pipeline_mode<synchronous>, transform_indices = @transform_0, window_bounds = array<i64: 8, 128>}, {transform_indices = @transform_1, window_bounds = array<i64: 1, 8, 128>}, {transform_indices = @transform_2, window_bounds = array<i64: 1, 8, 128>}]} {
    %c0 = arith.constant 0 : index
    %c0_0 = arith.constant 0 : index
    %c0_1 = arith.constant 0 : index
    %0 = vector.load %arg2[%c0, %c0_0, %c0_1] : memref<1x8x128xf32, #tpu.memory_space<vmem>>, vector<1x8x128xf32>
    %1 = vector.shape_cast %0 : vector<1x8x128xf32> to vector<8x128xf32>
    %c0_2 = arith.constant 0 : index
    %c0_3 = arith.constant 0 : index
    %2 = vector.load %arg1[%c0_2, %c0_3] : memref<8x128xf32, #tpu.memory_space<vmem>>, vector<8x128xf32>
    %3 = arith.addf %1, %2 : vector<8x128xf32>
    %c0_4 = arith.constant 0 : index
    %c0_5 = arith.constant 0 : index
    %c0_6 = arith.constant 0 : index
    %4 = vector.load %arg3[%c0_4, %c0_5, %c0_6] : memref<1x8x128xf32, #tpu.memory_space<vmem>>, vector<1x8x128xf32>
    %5 = vector.shape_cast %4 : vector<1x8x128xf32> to vector<8x128xf32>
    %6 = vector.shape_cast %3 : vector<8x128xf32> to vector<1x8x128xf32>
    tpu.vector_store %arg3[%c0_4, %c0_5, %c0_6], %6 {strides = array<i32>} : memref<1x8x128xf32, #tpu.memory_space<vmem>>, vector<1x8x128xf32>,
    return
  }
  func.func @transform_0(%arg0: i32) -> (i32, i32) {
    %c0_i32 = arith.constant 0 : i32
    %c0_i32_0 = arith.constant 0 : i32
    %c0_i32_1 = arith.constant 0 : i32
    return %c0_i32, %c0_i32_0 : i32, i32
  }
  func.func @transform_1(%arg0: i32) -> (i32, i32, i32) {
    %c0_i32 = arith.constant 0 : i32
    %c0_i32_0 = arith.constant 0 : i32
    %c0_i32_1 = arith.constant 0 : i32
    return %arg0, %c0_i32, %c0_i32_0 : i32, i32, i32
  }
  func.func @transform_2(%arg0: i32) -> (i32, i32, i32) {
    %c0_i32 = arith.constant 0 : i32
    %c0_i32_0 = arith.constant 0 : i32
    %c0_i32_1 = arith.constant 0 : i32
    return %arg0, %c0_i32, %c0_i32_0 : i32, i32, i32
  }
}

module attributes {stable_mosaic.version = 11 : i64} {
  func.func @kernel(%arg0: i32, %arg1: memref<1x32x128xf32, #tpu.memory_space<vmem>>, %arg2: memref<1x128x32xf32, #tpu.memory_space<vmem>>, %arg3: memref<32x128xf32, #tpu.memory_space<vmem>>, %arg4: memref<32x32xf32, #tpu.memory_space<vmem>>, %arg5: memref<32x32xf32, #tpu.memory_space<vmem>>, %arg6: memref<32x32xf32, #tpu.memory_space<vmem>>, %arg7: memref<32x32xf32, #tpu.memory_space<vmem>>, %arg8: memref<144xf32, #tpu.memory_space<smem>>, %arg9: memref<8xf32, #tpu.memory_space<smem>>, %arg10: memref<144xf32, #tpu.memory_space<smem>>, %arg11: memref<2xf32, #tpu.memory_space<smem>>, %arg12: memref<1x4x32x128xf32, #tpu.memory_space<vmem>>) attributes {dimension_semantics = [#tpu.dimension_semantics<parallel>], iteration_bounds = array<i64: 2>, scalar_prefetch = 0 : i64, scratch_operands = 0 : i64, tpu.core_type = #tpu.core_type<tc>, window_params = [{transform_indices = @transform_0, window_bounds = array<i64: 1, 32, 128>}, {transform_indices = @transform_1, window_bounds = array<i64: 1, 128, 32>}, {pipeline_mode = #tpu.pipeline_mode<synchronous>, transform_indices = @transform_2, window_bounds = array<i64: 32, 128>}, {pipeline_mode = #tpu.pipeline_mode<synchronous>, transform_indices = @transform_3, window_bounds = array<i64: 32, 32>}, {pipeline_mode = #tpu.pipeline_mode<synchronous>, transform_indices = @transform_4, window_bounds = array<i64: 32, 32>}, {pipeline_mode = #tpu.pipeline_mode<synchronous>, transform_indices = @transform_5, window_bounds = array<i64: 32, 32>}, {pipeline_mode = #tpu.pipeline_mode<synchronous>, transform_indices = @transform_6, window_bounds = array<i64: 32, 32>}, {transform_indices = @transform_7, window_bounds = array<i64: 144>}, {transform_indices = @transform_8, window_bounds = array<i64: 8>}, {transform_indices = @transform_9, window_bounds = array<i64: 144>}, {transform_indices = @transform_10, window_bounds = array<i64: 2>}, {transform_indices = @transform_11, window_bounds = array<i64: 1, 4, 32, 128>}]} {
    %c0 = arith.constant 0 : index
    %c0_0 = arith.constant 0 : index
    %c0_1 = arith.constant 0 : index
    %0 = vector.load %arg1[%c0, %c0_0, %c0_1] : memref<1x32x128xf32, #tpu.memory_space<vmem>>, vector<1x32x128xf32>
    %1 = vector.shape_cast %0 : vector<1x32x128xf32> to vector<32x128xf32>
    %c0_2 = arith.constant 0 : index
    %c0_3 = arith.constant 0 : index
    %c0_4 = arith.constant 0 : index
    %2 = vector.load %arg2[%c0_2, %c0_3, %c0_4] : memref<1x128x32xf32, #tpu.memory_space<vmem>>, vector<1x128x32xf32>
    %3 = vector.shape_cast %2 : vector<1x128x32xf32> to vector<128x32xf32>
    %c0_5 = arith.constant 0 : index
    %c0_6 = arith.constant 0 : index
    %4 = vector.load %arg3[%c0_5, %c0_6] : memref<32x128xf32, #tpu.memory_space<vmem>>, vector<32x128xf32>
    %c0_7 = arith.constant 0 : index
    %c0_8 = arith.constant 0 : index
    %5 = vector.load %arg4[%c0_7, %c0_8] : memref<32x32xf32, #tpu.memory_space<vmem>>, vector<32x32xf32>
    %c0_9 = arith.constant 0 : index
    %c0_10 = arith.constant 0 : index
    %6 = vector.load %arg5[%c0_9, %c0_10] : memref<32x32xf32, #tpu.memory_space<vmem>>, vector<32x32xf32>
    %c0_11 = arith.constant 0 : index
    %c0_12 = arith.constant 0 : index
    %7 = vector.load %arg6[%c0_11, %c0_12] : memref<32x32xf32, #tpu.memory_space<vmem>>, vector<32x32xf32>
    %c0_13 = arith.constant 0 : index
    %c0_14 = arith.constant 0 : index
    %8 = vector.load %arg7[%c0_13, %c0_14] : memref<32x32xf32, #tpu.memory_space<vmem>>, vector<32x32xf32>
    %9 = vector.extract_strided_slice %3 {offsets = [0, 0], sizes = [128, 16], strides = [1, 1]} : vector<128x32xf32> to vector<128x16xf32>
    %10 = vector.extract_strided_slice %3 {offsets = [0, 16], sizes = [128, 16], strides = [1, 1]} : vector<128x32xf32> to vector<128x16xf32>
    %c0_i32 = arith.constant 0 : i32
    %c4_i32 = arith.constant 4 : i32
    %11 = arith.addi %c0_i32, %c4_i32 : i32
    %c1_i32 = arith.constant 1 : i32
    %12 = scf.for %arg13 = %c0_i32 to %11 step %c1_i32 iter_args(%arg14 = %1) -> (vector<32x128xf32>)  : i32 {
      %cst = arith.constant dense<0.000000e+00> : vector<32x128xf32>
      %13 = tpu.matmul %5, %arg14, %cst {dimension_numbers = #tpu.dot_dimension_numbers<[1], [0], [0], [1], [0, 0, 1, 1], [], []>} : vector<32x32xf32>, vector<32x128xf32>, vector<32x128xf32> -> vector<32x128xf32>
      %14 = vector.extract_strided_slice %13 {offsets = [0, 0], sizes = [16, 128], strides = [1, 1]} : vector<32x128xf32> to vector<16x128xf32>
      %15 = vector.extract_strided_slice %13 {offsets = [16, 0], sizes = [16, 128], strides = [1, 1]} : vector<32x128xf32> to vector<16x128xf32>
      %16 = vector.extract_strided_slice %14 {offsets = [0, 0], sizes = [16, 16], strides = [1, 1]} : vector<16x128xf32> to vector<16x16xf32>
      %17 = vector.extract_strided_slice %14 {offsets = [0, 16], sizes = [16, 16], strides = [1, 1]} : vector<16x128xf32> to vector<16x16xf32>
      %18 = vector.extract_strided_slice %14 {offsets = [0, 32], sizes = [16, 16], strides = [1, 1]} : vector<16x128xf32> to vector<16x16xf32>
      %19 = vector.extract_strided_slice %14 {offsets = [0, 48], sizes = [16, 16], strides = [1, 1]} : vector<16x128xf32> to vector<16x16xf32>
      %20 = vector.extract_strided_slice %14 {offsets = [0, 64], sizes = [16, 16], strides = [1, 1]} : vector<16x128xf32> to vector<16x16xf32>
      %21 = vector.extract_strided_slice %14 {offsets = [0, 80], sizes = [16, 16], strides = [1, 1]} : vector<16x128xf32> to vector<16x16xf32>
      %22 = vector.extract_strided_slice %14 {offsets = [0, 96], sizes = [16, 16], strides = [1, 1]} : vector<16x128xf32> to vector<16x16xf32>
      %23 = vector.extract_strided_slice %14 {offsets = [0, 112], sizes = [16, 16], strides = [1, 1]} : vector<16x128xf32> to vector<16x16xf32>
      %24 = tpu.concatenate %16, %17, %18, %19, %20, %21, %22, %23 in 0 : vector<16x16xf32>, vector<16x16xf32>, vector<16x16xf32>, vector<16x16xf32>, vector<16x16xf32>, vector<16x16xf32>, vector<16x16xf32>, vector<16x16xf32> -> vector<128x16xf32>
      %25 = vector.extract_strided_slice %15 {offsets = [0, 0], sizes = [16, 16], strides = [1, 1]} : vector<16x128xf32> to vector<16x16xf32>
      %26 = vector.extract_strided_slice %15 {offsets = [0, 16], sizes = [16, 16], strides = [1, 1]} : vector<16x128xf32> to vector<16x16xf32>
      %27 = vector.extract_strided_slice %15 {offsets = [0, 32], sizes = [16, 16], strides = [1, 1]} : vector<16x128xf32> to vector<16x16xf32>
      %28 = vector.extract_strided_slice %15 {offsets = [0, 48], sizes = [16, 16], strides = [1, 1]} : vector<16x128xf32> to vector<16x16xf32>
      %29 = vector.extract_strided_slice %15 {offsets = [0, 64], sizes = [16, 16], strides = [1, 1]} : vector<16x128xf32> to vector<16x16xf32>
      %30 = vector.extract_strided_slice %15 {offsets = [0, 80], sizes = [16, 16], strides = [1, 1]} : vector<16x128xf32> to vector<16x16xf32>
      %31 = vector.extract_strided_slice %15 {offsets = [0, 96], sizes = [16, 16], strides = [1, 1]} : vector<16x128xf32> to vector<16x16xf32>
      %32 = vector.extract_strided_slice %15 {offsets = [0, 112], sizes = [16, 16], strides = [1, 1]} : vector<16x128xf32> to vector<16x16xf32>
      %33 = tpu.concatenate %25, %26, %27, %28, %29, %30, %31, %32 in 0 : vector<16x16xf32>, vector<16x16xf32>, vector<16x16xf32>, vector<16x16xf32>, vector<16x16xf32>, vector<16x16xf32>, vector<16x16xf32>, vector<16x16xf32> -> vector<128x16xf32>
      %34 = tpu.concatenate %24, %33 in 1 : vector<128x16xf32>, vector<128x16xf32> -> vector<128x32xf32>
      %cst_16 = arith.constant dense<0.000000e+00> : vector<128x32xf32>
      %35 = tpu.matmul %34, %6, %cst_16 {dimension_numbers = #tpu.dot_dimension_numbers<[1], [0], [0], [1], [0, 0, 1, 1], [], []>} : vector<128x32xf32>, vector<32x32xf32>, vector<128x32xf32> -> vector<128x32xf32>
      %36 = vector.extract_strided_slice %35 {offsets = [0, 0], sizes = [128, 16], strides = [1, 1]} : vector<128x32xf32> to vector<128x16xf32>
      %37 = vector.extract_strided_slice %35 {offsets = [0, 16], sizes = [128, 16], strides = [1, 1]} : vector<128x32xf32> to vector<128x16xf32>
      %38 = arith.mulf %36, %9 : vector<128x16xf32>
      %39 = arith.mulf %37, %10 : vector<128x16xf32>
      %40 = arith.addf %38, %39 : vector<128x16xf32>
      %41 = arith.mulf %37, %9 : vector<128x16xf32>
      %42 = arith.mulf %36, %10 : vector<128x16xf32>
      %43 = arith.subf %41, %42 : vector<128x16xf32>
      %44 = vector.extract_strided_slice %40 {offsets = [0, 0], sizes = [16, 16], strides = [1, 1]} : vector<128x16xf32> to vector<16x16xf32>
      %45 = vector.extract_strided_slice %43 {offsets = [0, 0], sizes = [16, 16], strides = [1, 1]} : vector<128x16xf32> to vector<16x16xf32>
      %46 = vector.extract_strided_slice %40 {offsets = [16, 0], sizes = [16, 16], strides = [1, 1]} : vector<128x16xf32> to vector<16x16xf32>
      %47 = arith.addf %44, %46 : vector<16x16xf32>
      %48 = vector.extract_strided_slice %43 {offsets = [16, 0], sizes = [16, 16], strides = [1, 1]} : vector<128x16xf32> to vector<16x16xf32>
      %49 = arith.addf %45, %48 : vector<16x16xf32>
      %50 = vector.extract_strided_slice %40 {offsets = [32, 0], sizes = [16, 16], strides = [1, 1]} : vector<128x16xf32> to vector<16x16xf32>
      %51 = arith.addf %47, %50 : vector<16x16xf32>
      %52 = vector.extract_strided_slice %43 {offsets = [32, 0], sizes = [16, 16], strides = [1, 1]} : vector<128x16xf32> to vector<16x16xf32>
      %53 = arith.addf %49, %52 : vector<16x16xf32>
      %54 = vector.extract_strided_slice %40 {offsets = [48, 0], sizes = [16, 16], strides = [1, 1]} : vector<128x16xf32> to vector<16x16xf32>
      %55 = arith.addf %51, %54 : vector<16x16xf32>
      %56 = vector.extract_strided_slice %43 {offsets = [48, 0], sizes = [16, 16], strides = [1, 1]} : vector<128x16xf32> to vector<16x16xf32>
      %57 = arith.addf %53, %56 : vector<16x16xf32>
      %58 = vector.extract_strided_slice %40 {offsets = [64, 0], sizes = [16, 16], strides = [1, 1]} : vector<128x16xf32> to vector<16x16xf32>
      %59 = arith.addf %55, %58 : vector<16x16xf32>
      %60 = vector.extract_strided_slice %43 {offsets = [64, 0], sizes = [16, 16], strides = [1, 1]} : vector<128x16xf32> to vector<16x16xf32>
      %61 = arith.addf %57, %60 : vector<16x16xf32>
      %62 = vector.extract_strided_slice %40 {offsets = [80, 0], sizes = [16, 16], strides = [1, 1]} : vector<128x16xf32> to vector<16x16xf32>
      %63 = arith.addf %59, %62 : vector<16x16xf32>
      %64 = vector.extract_strided_slice %43 {offsets = [80, 0], sizes = [16, 16], strides = [1, 1]} : vector<128x16xf32> to vector<16x16xf32>
      %65 = arith.addf %61, %64 : vector<16x16xf32>
      %66 = vector.extract_strided_slice %40 {offsets = [96, 0], sizes = [16, 16], strides = [1, 1]} : vector<128x16xf32> to vector<16x16xf32>
      %67 = arith.addf %63, %66 : vector<16x16xf32>
      %68 = vector.extract_strided_slice %43 {offsets = [96, 0], sizes = [16, 16], strides = [1, 1]} : vector<128x16xf32> to vector<16x16xf32>
      %69 = arith.addf %65, %68 : vector<16x16xf32>
      %70 = vector.extract_strided_slice %40 {offsets = [112, 0], sizes = [16, 16], strides = [1, 1]} : vector<128x16xf32> to vector<16x16xf32>
      %71 = arith.addf %67, %70 : vector<16x16xf32>
      %72 = vector.extract_strided_slice %43 {offsets = [112, 0], sizes = [16, 16], strides = [1, 1]} : vector<128x16xf32> to vector<16x16xf32>
      %73 = arith.addf %69, %72 : vector<16x16xf32>
      %cst_17 = arith.constant 0.000000e+00 : f32
      %74 = vector.broadcast %cst_17 : f32 to vector<16x16xf32>
      %c0_18 = arith.constant 0 : index
      %75 = memref.load %arg9[%c0_18] : memref<8xf32, #tpu.memory_space<smem>>
      %76 = vector.broadcast %75 : f32 to vector<16x16xf32>
      %77 = arith.addf %74, %76 : vector<16x16xf32>
      %cst_19 = arith.constant 0.000000e+00 : f32
      %78 = vector.broadcast %cst_19 : f32 to vector<16x16xf32>
      %c1 = arith.constant 1 : index
      %79 = memref.load %arg9[%c1] : memref<8xf32, #tpu.memory_space<smem>>
      %80 = vector.broadcast %79 : f32 to vector<16x16xf32>
      %81 = arith.addf %78, %80 : vector<16x16xf32>
      %cst_20 = arith.constant 0.000000e+00 : f32
      %82 = vector.broadcast %cst_20 : f32 to vector<16x16xf32>
      %c2 = arith.constant 2 : index
      %83 = memref.load %arg9[%c2] : memref<8xf32, #tpu.memory_space<smem>>
      %84 = vector.broadcast %83 : f32 to vector<16x16xf32>
      %85 = arith.addf %82, %84 : vector<16x16xf32>
      %cst_21 = arith.constant 0.000000e+00 : f32
      %86 = vector.broadcast %cst_21 : f32 to vector<16x16xf32>
      %c3 = arith.constant 3 : index
      %87 = memref.load %arg9[%c3] : memref<8xf32, #tpu.memory_space<smem>>
      %88 = vector.broadcast %87 : f32 to vector<16x16xf32>
      %89 = arith.addf %86, %88 : vector<16x16xf32>
      %cst_22 = arith.constant 0.000000e+00 : f32
      %90 = vector.broadcast %cst_22 : f32 to vector<16x16xf32>
      %c4 = arith.constant 4 : index
      %91 = memref.load %arg9[%c4] : memref<8xf32, #tpu.memory_space<smem>>
      %92 = vector.broadcast %91 : f32 to vector<16x16xf32>
      %93 = arith.addf %90, %92 : vector<16x16xf32>
      %cst_23 = arith.constant 0.000000e+00 : f32
      %94 = vector.broadcast %cst_23 : f32 to vector<16x16xf32>
      %c5 = arith.constant 5 : index
      %95 = memref.load %arg9[%c5] : memref<8xf32, #tpu.memory_space<smem>>
      %96 = vector.broadcast %95 : f32 to vector<16x16xf32>
      %97 = arith.addf %94, %96 : vector<16x16xf32>
      %cst_24 = arith.constant 0.000000e+00 : f32
      %98 = vector.broadcast %cst_24 : f32 to vector<16x16xf32>
      %c6 = arith.constant 6 : index
      %99 = memref.load %arg9[%c6] : memref<8xf32, #tpu.memory_space<smem>>
      %100 = vector.broadcast %99 : f32 to vector<16x16xf32>
      %101 = arith.addf %98, %100 : vector<16x16xf32>
      %cst_25 = arith.constant 0.000000e+00 : f32
      %102 = vector.broadcast %cst_25 : f32 to vector<16x16xf32>
      %c7 = arith.constant 7 : index
      %103 = memref.load %arg9[%c7] : memref<8xf32, #tpu.memory_space<smem>>
      %104 = vector.broadcast %103 : f32 to vector<16x16xf32>
      %105 = arith.addf %102, %104 : vector<16x16xf32>
      %cst_26 = arith.constant 0.000000e+00 : f32
      %106 = vector.broadcast %cst_26 : f32 to vector<16x1xf32>
      %107 = vector.extract_strided_slice %71 {offsets = [0, 0], sizes = [16, 15], strides = [1, 1]} : vector<16x16xf32> to vector<16x15xf32>
      %108 = tpu.concatenate %106, %107 in 1 : vector<16x1xf32>, vector<16x15xf32> -> vector<16x16xf32>
      %cst_27 = arith.constant 0.000000e+00 : f32
      %109 = vector.broadcast %cst_27 : f32 to vector<1x16xf32>
      %110 = vector.extract_strided_slice %108 {offsets = [0, 0], sizes = [15, 16], strides = [1, 1]} : vector<16x16xf32> to vector<15x16xf32>
      %111 = tpu.concatenate %109, %110 in 0 : vector<1x16xf32>, vector<15x16xf32> -> vector<16x16xf32>
      %c0_28 = arith.constant 0 : index
      %112 = memref.load %arg8[%c0_28] : memref<144xf32, #tpu.memory_space<smem>>
      %113 = vector.broadcast %112 : f32 to vector<16x16xf32>
      %114 = arith.mulf %113, %111 : vector<16x16xf32>
      %115 = arith.addf %77, %114 : vector<16x16xf32>
      %c18 = arith.constant 18 : index
      %116 = memref.load %arg8[%c18] : memref<144xf32, #tpu.memory_space<smem>>
      %117 = vector.broadcast %116 : f32 to vector<16x16xf32>
      %118 = arith.mulf %117, %111 : vector<16x16xf32>
      %119 = arith.addf %81, %118 : vector<16x16xf32>
      %c36 = arith.constant 36 : index
      %120 = memref.load %arg8[%c36] : memref<144xf32, #tpu.memory_space<smem>>
      %121 = vector.broadcast %120 : f32 to vector<16x16xf32>
      %122 = arith.mulf %121, %111 : vector<16x16xf32>
      %123 = arith.addf %85, %122 : vector<16x16xf32>
      %c54 = arith.constant 54 : index
      %124 = memref.load %arg8[%c54] : memref<144xf32, #tpu.memory_space<smem>>
      %125 = vector.broadcast %124 : f32 to vector<16x16xf32>
      %126 = arith.mulf %125, %111 : vector<16x16xf32>
      %127 = arith.addf %89, %126 : vector<16x16xf32>
      %c72 = arith.constant 72 : index
      %128 = memref.load %arg8[%c72] : memref<144xf32, #tpu.memory_space<smem>>
      %129 = vector.broadcast %128 : f32 to vector<16x16xf32>
      %130 = arith.mulf %129, %111 : vector<16x16xf32>
      %131 = arith.addf %93, %130 : vector<16x16xf32>
      %c90 = arith.constant 90 : index
      %132 = memref.load %arg8[%c90] : memref<144xf32, #tpu.memory_space<smem>>
      %133 = vector.broadcast %132 : f32 to vector<16x16xf32>
      %134 = arith.mulf %133, %111 : vector<16x16xf32>
      %135 = arith.addf %97, %134 : vector<16x16xf32>
      %c108 = arith.constant 108 : index
      %136 = memref.load %arg8[%c108] : memref<144xf32, #tpu.memory_space<smem>>
      %137 = vector.broadcast %136 : f32 to vector<16x16xf32>
      %138 = arith.mulf %137, %111 : vector<16x16xf32>
      %139 = arith.addf %101, %138 : vector<16x16xf32>
      %c126 = arith.constant 126 : index
      %140 = memref.load %arg8[%c126] : memref<144xf32, #tpu.memory_space<smem>>
      %141 = vector.broadcast %140 : f32 to vector<16x16xf32>
      %142 = arith.mulf %141, %111 : vector<16x16xf32>
      %143 = arith.addf %105, %142 : vector<16x16xf32>
      %c3_29 = arith.constant 3 : index
      %144 = memref.load %arg8[%c3_29] : memref<144xf32, #tpu.memory_space<smem>>
      %145 = vector.broadcast %144 : f32 to vector<16x16xf32>
      %146 = arith.mulf %145, %108 : vector<16x16xf32>
      %147 = arith.addf %115, %146 : vector<16x16xf32>
      %c21 = arith.constant 21 : index
      %148 = memref.load %arg8[%c21] : memref<144xf32, #tpu.memory_space<smem>>
      %149 = vector.broadcast %148 : f32 to vector<16x16xf32>
      %150 = arith.mulf %149, %108 : vector<16x16xf32>
      %151 = arith.addf %119, %150 : vector<16x16xf32>
      %c39 = arith.constant 39 : index
      %152 = memref.load %arg8[%c39] : memref<144xf32, #tpu.memory_space<smem>>
      %153 = vector.broadcast %152 : f32 to vector<16x16xf32>
      %154 = arith.mulf %153, %108 : vector<16x16xf32>
      %155 = arith.addf %123, %154 : vector<16x16xf32>
      %c57 = arith.constant 57 : index
      %156 = memref.load %arg8[%c57] : memref<144xf32, #tpu.memory_space<smem>>
      %157 = vector.broadcast %156 : f32 to vector<16x16xf32>
      %158 = arith.mulf %157, %108 : vector<16x16xf32>
      %159 = arith.addf %127, %158 : vector<16x16xf32>
      %c75 = arith.constant 75 : index
      %160 = memref.load %arg8[%c75] : memref<144xf32, #tpu.memory_space<smem>>
      %161 = vector.broadcast %160 : f32 to vector<16x16xf32>
      %162 = arith.mulf %161, %108 : vector<16x16xf32>
      %163 = arith.addf %131, %162 : vector<16x16xf32>
      %c93 = arith.constant 93 : index
      %164 = memref.load %arg8[%c93] : memref<144xf32, #tpu.memory_space<smem>>
      %165 = vector.broadcast %164 : f32 to vector<16x16xf32>
      %166 = arith.mulf %165, %108 : vector<16x16xf32>
      %167 = arith.addf %135, %166 : vector<16x16xf32>
      %c111 = arith.constant 111 : index
      %168 = memref.load %arg8[%c111] : memref<144xf32, #tpu.memory_space<smem>>
      %169 = vector.broadcast %168 : f32 to vector<16x16xf32>
      %170 = arith.mulf %169, %108 : vector<16x16xf32>
      %171 = arith.addf %139, %170 : vector<16x16xf32>
      %c129 = arith.constant 129 : index
      %172 = memref.load %arg8[%c129] : memref<144xf32, #tpu.memory_space<smem>>
      %173 = vector.broadcast %172 : f32 to vector<16x16xf32>
      %174 = arith.mulf %173, %108 : vector<16x16xf32>
      %175 = arith.addf %143, %174 : vector<16x16xf32>
      %cst_30 = arith.constant 0.000000e+00 : f32
      %176 = vector.broadcast %cst_30 : f32 to vector<1x16xf32>
      %177 = vector.extract_strided_slice %108 {offsets = [1, 0], sizes = [15, 16], strides = [1, 1]} : vector<16x16xf32> to vector<15x16xf32>
      %178 = tpu.concatenate %177, %176 in 0 : vector<15x16xf32>, vector<1x16xf32> -> vector<16x16xf32>
      %c6_31 = arith.constant 6 : index
      %179 = memref.load %arg8[%c6_31] : memref<144xf32, #tpu.memory_space<smem>>
      %180 = vector.broadcast %179 : f32 to vector<16x16xf32>
      %181 = arith.mulf %180, %178 : vector<16x16xf32>
      %182 = arith.addf %147, %181 : vector<16x16xf32>
      %c24 = arith.constant 24 : index
      %183 = memref.load %arg8[%c24] : memref<144xf32, #tpu.memory_space<smem>>
      %184 = vector.broadcast %183 : f32 to vector<16x16xf32>
      %185 = arith.mulf %184, %178 : vector<16x16xf32>
      %186 = arith.addf %151, %185 : vector<16x16xf32>
      %c42 = arith.constant 42 : index
      %187 = memref.load %arg8[%c42] : memref<144xf32, #tpu.memory_space<smem>>
      %188 = vector.broadcast %187 : f32 to vector<16x16xf32>
      %189 = arith.mulf %188, %178 : vector<16x16xf32>
      %190 = arith.addf %155, %189 : vector<16x16xf32>
      %c60 = arith.constant 60 : index
      %191 = memref.load %arg8[%c60] : memref<144xf32, #tpu.memory_space<smem>>
      %192 = vector.broadcast %191 : f32 to vector<16x16xf32>
      %193 = arith.mulf %192, %178 : vector<16x16xf32>
      %194 = arith.addf %159, %193 : vector<16x16xf32>
      %c78 = arith.constant 78 : index
      %195 = memref.load %arg8[%c78] : memref<144xf32, #tpu.memory_space<smem>>
      %196 = vector.broadcast %195 : f32 to vector<16x16xf32>
      %197 = arith.mulf %196, %178 : vector<16x16xf32>
      %198 = arith.addf %163, %197 : vector<16x16xf32>
      %c96 = arith.constant 96 : index
      %199 = memref.load %arg8[%c96] : memref<144xf32, #tpu.memory_space<smem>>
      %200 = vector.broadcast %199 : f32 to vector<16x16xf32>
      %201 = arith.mulf %200, %178 : vector<16x16xf32>
      %202 = arith.addf %167, %201 : vector<16x16xf32>
      %c114 = arith.constant 114 : index
      %203 = memref.load %arg8[%c114] : memref<144xf32, #tpu.memory_space<smem>>
      %204 = vector.broadcast %203 : f32 to vector<16x16xf32>
      %205 = arith.mulf %204, %178 : vector<16x16xf32>
      %206 = arith.addf %171, %205 : vector<16x16xf32>
      %c132 = arith.constant 132 : index
      %207 = memref.load %arg8[%c132] : memref<144xf32, #tpu.memory_space<smem>>
      %208 = vector.broadcast %207 : f32 to vector<16x16xf32>
      %209 = arith.mulf %208, %178 : vector<16x16xf32>
      %210 = arith.addf %175, %209 : vector<16x16xf32>
      %cst_32 = arith.constant 0.000000e+00 : f32
      %211 = vector.broadcast %cst_32 : f32 to vector<1x16xf32>
      %212 = vector.extract_strided_slice %71 {offsets = [0, 0], sizes = [15, 16], strides = [1, 1]} : vector<16x16xf32> to vector<15x16xf32>
      %213 = tpu.concatenate %211, %212 in 0 : vector<1x16xf32>, vector<15x16xf32> -> vector<16x16xf32>
      %c1_33 = arith.constant 1 : index
      %214 = memref.load %arg8[%c1_33] : memref<144xf32, #tpu.memory_space<smem>>
      %215 = vector.broadcast %214 : f32 to vector<16x16xf32>
      %216 = arith.mulf %215, %213 : vector<16x16xf32>
      %217 = arith.addf %182, %216 : vector<16x16xf32>
      %c19 = arith.constant 19 : index
      %218 = memref.load %arg8[%c19] : memref<144xf32, #tpu.memory_space<smem>>
      %219 = vector.broadcast %218 : f32 to vector<16x16xf32>
      %220 = arith.mulf %219, %213 : vector<16x16xf32>
      %221 = arith.addf %186, %220 : vector<16x16xf32>
      %c37 = arith.constant 37 : index
      %222 = memref.load %arg8[%c37] : memref<144xf32, #tpu.memory_space<smem>>
      %223 = vector.broadcast %222 : f32 to vector<16x16xf32>
      %224 = arith.mulf %223, %213 : vector<16x16xf32>
      %225 = arith.addf %190, %224 : vector<16x16xf32>
      %c55 = arith.constant 55 : index
      %226 = memref.load %arg8[%c55] : memref<144xf32, #tpu.memory_space<smem>>
      %227 = vector.broadcast %226 : f32 to vector<16x16xf32>
      %228 = arith.mulf %227, %213 : vector<16x16xf32>
      %229 = arith.addf %194, %228 : vector<16x16xf32>
      %c73 = arith.constant 73 : index
      %230 = memref.load %arg8[%c73] : memref<144xf32, #tpu.memory_space<smem>>
      %231 = vector.broadcast %230 : f32 to vector<16x16xf32>
      %232 = arith.mulf %231, %213 : vector<16x16xf32>
      %233 = arith.addf %198, %232 : vector<16x16xf32>
      %c91 = arith.constant 91 : index
      %234 = memref.load %arg8[%c91] : memref<144xf32, #tpu.memory_space<smem>>
      %235 = vector.broadcast %234 : f32 to vector<16x16xf32>
      %236 = arith.mulf %235, %213 : vector<16x16xf32>
      %237 = arith.addf %202, %236 : vector<16x16xf32>
      %c109 = arith.constant 109 : index
      %238 = memref.load %arg8[%c109] : memref<144xf32, #tpu.memory_space<smem>>
      %239 = vector.broadcast %238 : f32 to vector<16x16xf32>
      %240 = arith.mulf %239, %213 : vector<16x16xf32>
      %241 = arith.addf %206, %240 : vector<16x16xf32>
      %c127 = arith.constant 127 : index
      %242 = memref.load %arg8[%c127] : memref<144xf32, #tpu.memory_space<smem>>
      %243 = vector.broadcast %242 : f32 to vector<16x16xf32>
      %244 = arith.mulf %243, %213 : vector<16x16xf32>
      %245 = arith.addf %210, %244 : vector<16x16xf32>
      %c4_34 = arith.constant 4 : index
      %246 = memref.load %arg8[%c4_34] : memref<144xf32, #tpu.memory_space<smem>>
      %247 = vector.broadcast %246 : f32 to vector<16x16xf32>
      %248 = arith.mulf %247, %71 : vector<16x16xf32>
      %249 = arith.addf %217, %248 : vector<16x16xf32>
      %c22 = arith.constant 22 : index
      %250 = memref.load %arg8[%c22] : memref<144xf32, #tpu.memory_space<smem>>
      %251 = vector.broadcast %250 : f32 to vector<16x16xf32>
      %252 = arith.mulf %251, %71 : vector<16x16xf32>
      %253 = arith.addf %221, %252 : vector<16x16xf32>
      %c40 = arith.constant 40 : index
      %254 = memref.load %arg8[%c40] : memref<144xf32, #tpu.memory_space<smem>>
      %255 = vector.broadcast %254 : f32 to vector<16x16xf32>
      %256 = arith.mulf %255, %71 : vector<16x16xf32>
      %257 = arith.addf %225, %256 : vector<16x16xf32>
      %c58 = arith.constant 58 : index
      %258 = memref.load %arg8[%c58] : memref<144xf32, #tpu.memory_space<smem>>
      %259 = vector.broadcast %258 : f32 to vector<16x16xf32>
      %260 = arith.mulf %259, %71 : vector<16x16xf32>
      %261 = arith.addf %229, %260 : vector<16x16xf32>
      %c76 = arith.constant 76 : index
      %262 = memref.load %arg8[%c76] : memref<144xf32, #tpu.memory_space<smem>>
      %263 = vector.broadcast %262 : f32 to vector<16x16xf32>
      %264 = arith.mulf %263, %71 : vector<16x16xf32>
      %265 = arith.addf %233, %264 : vector<16x16xf32>
      %c94 = arith.constant 94 : index
      %266 = memref.load %arg8[%c94] : memref<144xf32, #tpu.memory_space<smem>>
      %267 = vector.broadcast %266 : f32 to vector<16x16xf32>
      %268 = arith.mulf %267, %71 : vector<16x16xf32>
      %269 = arith.addf %237, %268 : vector<16x16xf32>
      %c112 = arith.constant 112 : index
      %270 = memref.load %arg8[%c112] : memref<144xf32, #tpu.memory_space<smem>>
      %271 = vector.broadcast %270 : f32 to vector<16x16xf32>
      %272 = arith.mulf %271, %71 : vector<16x16xf32>
      %273 = arith.addf %241, %272 : vector<16x16xf32>
      %c130 = arith.constant 130 : index
      %274 = memref.load %arg8[%c130] : memref<144xf32, #tpu.memory_space<smem>>
      %275 = vector.broadcast %274 : f32 to vector<16x16xf32>
      %276 = arith.mulf %275, %71 : vector<16x16xf32>
      %277 = arith.addf %245, %276 : vector<16x16xf32>
      %cst_35 = arith.constant 0.000000e+00 : f32
      %278 = vector.broadcast %cst_35 : f32 to vector<1x16xf32>
      %279 = vector.extract_strided_slice %71 {offsets = [1, 0], sizes = [15, 16], strides = [1, 1]} : vector<16x16xf32> to vector<15x16xf32>
      %280 = tpu.concatenate %279, %278 in 0 : vector<15x16xf32>, vector<1x16xf32> -> vector<16x16xf32>
      %c7_36 = arith.constant 7 : index
      %281 = memref.load %arg8[%c7_36] : memref<144xf32, #tpu.memory_space<smem>>
      %282 = vector.broadcast %281 : f32 to vector<16x16xf32>
      %283 = arith.mulf %282, %280 : vector<16x16xf32>
      %284 = arith.addf %249, %283 : vector<16x16xf32>
      %c25 = arith.constant 25 : index
      %285 = memref.load %arg8[%c25] : memref<144xf32, #tpu.memory_space<smem>>
      %286 = vector.broadcast %285 : f32 to vector<16x16xf32>
      %287 = arith.mulf %286, %280 : vector<16x16xf32>
      %288 = arith.addf %253, %287 : vector<16x16xf32>
      %c43 = arith.constant 43 : index
      %289 = memref.load %arg8[%c43] : memref<144xf32, #tpu.memory_space<smem>>
      %290 = vector.broadcast %289 : f32 to vector<16x16xf32>
      %291 = arith.mulf %290, %280 : vector<16x16xf32>
      %292 = arith.addf %257, %291 : vector<16x16xf32>
      %c61 = arith.constant 61 : index
      %293 = memref.load %arg8[%c61] : memref<144xf32, #tpu.memory_space<smem>>
      %294 = vector.broadcast %293 : f32 to vector<16x16xf32>
      %295 = arith.mulf %294, %280 : vector<16x16xf32>
      %296 = arith.addf %261, %295 : vector<16x16xf32>
      %c79 = arith.constant 79 : index
      %297 = memref.load %arg8[%c79] : memref<144xf32, #tpu.memory_space<smem>>
      %298 = vector.broadcast %297 : f32 to vector<16x16xf32>
      %299 = arith.mulf %298, %280 : vector<16x16xf32>
      %300 = arith.addf %265, %299 : vector<16x16xf32>
      %c97 = arith.constant 97 : index
      %301 = memref.load %arg8[%c97] : memref<144xf32, #tpu.memory_space<smem>>
      %302 = vector.broadcast %301 : f32 to vector<16x16xf32>
      %303 = arith.mulf %302, %280 : vector<16x16xf32>
      %304 = arith.addf %269, %303 : vector<16x16xf32>
      %c115 = arith.constant 115 : index
      %305 = memref.load %arg8[%c115] : memref<144xf32, #tpu.memory_space<smem>>
      %306 = vector.broadcast %305 : f32 to vector<16x16xf32>
      %307 = arith.mulf %306, %280 : vector<16x16xf32>
      %308 = arith.addf %273, %307 : vector<16x16xf32>
      %c133 = arith.constant 133 : index
      %309 = memref.load %arg8[%c133] : memref<144xf32, #tpu.memory_space<smem>>
      %310 = vector.broadcast %309 : f32 to vector<16x16xf32>
      %311 = arith.mulf %310, %280 : vector<16x16xf32>
      %312 = arith.addf %277, %311 : vector<16x16xf32>
      %cst_37 = arith.constant 0.000000e+00 : f32
      %313 = vector.broadcast %cst_37 : f32 to vector<16x1xf32>
      %314 = vector.extract_strided_slice %71 {offsets = [0, 1], sizes = [16, 15], strides = [1, 1]} : vector<16x16xf32> to vector<16x15xf32>
      %315 = tpu.concatenate %314, %313 in 1 : vector<16x15xf32>, vector<16x1xf32> -> vector<16x16xf32>
      %cst_38 = arith.constant 0.000000e+00 : f32
      %316 = vector.broadcast %cst_38 : f32 to vector<1x16xf32>
      %317 = vector.extract_strided_slice %315 {offsets = [0, 0], sizes = [15, 16], strides = [1, 1]} : vector<16x16xf32> to vector<15x16xf32>
      %318 = tpu.concatenate %316, %317 in 0 : vector<1x16xf32>, vector<15x16xf32> -> vector<16x16xf32>
      %c2_39 = arith.constant 2 : index
      %319 = memref.load %arg8[%c2_39] : memref<144xf32, #tpu.memory_space<smem>>
      %320 = vector.broadcast %319 : f32 to vector<16x16xf32>
      %321 = arith.mulf %320, %318 : vector<16x16xf32>
      %322 = arith.addf %284, %321 : vector<16x16xf32>
      %c20 = arith.constant 20 : index
      %323 = memref.load %arg8[%c20] : memref<144xf32, #tpu.memory_space<smem>>
      %324 = vector.broadcast %323 : f32 to vector<16x16xf32>
      %325 = arith.mulf %324, %318 : vector<16x16xf32>
      %326 = arith.addf %288, %325 : vector<16x16xf32>
      %c38 = arith.constant 38 : index
      %327 = memref.load %arg8[%c38] : memref<144xf32, #tpu.memory_space<smem>>
      %328 = vector.broadcast %327 : f32 to vector<16x16xf32>
      %329 = arith.mulf %328, %318 : vector<16x16xf32>
      %330 = arith.addf %292, %329 : vector<16x16xf32>
      %c56 = arith.constant 56 : index
      %331 = memref.load %arg8[%c56] : memref<144xf32, #tpu.memory_space<smem>>
      %332 = vector.broadcast %331 : f32 to vector<16x16xf32>
      %333 = arith.mulf %332, %318 : vector<16x16xf32>
      %334 = arith.addf %296, %333 : vector<16x16xf32>
      %c74 = arith.constant 74 : index
      %335 = memref.load %arg8[%c74] : memref<144xf32, #tpu.memory_space<smem>>
      %336 = vector.broadcast %335 : f32 to vector<16x16xf32>
      %337 = arith.mulf %336, %318 : vector<16x16xf32>
      %338 = arith.addf %300, %337 : vector<16x16xf32>
      %c92 = arith.constant 92 : index
      %339 = memref.load %arg8[%c92] : memref<144xf32, #tpu.memory_space<smem>>
      %340 = vector.broadcast %339 : f32 to vector<16x16xf32>
      %341 = arith.mulf %340, %318 : vector<16x16xf32>
      %342 = arith.addf %304, %341 : vector<16x16xf32>
      %c110 = arith.constant 110 : index
      %343 = memref.load %arg8[%c110] : memref<144xf32, #tpu.memory_space<smem>>
      %344 = vector.broadcast %343 : f32 to vector<16x16xf32>
      %345 = arith.mulf %344, %318 : vector<16x16xf32>
      %346 = arith.addf %308, %345 : vector<16x16xf32>
      %c128 = arith.constant 128 : index
      %347 = memref.load %arg8[%c128] : memref<144xf32, #tpu.memory_space<smem>>
      %348 = vector.broadcast %347 : f32 to vector<16x16xf32>
      %349 = arith.mulf %348, %318 : vector<16x16xf32>
      %350 = arith.addf %312, %349 : vector<16x16xf32>
      %c5_40 = arith.constant 5 : index
      %351 = memref.load %arg8[%c5_40] : memref<144xf32, #tpu.memory_space<smem>>
      %352 = vector.broadcast %351 : f32 to vector<16x16xf32>
      %353 = arith.mulf %352, %315 : vector<16x16xf32>
      %354 = arith.addf %322, %353 : vector<16x16xf32>
      %c23 = arith.constant 23 : index
      %355 = memref.load %arg8[%c23] : memref<144xf32, #tpu.memory_space<smem>>
      %356 = vector.broadcast %355 : f32 to vector<16x16xf32>
      %357 = arith.mulf %356, %315 : vector<16x16xf32>
      %358 = arith.addf %326, %357 : vector<16x16xf32>
      %c41 = arith.constant 41 : index
      %359 = memref.load %arg8[%c41] : memref<144xf32, #tpu.memory_space<smem>>
      %360 = vector.broadcast %359 : f32 to vector<16x16xf32>
      %361 = arith.mulf %360, %315 : vector<16x16xf32>
      %362 = arith.addf %330, %361 : vector<16x16xf32>
      %c59 = arith.constant 59 : index
      %363 = memref.load %arg8[%c59] : memref<144xf32, #tpu.memory_space<smem>>
      %364 = vector.broadcast %363 : f32 to vector<16x16xf32>
      %365 = arith.mulf %364, %315 : vector<16x16xf32>
      %366 = arith.addf %334, %365 : vector<16x16xf32>
      %c77 = arith.constant 77 : index
      %367 = memref.load %arg8[%c77] : memref<144xf32, #tpu.memory_space<smem>>
      %368 = vector.broadcast %367 : f32 to vector<16x16xf32>
      %369 = arith.mulf %368, %315 : vector<16x16xf32>
      %370 = arith.addf %338, %369 : vector<16x16xf32>
      %c95 = arith.constant 95 : index
      %371 = memref.load %arg8[%c95] : memref<144xf32, #tpu.memory_space<smem>>
      %372 = vector.broadcast %371 : f32 to vector<16x16xf32>
      %373 = arith.mulf %372, %315 : vector<16x16xf32>
      %374 = arith.addf %342, %373 : vector<16x16xf32>
      %c113 = arith.constant 113 : index
      %375 = memref.load %arg8[%c113] : memref<144xf32, #tpu.memory_space<smem>>
      %376 = vector.broadcast %375 : f32 to vector<16x16xf32>
      %377 = arith.mulf %376, %315 : vector<16x16xf32>
      %378 = arith.addf %346, %377 : vector<16x16xf32>
      %c131 = arith.constant 131 : index
      %379 = memref.load %arg8[%c131] : memref<144xf32, #tpu.memory_space<smem>>
      %380 = vector.broadcast %379 : f32 to vector<16x16xf32>
      %381 = arith.mulf %380, %315 : vector<16x16xf32>
      %382 = arith.addf %350, %381 : vector<16x16xf32>
      %cst_41 = arith.constant 0.000000e+00 : f32
      %383 = vector.broadcast %cst_41 : f32 to vector<1x16xf32>
      %384 = vector.extract_strided_slice %315 {offsets = [1, 0], sizes = [15, 16], strides = [1, 1]} : vector<16x16xf32> to vector<15x16xf32>
      %385 = tpu.concatenate %384, %383 in 0 : vector<15x16xf32>, vector<1x16xf32> -> vector<16x16xf32>
      %c8 = arith.constant 8 : index
      %386 = memref.load %arg8[%c8] : memref<144xf32, #tpu.memory_space<smem>>
      %387 = vector.broadcast %386 : f32 to vector<16x16xf32>
      %388 = arith.mulf %387, %385 : vector<16x16xf32>
      %389 = arith.addf %354, %388 : vector<16x16xf32>
      %c26 = arith.constant 26 : index
      %390 = memref.load %arg8[%c26] : memref<144xf32, #tpu.memory_space<smem>>
      %391 = vector.broadcast %390 : f32 to vector<16x16xf32>
      %392 = arith.mulf %391, %385 : vector<16x16xf32>
      %393 = arith.addf %358, %392 : vector<16x16xf32>
      %c44 = arith.constant 44 : index
      %394 = memref.load %arg8[%c44] : memref<144xf32, #tpu.memory_space<smem>>
      %395 = vector.broadcast %394 : f32 to vector<16x16xf32>
      %396 = arith.mulf %395, %385 : vector<16x16xf32>
      %397 = arith.addf %362, %396 : vector<16x16xf32>
      %c62 = arith.constant 62 : index
      %398 = memref.load %arg8[%c62] : memref<144xf32, #tpu.memory_space<smem>>
      %399 = vector.broadcast %398 : f32 to vector<16x16xf32>
      %400 = arith.mulf %399, %385 : vector<16x16xf32>
      %401 = arith.addf %366, %400 : vector<16x16xf32>
      %c80 = arith.constant 80 : index
      %402 = memref.load %arg8[%c80] : memref<144xf32, #tpu.memory_space<smem>>
      %403 = vector.broadcast %402 : f32 to vector<16x16xf32>
      %404 = arith.mulf %403, %385 : vector<16x16xf32>
      %405 = arith.addf %370, %404 : vector<16x16xf32>
      %c98 = arith.constant 98 : index
      %406 = memref.load %arg8[%c98] : memref<144xf32, #tpu.memory_space<smem>>
      %407 = vector.broadcast %406 : f32 to vector<16x16xf32>
      %408 = arith.mulf %407, %385 : vector<16x16xf32>
      %409 = arith.addf %374, %408 : vector<16x16xf32>
      %c116 = arith.constant 116 : index
      %410 = memref.load %arg8[%c116] : memref<144xf32, #tpu.memory_space<smem>>
      %411 = vector.broadcast %410 : f32 to vector<16x16xf32>
      %412 = arith.mulf %411, %385 : vector<16x16xf32>
      %413 = arith.addf %378, %412 : vector<16x16xf32>
      %c134 = arith.constant 134 : index
      %414 = memref.load %arg8[%c134] : memref<144xf32, #tpu.memory_space<smem>>
      %415 = vector.broadcast %414 : f32 to vector<16x16xf32>
      %416 = arith.mulf %415, %385 : vector<16x16xf32>
      %417 = arith.addf %382, %416 : vector<16x16xf32>
      %cst_42 = arith.constant 0.000000e+00 : f32
      %418 = vector.broadcast %cst_42 : f32 to vector<16x1xf32>
      %419 = vector.extract_strided_slice %73 {offsets = [0, 0], sizes = [16, 15], strides = [1, 1]} : vector<16x16xf32> to vector<16x15xf32>
      %420 = tpu.concatenate %418, %419 in 1 : vector<16x1xf32>, vector<16x15xf32> -> vector<16x16xf32>
      %cst_43 = arith.constant 0.000000e+00 : f32
      %421 = vector.broadcast %cst_43 : f32 to vector<1x16xf32>
      %422 = vector.extract_strided_slice %420 {offsets = [0, 0], sizes = [15, 16], strides = [1, 1]} : vector<16x16xf32> to vector<15x16xf32>
      %423 = tpu.concatenate %421, %422 in 0 : vector<1x16xf32>, vector<15x16xf32> -> vector<16x16xf32>
      %c9 = arith.constant 9 : index
      %424 = memref.load %arg8[%c9] : memref<144xf32, #tpu.memory_space<smem>>
      %425 = vector.broadcast %424 : f32 to vector<16x16xf32>
      %426 = arith.mulf %425, %423 : vector<16x16xf32>
      %427 = arith.addf %389, %426 : vector<16x16xf32>
      %c27 = arith.constant 27 : index
      %428 = memref.load %arg8[%c27] : memref<144xf32, #tpu.memory_space<smem>>
      %429 = vector.broadcast %428 : f32 to vector<16x16xf32>
      %430 = arith.mulf %429, %423 : vector<16x16xf32>
      %431 = arith.addf %393, %430 : vector<16x16xf32>
      %c45 = arith.constant 45 : index
      %432 = memref.load %arg8[%c45] : memref<144xf32, #tpu.memory_space<smem>>
      %433 = vector.broadcast %432 : f32 to vector<16x16xf32>
      %434 = arith.mulf %433, %423 : vector<16x16xf32>
      %435 = arith.addf %397, %434 : vector<16x16xf32>
      %c63 = arith.constant 63 : index
      %436 = memref.load %arg8[%c63] : memref<144xf32, #tpu.memory_space<smem>>
      %437 = vector.broadcast %436 : f32 to vector<16x16xf32>
      %438 = arith.mulf %437, %423 : vector<16x16xf32>
      %439 = arith.addf %401, %438 : vector<16x16xf32>
      %c81 = arith.constant 81 : index
      %440 = memref.load %arg8[%c81] : memref<144xf32, #tpu.memory_space<smem>>
      %441 = vector.broadcast %440 : f32 to vector<16x16xf32>
      %442 = arith.mulf %441, %423 : vector<16x16xf32>
      %443 = arith.addf %405, %442 : vector<16x16xf32>
      %c99 = arith.constant 99 : index
      %444 = memref.load %arg8[%c99] : memref<144xf32, #tpu.memory_space<smem>>
      %445 = vector.broadcast %444 : f32 to vector<16x16xf32>
      %446 = arith.mulf %445, %423 : vector<16x16xf32>
      %447 = arith.addf %409, %446 : vector<16x16xf32>
      %c117 = arith.constant 117 : index
      %448 = memref.load %arg8[%c117] : memref<144xf32, #tpu.memory_space<smem>>
      %449 = vector.broadcast %448 : f32 to vector<16x16xf32>
      %450 = arith.mulf %449, %423 : vector<16x16xf32>
      %451 = arith.addf %413, %450 : vector<16x16xf32>
      %c135 = arith.constant 135 : index
      %452 = memref.load %arg8[%c135] : memref<144xf32, #tpu.memory_space<smem>>
      %453 = vector.broadcast %452 : f32 to vector<16x16xf32>
      %454 = arith.mulf %453, %423 : vector<16x16xf32>
      %455 = arith.addf %417, %454 : vector<16x16xf32>
      %c12 = arith.constant 12 : index
      %456 = memref.load %arg8[%c12] : memref<144xf32, #tpu.memory_space<smem>>
      %457 = vector.broadcast %456 : f32 to vector<16x16xf32>
      %458 = arith.mulf %457, %420 : vector<16x16xf32>
      %459 = arith.addf %427, %458 : vector<16x16xf32>
      %c30 = arith.constant 30 : index
      %460 = memref.load %arg8[%c30] : memref<144xf32, #tpu.memory_space<smem>>
      %461 = vector.broadcast %460 : f32 to vector<16x16xf32>
      %462 = arith.mulf %461, %420 : vector<16x16xf32>
      %463 = arith.addf %431, %462 : vector<16x16xf32>
      %c48 = arith.constant 48 : index
      %464 = memref.load %arg8[%c48] : memref<144xf32, #tpu.memory_space<smem>>
      %465 = vector.broadcast %464 : f32 to vector<16x16xf32>
      %466 = arith.mulf %465, %420 : vector<16x16xf32>
      %467 = arith.addf %435, %466 : vector<16x16xf32>
      %c66 = arith.constant 66 : index
      %468 = memref.load %arg8[%c66] : memref<144xf32, #tpu.memory_space<smem>>
      %469 = vector.broadcast %468 : f32 to vector<16x16xf32>
      %470 = arith.mulf %469, %420 : vector<16x16xf32>
      %471 = arith.addf %439, %470 : vector<16x16xf32>
      %c84 = arith.constant 84 : index
      %472 = memref.load %arg8[%c84] : memref<144xf32, #tpu.memory_space<smem>>
      %473 = vector.broadcast %472 : f32 to vector<16x16xf32>
      %474 = arith.mulf %473, %420 : vector<16x16xf32>
      %475 = arith.addf %443, %474 : vector<16x16xf32>
      %c102 = arith.constant 102 : index
      %476 = memref.load %arg8[%c102] : memref<144xf32, #tpu.memory_space<smem>>
      %477 = vector.broadcast %476 : f32 to vector<16x16xf32>
      %478 = arith.mulf %477, %420 : vector<16x16xf32>
      %479 = arith.addf %447, %478 : vector<16x16xf32>
      %c120 = arith.constant 120 : index
      %480 = memref.load %arg8[%c120] : memref<144xf32, #tpu.memory_space<smem>>
      %481 = vector.broadcast %480 : f32 to vector<16x16xf32>
      %482 = arith.mulf %481, %420 : vector<16x16xf32>
      %483 = arith.addf %451, %482 : vector<16x16xf32>
      %c138 = arith.constant 138 : index
      %484 = memref.load %arg8[%c138] : memref<144xf32, #tpu.memory_space<smem>>
      %485 = vector.broadcast %484 : f32 to vector<16x16xf32>
      %486 = arith.mulf %485, %420 : vector<16x16xf32>
      %487 = arith.addf %455, %486 : vector<16x16xf32>
      %cst_44 = arith.constant 0.000000e+00 : f32
      %488 = vector.broadcast %cst_44 : f32 to vector<1x16xf32>
      %489 = vector.extract_strided_slice %420 {offsets = [1, 0], sizes = [15, 16], strides = [1, 1]} : vector<16x16xf32> to vector<15x16xf32>
      %490 = tpu.concatenate %489, %488 in 0 : vector<15x16xf32>, vector<1x16xf32> -> vector<16x16xf32>
      %c15 = arith.constant 15 : index
      %491 = memref.load %arg8[%c15] : memref<144xf32, #tpu.memory_space<smem>>
      %492 = vector.broadcast %491 : f32 to vector<16x16xf32>
      %493 = arith.mulf %492, %490 : vector<16x16xf32>
      %494 = arith.addf %459, %493 : vector<16x16xf32>
      %c33 = arith.constant 33 : index
      %495 = memref.load %arg8[%c33] : memref<144xf32, #tpu.memory_space<smem>>
      %496 = vector.broadcast %495 : f32 to vector<16x16xf32>
      %497 = arith.mulf %496, %490 : vector<16x16xf32>
      %498 = arith.addf %463, %497 : vector<16x16xf32>
      %c51 = arith.constant 51 : index
      %499 = memref.load %arg8[%c51] : memref<144xf32, #tpu.memory_space<smem>>
      %500 = vector.broadcast %499 : f32 to vector<16x16xf32>
      %501 = arith.mulf %500, %490 : vector<16x16xf32>
      %502 = arith.addf %467, %501 : vector<16x16xf32>
      %c69 = arith.constant 69 : index
      %503 = memref.load %arg8[%c69] : memref<144xf32, #tpu.memory_space<smem>>
      %504 = vector.broadcast %503 : f32 to vector<16x16xf32>
      %505 = arith.mulf %504, %490 : vector<16x16xf32>
      %506 = arith.addf %471, %505 : vector<16x16xf32>
      %c87 = arith.constant 87 : index
      %507 = memref.load %arg8[%c87] : memref<144xf32, #tpu.memory_space<smem>>
      %508 = vector.broadcast %507 : f32 to vector<16x16xf32>
      %509 = arith.mulf %508, %490 : vector<16x16xf32>
      %510 = arith.addf %475, %509 : vector<16x16xf32>
      %c105 = arith.constant 105 : index
      %511 = memref.load %arg8[%c105] : memref<144xf32, #tpu.memory_space<smem>>
      %512 = vector.broadcast %511 : f32 to vector<16x16xf32>
      %513 = arith.mulf %512, %490 : vector<16x16xf32>
      %514 = arith.addf %479, %513 : vector<16x16xf32>
      %c123 = arith.constant 123 : index
      %515 = memref.load %arg8[%c123] : memref<144xf32, #tpu.memory_space<smem>>
      %516 = vector.broadcast %515 : f32 to vector<16x16xf32>
      %517 = arith.mulf %516, %490 : vector<16x16xf32>
      %518 = arith.addf %483, %517 : vector<16x16xf32>
      %c141 = arith.constant 141 : index
      %519 = memref.load %arg8[%c141] : memref<144xf32, #tpu.memory_space<smem>>
      %520 = vector.broadcast %519 : f32 to vector<16x16xf32>
      %521 = arith.mulf %520, %490 : vector<16x16xf32>
      %522 = arith.addf %487, %521 : vector<16x16xf32>
      %cst_45 = arith.constant 0.000000e+00 : f32
      %523 = vector.broadcast %cst_45 : f32 to vector<1x16xf32>
      %524 = vector.extract_strided_slice %73 {offsets = [0, 0], sizes = [15, 16], strides = [1, 1]} : vector<16x16xf32> to vector<15x16xf32>
      %525 = tpu.concatenate %523, %524 in 0 : vector<1x16xf32>, vector<15x16xf32> -> vector<16x16xf32>
      %c10 = arith.constant 10 : index
      %526 = memref.load %arg8[%c10] : memref<144xf32, #tpu.memory_space<smem>>
      %527 = vector.broadcast %526 : f32 to vector<16x16xf32>
      %528 = arith.mulf %527, %525 : vector<16x16xf32>
      %529 = arith.addf %494, %528 : vector<16x16xf32>
      %c28 = arith.constant 28 : index
      %530 = memref.load %arg8[%c28] : memref<144xf32, #tpu.memory_space<smem>>
      %531 = vector.broadcast %530 : f32 to vector<16x16xf32>
      %532 = arith.mulf %531, %525 : vector<16x16xf32>
      %533 = arith.addf %498, %532 : vector<16x16xf32>
      %c46 = arith.constant 46 : index
      %534 = memref.load %arg8[%c46] : memref<144xf32, #tpu.memory_space<smem>>
      %535 = vector.broadcast %534 : f32 to vector<16x16xf32>
      %536 = arith.mulf %535, %525 : vector<16x16xf32>
      %537 = arith.addf %502, %536 : vector<16x16xf32>
      %c64 = arith.constant 64 : index
      %538 = memref.load %arg8[%c64] : memref<144xf32, #tpu.memory_space<smem>>
      %539 = vector.broadcast %538 : f32 to vector<16x16xf32>
      %540 = arith.mulf %539, %525 : vector<16x16xf32>
      %541 = arith.addf %506, %540 : vector<16x16xf32>
      %c82 = arith.constant 82 : index
      %542 = memref.load %arg8[%c82] : memref<144xf32, #tpu.memory_space<smem>>
      %543 = vector.broadcast %542 : f32 to vector<16x16xf32>
      %544 = arith.mulf %543, %525 : vector<16x16xf32>
      %545 = arith.addf %510, %544 : vector<16x16xf32>
      %c100 = arith.constant 100 : index
      %546 = memref.load %arg8[%c100] : memref<144xf32, #tpu.memory_space<smem>>
      %547 = vector.broadcast %546 : f32 to vector<16x16xf32>
      %548 = arith.mulf %547, %525 : vector<16x16xf32>
      %549 = arith.addf %514, %548 : vector<16x16xf32>
      %c118 = arith.constant 118 : index
      %550 = memref.load %arg8[%c118] : memref<144xf32, #tpu.memory_space<smem>>
      %551 = vector.broadcast %550 : f32 to vector<16x16xf32>
      %552 = arith.mulf %551, %525 : vector<16x16xf32>
      %553 = arith.addf %518, %552 : vector<16x16xf32>
      %c136 = arith.constant 136 : index
      %554 = memref.load %arg8[%c136] : memref<144xf32, #tpu.memory_space<smem>>
      %555 = vector.broadcast %554 : f32 to vector<16x16xf32>
      %556 = arith.mulf %555, %525 : vector<16x16xf32>
      %557 = arith.addf %522, %556 : vector<16x16xf32>
      %c13 = arith.constant 13 : index
      %558 = memref.load %arg8[%c13] : memref<144xf32, #tpu.memory_space<smem>>
      %559 = vector.broadcast %558 : f32 to vector<16x16xf32>
      %560 = arith.mulf %559, %73 : vector<16x16xf32>
      %561 = arith.addf %529, %560 : vector<16x16xf32>
      %c31 = arith.constant 31 : index
      %562 = memref.load %arg8[%c31] : memref<144xf32, #tpu.memory_space<smem>>
      %563 = vector.broadcast %562 : f32 to vector<16x16xf32>
      %564 = arith.mulf %563, %73 : vector<16x16xf32>
      %565 = arith.addf %533, %564 : vector<16x16xf32>
      %c49 = arith.constant 49 : index
      %566 = memref.load %arg8[%c49] : memref<144xf32, #tpu.memory_space<smem>>
      %567 = vector.broadcast %566 : f32 to vector<16x16xf32>
      %568 = arith.mulf %567, %73 : vector<16x16xf32>
      %569 = arith.addf %537, %568 : vector<16x16xf32>
      %c67 = arith.constant 67 : index
      %570 = memref.load %arg8[%c67] : memref<144xf32, #tpu.memory_space<smem>>
      %571 = vector.broadcast %570 : f32 to vector<16x16xf32>
      %572 = arith.mulf %571, %73 : vector<16x16xf32>
      %573 = arith.addf %541, %572 : vector<16x16xf32>
      %c85 = arith.constant 85 : index
      %574 = memref.load %arg8[%c85] : memref<144xf32, #tpu.memory_space<smem>>
      %575 = vector.broadcast %574 : f32 to vector<16x16xf32>
      %576 = arith.mulf %575, %73 : vector<16x16xf32>
      %577 = arith.addf %545, %576 : vector<16x16xf32>
      %c103 = arith.constant 103 : index
      %578 = memref.load %arg8[%c103] : memref<144xf32, #tpu.memory_space<smem>>
      %579 = vector.broadcast %578 : f32 to vector<16x16xf32>
      %580 = arith.mulf %579, %73 : vector<16x16xf32>
      %581 = arith.addf %549, %580 : vector<16x16xf32>
      %c121 = arith.constant 121 : index
      %582 = memref.load %arg8[%c121] : memref<144xf32, #tpu.memory_space<smem>>
      %583 = vector.broadcast %582 : f32 to vector<16x16xf32>
      %584 = arith.mulf %583, %73 : vector<16x16xf32>
      %585 = arith.addf %553, %584 : vector<16x16xf32>
      %c139 = arith.constant 139 : index
      %586 = memref.load %arg8[%c139] : memref<144xf32, #tpu.memory_space<smem>>
      %587 = vector.broadcast %586 : f32 to vector<16x16xf32>
      %588 = arith.mulf %587, %73 : vector<16x16xf32>
      %589 = arith.addf %557, %588 : vector<16x16xf32>
      %cst_46 = arith.constant 0.000000e+00 : f32
      %590 = vector.broadcast %cst_46 : f32 to vector<1x16xf32>
      %591 = vector.extract_strided_slice %73 {offsets = [1, 0], sizes = [15, 16], strides = [1, 1]} : vector<16x16xf32> to vector<15x16xf32>
      %592 = tpu.concatenate %591, %590 in 0 : vector<15x16xf32>, vector<1x16xf32> -> vector<16x16xf32>
      %c16 = arith.constant 16 : index
      %593 = memref.load %arg8[%c16] : memref<144xf32, #tpu.memory_space<smem>>
      %594 = vector.broadcast %593 : f32 to vector<16x16xf32>
      %595 = arith.mulf %594, %592 : vector<16x16xf32>
      %596 = arith.addf %561, %595 : vector<16x16xf32>
      %c34 = arith.constant 34 : index
      %597 = memref.load %arg8[%c34] : memref<144xf32, #tpu.memory_space<smem>>
      %598 = vector.broadcast %597 : f32 to vector<16x16xf32>
      %599 = arith.mulf %598, %592 : vector<16x16xf32>
      %600 = arith.addf %565, %599 : vector<16x16xf32>
      %c52 = arith.constant 52 : index
      %601 = memref.load %arg8[%c52] : memref<144xf32, #tpu.memory_space<smem>>
      %602 = vector.broadcast %601 : f32 to vector<16x16xf32>
      %603 = arith.mulf %602, %592 : vector<16x16xf32>
      %604 = arith.addf %569, %603 : vector<16x16xf32>
      %c70 = arith.constant 70 : index
      %605 = memref.load %arg8[%c70] : memref<144xf32, #tpu.memory_space<smem>>
      %606 = vector.broadcast %605 : f32 to vector<16x16xf32>
      %607 = arith.mulf %606, %592 : vector<16x16xf32>
      %608 = arith.addf %573, %607 : vector<16x16xf32>
      %c88 = arith.constant 88 : index
      %609 = memref.load %arg8[%c88] : memref<144xf32, #tpu.memory_space<smem>>
      %610 = vector.broadcast %609 : f32 to vector<16x16xf32>
      %611 = arith.mulf %610, %592 : vector<16x16xf32>
      %612 = arith.addf %577, %611 : vector<16x16xf32>
      %c106 = arith.constant 106 : index
      %613 = memref.load %arg8[%c106] : memref<144xf32, #tpu.memory_space<smem>>
      %614 = vector.broadcast %613 : f32 to vector<16x16xf32>
      %615 = arith.mulf %614, %592 : vector<16x16xf32>
      %616 = arith.addf %581, %615 : vector<16x16xf32>
      %c124 = arith.constant 124 : index
      %617 = memref.load %arg8[%c124] : memref<144xf32, #tpu.memory_space<smem>>
      %618 = vector.broadcast %617 : f32 to vector<16x16xf32>
      %619 = arith.mulf %618, %592 : vector<16x16xf32>
      %620 = arith.addf %585, %619 : vector<16x16xf32>
      %c142 = arith.constant 142 : index
      %621 = memref.load %arg8[%c142] : memref<144xf32, #tpu.memory_space<smem>>
      %622 = vector.broadcast %621 : f32 to vector<16x16xf32>
      %623 = arith.mulf %622, %592 : vector<16x16xf32>
      %624 = arith.addf %589, %623 : vector<16x16xf32>
      %cst_47 = arith.constant 0.000000e+00 : f32
      %625 = vector.broadcast %cst_47 : f32 to vector<16x1xf32>
      %626 = vector.extract_strided_slice %73 {offsets = [0, 1], sizes = [16, 15], strides = [1, 1]} : vector<16x16xf32> to vector<16x15xf32>
      %627 = tpu.concatenate %626, %625 in 1 : vector<16x15xf32>, vector<16x1xf32> -> vector<16x16xf32>
      %cst_48 = arith.constant 0.000000e+00 : f32
      %628 = vector.broadcast %cst_48 : f32 to vector<1x16xf32>
      %629 = vector.extract_strided_slice %627 {offsets = [0, 0], sizes = [15, 16], strides = [1, 1]} : vector<16x16xf32> to vector<15x16xf32>
      %630 = tpu.concatenate %628, %629 in 0 : vector<1x16xf32>, vector<15x16xf32> -> vector<16x16xf32>
      %c11 = arith.constant 11 : index
      %631 = memref.load %arg8[%c11] : memref<144xf32, #tpu.memory_space<smem>>
      %632 = vector.broadcast %631 : f32 to vector<16x16xf32>
      %633 = arith.mulf %632, %630 : vector<16x16xf32>
      %634 = arith.addf %596, %633 : vector<16x16xf32>
      %c29 = arith.constant 29 : index
      %635 = memref.load %arg8[%c29] : memref<144xf32, #tpu.memory_space<smem>>
      %636 = vector.broadcast %635 : f32 to vector<16x16xf32>
      %637 = arith.mulf %636, %630 : vector<16x16xf32>
      %638 = arith.addf %600, %637 : vector<16x16xf32>
      %c47 = arith.constant 47 : index
      %639 = memref.load %arg8[%c47] : memref<144xf32, #tpu.memory_space<smem>>
      %640 = vector.broadcast %639 : f32 to vector<16x16xf32>
      %641 = arith.mulf %640, %630 : vector<16x16xf32>
      %642 = arith.addf %604, %641 : vector<16x16xf32>
      %c65 = arith.constant 65 : index
      %643 = memref.load %arg8[%c65] : memref<144xf32, #tpu.memory_space<smem>>
      %644 = vector.broadcast %643 : f32 to vector<16x16xf32>
      %645 = arith.mulf %644, %630 : vector<16x16xf32>
      %646 = arith.addf %608, %645 : vector<16x16xf32>
      %c83 = arith.constant 83 : index
      %647 = memref.load %arg8[%c83] : memref<144xf32, #tpu.memory_space<smem>>
      %648 = vector.broadcast %647 : f32 to vector<16x16xf32>
      %649 = arith.mulf %648, %630 : vector<16x16xf32>
      %650 = arith.addf %612, %649 : vector<16x16xf32>
      %c101 = arith.constant 101 : index
      %651 = memref.load %arg8[%c101] : memref<144xf32, #tpu.memory_space<smem>>
      %652 = vector.broadcast %651 : f32 to vector<16x16xf32>
      %653 = arith.mulf %652, %630 : vector<16x16xf32>
      %654 = arith.addf %616, %653 : vector<16x16xf32>
      %c119 = arith.constant 119 : index
      %655 = memref.load %arg8[%c119] : memref<144xf32, #tpu.memory_space<smem>>
      %656 = vector.broadcast %655 : f32 to vector<16x16xf32>
      %657 = arith.mulf %656, %630 : vector<16x16xf32>
      %658 = arith.addf %620, %657 : vector<16x16xf32>
      %c137 = arith.constant 137 : index
      %659 = memref.load %arg8[%c137] : memref<144xf32, #tpu.memory_space<smem>>
      %660 = vector.broadcast %659 : f32 to vector<16x16xf32>
      %661 = arith.mulf %660, %630 : vector<16x16xf32>
      %662 = arith.addf %624, %661 : vector<16x16xf32>
      %c14 = arith.constant 14 : index
      %663 = memref.load %arg8[%c14] : memref<144xf32, #tpu.memory_space<smem>>
      %664 = vector.broadcast %663 : f32 to vector<16x16xf32>
      %665 = arith.mulf %664, %627 : vector<16x16xf32>
      %666 = arith.addf %634, %665 : vector<16x16xf32>
      %c32 = arith.constant 32 : index
      %667 = memref.load %arg8[%c32] : memref<144xf32, #tpu.memory_space<smem>>
      %668 = vector.broadcast %667 : f32 to vector<16x16xf32>
      %669 = arith.mulf %668, %627 : vector<16x16xf32>
      %670 = arith.addf %638, %669 : vector<16x16xf32>
      %c50 = arith.constant 50 : index
      %671 = memref.load %arg8[%c50] : memref<144xf32, #tpu.memory_space<smem>>
      %672 = vector.broadcast %671 : f32 to vector<16x16xf32>
      %673 = arith.mulf %672, %627 : vector<16x16xf32>
      %674 = arith.addf %642, %673 : vector<16x16xf32>
      %c68 = arith.constant 68 : index
      %675 = memref.load %arg8[%c68] : memref<144xf32, #tpu.memory_space<smem>>
      %676 = vector.broadcast %675 : f32 to vector<16x16xf32>
      %677 = arith.mulf %676, %627 : vector<16x16xf32>
      %678 = arith.addf %646, %677 : vector<16x16xf32>
      %c86 = arith.constant 86 : index
      %679 = memref.load %arg8[%c86] : memref<144xf32, #tpu.memory_space<smem>>
      %680 = vector.broadcast %679 : f32 to vector<16x16xf32>
      %681 = arith.mulf %680, %627 : vector<16x16xf32>
      %682 = arith.addf %650, %681 : vector<16x16xf32>
      %c104 = arith.constant 104 : index
      %683 = memref.load %arg8[%c104] : memref<144xf32, #tpu.memory_space<smem>>
      %684 = vector.broadcast %683 : f32 to vector<16x16xf32>
      %685 = arith.mulf %684, %627 : vector<16x16xf32>
      %686 = arith.addf %654, %685 : vector<16x16xf32>
      %c122 = arith.constant 122 : index
      %687 = memref.load %arg8[%c122] : memref<144xf32, #tpu.memory_space<smem>>
      %688 = vector.broadcast %687 : f32 to vector<16x16xf32>
      %689 = arith.mulf %688, %627 : vector<16x16xf32>
      %690 = arith.addf %658, %689 : vector<16x16xf32>
      %c140 = arith.constant 140 : index
      %691 = memref.load %arg8[%c140] : memref<144xf32, #tpu.memory_space<smem>>
      %692 = vector.broadcast %691 : f32 to vector<16x16xf32>
      %693 = arith.mulf %692, %627 : vector<16x16xf32>
      %694 = arith.addf %662, %693 : vector<16x16xf32>
      %cst_49 = arith.constant 0.000000e+00 : f32
      %695 = vector.broadcast %cst_49 : f32 to vector<1x16xf32>
      %696 = vector.extract_strided_slice %627 {offsets = [1, 0], sizes = [15, 16], strides = [1, 1]} : vector<16x16xf32> to vector<15x16xf32>
      %697 = tpu.concatenate %696, %695 in 0 : vector<15x16xf32>, vector<1x16xf32> -> vector<16x16xf32>
      %c17 = arith.constant 17 : index
      %698 = memref.load %arg8[%c17] : memref<144xf32, #tpu.memory_space<smem>>
      %699 = vector.broadcast %698 : f32 to vector<16x16xf32>
      %700 = arith.mulf %699, %697 : vector<16x16xf32>
      %701 = arith.addf %666, %700 : vector<16x16xf32>
      %c35 = arith.constant 35 : index
      %702 = memref.load %arg8[%c35] : memref<144xf32, #tpu.memory_space<smem>>
      %703 = vector.broadcast %702 : f32 to vector<16x16xf32>
      %704 = arith.mulf %703, %697 : vector<16x16xf32>
      %705 = arith.addf %670, %704 : vector<16x16xf32>
      %c53 = arith.constant 53 : index
      %706 = memref.load %arg8[%c53] : memref<144xf32, #tpu.memory_space<smem>>
      %707 = vector.broadcast %706 : f32 to vector<16x16xf32>
      %708 = arith.mulf %707, %697 : vector<16x16xf32>
      %709 = arith.addf %674, %708 : vector<16x16xf32>
      %c71 = arith.constant 71 : index
      %710 = memref.load %arg8[%c71] : memref<144xf32, #tpu.memory_space<smem>>
      %711 = vector.broadcast %710 : f32 to vector<16x16xf32>
      %712 = arith.mulf %711, %697 : vector<16x16xf32>
      %713 = arith.addf %678, %712 : vector<16x16xf32>
      %c89 = arith.constant 89 : index
      %714 = memref.load %arg8[%c89] : memref<144xf32, #tpu.memory_space<smem>>
      %715 = vector.broadcast %714 : f32 to vector<16x16xf32>
      %716 = arith.mulf %715, %697 : vector<16x16xf32>
      %717 = arith.addf %682, %716 : vector<16x16xf32>
      %c107 = arith.constant 107 : index
      %718 = memref.load %arg8[%c107] : memref<144xf32, #tpu.memory_space<smem>>
      %719 = vector.broadcast %718 : f32 to vector<16x16xf32>
      %720 = arith.mulf %719, %697 : vector<16x16xf32>
      %721 = arith.addf %686, %720 : vector<16x16xf32>
      %c125 = arith.constant 125 : index
      %722 = memref.load %arg8[%c125] : memref<144xf32, #tpu.memory_space<smem>>
      %723 = vector.broadcast %722 : f32 to vector<16x16xf32>
      %724 = arith.mulf %723, %697 : vector<16x16xf32>
      %725 = arith.addf %690, %724 : vector<16x16xf32>
      %c143 = arith.constant 143 : index
      %726 = memref.load %arg8[%c143] : memref<144xf32, #tpu.memory_space<smem>>
      %727 = vector.broadcast %726 : f32 to vector<16x16xf32>
      %728 = arith.mulf %727, %697 : vector<16x16xf32>
      %729 = arith.addf %694, %728 : vector<16x16xf32>
      %cst_50 = arith.constant 0.000000e+00 : f32
      %730 = vector.broadcast %cst_50 : f32 to vector<16x16xf32>
      %731 = arith.maximumf %701, %730 : vector<16x16xf32>
      %cst_51 = arith.constant 0.000000e+00 : f32
      %732 = vector.broadcast %cst_51 : f32 to vector<16x16xf32>
      %733 = arith.maximumf %705, %732 : vector<16x16xf32>
      %cst_52 = arith.constant 0.000000e+00 : f32
      %734 = vector.broadcast %cst_52 : f32 to vector<16x16xf32>
      %735 = arith.maximumf %709, %734 : vector<16x16xf32>
      %cst_53 = arith.constant 0.000000e+00 : f32
      %736 = vector.broadcast %cst_53 : f32 to vector<16x16xf32>
      %737 = arith.maximumf %713, %736 : vector<16x16xf32>
      %cst_54 = arith.constant 0.000000e+00 : f32
      %738 = vector.broadcast %cst_54 : f32 to vector<16x16xf32>
      %739 = arith.maximumf %717, %738 : vector<16x16xf32>
      %cst_55 = arith.constant 0.000000e+00 : f32
      %740 = vector.broadcast %cst_55 : f32 to vector<16x16xf32>
      %741 = arith.maximumf %721, %740 : vector<16x16xf32>
      %cst_56 = arith.constant 0.000000e+00 : f32
      %742 = vector.broadcast %cst_56 : f32 to vector<16x16xf32>
      %743 = arith.maximumf %725, %742 : vector<16x16xf32>
      %cst_57 = arith.constant 0.000000e+00 : f32
      %744 = vector.broadcast %cst_57 : f32 to vector<16x16xf32>
      %745 = arith.maximumf %729, %744 : vector<16x16xf32>
      %cst_58 = arith.constant 0.000000e+00 : f32
      %746 = vector.broadcast %cst_58 : f32 to vector<16x16xf32>
      %c0_59 = arith.constant 0 : index
      %747 = memref.load %arg11[%c0_59] : memref<2xf32, #tpu.memory_space<smem>>
      %748 = vector.broadcast %747 : f32 to vector<16x16xf32>
      %749 = arith.addf %746, %748 : vector<16x16xf32>
      %cst_60 = arith.constant 0.000000e+00 : f32
      %750 = vector.broadcast %cst_60 : f32 to vector<16x16xf32>
      %c1_61 = arith.constant 1 : index
      %751 = memref.load %arg11[%c1_61] : memref<2xf32, #tpu.memory_space<smem>>
      %752 = vector.broadcast %751 : f32 to vector<16x16xf32>
      %753 = arith.addf %750, %752 : vector<16x16xf32>
      %cst_62 = arith.constant 0.000000e+00 : f32
      %754 = vector.broadcast %cst_62 : f32 to vector<16x1xf32>
      %755 = vector.extract_strided_slice %731 {offsets = [0, 0], sizes = [16, 15], strides = [1, 1]} : vector<16x16xf32> to vector<16x15xf32>
      %756 = tpu.concatenate %754, %755 in 1 : vector<16x1xf32>, vector<16x15xf32> -> vector<16x16xf32>
      %cst_63 = arith.constant 0.000000e+00 : f32
      %757 = vector.broadcast %cst_63 : f32 to vector<1x16xf32>
      %758 = vector.extract_strided_slice %756 {offsets = [0, 0], sizes = [15, 16], strides = [1, 1]} : vector<16x16xf32> to vector<15x16xf32>
      %759 = tpu.concatenate %757, %758 in 0 : vector<1x16xf32>, vector<15x16xf32> -> vector<16x16xf32>
      %c0_64 = arith.constant 0 : index
      %760 = memref.load %arg10[%c0_64] : memref<144xf32, #tpu.memory_space<smem>>
      %761 = vector.broadcast %760 : f32 to vector<16x16xf32>
      %762 = arith.mulf %761, %759 : vector<16x16xf32>
      %763 = arith.addf %749, %762 : vector<16x16xf32>
      %c72_65 = arith.constant 72 : index
      %764 = memref.load %arg10[%c72_65] : memref<144xf32, #tpu.memory_space<smem>>
      %765 = vector.broadcast %764 : f32 to vector<16x16xf32>
      %766 = arith.mulf %765, %759 : vector<16x16xf32>
      %767 = arith.addf %753, %766 : vector<16x16xf32>
      %c3_66 = arith.constant 3 : index
      %768 = memref.load %arg10[%c3_66] : memref<144xf32, #tpu.memory_space<smem>>
      %769 = vector.broadcast %768 : f32 to vector<16x16xf32>
      %770 = arith.mulf %769, %756 : vector<16x16xf32>
      %771 = arith.addf %763, %770 : vector<16x16xf32>
      %c75_67 = arith.constant 75 : index
      %772 = memref.load %arg10[%c75_67] : memref<144xf32, #tpu.memory_space<smem>>
      %773 = vector.broadcast %772 : f32 to vector<16x16xf32>
      %774 = arith.mulf %773, %756 : vector<16x16xf32>
      %775 = arith.addf %767, %774 : vector<16x16xf32>
      %cst_68 = arith.constant 0.000000e+00 : f32
      %776 = vector.broadcast %cst_68 : f32 to vector<1x16xf32>
      %777 = vector.extract_strided_slice %756 {offsets = [1, 0], sizes = [15, 16], strides = [1, 1]} : vector<16x16xf32> to vector<15x16xf32>
      %778 = tpu.concatenate %777, %776 in 0 : vector<15x16xf32>, vector<1x16xf32> -> vector<16x16xf32>
      %c6_69 = arith.constant 6 : index
      %779 = memref.load %arg10[%c6_69] : memref<144xf32, #tpu.memory_space<smem>>
      %780 = vector.broadcast %779 : f32 to vector<16x16xf32>
      %781 = arith.mulf %780, %778 : vector<16x16xf32>
      %782 = arith.addf %771, %781 : vector<16x16xf32>
      %c78_70 = arith.constant 78 : index
      %783 = memref.load %arg10[%c78_70] : memref<144xf32, #tpu.memory_space<smem>>
      %784 = vector.broadcast %783 : f32 to vector<16x16xf32>
      %785 = arith.mulf %784, %778 : vector<16x16xf32>
      %786 = arith.addf %775, %785 : vector<16x16xf32>
      %cst_71 = arith.constant 0.000000e+00 : f32
      %787 = vector.broadcast %cst_71 : f32 to vector<1x16xf32>
      %788 = vector.extract_strided_slice %731 {offsets = [0, 0], sizes = [15, 16], strides = [1, 1]} : vector<16x16xf32> to vector<15x16xf32>
      %789 = tpu.concatenate %787, %788 in 0 : vector<1x16xf32>, vector<15x16xf32> -> vector<16x16xf32>
      %c1_72 = arith.constant 1 : index
      %790 = memref.load %arg10[%c1_72] : memref<144xf32, #tpu.memory_space<smem>>
      %791 = vector.broadcast %790 : f32 to vector<16x16xf32>
      %792 = arith.mulf %791, %789 : vector<16x16xf32>
      %793 = arith.addf %782, %792 : vector<16x16xf32>
      %c73_73 = arith.constant 73 : index
      %794 = memref.load %arg10[%c73_73] : memref<144xf32, #tpu.memory_space<smem>>
      %795 = vector.broadcast %794 : f32 to vector<16x16xf32>
      %796 = arith.mulf %795, %789 : vector<16x16xf32>
      %797 = arith.addf %786, %796 : vector<16x16xf32>
      %c4_74 = arith.constant 4 : index
      %798 = memref.load %arg10[%c4_74] : memref<144xf32, #tpu.memory_space<smem>>
      %799 = vector.broadcast %798 : f32 to vector<16x16xf32>
      %800 = arith.mulf %799, %731 : vector<16x16xf32>
      %801 = arith.addf %793, %800 : vector<16x16xf32>
      %c76_75 = arith.constant 76 : index
      %802 = memref.load %arg10[%c76_75] : memref<144xf32, #tpu.memory_space<smem>>
      %803 = vector.broadcast %802 : f32 to vector<16x16xf32>
      %804 = arith.mulf %803, %731 : vector<16x16xf32>
      %805 = arith.addf %797, %804 : vector<16x16xf32>
      %cst_76 = arith.constant 0.000000e+00 : f32
      %806 = vector.broadcast %cst_76 : f32 to vector<1x16xf32>
      %807 = vector.extract_strided_slice %731 {offsets = [1, 0], sizes = [15, 16], strides = [1, 1]} : vector<16x16xf32> to vector<15x16xf32>
      %808 = tpu.concatenate %807, %806 in 0 : vector<15x16xf32>, vector<1x16xf32> -> vector<16x16xf32>
      %c7_77 = arith.constant 7 : index
      %809 = memref.load %arg10[%c7_77] : memref<144xf32, #tpu.memory_space<smem>>
      %810 = vector.broadcast %809 : f32 to vector<16x16xf32>
      %811 = arith.mulf %810, %808 : vector<16x16xf32>
      %812 = arith.addf %801, %811 : vector<16x16xf32>
      %c79_78 = arith.constant 79 : index
      %813 = memref.load %arg10[%c79_78] : memref<144xf32, #tpu.memory_space<smem>>
      %814 = vector.broadcast %813 : f32 to vector<16x16xf32>
      %815 = arith.mulf %814, %808 : vector<16x16xf32>
      %816 = arith.addf %805, %815 : vector<16x16xf32>
      %cst_79 = arith.constant 0.000000e+00 : f32
      %817 = vector.broadcast %cst_79 : f32 to vector<16x1xf32>
      %818 = vector.extract_strided_slice %731 {offsets = [0, 1], sizes = [16, 15], strides = [1, 1]} : vector<16x16xf32> to vector<16x15xf32>
      %819 = tpu.concatenate %818, %817 in 1 : vector<16x15xf32>, vector<16x1xf32> -> vector<16x16xf32>
      %cst_80 = arith.constant 0.000000e+00 : f32
      %820 = vector.broadcast %cst_80 : f32 to vector<1x16xf32>
      %821 = vector.extract_strided_slice %819 {offsets = [0, 0], sizes = [15, 16], strides = [1, 1]} : vector<16x16xf32> to vector<15x16xf32>
      %822 = tpu.concatenate %820, %821 in 0 : vector<1x16xf32>, vector<15x16xf32> -> vector<16x16xf32>
      %c2_81 = arith.constant 2 : index
      %823 = memref.load %arg10[%c2_81] : memref<144xf32, #tpu.memory_space<smem>>
      %824 = vector.broadcast %823 : f32 to vector<16x16xf32>
      %825 = arith.mulf %824, %822 : vector<16x16xf32>
      %826 = arith.addf %812, %825 : vector<16x16xf32>
      %c74_82 = arith.constant 74 : index
      %827 = memref.load %arg10[%c74_82] : memref<144xf32, #tpu.memory_space<smem>>
      %828 = vector.broadcast %827 : f32 to vector<16x16xf32>
      %829 = arith.mulf %828, %822 : vector<16x16xf32>
      %830 = arith.addf %816, %829 : vector<16x16xf32>
      %c5_83 = arith.constant 5 : index
      %831 = memref.load %arg10[%c5_83] : memref<144xf32, #tpu.memory_space<smem>>
      %832 = vector.broadcast %831 : f32 to vector<16x16xf32>
      %833 = arith.mulf %832, %819 : vector<16x16xf32>
      %834 = arith.addf %826, %833 : vector<16x16xf32>
      %c77_84 = arith.constant 77 : index
      %835 = memref.load %arg10[%c77_84] : memref<144xf32, #tpu.memory_space<smem>>
      %836 = vector.broadcast %835 : f32 to vector<16x16xf32>
      %837 = arith.mulf %836, %819 : vector<16x16xf32>
      %838 = arith.addf %830, %837 : vector<16x16xf32>
      %cst_85 = arith.constant 0.000000e+00 : f32
      %839 = vector.broadcast %cst_85 : f32 to vector<1x16xf32>
      %840 = vector.extract_strided_slice %819 {offsets = [1, 0], sizes = [15, 16], strides = [1, 1]} : vector<16x16xf32> to vector<15x16xf32>
      %841 = tpu.concatenate %840, %839 in 0 : vector<15x16xf32>, vector<1x16xf32> -> vector<16x16xf32>
      %c8_86 = arith.constant 8 : index
      %842 = memref.load %arg10[%c8_86] : memref<144xf32, #tpu.memory_space<smem>>
      %843 = vector.broadcast %842 : f32 to vector<16x16xf32>
      %844 = arith.mulf %843, %841 : vector<16x16xf32>
      %845 = arith.addf %834, %844 : vector<16x16xf32>
      %c80_87 = arith.constant 80 : index
      %846 = memref.load %arg10[%c80_87] : memref<144xf32, #tpu.memory_space<smem>>
      %847 = vector.broadcast %846 : f32 to vector<16x16xf32>
      %848 = arith.mulf %847, %841 : vector<16x16xf32>
      %849 = arith.addf %838, %848 : vector<16x16xf32>
      %cst_88 = arith.constant 0.000000e+00 : f32
      %850 = vector.broadcast %cst_88 : f32 to vector<16x1xf32>
      %851 = vector.extract_strided_slice %733 {offsets = [0, 0], sizes = [16, 15], strides = [1, 1]} : vector<16x16xf32> to vector<16x15xf32>
      %852 = tpu.concatenate %850, %851 in 1 : vector<16x1xf32>, vector<16x15xf32> -> vector<16x16xf32>
      %cst_89 = arith.constant 0.000000e+00 : f32
      %853 = vector.broadcast %cst_89 : f32 to vector<1x16xf32>
      %854 = vector.extract_strided_slice %852 {offsets = [0, 0], sizes = [15, 16], strides = [1, 1]} : vector<16x16xf32> to vector<15x16xf32>
      %855 = tpu.concatenate %853, %854 in 0 : vector<1x16xf32>, vector<15x16xf32> -> vector<16x16xf32>
      %c9_90 = arith.constant 9 : index
      %856 = memref.load %arg10[%c9_90] : memref<144xf32, #tpu.memory_space<smem>>
      %857 = vector.broadcast %856 : f32 to vector<16x16xf32>
      %858 = arith.mulf %857, %855 : vector<16x16xf32>
      %859 = arith.addf %845, %858 : vector<16x16xf32>
      %c81_91 = arith.constant 81 : index
      %860 = memref.load %arg10[%c81_91] : memref<144xf32, #tpu.memory_space<smem>>
      %861 = vector.broadcast %860 : f32 to vector<16x16xf32>
      %862 = arith.mulf %861, %855 : vector<16x16xf32>
      %863 = arith.addf %849, %862 : vector<16x16xf32>
      %c12_92 = arith.constant 12 : index
      %864 = memref.load %arg10[%c12_92] : memref<144xf32, #tpu.memory_space<smem>>
      %865 = vector.broadcast %864 : f32 to vector<16x16xf32>
      %866 = arith.mulf %865, %852 : vector<16x16xf32>
      %867 = arith.addf %859, %866 : vector<16x16xf32>
      %c84_93 = arith.constant 84 : index
      %868 = memref.load %arg10[%c84_93] : memref<144xf32, #tpu.memory_space<smem>>
      %869 = vector.broadcast %868 : f32 to vector<16x16xf32>
      %870 = arith.mulf %869, %852 : vector<16x16xf32>
      %871 = arith.addf %863, %870 : vector<16x16xf32>
      %cst_94 = arith.constant 0.000000e+00 : f32
      %872 = vector.broadcast %cst_94 : f32 to vector<1x16xf32>
      %873 = vector.extract_strided_slice %852 {offsets = [1, 0], sizes = [15, 16], strides = [1, 1]} : vector<16x16xf32> to vector<15x16xf32>
      %874 = tpu.concatenate %873, %872 in 0 : vector<15x16xf32>, vector<1x16xf32> -> vector<16x16xf32>
      %c15_95 = arith.constant 15 : index
      %875 = memref.load %arg10[%c15_95] : memref<144xf32, #tpu.memory_space<smem>>
      %876 = vector.broadcast %875 : f32 to vector<16x16xf32>
      %877 = arith.mulf %876, %874 : vector<16x16xf32>
      %878 = arith.addf %867, %877 : vector<16x16xf32>
      %c87_96 = arith.constant 87 : index
      %879 = memref.load %arg10[%c87_96] : memref<144xf32, #tpu.memory_space<smem>>
      %880 = vector.broadcast %879 : f32 to vector<16x16xf32>
      %881 = arith.mulf %880, %874 : vector<16x16xf32>
      %882 = arith.addf %871, %881 : vector<16x16xf32>
      %cst_97 = arith.constant 0.000000e+00 : f32
      %883 = vector.broadcast %cst_97 : f32 to vector<1x16xf32>
      %884 = vector.extract_strided_slice %733 {offsets = [0, 0], sizes = [15, 16], strides = [1, 1]} : vector<16x16xf32> to vector<15x16xf32>
      %885 = tpu.concatenate %883, %884 in 0 : vector<1x16xf32>, vector<15x16xf32> -> vector<16x16xf32>
      %c10_98 = arith.constant 10 : index
      %886 = memref.load %arg10[%c10_98] : memref<144xf32, #tpu.memory_space<smem>>
      %887 = vector.broadcast %886 : f32 to vector<16x16xf32>
      %888 = arith.mulf %887, %885 : vector<16x16xf32>
      %889 = arith.addf %878, %888 : vector<16x16xf32>
      %c82_99 = arith.constant 82 : index
      %890 = memref.load %arg10[%c82_99] : memref<144xf32, #tpu.memory_space<smem>>
      %891 = vector.broadcast %890 : f32 to vector<16x16xf32>
      %892 = arith.mulf %891, %885 : vector<16x16xf32>
      %893 = arith.addf %882, %892 : vector<16x16xf32>
      %c13_100 = arith.constant 13 : index
      %894 = memref.load %arg10[%c13_100] : memref<144xf32, #tpu.memory_space<smem>>
      %895 = vector.broadcast %894 : f32 to vector<16x16xf32>
      %896 = arith.mulf %895, %733 : vector<16x16xf32>
      %897 = arith.addf %889, %896 : vector<16x16xf32>
      %c85_101 = arith.constant 85 : index
      %898 = memref.load %arg10[%c85_101] : memref<144xf32, #tpu.memory_space<smem>>
      %899 = vector.broadcast %898 : f32 to vector<16x16xf32>
      %900 = arith.mulf %899, %733 : vector<16x16xf32>
      %901 = arith.addf %893, %900 : vector<16x16xf32>
      %cst_102 = arith.constant 0.000000e+00 : f32
      %902 = vector.broadcast %cst_102 : f32 to vector<1x16xf32>
      %903 = vector.extract_strided_slice %733 {offsets = [1, 0], sizes = [15, 16], strides = [1, 1]} : vector<16x16xf32> to vector<15x16xf32>
      %904 = tpu.concatenate %903, %902 in 0 : vector<15x16xf32>, vector<1x16xf32> -> vector<16x16xf32>
      %c16_103 = arith.constant 16 : index
      %905 = memref.load %arg10[%c16_103] : memref<144xf32, #tpu.memory_space<smem>>
      %906 = vector.broadcast %905 : f32 to vector<16x16xf32>
      %907 = arith.mulf %906, %904 : vector<16x16xf32>
      %908 = arith.addf %897, %907 : vector<16x16xf32>
      %c88_104 = arith.constant 88 : index
      %909 = memref.load %arg10[%c88_104] : memref<144xf32, #tpu.memory_space<smem>>
      %910 = vector.broadcast %909 : f32 to vector<16x16xf32>
      %911 = arith.mulf %910, %904 : vector<16x16xf32>
      %912 = arith.addf %901, %911 : vector<16x16xf32>
      %cst_105 = arith.constant 0.000000e+00 : f32
      %913 = vector.broadcast %cst_105 : f32 to vector<16x1xf32>
      %914 = vector.extract_strided_slice %733 {offsets = [0, 1], sizes = [16, 15], strides = [1, 1]} : vector<16x16xf32> to vector<16x15xf32>
      %915 = tpu.concatenate %914, %913 in 1 : vector<16x15xf32>, vector<16x1xf32> -> vector<16x16xf32>
      %cst_106 = arith.constant 0.000000e+00 : f32
      %916 = vector.broadcast %cst_106 : f32 to vector<1x16xf32>
      %917 = vector.extract_strided_slice %915 {offsets = [0, 0], sizes = [15, 16], strides = [1, 1]} : vector<16x16xf32> to vector<15x16xf32>
      %918 = tpu.concatenate %916, %917 in 0 : vector<1x16xf32>, vector<15x16xf32> -> vector<16x16xf32>
      %c11_107 = arith.constant 11 : index
      %919 = memref.load %arg10[%c11_107] : memref<144xf32, #tpu.memory_space<smem>>
      %920 = vector.broadcast %919 : f32 to vector<16x16xf32>
      %921 = arith.mulf %920, %918 : vector<16x16xf32>
      %922 = arith.addf %908, %921 : vector<16x16xf32>
      %c83_108 = arith.constant 83 : index
      %923 = memref.load %arg10[%c83_108] : memref<144xf32, #tpu.memory_space<smem>>
      %924 = vector.broadcast %923 : f32 to vector<16x16xf32>
      %925 = arith.mulf %924, %918 : vector<16x16xf32>
      %926 = arith.addf %912, %925 : vector<16x16xf32>
      %c14_109 = arith.constant 14 : index
      %927 = memref.load %arg10[%c14_109] : memref<144xf32, #tpu.memory_space<smem>>
      %928 = vector.broadcast %927 : f32 to vector<16x16xf32>
      %929 = arith.mulf %928, %915 : vector<16x16xf32>
      %930 = arith.addf %922, %929 : vector<16x16xf32>
      %c86_110 = arith.constant 86 : index
      %931 = memref.load %arg10[%c86_110] : memref<144xf32, #tpu.memory_space<smem>>
      %932 = vector.broadcast %931 : f32 to vector<16x16xf32>
      %933 = arith.mulf %932, %915 : vector<16x16xf32>
      %934 = arith.addf %926, %933 : vector<16x16xf32>
      %cst_111 = arith.constant 0.000000e+00 : f32
      %935 = vector.broadcast %cst_111 : f32 to vector<1x16xf32>
      %936 = vector.extract_strided_slice %915 {offsets = [1, 0], sizes = [15, 16], strides = [1, 1]} : vector<16x16xf32> to vector<15x16xf32>
      %937 = tpu.concatenate %936, %935 in 0 : vector<15x16xf32>, vector<1x16xf32> -> vector<16x16xf32>
      %c17_112 = arith.constant 17 : index
      %938 = memref.load %arg10[%c17_112] : memref<144xf32, #tpu.memory_space<smem>>
      %939 = vector.broadcast %938 : f32 to vector<16x16xf32>
      %940 = arith.mulf %939, %937 : vector<16x16xf32>
      %941 = arith.addf %930, %940 : vector<16x16xf32>
      %c89_113 = arith.constant 89 : index
      %942 = memref.load %arg10[%c89_113] : memref<144xf32, #tpu.memory_space<smem>>
      %943 = vector.broadcast %942 : f32 to vector<16x16xf32>
      %944 = arith.mulf %943, %937 : vector<16x16xf32>
      %945 = arith.addf %934, %944 : vector<16x16xf32>
      %cst_114 = arith.constant 0.000000e+00 : f32
      %946 = vector.broadcast %cst_114 : f32 to vector<16x1xf32>
      %947 = vector.extract_strided_slice %735 {offsets = [0, 0], sizes = [16, 15], strides = [1, 1]} : vector<16x16xf32> to vector<16x15xf32>
      %948 = tpu.concatenate %946, %947 in 1 : vector<16x1xf32>, vector<16x15xf32> -> vector<16x16xf32>
      %cst_115 = arith.constant 0.000000e+00 : f32
      %949 = vector.broadcast %cst_115 : f32 to vector<1x16xf32>
      %950 = vector.extract_strided_slice %948 {offsets = [0, 0], sizes = [15, 16], strides = [1, 1]} : vector<16x16xf32> to vector<15x16xf32>
      %951 = tpu.concatenate %949, %950 in 0 : vector<1x16xf32>, vector<15x16xf32> -> vector<16x16xf32>
      %c18_116 = arith.constant 18 : index
      %952 = memref.load %arg10[%c18_116] : memref<144xf32, #tpu.memory_space<smem>>
      %953 = vector.broadcast %952 : f32 to vector<16x16xf32>
      %954 = arith.mulf %953, %951 : vector<16x16xf32>
      %955 = arith.addf %941, %954 : vector<16x16xf32>
      %c90_117 = arith.constant 90 : index
      %956 = memref.load %arg10[%c90_117] : memref<144xf32, #tpu.memory_space<smem>>
      %957 = vector.broadcast %956 : f32 to vector<16x16xf32>
      %958 = arith.mulf %957, %951 : vector<16x16xf32>
      %959 = arith.addf %945, %958 : vector<16x16xf32>
      %c21_118 = arith.constant 21 : index
      %960 = memref.load %arg10[%c21_118] : memref<144xf32, #tpu.memory_space<smem>>
      %961 = vector.broadcast %960 : f32 to vector<16x16xf32>
      %962 = arith.mulf %961, %948 : vector<16x16xf32>
      %963 = arith.addf %955, %962 : vector<16x16xf32>
      %c93_119 = arith.constant 93 : index
      %964 = memref.load %arg10[%c93_119] : memref<144xf32, #tpu.memory_space<smem>>
      %965 = vector.broadcast %964 : f32 to vector<16x16xf32>
      %966 = arith.mulf %965, %948 : vector<16x16xf32>
      %967 = arith.addf %959, %966 : vector<16x16xf32>
      %cst_120 = arith.constant 0.000000e+00 : f32
      %968 = vector.broadcast %cst_120 : f32 to vector<1x16xf32>
      %969 = vector.extract_strided_slice %948 {offsets = [1, 0], sizes = [15, 16], strides = [1, 1]} : vector<16x16xf32> to vector<15x16xf32>
      %970 = tpu.concatenate %969, %968 in 0 : vector<15x16xf32>, vector<1x16xf32> -> vector<16x16xf32>
      %c24_121 = arith.constant 24 : index
      %971 = memref.load %arg10[%c24_121] : memref<144xf32, #tpu.memory_space<smem>>
      %972 = vector.broadcast %971 : f32 to vector<16x16xf32>
      %973 = arith.mulf %972, %970 : vector<16x16xf32>
      %974 = arith.addf %963, %973 : vector<16x16xf32>
      %c96_122 = arith.constant 96 : index
      %975 = memref.load %arg10[%c96_122] : memref<144xf32, #tpu.memory_space<smem>>
      %976 = vector.broadcast %975 : f32 to vector<16x16xf32>
      %977 = arith.mulf %976, %970 : vector<16x16xf32>
      %978 = arith.addf %967, %977 : vector<16x16xf32>
      %cst_123 = arith.constant 0.000000e+00 : f32
      %979 = vector.broadcast %cst_123 : f32 to vector<1x16xf32>
      %980 = vector.extract_strided_slice %735 {offsets = [0, 0], sizes = [15, 16], strides = [1, 1]} : vector<16x16xf32> to vector<15x16xf32>
      %981 = tpu.concatenate %979, %980 in 0 : vector<1x16xf32>, vector<15x16xf32> -> vector<16x16xf32>
      %c19_124 = arith.constant 19 : index
      %982 = memref.load %arg10[%c19_124] : memref<144xf32, #tpu.memory_space<smem>>
      %983 = vector.broadcast %982 : f32 to vector<16x16xf32>
      %984 = arith.mulf %983, %981 : vector<16x16xf32>
      %985 = arith.addf %974, %984 : vector<16x16xf32>
      %c91_125 = arith.constant 91 : index
      %986 = memref.load %arg10[%c91_125] : memref<144xf32, #tpu.memory_space<smem>>
      %987 = vector.broadcast %986 : f32 to vector<16x16xf32>
      %988 = arith.mulf %987, %981 : vector<16x16xf32>
      %989 = arith.addf %978, %988 : vector<16x16xf32>
      %c22_126 = arith.constant 22 : index
      %990 = memref.load %arg10[%c22_126] : memref<144xf32, #tpu.memory_space<smem>>
      %991 = vector.broadcast %990 : f32 to vector<16x16xf32>
      %992 = arith.mulf %991, %735 : vector<16x16xf32>
      %993 = arith.addf %985, %992 : vector<16x16xf32>
      %c94_127 = arith.constant 94 : index
      %994 = memref.load %arg10[%c94_127] : memref<144xf32, #tpu.memory_space<smem>>
      %995 = vector.broadcast %994 : f32 to vector<16x16xf32>
      %996 = arith.mulf %995, %735 : vector<16x16xf32>
      %997 = arith.addf %989, %996 : vector<16x16xf32>
      %cst_128 = arith.constant 0.000000e+00 : f32
      %998 = vector.broadcast %cst_128 : f32 to vector<1x16xf32>
      %999 = vector.extract_strided_slice %735 {offsets = [1, 0], sizes = [15, 16], strides = [1, 1]} : vector<16x16xf32> to vector<15x16xf32>
      %1000 = tpu.concatenate %999, %998 in 0 : vector<15x16xf32>, vector<1x16xf32> -> vector<16x16xf32>
      %c25_129 = arith.constant 25 : index
      %1001 = memref.load %arg10[%c25_129] : memref<144xf32, #tpu.memory_space<smem>>
      %1002 = vector.broadcast %1001 : f32 to vector<16x16xf32>
      %1003 = arith.mulf %1002, %1000 : vector<16x16xf32>
      %1004 = arith.addf %993, %1003 : vector<16x16xf32>
      %c97_130 = arith.constant 97 : index
      %1005 = memref.load %arg10[%c97_130] : memref<144xf32, #tpu.memory_space<smem>>
      %1006 = vector.broadcast %1005 : f32 to vector<16x16xf32>
      %1007 = arith.mulf %1006, %1000 : vector<16x16xf32>
      %1008 = arith.addf %997, %1007 : vector<16x16xf32>
      %cst_131 = arith.constant 0.000000e+00 : f32
      %1009 = vector.broadcast %cst_131 : f32 to vector<16x1xf32>
      %1010 = vector.extract_strided_slice %735 {offsets = [0, 1], sizes = [16, 15], strides = [1, 1]} : vector<16x16xf32> to vector<16x15xf32>
      %1011 = tpu.concatenate %1010, %1009 in 1 : vector<16x15xf32>, vector<16x1xf32> -> vector<16x16xf32>
      %cst_132 = arith.constant 0.000000e+00 : f32
      %1012 = vector.broadcast %cst_132 : f32 to vector<1x16xf32>
      %1013 = vector.extract_strided_slice %1011 {offsets = [0, 0], sizes = [15, 16], strides = [1, 1]} : vector<16x16xf32> to vector<15x16xf32>
      %1014 = tpu.concatenate %1012, %1013 in 0 : vector<1x16xf32>, vector<15x16xf32> -> vector<16x16xf32>
      %c20_133 = arith.constant 20 : index
      %1015 = memref.load %arg10[%c20_133] : memref<144xf32, #tpu.memory_space<smem>>
      %1016 = vector.broadcast %1015 : f32 to vector<16x16xf32>
      %1017 = arith.mulf %1016, %1014 : vector<16x16xf32>
      %1018 = arith.addf %1004, %1017 : vector<16x16xf32>
      %c92_134 = arith.constant 92 : index
      %1019 = memref.load %arg10[%c92_134] : memref<144xf32, #tpu.memory_space<smem>>
      %1020 = vector.broadcast %1019 : f32 to vector<16x16xf32>
      %1021 = arith.mulf %1020, %1014 : vector<16x16xf32>
      %1022 = arith.addf %1008, %1021 : vector<16x16xf32>
      %c23_135 = arith.constant 23 : index
      %1023 = memref.load %arg10[%c23_135] : memref<144xf32, #tpu.memory_space<smem>>
      %1024 = vector.broadcast %1023 : f32 to vector<16x16xf32>
      %1025 = arith.mulf %1024, %1011 : vector<16x16xf32>
      %1026 = arith.addf %1018, %1025 : vector<16x16xf32>
      %c95_136 = arith.constant 95 : index
      %1027 = memref.load %arg10[%c95_136] : memref<144xf32, #tpu.memory_space<smem>>
      %1028 = vector.broadcast %1027 : f32 to vector<16x16xf32>
      %1029 = arith.mulf %1028, %1011 : vector<16x16xf32>
      %1030 = arith.addf %1022, %1029 : vector<16x16xf32>
      %cst_137 = arith.constant 0.000000e+00 : f32
      %1031 = vector.broadcast %cst_137 : f32 to vector<1x16xf32>
      %1032 = vector.extract_strided_slice %1011 {offsets = [1, 0], sizes = [15, 16], strides = [1, 1]} : vector<16x16xf32> to vector<15x16xf32>
      %1033 = tpu.concatenate %1032, %1031 in 0 : vector<15x16xf32>, vector<1x16xf32> -> vector<16x16xf32>
      %c26_138 = arith.constant 26 : index
      %1034 = memref.load %arg10[%c26_138] : memref<144xf32, #tpu.memory_space<smem>>
      %1035 = vector.broadcast %1034 : f32 to vector<16x16xf32>
      %1036 = arith.mulf %1035, %1033 : vector<16x16xf32>
      %1037 = arith.addf %1026, %1036 : vector<16x16xf32>
      %c98_139 = arith.constant 98 : index
      %1038 = memref.load %arg10[%c98_139] : memref<144xf32, #tpu.memory_space<smem>>
      %1039 = vector.broadcast %1038 : f32 to vector<16x16xf32>
      %1040 = arith.mulf %1039, %1033 : vector<16x16xf32>
      %1041 = arith.addf %1030, %1040 : vector<16x16xf32>
      %cst_140 = arith.constant 0.000000e+00 : f32
      %1042 = vector.broadcast %cst_140 : f32 to vector<16x1xf32>
      %1043 = vector.extract_strided_slice %737 {offsets = [0, 0], sizes = [16, 15], strides = [1, 1]} : vector<16x16xf32> to vector<16x15xf32>
      %1044 = tpu.concatenate %1042, %1043 in 1 : vector<16x1xf32>, vector<16x15xf32> -> vector<16x16xf32>
      %cst_141 = arith.constant 0.000000e+00 : f32
      %1045 = vector.broadcast %cst_141 : f32 to vector<1x16xf32>
      %1046 = vector.extract_strided_slice %1044 {offsets = [0, 0], sizes = [15, 16], strides = [1, 1]} : vector<16x16xf32> to vector<15x16xf32>
      %1047 = tpu.concatenate %1045, %1046 in 0 : vector<1x16xf32>, vector<15x16xf32> -> vector<16x16xf32>
      %c27_142 = arith.constant 27 : index
      %1048 = memref.load %arg10[%c27_142] : memref<144xf32, #tpu.memory_space<smem>>
      %1049 = vector.broadcast %1048 : f32 to vector<16x16xf32>
      %1050 = arith.mulf %1049, %1047 : vector<16x16xf32>
      %1051 = arith.addf %1037, %1050 : vector<16x16xf32>
      %c99_143 = arith.constant 99 : index
      %1052 = memref.load %arg10[%c99_143] : memref<144xf32, #tpu.memory_space<smem>>
      %1053 = vector.broadcast %1052 : f32 to vector<16x16xf32>
      %1054 = arith.mulf %1053, %1047 : vector<16x16xf32>
      %1055 = arith.addf %1041, %1054 : vector<16x16xf32>
      %c30_144 = arith.constant 30 : index
      %1056 = memref.load %arg10[%c30_144] : memref<144xf32, #tpu.memory_space<smem>>
      %1057 = vector.broadcast %1056 : f32 to vector<16x16xf32>
      %1058 = arith.mulf %1057, %1044 : vector<16x16xf32>
      %1059 = arith.addf %1051, %1058 : vector<16x16xf32>
      %c102_145 = arith.constant 102 : index
      %1060 = memref.load %arg10[%c102_145] : memref<144xf32, #tpu.memory_space<smem>>
      %1061 = vector.broadcast %1060 : f32 to vector<16x16xf32>
      %1062 = arith.mulf %1061, %1044 : vector<16x16xf32>
      %1063 = arith.addf %1055, %1062 : vector<16x16xf32>
      %cst_146 = arith.constant 0.000000e+00 : f32
      %1064 = vector.broadcast %cst_146 : f32 to vector<1x16xf32>
      %1065 = vector.extract_strided_slice %1044 {offsets = [1, 0], sizes = [15, 16], strides = [1, 1]} : vector<16x16xf32> to vector<15x16xf32>
      %1066 = tpu.concatenate %1065, %1064 in 0 : vector<15x16xf32>, vector<1x16xf32> -> vector<16x16xf32>
      %c33_147 = arith.constant 33 : index
      %1067 = memref.load %arg10[%c33_147] : memref<144xf32, #tpu.memory_space<smem>>
      %1068 = vector.broadcast %1067 : f32 to vector<16x16xf32>
      %1069 = arith.mulf %1068, %1066 : vector<16x16xf32>
      %1070 = arith.addf %1059, %1069 : vector<16x16xf32>
      %c105_148 = arith.constant 105 : index
      %1071 = memref.load %arg10[%c105_148] : memref<144xf32, #tpu.memory_space<smem>>
      %1072 = vector.broadcast %1071 : f32 to vector<16x16xf32>
      %1073 = arith.mulf %1072, %1066 : vector<16x16xf32>
      %1074 = arith.addf %1063, %1073 : vector<16x16xf32>
      %cst_149 = arith.constant 0.000000e+00 : f32
      %1075 = vector.broadcast %cst_149 : f32 to vector<1x16xf32>
      %1076 = vector.extract_strided_slice %737 {offsets = [0, 0], sizes = [15, 16], strides = [1, 1]} : vector<16x16xf32> to vector<15x16xf32>
      %1077 = tpu.concatenate %1075, %1076 in 0 : vector<1x16xf32>, vector<15x16xf32> -> vector<16x16xf32>
      %c28_150 = arith.constant 28 : index
      %1078 = memref.load %arg10[%c28_150] : memref<144xf32, #tpu.memory_space<smem>>
      %1079 = vector.broadcast %1078 : f32 to vector<16x16xf32>
      %1080 = arith.mulf %1079, %1077 : vector<16x16xf32>
      %1081 = arith.addf %1070, %1080 : vector<16x16xf32>
      %c100_151 = arith.constant 100 : index
      %1082 = memref.load %arg10[%c100_151] : memref<144xf32, #tpu.memory_space<smem>>
      %1083 = vector.broadcast %1082 : f32 to vector<16x16xf32>
      %1084 = arith.mulf %1083, %1077 : vector<16x16xf32>
      %1085 = arith.addf %1074, %1084 : vector<16x16xf32>
      %c31_152 = arith.constant 31 : index
      %1086 = memref.load %arg10[%c31_152] : memref<144xf32, #tpu.memory_space<smem>>
      %1087 = vector.broadcast %1086 : f32 to vector<16x16xf32>
      %1088 = arith.mulf %1087, %737 : vector<16x16xf32>
      %1089 = arith.addf %1081, %1088 : vector<16x16xf32>
      %c103_153 = arith.constant 103 : index
      %1090 = memref.load %arg10[%c103_153] : memref<144xf32, #tpu.memory_space<smem>>
      %1091 = vector.broadcast %1090 : f32 to vector<16x16xf32>
      %1092 = arith.mulf %1091, %737 : vector<16x16xf32>
      %1093 = arith.addf %1085, %1092 : vector<16x16xf32>
      %cst_154 = arith.constant 0.000000e+00 : f32
      %1094 = vector.broadcast %cst_154 : f32 to vector<1x16xf32>
      %1095 = vector.extract_strided_slice %737 {offsets = [1, 0], sizes = [15, 16], strides = [1, 1]} : vector<16x16xf32> to vector<15x16xf32>
      %1096 = tpu.concatenate %1095, %1094 in 0 : vector<15x16xf32>, vector<1x16xf32> -> vector<16x16xf32>
      %c34_155 = arith.constant 34 : index
      %1097 = memref.load %arg10[%c34_155] : memref<144xf32, #tpu.memory_space<smem>>
      %1098 = vector.broadcast %1097 : f32 to vector<16x16xf32>
      %1099 = arith.mulf %1098, %1096 : vector<16x16xf32>
      %1100 = arith.addf %1089, %1099 : vector<16x16xf32>
      %c106_156 = arith.constant 106 : index
      %1101 = memref.load %arg10[%c106_156] : memref<144xf32, #tpu.memory_space<smem>>
      %1102 = vector.broadcast %1101 : f32 to vector<16x16xf32>
      %1103 = arith.mulf %1102, %1096 : vector<16x16xf32>
      %1104 = arith.addf %1093, %1103 : vector<16x16xf32>
      %cst_157 = arith.constant 0.000000e+00 : f32
      %1105 = vector.broadcast %cst_157 : f32 to vector<16x1xf32>
      %1106 = vector.extract_strided_slice %737 {offsets = [0, 1], sizes = [16, 15], strides = [1, 1]} : vector<16x16xf32> to vector<16x15xf32>
      %1107 = tpu.concatenate %1106, %1105 in 1 : vector<16x15xf32>, vector<16x1xf32> -> vector<16x16xf32>
      %cst_158 = arith.constant 0.000000e+00 : f32
      %1108 = vector.broadcast %cst_158 : f32 to vector<1x16xf32>
      %1109 = vector.extract_strided_slice %1107 {offsets = [0, 0], sizes = [15, 16], strides = [1, 1]} : vector<16x16xf32> to vector<15x16xf32>
      %1110 = tpu.concatenate %1108, %1109 in 0 : vector<1x16xf32>, vector<15x16xf32> -> vector<16x16xf32>
      %c29_159 = arith.constant 29 : index
      %1111 = memref.load %arg10[%c29_159] : memref<144xf32, #tpu.memory_space<smem>>
      %1112 = vector.broadcast %1111 : f32 to vector<16x16xf32>
      %1113 = arith.mulf %1112, %1110 : vector<16x16xf32>
      %1114 = arith.addf %1100, %1113 : vector<16x16xf32>
      %c101_160 = arith.constant 101 : index
      %1115 = memref.load %arg10[%c101_160] : memref<144xf32, #tpu.memory_space<smem>>
      %1116 = vector.broadcast %1115 : f32 to vector<16x16xf32>
      %1117 = arith.mulf %1116, %1110 : vector<16x16xf32>
      %1118 = arith.addf %1104, %1117 : vector<16x16xf32>
      %c32_161 = arith.constant 32 : index
      %1119 = memref.load %arg10[%c32_161] : memref<144xf32, #tpu.memory_space<smem>>
      %1120 = vector.broadcast %1119 : f32 to vector<16x16xf32>
      %1121 = arith.mulf %1120, %1107 : vector<16x16xf32>
      %1122 = arith.addf %1114, %1121 : vector<16x16xf32>
      %c104_162 = arith.constant 104 : index
      %1123 = memref.load %arg10[%c104_162] : memref<144xf32, #tpu.memory_space<smem>>
      %1124 = vector.broadcast %1123 : f32 to vector<16x16xf32>
      %1125 = arith.mulf %1124, %1107 : vector<16x16xf32>
      %1126 = arith.addf %1118, %1125 : vector<16x16xf32>
      %cst_163 = arith.constant 0.000000e+00 : f32
      %1127 = vector.broadcast %cst_163 : f32 to vector<1x16xf32>
      %1128 = vector.extract_strided_slice %1107 {offsets = [1, 0], sizes = [15, 16], strides = [1, 1]} : vector<16x16xf32> to vector<15x16xf32>
      %1129 = tpu.concatenate %1128, %1127 in 0 : vector<15x16xf32>, vector<1x16xf32> -> vector<16x16xf32>
      %c35_164 = arith.constant 35 : index
      %1130 = memref.load %arg10[%c35_164] : memref<144xf32, #tpu.memory_space<smem>>
      %1131 = vector.broadcast %1130 : f32 to vector<16x16xf32>
      %1132 = arith.mulf %1131, %1129 : vector<16x16xf32>
      %1133 = arith.addf %1122, %1132 : vector<16x16xf32>
      %c107_165 = arith.constant 107 : index
      %1134 = memref.load %arg10[%c107_165] : memref<144xf32, #tpu.memory_space<smem>>
      %1135 = vector.broadcast %1134 : f32 to vector<16x16xf32>
      %1136 = arith.mulf %1135, %1129 : vector<16x16xf32>
      %1137 = arith.addf %1126, %1136 : vector<16x16xf32>
      %cst_166 = arith.constant 0.000000e+00 : f32
      %1138 = vector.broadcast %cst_166 : f32 to vector<16x1xf32>
      %1139 = vector.extract_strided_slice %739 {offsets = [0, 0], sizes = [16, 15], strides = [1, 1]} : vector<16x16xf32> to vector<16x15xf32>
      %1140 = tpu.concatenate %1138, %1139 in 1 : vector<16x1xf32>, vector<16x15xf32> -> vector<16x16xf32>
      %cst_167 = arith.constant 0.000000e+00 : f32
      %1141 = vector.broadcast %cst_167 : f32 to vector<1x16xf32>
      %1142 = vector.extract_strided_slice %1140 {offsets = [0, 0], sizes = [15, 16], strides = [1, 1]} : vector<16x16xf32> to vector<15x16xf32>
      %1143 = tpu.concatenate %1141, %1142 in 0 : vector<1x16xf32>, vector<15x16xf32> -> vector<16x16xf32>
      %c36_168 = arith.constant 36 : index
      %1144 = memref.load %arg10[%c36_168] : memref<144xf32, #tpu.memory_space<smem>>
      %1145 = vector.broadcast %1144 : f32 to vector<16x16xf32>
      %1146 = arith.mulf %1145, %1143 : vector<16x16xf32>
      %1147 = arith.addf %1133, %1146 : vector<16x16xf32>
      %c108_169 = arith.constant 108 : index
      %1148 = memref.load %arg10[%c108_169] : memref<144xf32, #tpu.memory_space<smem>>
      %1149 = vector.broadcast %1148 : f32 to vector<16x16xf32>
      %1150 = arith.mulf %1149, %1143 : vector<16x16xf32>
      %1151 = arith.addf %1137, %1150 : vector<16x16xf32>
      %c39_170 = arith.constant 39 : index
      %1152 = memref.load %arg10[%c39_170] : memref<144xf32, #tpu.memory_space<smem>>
      %1153 = vector.broadcast %1152 : f32 to vector<16x16xf32>
      %1154 = arith.mulf %1153, %1140 : vector<16x16xf32>
      %1155 = arith.addf %1147, %1154 : vector<16x16xf32>
      %c111_171 = arith.constant 111 : index
      %1156 = memref.load %arg10[%c111_171] : memref<144xf32, #tpu.memory_space<smem>>
      %1157 = vector.broadcast %1156 : f32 to vector<16x16xf32>
      %1158 = arith.mulf %1157, %1140 : vector<16x16xf32>
      %1159 = arith.addf %1151, %1158 : vector<16x16xf32>
      %cst_172 = arith.constant 0.000000e+00 : f32
      %1160 = vector.broadcast %cst_172 : f32 to vector<1x16xf32>
      %1161 = vector.extract_strided_slice %1140 {offsets = [1, 0], sizes = [15, 16], strides = [1, 1]} : vector<16x16xf32> to vector<15x16xf32>
      %1162 = tpu.concatenate %1161, %1160 in 0 : vector<15x16xf32>, vector<1x16xf32> -> vector<16x16xf32>
      %c42_173 = arith.constant 42 : index
      %1163 = memref.load %arg10[%c42_173] : memref<144xf32, #tpu.memory_space<smem>>
      %1164 = vector.broadcast %1163 : f32 to vector<16x16xf32>
      %1165 = arith.mulf %1164, %1162 : vector<16x16xf32>
      %1166 = arith.addf %1155, %1165 : vector<16x16xf32>
      %c114_174 = arith.constant 114 : index
      %1167 = memref.load %arg10[%c114_174] : memref<144xf32, #tpu.memory_space<smem>>
      %1168 = vector.broadcast %1167 : f32 to vector<16x16xf32>
      %1169 = arith.mulf %1168, %1162 : vector<16x16xf32>
      %1170 = arith.addf %1159, %1169 : vector<16x16xf32>
      %cst_175 = arith.constant 0.000000e+00 : f32
      %1171 = vector.broadcast %cst_175 : f32 to vector<1x16xf32>
      %1172 = vector.extract_strided_slice %739 {offsets = [0, 0], sizes = [15, 16], strides = [1, 1]} : vector<16x16xf32> to vector<15x16xf32>
      %1173 = tpu.concatenate %1171, %1172 in 0 : vector<1x16xf32>, vector<15x16xf32> -> vector<16x16xf32>
      %c37_176 = arith.constant 37 : index
      %1174 = memref.load %arg10[%c37_176] : memref<144xf32, #tpu.memory_space<smem>>
      %1175 = vector.broadcast %1174 : f32 to vector<16x16xf32>
      %1176 = arith.mulf %1175, %1173 : vector<16x16xf32>
      %1177 = arith.addf %1166, %1176 : vector<16x16xf32>
      %c109_177 = arith.constant 109 : index
      %1178 = memref.load %arg10[%c109_177] : memref<144xf32, #tpu.memory_space<smem>>
      %1179 = vector.broadcast %1178 : f32 to vector<16x16xf32>
      %1180 = arith.mulf %1179, %1173 : vector<16x16xf32>
      %1181 = arith.addf %1170, %1180 : vector<16x16xf32>
      %c40_178 = arith.constant 40 : index
      %1182 = memref.load %arg10[%c40_178] : memref<144xf32, #tpu.memory_space<smem>>
      %1183 = vector.broadcast %1182 : f32 to vector<16x16xf32>
      %1184 = arith.mulf %1183, %739 : vector<16x16xf32>
      %1185 = arith.addf %1177, %1184 : vector<16x16xf32>
      %c112_179 = arith.constant 112 : index
      %1186 = memref.load %arg10[%c112_179] : memref<144xf32, #tpu.memory_space<smem>>
      %1187 = vector.broadcast %1186 : f32 to vector<16x16xf32>
      %1188 = arith.mulf %1187, %739 : vector<16x16xf32>
      %1189 = arith.addf %1181, %1188 : vector<16x16xf32>
      %cst_180 = arith.constant 0.000000e+00 : f32
      %1190 = vector.broadcast %cst_180 : f32 to vector<1x16xf32>
      %1191 = vector.extract_strided_slice %739 {offsets = [1, 0], sizes = [15, 16], strides = [1, 1]} : vector<16x16xf32> to vector<15x16xf32>
      %1192 = tpu.concatenate %1191, %1190 in 0 : vector<15x16xf32>, vector<1x16xf32> -> vector<16x16xf32>
      %c43_181 = arith.constant 43 : index
      %1193 = memref.load %arg10[%c43_181] : memref<144xf32, #tpu.memory_space<smem>>
      %1194 = vector.broadcast %1193 : f32 to vector<16x16xf32>
      %1195 = arith.mulf %1194, %1192 : vector<16x16xf32>
      %1196 = arith.addf %1185, %1195 : vector<16x16xf32>
      %c115_182 = arith.constant 115 : index
      %1197 = memref.load %arg10[%c115_182] : memref<144xf32, #tpu.memory_space<smem>>
      %1198 = vector.broadcast %1197 : f32 to vector<16x16xf32>
      %1199 = arith.mulf %1198, %1192 : vector<16x16xf32>
      %1200 = arith.addf %1189, %1199 : vector<16x16xf32>
      %cst_183 = arith.constant 0.000000e+00 : f32
      %1201 = vector.broadcast %cst_183 : f32 to vector<16x1xf32>
      %1202 = vector.extract_strided_slice %739 {offsets = [0, 1], sizes = [16, 15], strides = [1, 1]} : vector<16x16xf32> to vector<16x15xf32>
      %1203 = tpu.concatenate %1202, %1201 in 1 : vector<16x15xf32>, vector<16x1xf32> -> vector<16x16xf32>
      %cst_184 = arith.constant 0.000000e+00 : f32
      %1204 = vector.broadcast %cst_184 : f32 to vector<1x16xf32>
      %1205 = vector.extract_strided_slice %1203 {offsets = [0, 0], sizes = [15, 16], strides = [1, 1]} : vector<16x16xf32> to vector<15x16xf32>
      %1206 = tpu.concatenate %1204, %1205 in 0 : vector<1x16xf32>, vector<15x16xf32> -> vector<16x16xf32>
      %c38_185 = arith.constant 38 : index
      %1207 = memref.load %arg10[%c38_185] : memref<144xf32, #tpu.memory_space<smem>>
      %1208 = vector.broadcast %1207 : f32 to vector<16x16xf32>
      %1209 = arith.mulf %1208, %1206 : vector<16x16xf32>
      %1210 = arith.addf %1196, %1209 : vector<16x16xf32>
      %c110_186 = arith.constant 110 : index
      %1211 = memref.load %arg10[%c110_186] : memref<144xf32, #tpu.memory_space<smem>>
      %1212 = vector.broadcast %1211 : f32 to vector<16x16xf32>
      %1213 = arith.mulf %1212, %1206 : vector<16x16xf32>
      %1214 = arith.addf %1200, %1213 : vector<16x16xf32>
      %c41_187 = arith.constant 41 : index
      %1215 = memref.load %arg10[%c41_187] : memref<144xf32, #tpu.memory_space<smem>>
      %1216 = vector.broadcast %1215 : f32 to vector<16x16xf32>
      %1217 = arith.mulf %1216, %1203 : vector<16x16xf32>
      %1218 = arith.addf %1210, %1217 : vector<16x16xf32>
      %c113_188 = arith.constant 113 : index
      %1219 = memref.load %arg10[%c113_188] : memref<144xf32, #tpu.memory_space<smem>>
      %1220 = vector.broadcast %1219 : f32 to vector<16x16xf32>
      %1221 = arith.mulf %1220, %1203 : vector<16x16xf32>
      %1222 = arith.addf %1214, %1221 : vector<16x16xf32>
      %cst_189 = arith.constant 0.000000e+00 : f32
      %1223 = vector.broadcast %cst_189 : f32 to vector<1x16xf32>
      %1224 = vector.extract_strided_slice %1203 {offsets = [1, 0], sizes = [15, 16], strides = [1, 1]} : vector<16x16xf32> to vector<15x16xf32>
      %1225 = tpu.concatenate %1224, %1223 in 0 : vector<15x16xf32>, vector<1x16xf32> -> vector<16x16xf32>
      %c44_190 = arith.constant 44 : index
      %1226 = memref.load %arg10[%c44_190] : memref<144xf32, #tpu.memory_space<smem>>
      %1227 = vector.broadcast %1226 : f32 to vector<16x16xf32>
      %1228 = arith.mulf %1227, %1225 : vector<16x16xf32>
      %1229 = arith.addf %1218, %1228 : vector<16x16xf32>
      %c116_191 = arith.constant 116 : index
      %1230 = memref.load %arg10[%c116_191] : memref<144xf32, #tpu.memory_space<smem>>
      %1231 = vector.broadcast %1230 : f32 to vector<16x16xf32>
      %1232 = arith.mulf %1231, %1225 : vector<16x16xf32>
      %1233 = arith.addf %1222, %1232 : vector<16x16xf32>
      %cst_192 = arith.constant 0.000000e+00 : f32
      %1234 = vector.broadcast %cst_192 : f32 to vector<16x1xf32>
      %1235 = vector.extract_strided_slice %741 {offsets = [0, 0], sizes = [16, 15], strides = [1, 1]} : vector<16x16xf32> to vector<16x15xf32>
      %1236 = tpu.concatenate %1234, %1235 in 1 : vector<16x1xf32>, vector<16x15xf32> -> vector<16x16xf32>
      %cst_193 = arith.constant 0.000000e+00 : f32
      %1237 = vector.broadcast %cst_193 : f32 to vector<1x16xf32>
      %1238 = vector.extract_strided_slice %1236 {offsets = [0, 0], sizes = [15, 16], strides = [1, 1]} : vector<16x16xf32> to vector<15x16xf32>
      %1239 = tpu.concatenate %1237, %1238 in 0 : vector<1x16xf32>, vector<15x16xf32> -> vector<16x16xf32>
      %c45_194 = arith.constant 45 : index
      %1240 = memref.load %arg10[%c45_194] : memref<144xf32, #tpu.memory_space<smem>>
      %1241 = vector.broadcast %1240 : f32 to vector<16x16xf32>
      %1242 = arith.mulf %1241, %1239 : vector<16x16xf32>
      %1243 = arith.addf %1229, %1242 : vector<16x16xf32>
      %c117_195 = arith.constant 117 : index
      %1244 = memref.load %arg10[%c117_195] : memref<144xf32, #tpu.memory_space<smem>>
      %1245 = vector.broadcast %1244 : f32 to vector<16x16xf32>
      %1246 = arith.mulf %1245, %1239 : vector<16x16xf32>
      %1247 = arith.addf %1233, %1246 : vector<16x16xf32>
      %c48_196 = arith.constant 48 : index
      %1248 = memref.load %arg10[%c48_196] : memref<144xf32, #tpu.memory_space<smem>>
      %1249 = vector.broadcast %1248 : f32 to vector<16x16xf32>
      %1250 = arith.mulf %1249, %1236 : vector<16x16xf32>
      %1251 = arith.addf %1243, %1250 : vector<16x16xf32>
      %c120_197 = arith.constant 120 : index
      %1252 = memref.load %arg10[%c120_197] : memref<144xf32, #tpu.memory_space<smem>>
      %1253 = vector.broadcast %1252 : f32 to vector<16x16xf32>
      %1254 = arith.mulf %1253, %1236 : vector<16x16xf32>
      %1255 = arith.addf %1247, %1254 : vector<16x16xf32>
      %cst_198 = arith.constant 0.000000e+00 : f32
      %1256 = vector.broadcast %cst_198 : f32 to vector<1x16xf32>
      %1257 = vector.extract_strided_slice %1236 {offsets = [1, 0], sizes = [15, 16], strides = [1, 1]} : vector<16x16xf32> to vector<15x16xf32>
      %1258 = tpu.concatenate %1257, %1256 in 0 : vector<15x16xf32>, vector<1x16xf32> -> vector<16x16xf32>
      %c51_199 = arith.constant 51 : index
      %1259 = memref.load %arg10[%c51_199] : memref<144xf32, #tpu.memory_space<smem>>
      %1260 = vector.broadcast %1259 : f32 to vector<16x16xf32>
      %1261 = arith.mulf %1260, %1258 : vector<16x16xf32>
      %1262 = arith.addf %1251, %1261 : vector<16x16xf32>
      %c123_200 = arith.constant 123 : index
      %1263 = memref.load %arg10[%c123_200] : memref<144xf32, #tpu.memory_space<smem>>
      %1264 = vector.broadcast %1263 : f32 to vector<16x16xf32>
      %1265 = arith.mulf %1264, %1258 : vector<16x16xf32>
      %1266 = arith.addf %1255, %1265 : vector<16x16xf32>
      %cst_201 = arith.constant 0.000000e+00 : f32
      %1267 = vector.broadcast %cst_201 : f32 to vector<1x16xf32>
      %1268 = vector.extract_strided_slice %741 {offsets = [0, 0], sizes = [15, 16], strides = [1, 1]} : vector<16x16xf32> to vector<15x16xf32>
      %1269 = tpu.concatenate %1267, %1268 in 0 : vector<1x16xf32>, vector<15x16xf32> -> vector<16x16xf32>
      %c46_202 = arith.constant 46 : index
      %1270 = memref.load %arg10[%c46_202] : memref<144xf32, #tpu.memory_space<smem>>
      %1271 = vector.broadcast %1270 : f32 to vector<16x16xf32>
      %1272 = arith.mulf %1271, %1269 : vector<16x16xf32>
      %1273 = arith.addf %1262, %1272 : vector<16x16xf32>
      %c118_203 = arith.constant 118 : index
      %1274 = memref.load %arg10[%c118_203] : memref<144xf32, #tpu.memory_space<smem>>
      %1275 = vector.broadcast %1274 : f32 to vector<16x16xf32>
      %1276 = arith.mulf %1275, %1269 : vector<16x16xf32>
      %1277 = arith.addf %1266, %1276 : vector<16x16xf32>
      %c49_204 = arith.constant 49 : index
      %1278 = memref.load %arg10[%c49_204] : memref<144xf32, #tpu.memory_space<smem>>
      %1279 = vector.broadcast %1278 : f32 to vector<16x16xf32>
      %1280 = arith.mulf %1279, %741 : vector<16x16xf32>
      %1281 = arith.addf %1273, %1280 : vector<16x16xf32>
      %c121_205 = arith.constant 121 : index
      %1282 = memref.load %arg10[%c121_205] : memref<144xf32, #tpu.memory_space<smem>>
      %1283 = vector.broadcast %1282 : f32 to vector<16x16xf32>
      %1284 = arith.mulf %1283, %741 : vector<16x16xf32>
      %1285 = arith.addf %1277, %1284 : vector<16x16xf32>
      %cst_206 = arith.constant 0.000000e+00 : f32
      %1286 = vector.broadcast %cst_206 : f32 to vector<1x16xf32>
      %1287 = vector.extract_strided_slice %741 {offsets = [1, 0], sizes = [15, 16], strides = [1, 1]} : vector<16x16xf32> to vector<15x16xf32>
      %1288 = tpu.concatenate %1287, %1286 in 0 : vector<15x16xf32>, vector<1x16xf32> -> vector<16x16xf32>
      %c52_207 = arith.constant 52 : index
      %1289 = memref.load %arg10[%c52_207] : memref<144xf32, #tpu.memory_space<smem>>
      %1290 = vector.broadcast %1289 : f32 to vector<16x16xf32>
      %1291 = arith.mulf %1290, %1288 : vector<16x16xf32>
      %1292 = arith.addf %1281, %1291 : vector<16x16xf32>
      %c124_208 = arith.constant 124 : index
      %1293 = memref.load %arg10[%c124_208] : memref<144xf32, #tpu.memory_space<smem>>
      %1294 = vector.broadcast %1293 : f32 to vector<16x16xf32>
      %1295 = arith.mulf %1294, %1288 : vector<16x16xf32>
      %1296 = arith.addf %1285, %1295 : vector<16x16xf32>
      %cst_209 = arith.constant 0.000000e+00 : f32
      %1297 = vector.broadcast %cst_209 : f32 to vector<16x1xf32>
      %1298 = vector.extract_strided_slice %741 {offsets = [0, 1], sizes = [16, 15], strides = [1, 1]} : vector<16x16xf32> to vector<16x15xf32>
      %1299 = tpu.concatenate %1298, %1297 in 1 : vector<16x15xf32>, vector<16x1xf32> -> vector<16x16xf32>
      %cst_210 = arith.constant 0.000000e+00 : f32
      %1300 = vector.broadcast %cst_210 : f32 to vector<1x16xf32>
      %1301 = vector.extract_strided_slice %1299 {offsets = [0, 0], sizes = [15, 16], strides = [1, 1]} : vector<16x16xf32> to vector<15x16xf32>
      %1302 = tpu.concatenate %1300, %1301 in 0 : vector<1x16xf32>, vector<15x16xf32> -> vector<16x16xf32>
      %c47_211 = arith.constant 47 : index
      %1303 = memref.load %arg10[%c47_211] : memref<144xf32, #tpu.memory_space<smem>>
      %1304 = vector.broadcast %1303 : f32 to vector<16x16xf32>
      %1305 = arith.mulf %1304, %1302 : vector<16x16xf32>
      %1306 = arith.addf %1292, %1305 : vector<16x16xf32>
      %c119_212 = arith.constant 119 : index
      %1307 = memref.load %arg10[%c119_212] : memref<144xf32, #tpu.memory_space<smem>>
      %1308 = vector.broadcast %1307 : f32 to vector<16x16xf32>
      %1309 = arith.mulf %1308, %1302 : vector<16x16xf32>
      %1310 = arith.addf %1296, %1309 : vector<16x16xf32>
      %c50_213 = arith.constant 50 : index
      %1311 = memref.load %arg10[%c50_213] : memref<144xf32, #tpu.memory_space<smem>>
      %1312 = vector.broadcast %1311 : f32 to vector<16x16xf32>
      %1313 = arith.mulf %1312, %1299 : vector<16x16xf32>
      %1314 = arith.addf %1306, %1313 : vector<16x16xf32>
      %c122_214 = arith.constant 122 : index
      %1315 = memref.load %arg10[%c122_214] : memref<144xf32, #tpu.memory_space<smem>>
      %1316 = vector.broadcast %1315 : f32 to vector<16x16xf32>
      %1317 = arith.mulf %1316, %1299 : vector<16x16xf32>
      %1318 = arith.addf %1310, %1317 : vector<16x16xf32>
      %cst_215 = arith.constant 0.000000e+00 : f32
      %1319 = vector.broadcast %cst_215 : f32 to vector<1x16xf32>
      %1320 = vector.extract_strided_slice %1299 {offsets = [1, 0], sizes = [15, 16], strides = [1, 1]} : vector<16x16xf32> to vector<15x16xf32>
      %1321 = tpu.concatenate %1320, %1319 in 0 : vector<15x16xf32>, vector<1x16xf32> -> vector<16x16xf32>
      %c53_216 = arith.constant 53 : index
      %1322 = memref.load %arg10[%c53_216] : memref<144xf32, #tpu.memory_space<smem>>
      %1323 = vector.broadcast %1322 : f32 to vector<16x16xf32>
      %1324 = arith.mulf %1323, %1321 : vector<16x16xf32>
      %1325 = arith.addf %1314, %1324 : vector<16x16xf32>
      %c125_217 = arith.constant 125 : index
      %1326 = memref.load %arg10[%c125_217] : memref<144xf32, #tpu.memory_space<smem>>
      %1327 = vector.broadcast %1326 : f32 to vector<16x16xf32>
      %1328 = arith.mulf %1327, %1321 : vector<16x16xf32>
      %1329 = arith.addf %1318, %1328 : vector<16x16xf32>
      %cst_218 = arith.constant 0.000000e+00 : f32
      %1330 = vector.broadcast %cst_218 : f32 to vector<16x1xf32>
      %1331 = vector.extract_strided_slice %743 {offsets = [0, 0], sizes = [16, 15], strides = [1, 1]} : vector<16x16xf32> to vector<16x15xf32>
      %1332 = tpu.concatenate %1330, %1331 in 1 : vector<16x1xf32>, vector<16x15xf32> -> vector<16x16xf32>
      %cst_219 = arith.constant 0.000000e+00 : f32
      %1333 = vector.broadcast %cst_219 : f32 to vector<1x16xf32>
      %1334 = vector.extract_strided_slice %1332 {offsets = [0, 0], sizes = [15, 16], strides = [1, 1]} : vector<16x16xf32> to vector<15x16xf32>
      %1335 = tpu.concatenate %1333, %1334 in 0 : vector<1x16xf32>, vector<15x16xf32> -> vector<16x16xf32>
      %c54_220 = arith.constant 54 : index
      %1336 = memref.load %arg10[%c54_220] : memref<144xf32, #tpu.memory_space<smem>>
      %1337 = vector.broadcast %1336 : f32 to vector<16x16xf32>
      %1338 = arith.mulf %1337, %1335 : vector<16x16xf32>
      %1339 = arith.addf %1325, %1338 : vector<16x16xf32>
      %c126_221 = arith.constant 126 : index
      %1340 = memref.load %arg10[%c126_221] : memref<144xf32, #tpu.memory_space<smem>>
      %1341 = vector.broadcast %1340 : f32 to vector<16x16xf32>
      %1342 = arith.mulf %1341, %1335 : vector<16x16xf32>
      %1343 = arith.addf %1329, %1342 : vector<16x16xf32>
      %c57_222 = arith.constant 57 : index
      %1344 = memref.load %arg10[%c57_222] : memref<144xf32, #tpu.memory_space<smem>>
      %1345 = vector.broadcast %1344 : f32 to vector<16x16xf32>
      %1346 = arith.mulf %1345, %1332 : vector<16x16xf32>
      %1347 = arith.addf %1339, %1346 : vector<16x16xf32>
      %c129_223 = arith.constant 129 : index
      %1348 = memref.load %arg10[%c129_223] : memref<144xf32, #tpu.memory_space<smem>>
      %1349 = vector.broadcast %1348 : f32 to vector<16x16xf32>
      %1350 = arith.mulf %1349, %1332 : vector<16x16xf32>
      %1351 = arith.addf %1343, %1350 : vector<16x16xf32>
      %cst_224 = arith.constant 0.000000e+00 : f32
      %1352 = vector.broadcast %cst_224 : f32 to vector<1x16xf32>
      %1353 = vector.extract_strided_slice %1332 {offsets = [1, 0], sizes = [15, 16], strides = [1, 1]} : vector<16x16xf32> to vector<15x16xf32>
      %1354 = tpu.concatenate %1353, %1352 in 0 : vector<15x16xf32>, vector<1x16xf32> -> vector<16x16xf32>
      %c60_225 = arith.constant 60 : index
      %1355 = memref.load %arg10[%c60_225] : memref<144xf32, #tpu.memory_space<smem>>
      %1356 = vector.broadcast %1355 : f32 to vector<16x16xf32>
      %1357 = arith.mulf %1356, %1354 : vector<16x16xf32>
      %1358 = arith.addf %1347, %1357 : vector<16x16xf32>
      %c132_226 = arith.constant 132 : index
      %1359 = memref.load %arg10[%c132_226] : memref<144xf32, #tpu.memory_space<smem>>
      %1360 = vector.broadcast %1359 : f32 to vector<16x16xf32>
      %1361 = arith.mulf %1360, %1354 : vector<16x16xf32>
      %1362 = arith.addf %1351, %1361 : vector<16x16xf32>
      %cst_227 = arith.constant 0.000000e+00 : f32
      %1363 = vector.broadcast %cst_227 : f32 to vector<1x16xf32>
      %1364 = vector.extract_strided_slice %743 {offsets = [0, 0], sizes = [15, 16], strides = [1, 1]} : vector<16x16xf32> to vector<15x16xf32>
      %1365 = tpu.concatenate %1363, %1364 in 0 : vector<1x16xf32>, vector<15x16xf32> -> vector<16x16xf32>
      %c55_228 = arith.constant 55 : index
      %1366 = memref.load %arg10[%c55_228] : memref<144xf32, #tpu.memory_space<smem>>
      %1367 = vector.broadcast %1366 : f32 to vector<16x16xf32>
      %1368 = arith.mulf %1367, %1365 : vector<16x16xf32>
      %1369 = arith.addf %1358, %1368 : vector<16x16xf32>
      %c127_229 = arith.constant 127 : index
      %1370 = memref.load %arg10[%c127_229] : memref<144xf32, #tpu.memory_space<smem>>
      %1371 = vector.broadcast %1370 : f32 to vector<16x16xf32>
      %1372 = arith.mulf %1371, %1365 : vector<16x16xf32>
      %1373 = arith.addf %1362, %1372 : vector<16x16xf32>
      %c58_230 = arith.constant 58 : index
      %1374 = memref.load %arg10[%c58_230] : memref<144xf32, #tpu.memory_space<smem>>
      %1375 = vector.broadcast %1374 : f32 to vector<16x16xf32>
      %1376 = arith.mulf %1375, %743 : vector<16x16xf32>
      %1377 = arith.addf %1369, %1376 : vector<16x16xf32>
      %c130_231 = arith.constant 130 : index
      %1378 = memref.load %arg10[%c130_231] : memref<144xf32, #tpu.memory_space<smem>>
      %1379 = vector.broadcast %1378 : f32 to vector<16x16xf32>
      %1380 = arith.mulf %1379, %743 : vector<16x16xf32>
      %1381 = arith.addf %1373, %1380 : vector<16x16xf32>
      %cst_232 = arith.constant 0.000000e+00 : f32
      %1382 = vector.broadcast %cst_232 : f32 to vector<1x16xf32>
      %1383 = vector.extract_strided_slice %743 {offsets = [1, 0], sizes = [15, 16], strides = [1, 1]} : vector<16x16xf32> to vector<15x16xf32>
      %1384 = tpu.concatenate %1383, %1382 in 0 : vector<15x16xf32>, vector<1x16xf32> -> vector<16x16xf32>
      %c61_233 = arith.constant 61 : index
      %1385 = memref.load %arg10[%c61_233] : memref<144xf32, #tpu.memory_space<smem>>
      %1386 = vector.broadcast %1385 : f32 to vector<16x16xf32>
      %1387 = arith.mulf %1386, %1384 : vector<16x16xf32>
      %1388 = arith.addf %1377, %1387 : vector<16x16xf32>
      %c133_234 = arith.constant 133 : index
      %1389 = memref.load %arg10[%c133_234] : memref<144xf32, #tpu.memory_space<smem>>
      %1390 = vector.broadcast %1389 : f32 to vector<16x16xf32>
      %1391 = arith.mulf %1390, %1384 : vector<16x16xf32>
      %1392 = arith.addf %1381, %1391 : vector<16x16xf32>
      %cst_235 = arith.constant 0.000000e+00 : f32
      %1393 = vector.broadcast %cst_235 : f32 to vector<16x1xf32>
      %1394 = vector.extract_strided_slice %743 {offsets = [0, 1], sizes = [16, 15], strides = [1, 1]} : vector<16x16xf32> to vector<16x15xf32>
      %1395 = tpu.concatenate %1394, %1393 in 1 : vector<16x15xf32>, vector<16x1xf32> -> vector<16x16xf32>
      %cst_236 = arith.constant 0.000000e+00 : f32
      %1396 = vector.broadcast %cst_236 : f32 to vector<1x16xf32>
      %1397 = vector.extract_strided_slice %1395 {offsets = [0, 0], sizes = [15, 16], strides = [1, 1]} : vector<16x16xf32> to vector<15x16xf32>
      %1398 = tpu.concatenate %1396, %1397 in 0 : vector<1x16xf32>, vector<15x16xf32> -> vector<16x16xf32>
      %c56_237 = arith.constant 56 : index
      %1399 = memref.load %arg10[%c56_237] : memref<144xf32, #tpu.memory_space<smem>>
      %1400 = vector.broadcast %1399 : f32 to vector<16x16xf32>
      %1401 = arith.mulf %1400, %1398 : vector<16x16xf32>
      %1402 = arith.addf %1388, %1401 : vector<16x16xf32>
      %c128_238 = arith.constant 128 : index
      %1403 = memref.load %arg10[%c128_238] : memref<144xf32, #tpu.memory_space<smem>>
      %1404 = vector.broadcast %1403 : f32 to vector<16x16xf32>
      %1405 = arith.mulf %1404, %1398 : vector<16x16xf32>
      %1406 = arith.addf %1392, %1405 : vector<16x16xf32>
      %c59_239 = arith.constant 59 : index
      %1407 = memref.load %arg10[%c59_239] : memref<144xf32, #tpu.memory_space<smem>>
      %1408 = vector.broadcast %1407 : f32 to vector<16x16xf32>
      %1409 = arith.mulf %1408, %1395 : vector<16x16xf32>
      %1410 = arith.addf %1402, %1409 : vector<16x16xf32>
      %c131_240 = arith.constant 131 : index
      %1411 = memref.load %arg10[%c131_240] : memref<144xf32, #tpu.memory_space<smem>>
      %1412 = vector.broadcast %1411 : f32 to vector<16x16xf32>
      %1413 = arith.mulf %1412, %1395 : vector<16x16xf32>
      %1414 = arith.addf %1406, %1413 : vector<16x16xf32>
      %cst_241 = arith.constant 0.000000e+00 : f32
      %1415 = vector.broadcast %cst_241 : f32 to vector<1x16xf32>
      %1416 = vector.extract_strided_slice %1395 {offsets = [1, 0], sizes = [15, 16], strides = [1, 1]} : vector<16x16xf32> to vector<15x16xf32>
      %1417 = tpu.concatenate %1416, %1415 in 0 : vector<15x16xf32>, vector<1x16xf32> -> vector<16x16xf32>
      %c62_242 = arith.constant 62 : index
      %1418 = memref.load %arg10[%c62_242] : memref<144xf32, #tpu.memory_space<smem>>
      %1419 = vector.broadcast %1418 : f32 to vector<16x16xf32>
      %1420 = arith.mulf %1419, %1417 : vector<16x16xf32>
      %1421 = arith.addf %1410, %1420 : vector<16x16xf32>
      %c134_243 = arith.constant 134 : index
      %1422 = memref.load %arg10[%c134_243] : memref<144xf32, #tpu.memory_space<smem>>
      %1423 = vector.broadcast %1422 : f32 to vector<16x16xf32>
      %1424 = arith.mulf %1423, %1417 : vector<16x16xf32>
      %1425 = arith.addf %1414, %1424 : vector<16x16xf32>
      %cst_244 = arith.constant 0.000000e+00 : f32
      %1426 = vector.broadcast %cst_244 : f32 to vector<16x1xf32>
      %1427 = vector.extract_strided_slice %745 {offsets = [0, 0], sizes = [16, 15], strides = [1, 1]} : vector<16x16xf32> to vector<16x15xf32>
      %1428 = tpu.concatenate %1426, %1427 in 1 : vector<16x1xf32>, vector<16x15xf32> -> vector<16x16xf32>
      %cst_245 = arith.constant 0.000000e+00 : f32
      %1429 = vector.broadcast %cst_245 : f32 to vector<1x16xf32>
      %1430 = vector.extract_strided_slice %1428 {offsets = [0, 0], sizes = [15, 16], strides = [1, 1]} : vector<16x16xf32> to vector<15x16xf32>
      %1431 = tpu.concatenate %1429, %1430 in 0 : vector<1x16xf32>, vector<15x16xf32> -> vector<16x16xf32>
      %c63_246 = arith.constant 63 : index
      %1432 = memref.load %arg10[%c63_246] : memref<144xf32, #tpu.memory_space<smem>>
      %1433 = vector.broadcast %1432 : f32 to vector<16x16xf32>
      %1434 = arith.mulf %1433, %1431 : vector<16x16xf32>
      %1435 = arith.addf %1421, %1434 : vector<16x16xf32>
      %c135_247 = arith.constant 135 : index
      %1436 = memref.load %arg10[%c135_247] : memref<144xf32, #tpu.memory_space<smem>>
      %1437 = vector.broadcast %1436 : f32 to vector<16x16xf32>
      %1438 = arith.mulf %1437, %1431 : vector<16x16xf32>
      %1439 = arith.addf %1425, %1438 : vector<16x16xf32>
      %c66_248 = arith.constant 66 : index
      %1440 = memref.load %arg10[%c66_248] : memref<144xf32, #tpu.memory_space<smem>>
      %1441 = vector.broadcast %1440 : f32 to vector<16x16xf32>
      %1442 = arith.mulf %1441, %1428 : vector<16x16xf32>
      %1443 = arith.addf %1435, %1442 : vector<16x16xf32>
      %c138_249 = arith.constant 138 : index
      %1444 = memref.load %arg10[%c138_249] : memref<144xf32, #tpu.memory_space<smem>>
      %1445 = vector.broadcast %1444 : f32 to vector<16x16xf32>
      %1446 = arith.mulf %1445, %1428 : vector<16x16xf32>
      %1447 = arith.addf %1439, %1446 : vector<16x16xf32>
      %cst_250 = arith.constant 0.000000e+00 : f32
      %1448 = vector.broadcast %cst_250 : f32 to vector<1x16xf32>
      %1449 = vector.extract_strided_slice %1428 {offsets = [1, 0], sizes = [15, 16], strides = [1, 1]} : vector<16x16xf32> to vector<15x16xf32>
      %1450 = tpu.concatenate %1449, %1448 in 0 : vector<15x16xf32>, vector<1x16xf32> -> vector<16x16xf32>
      %c69_251 = arith.constant 69 : index
      %1451 = memref.load %arg10[%c69_251] : memref<144xf32, #tpu.memory_space<smem>>
      %1452 = vector.broadcast %1451 : f32 to vector<16x16xf32>
      %1453 = arith.mulf %1452, %1450 : vector<16x16xf32>
      %1454 = arith.addf %1443, %1453 : vector<16x16xf32>
      %c141_252 = arith.constant 141 : index
      %1455 = memref.load %arg10[%c141_252] : memref<144xf32, #tpu.memory_space<smem>>
      %1456 = vector.broadcast %1455 : f32 to vector<16x16xf32>
      %1457 = arith.mulf %1456, %1450 : vector<16x16xf32>
      %1458 = arith.addf %1447, %1457 : vector<16x16xf32>
      %cst_253 = arith.constant 0.000000e+00 : f32
      %1459 = vector.broadcast %cst_253 : f32 to vector<1x16xf32>
      %1460 = vector.extract_strided_slice %745 {offsets = [0, 0], sizes = [15, 16], strides = [1, 1]} : vector<16x16xf32> to vector<15x16xf32>
      %1461 = tpu.concatenate %1459, %1460 in 0 : vector<1x16xf32>, vector<15x16xf32> -> vector<16x16xf32>
      %c64_254 = arith.constant 64 : index
      %1462 = memref.load %arg10[%c64_254] : memref<144xf32, #tpu.memory_space<smem>>
      %1463 = vector.broadcast %1462 : f32 to vector<16x16xf32>
      %1464 = arith.mulf %1463, %1461 : vector<16x16xf32>
      %1465 = arith.addf %1454, %1464 : vector<16x16xf32>
      %c136_255 = arith.constant 136 : index
      %1466 = memref.load %arg10[%c136_255] : memref<144xf32, #tpu.memory_space<smem>>
      %1467 = vector.broadcast %1466 : f32 to vector<16x16xf32>
      %1468 = arith.mulf %1467, %1461 : vector<16x16xf32>
      %1469 = arith.addf %1458, %1468 : vector<16x16xf32>
      %c67_256 = arith.constant 67 : index
      %1470 = memref.load %arg10[%c67_256] : memref<144xf32, #tpu.memory_space<smem>>
      %1471 = vector.broadcast %1470 : f32 to vector<16x16xf32>
      %1472 = arith.mulf %1471, %745 : vector<16x16xf32>
      %1473 = arith.addf %1465, %1472 : vector<16x16xf32>
      %c139_257 = arith.constant 139 : index
      %1474 = memref.load %arg10[%c139_257] : memref<144xf32, #tpu.memory_space<smem>>
      %1475 = vector.broadcast %1474 : f32 to vector<16x16xf32>
      %1476 = arith.mulf %1475, %745 : vector<16x16xf32>
      %1477 = arith.addf %1469, %1476 : vector<16x16xf32>
      %cst_258 = arith.constant 0.000000e+00 : f32
      %1478 = vector.broadcast %cst_258 : f32 to vector<1x16xf32>
      %1479 = vector.extract_strided_slice %745 {offsets = [1, 0], sizes = [15, 16], strides = [1, 1]} : vector<16x16xf32> to vector<15x16xf32>
      %1480 = tpu.concatenate %1479, %1478 in 0 : vector<15x16xf32>, vector<1x16xf32> -> vector<16x16xf32>
      %c70_259 = arith.constant 70 : index
      %1481 = memref.load %arg10[%c70_259] : memref<144xf32, #tpu.memory_space<smem>>
      %1482 = vector.broadcast %1481 : f32 to vector<16x16xf32>
      %1483 = arith.mulf %1482, %1480 : vector<16x16xf32>
      %1484 = arith.addf %1473, %1483 : vector<16x16xf32>
      %c142_260 = arith.constant 142 : index
      %1485 = memref.load %arg10[%c142_260] : memref<144xf32, #tpu.memory_space<smem>>
      %1486 = vector.broadcast %1485 : f32 to vector<16x16xf32>
      %1487 = arith.mulf %1486, %1480 : vector<16x16xf32>
      %1488 = arith.addf %1477, %1487 : vector<16x16xf32>
      %cst_261 = arith.constant 0.000000e+00 : f32
      %1489 = vector.broadcast %cst_261 : f32 to vector<16x1xf32>
      %1490 = vector.extract_strided_slice %745 {offsets = [0, 1], sizes = [16, 15], strides = [1, 1]} : vector<16x16xf32> to vector<16x15xf32>
      %1491 = tpu.concatenate %1490, %1489 in 1 : vector<16x15xf32>, vector<16x1xf32> -> vector<16x16xf32>
      %cst_262 = arith.constant 0.000000e+00 : f32
      %1492 = vector.broadcast %cst_262 : f32 to vector<1x16xf32>
      %1493 = vector.extract_strided_slice %1491 {offsets = [0, 0], sizes = [15, 16], strides = [1, 1]} : vector<16x16xf32> to vector<15x16xf32>
      %1494 = tpu.concatenate %1492, %1493 in 0 : vector<1x16xf32>, vector<15x16xf32> -> vector<16x16xf32>
      %c65_263 = arith.constant 65 : index
      %1495 = memref.load %arg10[%c65_263] : memref<144xf32, #tpu.memory_space<smem>>
      %1496 = vector.broadcast %1495 : f32 to vector<16x16xf32>
      %1497 = arith.mulf %1496, %1494 : vector<16x16xf32>
      %1498 = arith.addf %1484, %1497 : vector<16x16xf32>
      %c137_264 = arith.constant 137 : index
      %1499 = memref.load %arg10[%c137_264] : memref<144xf32, #tpu.memory_space<smem>>
      %1500 = vector.broadcast %1499 : f32 to vector<16x16xf32>
      %1501 = arith.mulf %1500, %1494 : vector<16x16xf32>
      %1502 = arith.addf %1488, %1501 : vector<16x16xf32>
      %c68_265 = arith.constant 68 : index
      %1503 = memref.load %arg10[%c68_265] : memref<144xf32, #tpu.memory_space<smem>>
      %1504 = vector.broadcast %1503 : f32 to vector<16x16xf32>
      %1505 = arith.mulf %1504, %1491 : vector<16x16xf32>
      %1506 = arith.addf %1498, %1505 : vector<16x16xf32>
      %c140_266 = arith.constant 140 : index
      %1507 = memref.load %arg10[%c140_266] : memref<144xf32, #tpu.memory_space<smem>>
      %1508 = vector.broadcast %1507 : f32 to vector<16x16xf32>
      %1509 = arith.mulf %1508, %1491 : vector<16x16xf32>
      %1510 = arith.addf %1502, %1509 : vector<16x16xf32>
      %cst_267 = arith.constant 0.000000e+00 : f32
      %1511 = vector.broadcast %cst_267 : f32 to vector<1x16xf32>
      %1512 = vector.extract_strided_slice %1491 {offsets = [1, 0], sizes = [15, 16], strides = [1, 1]} : vector<16x16xf32> to vector<15x16xf32>
      %1513 = tpu.concatenate %1512, %1511 in 0 : vector<15x16xf32>, vector<1x16xf32> -> vector<16x16xf32>
      %c71_268 = arith.constant 71 : index
      %1514 = memref.load %arg10[%c71_268] : memref<144xf32, #tpu.memory_space<smem>>
      %1515 = vector.broadcast %1514 : f32 to vector<16x16xf32>
      %1516 = arith.mulf %1515, %1513 : vector<16x16xf32>
      %1517 = arith.addf %1506, %1516 : vector<16x16xf32>
      %c143_269 = arith.constant 143 : index
      %1518 = memref.load %arg10[%c143_269] : memref<144xf32, #tpu.memory_space<smem>>
      %1519 = vector.broadcast %1518 : f32 to vector<16x16xf32>
      %1520 = arith.mulf %1519, %1513 : vector<16x16xf32>
      %1521 = arith.addf %1510, %1520 : vector<16x16xf32>
      %1522 = arith.addf %1517, %71 : vector<16x16xf32>
      %1523 = arith.addf %1521, %73 : vector<16x16xf32>
      %1524 = vector.extract_strided_slice %9 {offsets = [0, 0], sizes = [16, 16], strides = [1, 1]} : vector<128x16xf32> to vector<16x16xf32>
      %1525 = vector.extract_strided_slice %10 {offsets = [0, 0], sizes = [16, 16], strides = [1, 1]} : vector<128x16xf32> to vector<16x16xf32>
      %1526 = arith.mulf %1522, %1524 : vector<16x16xf32>
      %1527 = arith.mulf %1523, %1525 : vector<16x16xf32>
      %1528 = arith.subf %1526, %1527 : vector<16x16xf32>
      %1529 = arith.mulf %1522, %1525 : vector<16x16xf32>
      %1530 = arith.mulf %1523, %1524 : vector<16x16xf32>
      %1531 = arith.addf %1529, %1530 : vector<16x16xf32>
      %1532 = vector.extract_strided_slice %9 {offsets = [16, 0], sizes = [16, 16], strides = [1, 1]} : vector<128x16xf32> to vector<16x16xf32>
      %1533 = vector.extract_strided_slice %10 {offsets = [16, 0], sizes = [16, 16], strides = [1, 1]} : vector<128x16xf32> to vector<16x16xf32>
      %1534 = arith.mulf %1522, %1532 : vector<16x16xf32>
      %1535 = arith.mulf %1523, %1533 : vector<16x16xf32>
      %1536 = arith.subf %1534, %1535 : vector<16x16xf32>
      %1537 = arith.mulf %1522, %1533 : vector<16x16xf32>
      %1538 = arith.mulf %1523, %1532 : vector<16x16xf32>
      %1539 = arith.addf %1537, %1538 : vector<16x16xf32>
      %1540 = vector.extract_strided_slice %9 {offsets = [32, 0], sizes = [16, 16], strides = [1, 1]} : vector<128x16xf32> to vector<16x16xf32>
      %1541 = vector.extract_strided_slice %10 {offsets = [32, 0], sizes = [16, 16], strides = [1, 1]} : vector<128x16xf32> to vector<16x16xf32>
      %1542 = arith.mulf %1522, %1540 : vector<16x16xf32>
      %1543 = arith.mulf %1523, %1541 : vector<16x16xf32>
      %1544 = arith.subf %1542, %1543 : vector<16x16xf32>
      %1545 = arith.mulf %1522, %1541 : vector<16x16xf32>
      %1546 = arith.mulf %1523, %1540 : vector<16x16xf32>
      %1547 = arith.addf %1545, %1546 : vector<16x16xf32>
      %1548 = vector.extract_strided_slice %9 {offsets = [48, 0], sizes = [16, 16], strides = [1, 1]} : vector<128x16xf32> to vector<16x16xf32>
      %1549 = vector.extract_strided_slice %10 {offsets = [48, 0], sizes = [16, 16], strides = [1, 1]} : vector<128x16xf32> to vector<16x16xf32>
      %1550 = arith.mulf %1522, %1548 : vector<16x16xf32>
      %1551 = arith.mulf %1523, %1549 : vector<16x16xf32>
      %1552 = arith.subf %1550, %1551 : vector<16x16xf32>
      %1553 = arith.mulf %1522, %1549 : vector<16x16xf32>
      %1554 = arith.mulf %1523, %1548 : vector<16x16xf32>
      %1555 = arith.addf %1553, %1554 : vector<16x16xf32>
      %1556 = vector.extract_strided_slice %9 {offsets = [64, 0], sizes = [16, 16], strides = [1, 1]} : vector<128x16xf32> to vector<16x16xf32>
      %1557 = vector.extract_strided_slice %10 {offsets = [64, 0], sizes = [16, 16], strides = [1, 1]} : vector<128x16xf32> to vector<16x16xf32>
      %1558 = arith.mulf %1522, %1556 : vector<16x16xf32>
      %1559 = arith.mulf %1523, %1557 : vector<16x16xf32>
      %1560 = arith.subf %1558, %1559 : vector<16x16xf32>
      %1561 = arith.mulf %1522, %1557 : vector<16x16xf32>
      %1562 = arith.mulf %1523, %1556 : vector<16x16xf32>
      %1563 = arith.addf %1561, %1562 : vector<16x16xf32>
      %1564 = vector.extract_strided_slice %9 {offsets = [80, 0], sizes = [16, 16], strides = [1, 1]} : vector<128x16xf32> to vector<16x16xf32>
      %1565 = vector.extract_strided_slice %10 {offsets = [80, 0], sizes = [16, 16], strides = [1, 1]} : vector<128x16xf32> to vector<16x16xf32>
      %1566 = arith.mulf %1522, %1564 : vector<16x16xf32>
      %1567 = arith.mulf %1523, %1565 : vector<16x16xf32>
      %1568 = arith.subf %1566, %1567 : vector<16x16xf32>
      %1569 = arith.mulf %1522, %1565 : vector<16x16xf32>
      %1570 = arith.mulf %1523, %1564 : vector<16x16xf32>
      %1571 = arith.addf %1569, %1570 : vector<16x16xf32>
      %1572 = vector.extract_strided_slice %9 {offsets = [96, 0], sizes = [16, 16], strides = [1, 1]} : vector<128x16xf32> to vector<16x16xf32>
      %1573 = vector.extract_strided_slice %10 {offsets = [96, 0], sizes = [16, 16], strides = [1, 1]} : vector<128x16xf32> to vector<16x16xf32>
      %1574 = arith.mulf %1522, %1572 : vector<16x16xf32>
      %1575 = arith.mulf %1523, %1573 : vector<16x16xf32>
      %1576 = arith.subf %1574, %1575 : vector<16x16xf32>
      %1577 = arith.mulf %1522, %1573 : vector<16x16xf32>
      %1578 = arith.mulf %1523, %1572 : vector<16x16xf32>
      %1579 = arith.addf %1577, %1578 : vector<16x16xf32>
      %1580 = vector.extract_strided_slice %9 {offsets = [112, 0], sizes = [16, 16], strides = [1, 1]} : vector<128x16xf32> to vector<16x16xf32>
      %1581 = vector.extract_strided_slice %10 {offsets = [112, 0], sizes = [16, 16], strides = [1, 1]} : vector<128x16xf32> to vector<16x16xf32>
      %1582 = arith.mulf %1522, %1580 : vector<16x16xf32>
      %1583 = arith.mulf %1523, %1581 : vector<16x16xf32>
      %1584 = arith.subf %1582, %1583 : vector<16x16xf32>
      %1585 = arith.mulf %1522, %1581 : vector<16x16xf32>
      %1586 = arith.mulf %1523, %1580 : vector<16x16xf32>
      %1587 = arith.addf %1585, %1586 : vector<16x16xf32>
      %1588 = tpu.concatenate %1528, %1536, %1544, %1552, %1560, %1568, %1576, %1584 in 0 : vector<16x16xf32>, vector<16x16xf32>, vector<16x16xf32>, vector<16x16xf32>, vector<16x16xf32>, vector<16x16xf32>, vector<16x16xf32>, vector<16x16xf32> -> vector<128x16xf32>
      %1589 = tpu.concatenate %1531, %1539, %1547, %1555, %1563, %1571, %1579, %1587 in 0 : vector<16x16xf32>, vector<16x16xf32>, vector<16x16xf32>, vector<16x16xf32>, vector<16x16xf32>, vector<16x16xf32>, vector<16x16xf32>, vector<16x16xf32> -> vector<128x16xf32>
      %1590 = tpu.concatenate %1588, %1589 in 1 : vector<128x16xf32>, vector<128x16xf32> -> vector<128x32xf32>
      %cst_270 = arith.constant dense<0.000000e+00> : vector<128x32xf32>
      %1591 = tpu.matmul %1590, %8, %cst_270 {dimension_numbers = #tpu.dot_dimension_numbers<[1], [0], [0], [1], [0, 0, 1, 1], [], []>} : vector<128x32xf32>, vector<32x32xf32>, vector<128x32xf32> -> vector<128x32xf32>
      %1592 = vector.extract_strided_slice %1591 {offsets = [0, 0], sizes = [128, 16], strides = [1, 1]} : vector<128x32xf32> to vector<128x16xf32>
      %1593 = vector.extract_strided_slice %1591 {offsets = [0, 16], sizes = [128, 16], strides = [1, 1]} : vector<128x32xf32> to vector<128x16xf32>
      %1594 = vector.extract_strided_slice %1592 {offsets = [0, 0], sizes = [16, 16], strides = [1, 1]} : vector<128x16xf32> to vector<16x16xf32>
      %1595 = vector.extract_strided_slice %1592 {offsets = [16, 0], sizes = [16, 16], strides = [1, 1]} : vector<128x16xf32> to vector<16x16xf32>
      %1596 = vector.extract_strided_slice %1592 {offsets = [32, 0], sizes = [16, 16], strides = [1, 1]} : vector<128x16xf32> to vector<16x16xf32>
      %1597 = vector.extract_strided_slice %1592 {offsets = [48, 0], sizes = [16, 16], strides = [1, 1]} : vector<128x16xf32> to vector<16x16xf32>
      %1598 = vector.extract_strided_slice %1592 {offsets = [64, 0], sizes = [16, 16], strides = [1, 1]} : vector<128x16xf32> to vector<16x16xf32>
      %1599 = vector.extract_strided_slice %1592 {offsets = [80, 0], sizes = [16, 16], strides = [1, 1]} : vector<128x16xf32> to vector<16x16xf32>
      %1600 = vector.extract_strided_slice %1592 {offsets = [96, 0], sizes = [16, 16], strides = [1, 1]} : vector<128x16xf32> to vector<16x16xf32>
      %1601 = vector.extract_strided_slice %1592 {offsets = [112, 0], sizes = [16, 16], strides = [1, 1]} : vector<128x16xf32> to vector<16x16xf32>
      %1602 = tpu.concatenate %1594, %1595, %1596, %1597, %1598, %1599, %1600, %1601 in 1 : vector<16x16xf32>, vector<16x16xf32>, vector<16x16xf32>, vector<16x16xf32>, vector<16x16xf32>, vector<16x16xf32>, vector<16x16xf32>, vector<16x16xf32> -> vector<16x128xf32>
      %1603 = vector.extract_strided_slice %1593 {offsets = [0, 0], sizes = [16, 16], strides = [1, 1]} : vector<128x16xf32> to vector<16x16xf32>
      %1604 = vector.extract_strided_slice %1593 {offsets = [16, 0], sizes = [16, 16], strides = [1, 1]} : vector<128x16xf32> to vector<16x16xf32>
      %1605 = vector.extract_strided_slice %1593 {offsets = [32, 0], sizes = [16, 16], strides = [1, 1]} : vector<128x16xf32> to vector<16x16xf32>
      %1606 = vector.extract_strided_slice %1593 {offsets = [48, 0], sizes = [16, 16], strides = [1, 1]} : vector<128x16xf32> to vector<16x16xf32>
      %1607 = vector.extract_strided_slice %1593 {offsets = [64, 0], sizes = [16, 16], strides = [1, 1]} : vector<128x16xf32> to vector<16x16xf32>
      %1608 = vector.extract_strided_slice %1593 {offsets = [80, 0], sizes = [16, 16], strides = [1, 1]} : vector<128x16xf32> to vector<16x16xf32>
      %1609 = vector.extract_strided_slice %1593 {offsets = [96, 0], sizes = [16, 16], strides = [1, 1]} : vector<128x16xf32> to vector<16x16xf32>
      %1610 = vector.extract_strided_slice %1593 {offsets = [112, 0], sizes = [16, 16], strides = [1, 1]} : vector<128x16xf32> to vector<16x16xf32>
      %1611 = tpu.concatenate %1603, %1604, %1605, %1606, %1607, %1608, %1609, %1610 in 1 : vector<16x16xf32>, vector<16x16xf32>, vector<16x16xf32>, vector<16x16xf32>, vector<16x16xf32>, vector<16x16xf32>, vector<16x16xf32>, vector<16x16xf32> -> vector<16x128xf32>
      %1612 = tpu.concatenate %1602, %1611 in 0 : vector<16x128xf32>, vector<16x128xf32> -> vector<32x128xf32>
      %cst_271 = arith.constant dense<0.000000e+00> : vector<32x128xf32>
      %1613 = tpu.matmul %7, %1612, %cst_271 {dimension_numbers = #tpu.dot_dimension_numbers<[1], [0], [0], [1], [0, 0, 1, 1], [], []>} : vector<32x32xf32>, vector<32x128xf32>, vector<32x128xf32> -> vector<32x128xf32>
      %1614 = arith.subf %arg14, %1 : vector<32x128xf32>
      %1615 = arith.mulf %4, %1614 : vector<32x128xf32>
      %1616 = arith.subf %arg14, %1615 : vector<32x128xf32>
      %1617 = arith.subf %1616, %1613 : vector<32x128xf32>
      %c0_272 = arith.constant 0 : index
      %1618 = arith.index_cast %arg13 : i32 to index
      %c0_273 = arith.constant 0 : index
      %c0_274 = arith.constant 0 : index
      %1619 = vector.load %arg12[%c0_272, %1618, %c0_273, %c0_274] : memref<1x4x32x128xf32, #tpu.memory_space<vmem>>, vector<1x1x32x128xf32>
      %1620 = vector.shape_cast %1619 : vector<1x1x32x128xf32> to vector<32x128xf32>
      %1621 = vector.shape_cast %1617 : vector<32x128xf32> to vector<1x1x32x128xf32>
      tpu.vector_store %arg12[%c0_272, %1618, %c0_273, %c0_274], %1621 {strides = array<i32>} : memref<1x4x32x128xf32, #tpu.memory_space<vmem>>, vector<1x1x32x128xf32>,
      scf.yield %1617 : vector<32x128xf32>
    }
    %c4_i32_15 = arith.constant 4 : i32
    return
  }
  func.func @transform_0(%arg0: i32) -> (i32, i32, i32) {
    %c0_i32 = arith.constant 0 : i32
    %c0_i32_0 = arith.constant 0 : i32
    %c0_i32_1 = arith.constant 0 : i32
    return %arg0, %c0_i32, %c0_i32_0 : i32, i32, i32
  }
  func.func @transform_1(%arg0: i32) -> (i32, i32, i32) {
    %c0_i32 = arith.constant 0 : i32
    %c0_i32_0 = arith.constant 0 : i32
    %c0_i32_1 = arith.constant 0 : i32
    return %arg0, %c0_i32, %c0_i32_0 : i32, i32, i32
  }
  func.func @transform_2(%arg0: i32) -> (i32, i32) {
    %c0_i32 = arith.constant 0 : i32
    %c0_i32_0 = arith.constant 0 : i32
    %c0_i32_1 = arith.constant 0 : i32
    return %c0_i32, %c0_i32_0 : i32, i32
  }
  func.func @transform_3(%arg0: i32) -> (i32, i32) {
    %c0_i32 = arith.constant 0 : i32
    %c0_i32_0 = arith.constant 0 : i32
    %c0_i32_1 = arith.constant 0 : i32
    return %c0_i32, %c0_i32_0 : i32, i32
  }
  func.func @transform_4(%arg0: i32) -> (i32, i32) {
    %c0_i32 = arith.constant 0 : i32
    %c0_i32_0 = arith.constant 0 : i32
    %c0_i32_1 = arith.constant 0 : i32
    return %c0_i32, %c0_i32_0 : i32, i32
  }
  func.func @transform_5(%arg0: i32) -> (i32, i32) {
    %c0_i32 = arith.constant 0 : i32
    %c0_i32_0 = arith.constant 0 : i32
    %c0_i32_1 = arith.constant 0 : i32
    return %c0_i32, %c0_i32_0 : i32, i32
  }
  func.func @transform_6(%arg0: i32) -> (i32, i32) {
    %c0_i32 = arith.constant 0 : i32
    %c0_i32_0 = arith.constant 0 : i32
    %c0_i32_1 = arith.constant 0 : i32
    return %c0_i32, %c0_i32_0 : i32, i32
  }
  func.func @transform_7(%arg0: i32) -> i32 {
    %c0_i32 = arith.constant 0 : i32
    %c0_i32_0 = arith.constant 0 : i32
    return %c0_i32 : i32
  }
  func.func @transform_8(%arg0: i32) -> i32 {
    %c0_i32 = arith.constant 0 : i32
    %c0_i32_0 = arith.constant 0 : i32
    return %c0_i32 : i32
  }
  func.func @transform_9(%arg0: i32) -> i32 {
    %c0_i32 = arith.constant 0 : i32
    %c0_i32_0 = arith.constant 0 : i32
    return %c0_i32 : i32
  }
  func.func @transform_10(%arg0: i32) -> i32 {
    %c0_i32 = arith.constant 0 : i32
    %c0_i32_0 = arith.constant 0 : i32
    return %c0_i32 : i32
  }
  func.func @transform_11(%arg0: i32) -> (i32, i32, i32, i32) {
    %c0_i32 = arith.constant 0 : i32
    %c0_i32_0 = arith.constant 0 : i32
    %c0_i32_1 = arith.constant 0 : i32
    %c0_i32_2 = arith.constant 0 : i32
    return %arg0, %c0_i32, %c0_i32_0, %c0_i32_1 : i32, i32, i32, i32
  }
}

</mosaic_0001>

<bundles_post_ra>
// kernel: tpu_custom_call.1
= control target key start
LH: loop header
LB: loop body
LE: loop exit
PB: predicated region body
PF: predicated region fallthrough
CT: control target
= control target key end

     0   :  { %7 = vsyncpa [#allocation3], 0  ;;  %s635_s0 = inlined_call_operand.hbm [shape: f32[8,128], index: 0, kind: input, shape index: {}]   ;;  %s636_s1 = inlined_call_operand.hbm [shape: f32[2,8,128], index: 1, kind: input, shape index: {}]   ;;  %s637_s2 = inlined_call_operand.hbm [shape: f32[2,8,128], index: 2, kind: output, shape index: {}]  }
   0x1   :  { %8 = vsyncpa [#allocation6], 0 }
   0x2   :  { %10 = vsyncpa [#allocation6 + $0x1], 0 }
   0x3   :  { %11 = vsyncpa [#allocation4], 0 }
   0x4   :  { %13 = vsyncpa [#allocation4 + $0x1], 0  ;;  %s497_s9 = smov 0   ;;  %s499_s10 = smov 0  }
   0x5   :  { %s501_s11 = smov 0   ;;  %s503_s12 = smov 0  }
   0x6 LB: > { %s518_s13 = sadd.s32 4294967295, %s479_s12   ;;  %s278_s14 = sadd.s32 4294967294, %s479_s12   ;;  %s479_s12 = sphi %s503_s12, %s647_s12   ;;  %s475_s11 = sphi %s501_s11, %s646_s11   ;;  %s471_s10 = sphi %s499_s10, %s645_s10   ;;  %s467_s9 = sphi %s497_s9, %s644_s9  }
   0x7   : > { %p60_p0 = scmp.ne.s32.totalorder %s471_s10, %s467_s9  ;;  %p61_p1 = scmp.eq.s32.totalorder %s518_s13, 0 }
   0x8   : > { %p84_p2 = scmp.eq.s32.totalorder %s518_s13, 1  ;;  %p90_p3 = scmp.eq.s32.totalorder %s278_s14, 1 }
   0x9   : > { %p527_p4 = por %p61_p1, %p60_p0  ;;  %p279_p5 = scmp.ge.s32.totalorder %s479_s12, 1 }
   0xa   : > { %p532_p6 = por %p90_p3, %p60_p0  ;;  %p97_p7 = scmp.lt.s32.totalorder %s479_s12, 3 }
   0xb   : > { %s109_s19 = sshll.u32 %s635_s0, 4  ;;  %s481_s21 = smov [#allocation2]   ;;  %s110_s19 = int_to_ptr.hbm [resolvable:$true] %s109_s19 }
   0xc   : > { %p540_p8 = pnand %p279_p5, %p97_p7  ;;  %s111_s22 = sshll.u32 %s481_s21, 4  ;;  %s112_s22 = int_to_ptr.vmem [resolvable:$true] %s111_s22 }
   0xd   : > { %s550_s23 = sadd.s32 1, %s479_s12   ;;  %s47_s24 = sadd.s32 1, %s475_s11 }
   0xe   : > { %p300_p10 = pneg %p540_p8  ;;  %s44_s25 = ssub.s32 %s479_s12, %s550_s23 }
   0xf   : > { %p45_p12 = scmp.eq.s32.totalorder %s44_s25, 0  ;;  %p54_p13 = scmp.ne.s32.totalorder %s475_s11, %s471_s10 }
  0x10   : > { %p301_p11 = pnand %p300_p10, %p61_p1  ;;  %p55_p0 = scmp.eq.s32.totalorder %s479_s12, 0 }
  0x11   : > { %s559_s26 = scalar_select %p45_p12, %s475_s11, %s47_s24  }
  0x12   : > { %303 = dma.hbm_to_vmem [thread:$0]  (!%p301_p11), %s110_s19, 128, %s112_s22, [#allocation3]  }
  0x13   : > { %p563_p3 = por %p84_p2, %p54_p13  ;;  %p313_p5 = scmp.lt.s32.totalorder %s479_s12, 2 }
  0x14   : > { %s122_s28 = sand.u32 1, %s475_s11   ;;  %s283_s29 = sshll.u32 %s479_s12, 3 }
  0x15   : > { %p56_p7 = por %p55_p0, %p54_p13  ;;  %s282_s30 = sshll.u32 %s122_s28, 3 }
  0x16   : > { %s130_s5 = scalar_lea.hbm %s636_s1, %s283_s29  ;;  %s126_s7 = scalar_lea.vmem [#allocation5], %s282_s30 }
  0x17   : > { %s132_s6 = sshll.u32 %s130_s5, 4  ;;  %s134_s8 = sshll.u32 %s126_s7, 4  ;;  %s133_s6 = int_to_ptr.hbm [resolvable:$true] %s132_s6  ;;  %s135_s8 = int_to_ptr.vmem [resolvable:$true] %s134_s8 }
  0x18   : > { %p573_p10 = pnand %p313_p5, %p56_p7  ;;  %s123_s17 = scalar_lea.sflag [#allocation6], %s122_s28 }
  0x19   : > { %s379_s18 = sshra.s32 %s133_s6, 4  ;;  %s386_s24 = scalar_lea.hbm %s636_s1, 16  ;;  %s380_s18 = int_to_ptr.hbm [resolvable:$true] %s379_s18 }
  0x1a   : > { %s381_s19 = scalar_lea.hbm %s380_s18, 8  ;;  %p383_p11 = pneg %p573_p10 }
  0x1b   : > { %p382_p2 = scmp.ne.s32.totalorder %s380_s18, %s381_s19  ;;  %p387_p0 = scmp.lt.s32.totalorder %s380_s18, %s636_s1 }
  0x1c   : > { %p388_p5 = scmp.lt.s32.totalorder %s386_s24, %s381_s19 }
  0x1d   : > { %p384_p12 = pnand %p383_p11, %p382_p2 }
  0x1e   : > { %p389_p7 = por %p388_p5, %p387_p0 }
  0x1f   : > { %p385_p13 = pneg %p384_p12 }
  0x21   : > { %p390_p9 = pnand %p389_p7, %p385_p13 }
  0x23   : > { %393 = shalt.err (!%p390_p9)
}
  0x24   : > { %307 = dma.hbm_to_vmem [thread:$0]  (!%p573_p10), %s133_s6, 128, %s135_s8, %s123_s17  }
  0x25   : > { %143 = sbr.rel (%p540_p8) target bundleno = 62 (0x3e), region = 28 }
  0x2a   : > { %454 = dma.done.wait (%p61_p1), [#allocation3], 128  }
  0x2b   : > { %456 = vsyncadd (%p61_p1), [#allocation3], 4294967168  ;;  %s594_s28 = sand.u32 1, %s471_s10  }
  0x2c   : > { %s286_s30 = sshll.u32 %s594_s28, 3  ;;  %s151_s3 = scalar_lea.sflag [#allocation6], %s594_s28 }
  0x2d   : > { %s154_s4 = scalar_lea.vmem [#allocation5], %s286_s30 }
  0x2e   : > { %458 = dma.done.wait (%p527_p4), %s151_s3, 128  }
  0x2f   : > { %460 = vsyncadd (%p527_p4), %s151_s3, 4294967168  ;;  %s289_s20 = sshll.u32 %s518_s13, 3  ;;  %s175_s8 = scalar_lea.vmem [#allocation7], %s286_s30  ;;  %v176_v0 = vld [vmem:[%s154_s4] sm:$0xff]  ;;  %v177_v1 = vld [vmem:[#allocation2] sm:$0xff] }
  0x30   : > { %s191_s7 = scalar_lea.hbm %s637_s2, %s289_s20  ;;  %s193_s14 = sshll.u32 %s175_s8, 4  ;;  %v178_v2 = vadd.f32 %v177_v1, %v176_v0  ;;  %s194_s14 = int_to_ptr.vmem [resolvable:$true] %s193_s14 }
  0x31   : > { %s195_s17 = sshll.u32 %s191_s7, 4  ;;  %s181_s18 = scalar_lea.sflag [#allocation4], %s594_s28  ;;  %s196_s17 = int_to_ptr.hbm [resolvable:$true] %s195_s17 }
  0x32   : > { %179 = vst [vmem:[%s175_s8] sm:$0xff] %v178_v2  ;;  %s423_s15 = sshra.s32 %s196_s17, 4  ;;  %s429_s22 = scalar_lea.hbm %s637_s2, 16  ;;  %s424_s15 = int_to_ptr.hbm [resolvable:$true] %s423_s15 }
  0x33   : > { %s425_s19 = scalar_lea.hbm %s424_s15, 8  ;;  %p430_p9 = scmp.lt.s32.totalorder %s424_s15, %s637_s2 }
  0x34   : > { %p426_p1 = scmp.ne.s32.totalorder %s424_s15, %s425_s19  ;;  %p431_p10 = scmp.lt.s32.totalorder %s429_s22, %s425_s19 }
  0x36   : > { %p427_p4 = pnand %p426_p1, %p563_p3  ;;  %p432_p2 = por %p431_p10, %p430_p9 }
  0x38   : > { %p428_p8 = pneg %p427_p4 }
  0x3a   : > { %p433_p11 = pnand %p432_p2, %p428_p8 }
  0x3c   : > { %436 = shalt.err (!%p433_p11)
}
  0x3d   : > { %298 = dma.vmem_to_hbm [thread:$0]  (%p563_p3), %s194_s14, 128, %s196_s17, %s181_s18  }
  0x3e PF: > { %s207_s29 = sand.u32 1, %s467_s9   ;;  %p643_p12 = scmp.ge.s32.totalorder %s479_s12, 2 }
  0x3f   : > { %s208_s28 = scalar_lea.sflag [#allocation4], %s207_s29 }
  0x40   : > { %p309_p13 = pnand %p643_p12, %p532_p6 }
  0x42   : > { %p310_p0 = pneg %p309_p13 }
  0x44   : > { %462 = dma.done.wait (%p310_p0), %s208_s28, 128  }
  0x45   : > { %464 = vsyncadd (%p310_p0), %s208_s28, 4294967168  ;;  %p16_p5 = scmp.ge.s32.totalorder %s550_s23, 4   ;;  %s644_s9 = smov %s471_s10 }
  0x46   : > { %s645_s10 = smov %s475_s11  ;;  %s646_s11 = smov %s559_s26 }
  0x47   : > { %s647_s12 = smov %s550_s23  ;;  %18 = sbr.rel (!%p16_p5) target bundleno = 6 (0x6), region = 78 }
  0x4c   :  { %214 = vsyncpa [#allocation3], 1 }
  0x4d   :  { %216 = vsyncpa [#allocation3 + $0x1], 1 }
  0x4e   :  { %217 = vsyncpa [#allocation6], 1 }
  0x4f   :  { %219 = vsyncpa [#allocation6 + $0x1], 1 }
  0x50   :  { %220 = vsyncpa [#allocation4], 1 }
  0x51   :  { %222 = vsyncpa [#allocation4 + $0x1], 1 }

// kernel: pallas_forward.1
= control target key start
LH: loop header
LB: loop body
LE: loop exit
PB: predicated region body
PF: predicated region fallthrough
CT: control target
= control target key end

     0   :  { %s9098_s0 = inlined_call_operand.vmem [shape: f32[2,32,128], index: 0, kind: input, shape index: {}]   ;;  %s9099_s1 = inlined_call_operand.vmem [shape: f32[2,128,32], index: 1, kind: input, shape index: {}]   ;;  %s9100_s2 = inlined_call_operand.vmem [shape: f32[32,128], index: 2, kind: input, shape index: {}]   ;;  %s9101_s3 = inlined_call_operand.vmem [shape: f32[32,32], index: 3, kind: input, shape index: {}]   ;;  %s9102_s4 = inlined_call_operand.vmem [shape: f32[32,32], index: 4, kind: input, shape index: {}]   ;;  %s9103_s5 = inlined_call_operand.vmem [shape: f32[32,32], index: 5, kind: input, shape index: {}]   ;;  %s9104_s6 = inlined_call_operand.vmem [shape: f32[32,32], index: 6, kind: input, shape index: {}]   ;;  %s9105_s7 = inlined_call_operand.vmem [shape: f32[144], index: 7, kind: input, shape index: {}]   ;;  %s9106_s8 = inlined_call_operand.vmem [shape: f32[8], index: 8, kind: input, shape index: {}]   ;;  %s9107_s9 = inlined_call_operand.vmem [shape: f32[144], index: 9, kind: input, shape index: {}]   ;;  %s9108_s10 = inlined_call_operand.vmem [shape: f32[2], index: 10, kind: input, shape index: {}]   ;;  %s9109_s11 = inlined_call_operand.vmem [shape: f32[2,4,32,128], index: 11, kind: output, shape index: {}]  }
   0x1   :  { %9415 = sst [smem:[#allocation192_spill]] %s9098_s0 }
   0x2   :  { %9416 = sst [smem:[#allocation193_spill]] %s9099_s1 }
   0x3   :  { %9417 = sst [smem:[#allocation194_spill]] %s9100_s2 }
   0x4   :  { %9418 = sst [smem:[#allocation195_spill]] %s9101_s3 }
   0x5   :  { %9419 = sst [smem:[#allocation196_spill]] %s9102_s4 }
   0x6   :  { %9420 = sst [smem:[#allocation197_spill]] %s9103_s5 }
   0x7   :  { %9421 = sst [smem:[#allocation198_spill]] %s9104_s6 }
   0x8   :  { %9422 = sst [smem:[#allocation199_spill]] %s9105_s7 }
   0x9   :  { %9423 = sst [smem:[#allocation200_spill]] %s9106_s8 }
   0xa   :  { %9424 = sst [smem:[#allocation201_spill]] %s9107_s9 }
   0xb   :  { %9425 = sst [smem:[#allocation202_spill]] %s9108_s10 }
   0xc   :  { %9426 = sst [smem:[#allocation203_spill]] %s9109_s11 }
   0xd   :  { %16 = vsyncpa [#allocation3], 0 }
   0xe   :  { %17 = vsyncpa [#allocation5], 0 }
   0xf   :  { %18 = vsyncpa [#allocation8], 0  ;;  %s4991_s17 = smov 0  }
  0x10 LB: > { %9427 = sst [smem:[#allocation12_spill]] %s4894_s17  ;;  %s5000_s21 = sadd.s32 4294967295, %s4894_s17   ;;  %s4894_s17 = sphi %s4991_s17, %s24_s17  }
  0x11   : > { %s9428_s8 = sld [smem:[#allocation200_spill]]  ;;  %p4261_p0 = scmp.ge.s32.totalorder %s4894_s17, 1 }
  0x12   : > { %p296_p1 = scmp.lt.s32.totalorder %s4894_s17, 3  ;;  %p4655_p2 = scmp.eq.s32.totalorder %s5000_s21, 0 }
  0x13   : > { %s9430_s7 = sld [smem:[#allocation199_spill]]  ;;  %s4916_s13 = smov [#allocation4]  }
  0x14   : > { %p5005_p3 = pnand %p4261_p0, %p296_p1  ;;  %s9431_s9 = sld [smem:[#allocation201_spill]] }
  0x15   : > { %s9432_s10 = sld [smem:[#allocation202_spill]]  ;;  %s4917_s14 = smov [#allocation2]  }
  0x16   : > { %p4642_p4 = pneg %p5005_p3  ;;  %s4918_s15 = smov [#allocation6]  }
  0x17   : > { %s333_s20 = sshll.u32 %s9428_s8, 4  ;;  %s4919_s16 = smov [#allocation7]   ;;  %s334_s20 = int_to_ptr.vmem [resolvable:$true] %s333_s20 }
  0x18   : > { %p4643_p5 = pnand %p4655_p2, %p4642_p4 }
  0x19   : > { %s323_s25 = sshll.u32 %s9430_s7, 4  ;;  %s324_s25 = int_to_ptr.vmem [resolvable:$true] %s323_s25 }
  0x1a   : > { %s343_s28 = sshll.u32 %s9431_s9, 4  ;;  %s344_s28 = int_to_ptr.vmem [resolvable:$true] %s343_s28 }
  0x1b   : > { %s353_s12 = sshll.u32 %s9432_s10, 4  ;;  %382 = sbr.rel (%p5005_p3) target bundleno = 2072 (0x818), region = 64  ;;  %s354_s12 = int_to_ptr.vmem [resolvable:$true] %s353_s12 }
  0x1c   : > { %4648 = dma.vmem_to_smem (!%p4643_p5), %s334_s20, 16, %s4916_s13, [#allocation5]  }
  0x1d   : > { %4645 = dma.vmem_to_smem (!%p4643_p5), %s324_s25, 32, %s4917_s14, [#allocation3]  }
  0x1e   : > { %4651 = dma.vmem_to_smem (!%p4643_p5), %s344_s28, 32, %s4918_s15, [#allocation5]  }
  0x1f   : > { %4654 = dma.vmem_to_smem (!%p4643_p5), %s354_s12, 16, %s4919_s16, [#allocation8]  }
  0x20   : > { %4881 = dma.done.wait (%p4655_p2), [#allocation3], 32  }
  0x21   : > { %4883 = vsyncadd (%p4655_p2), [#allocation3], 4294967264 }
  0x22   : > { %4885 = dma.done.wait (%p4655_p2), [#allocation5], 48  }
  0x23   : > { %4887 = vsyncadd (%p4655_p2), [#allocation5], 4294967248 }
  0x24   : > { %4889 = dma.done.wait (%p4655_p2), [#allocation8], 16  }
  0x25   : > { %4891 = vsyncadd (%p4655_p2), [#allocation8], 4294967280 }
  0x26   : > { %404 = sfence }
  0x27   : > { %p444_p6 = scmp.lt.s32.totalorder %s5000_s21, 1  ;;  %s9433_s2 = sld [smem:[#allocation194_spill]] }
  0x28   : > { %s9438_s3 = sld [smem:[#allocation195_spill]]  ;;  %s5201_s16 = smov 0  }
  0x29   : > { %s10198_s21 = smov (!%p444_p6, %s5000_s21), 1  ;;  %s9443_s4 = sld [smem:[#allocation196_spill]] }
  0x2a   : > { %s4615_s26 = sshll.u32 %s10198_s21, 5  ;;  %s4616_s27 = sshll.u32 %s10198_s21, 7 }
  0x2b   : > { %s9448_s5 = sld [smem:[#allocation197_spill]] }
  0x2c   : > { %s9452_s0 = sld [smem:[#allocation192_spill]] }
  0x2d   : > { %v5040_v0 = vld [vmem:[%s9433_s2] sm:$0xff]  ;;  %v5045_v1 = vld [vmem:[%s9433_s2 + $0x8] sm:$0xff]  ;;  %v5050_v2 = vld [vmem:[%s9433_s2 + $0x10] sm:$0xff]  ;;  %s9453_s1 = sld [smem:[#allocation193_spill]] }
  0x2e   : > { %9434 = vst [vmem:[#allocation13_spill] sm:$0xff] %v5040_v0  ;;  %v5055_v3 = vld [vmem:[%s9433_s2 + $0x18] sm:$0xff]  ;;  %v5060_v4 = vld [vmem:[%s9438_s3] sm:$0xff]  ;;  %v5065_v5 = vld [vmem:[%s9438_s3 + $0x8] sm:$0xff]  ;;  %s9455_s6 = sld [smem:[#allocation198_spill]] }
  0x2f   : > { %9435 = vst [vmem:[#allocation14_spill] sm:$0xff] %v5045_v1  ;;  %v5071_v6 = vld [vmem:[%s9438_s3 + $0x10] sm:$0xff]  ;;  %v5076_v7 = vld [vmem:[%s9438_s3 + $0x18] sm:$0xff]  ;;  %v5081_v8 = vld [vmem:[%s9443_s4] sm:$0xff]  ;;  %s9458_s11 = sld [smem:[#allocation203_spill]] }
  0x30   : > { %9436 = vst [vmem:[#allocation15_spill] sm:$0xff] %v5050_v2  ;;  %v5086_v9 = vld [vmem:[%s9443_s4 + $0x8] sm:$0xff]  ;;  %v5091_v10 = vld [vmem:[%s9443_s4 + $0x10] sm:$0xff]  ;;  %v5096_v11 = vld [vmem:[%s9443_s4 + $0x18] sm:$0xff] }
  0x31   : > { %9437 = vst [vmem:[#allocation16_spill] sm:$0xff] %v5055_v3  ;;  %v5101_v12 = vld [vmem:[%s9448_s5] sm:$0xff]  ;;  %v5106_v13 = vld [vmem:[%s9448_s5 + $0x8] sm:$0xff]  ;;  %v5111_v14 = vld [vmem:[%s9448_s5 + $0x10] sm:$0xff] }
  0x32   : > { %9439 = vst [vmem:[#allocation17_spill] sm:$0xff] %v5060_v4  ;;  %s448_s18 = scalar_lea.vmem %s9452_s0, %s4615_s26  ;;  %v5122_v15 = vld [vmem:[%s9448_s5 + $0x18] sm:$0xff] }
  0x33   : > { %9440 = vst [vmem:[#allocation18_spill] sm:$0xff] %v5065_v5  ;;  %s453_s20 = scalar_lea.vmem %s9453_s1, %s4616_s27  ;;  %v5139_v18 = vld [vmem:[%s448_s18] sm:$0xff]   ;;  %v5141_v19 = vld [vmem:[%s448_s18 + $0x8] sm:$0xff]   ;;  %v5143_v20 = vld [vmem:[%s448_s18 + $0x10] sm:$0xff]  }
  0x34   : > { %9441 = vst [vmem:[#allocation19_spill] sm:$0xff] %v5071_v6  ;;  %v5127_v16 = vld [vmem:[%s9455_s6] sm:$0xff]  ;;  %v5132_v17 = vld [vmem:[%s9455_s6 + $0x8] sm:$0xff]  ;;  %v5145_v21 = vld [vmem:[%s448_s18 + $0x18] sm:$0xff]   ;;  %v9483_v41 = vmov %v5143_v20  ;;  %v9484_v42 = vmov %v5141_v19  ;;  %v9485_v43 = vmov %v5139_v18 }
  0x35   : > { %9442 = vst [vmem:[#allocation20_spill] sm:$0xff] %v5076_v7  ;;  %s5137_s12 = scalar_lea.vmem %s9458_s11, %s4616_s27  ;;  %v5147_v22 = vld [vmem:[%s453_s20] sm:$0xff]  ;;  %v5149_v23 = vld [vmem:[%s453_s20 + $0x8] sm:$0xff]  ;;  %v5151_v24 = vld [vmem:[%s453_s20 + $0x10] sm:$0xff]  ;;  %v9482_v40 = vmov %v5145_v21 }
  0x36   : > { %9444 = vst [vmem:[#allocation21_spill] sm:$0xff] %v5081_v8  ;;  %9459 = sst [smem:[#allocation31_spill]] %s5137_s12  ;;  %v5153_v25 = vld [vmem:[%s453_s20 + $0x18] sm:$0xff]  ;;  %v5155_v26 = vld [vmem:[%s453_s20 + $0x20] sm:$0xff]  ;;  %v5157_v27 = vld [vmem:[%s453_s20 + $0x28] sm:$0xff] }
  0x37   : > { %9445 = vst [vmem:[#allocation22_spill] sm:$0xff] %v5086_v9  ;;  %v5159_v28 = vld [vmem:[%s453_s20 + $0x30] sm:$0xff]  ;;  %v5161_v29 = vld [vmem:[%s453_s20 + $0x38] sm:$0xff]  ;;  %v5163_v30 = vld [vmem:[%s453_s20 + $0x40] sm:$0xff] }
  0x38   : > { %9446 = vst [vmem:[#allocation23_spill] sm:$0xff] %v5091_v10  ;;  %v5165_v31 = vld [vmem:[%s453_s20 + $0x48] sm:$0xff]  ;;  %v5167_v32 = vld [vmem:[%s453_s20 + $0x50] sm:$0xff]  ;;  %v5169_v33 = vld [vmem:[%s453_s20 + $0x58] sm:$0xff] }
  0x39   : > { %9447 = vst [vmem:[#allocation24_spill] sm:$0xff] %v5096_v11  ;;  %v5171_v34 = vld [vmem:[%s453_s20 + $0x60] sm:$0xff]  ;;  %v5173_v35 = vld [vmem:[%s453_s20 + $0x68] sm:$0xff]  ;;  %v5175_v36 = vld [vmem:[%s453_s20 + $0x70] sm:$0xff] }
  0x3a   : > { %9449 = vst [vmem:[#allocation25_spill] sm:$0xff] %v5101_v12  ;;  %v5177_v37 = vld [vmem:[%s453_s20 + $0x78] sm:$0xff]  ;;  %v5182_v38 = vld [vmem:[%s9455_s6 + $0x10] sm:$0xff] }
  0x3b   : > { %9450 = vst [vmem:[#allocation26_spill] sm:$0xff] %v5106_v13  ;;  %v5187_v39 = vld [vmem:[%s9455_s6 + $0x18] sm:$0xff] }
  0x3c   : > { %9451 = vst [vmem:[#allocation27_spill] sm:$0xff] %v5111_v14 }
  0x3d   : > { %9454 = vst [vmem:[#allocation28_spill] sm:$0xff] %v5122_v15 }
  0x3e   : > { %9456 = vst [vmem:[#allocation29_spill] sm:$0xff] %v5127_v16 }
  0x3f   : > { %9457 = vst [vmem:[#allocation30_spill] sm:$0xff] %v5132_v17 }
  0x40   : > { %9460 = vst [vmem:[#allocation32_spill] sm:$0xff] %v5139_v18 }
  0x41   : > { %9461 = vst [vmem:[#allocation33_spill] sm:$0xff] %v5141_v19 }
  0x42   : > { %9462 = vst [vmem:[#allocation34_spill] sm:$0xff] %v5143_v20 }
  0x43   : > { %9463 = vst [vmem:[#allocation35_spill] sm:$0xff] %v5145_v21 }
  0x44   : > { %9464 = vst [vmem:[#allocation36_spill] sm:$0xff] %v5147_v22 }
  0x45   : > { %9465 = vst [vmem:[#allocation37_spill] sm:$0xff] %v5149_v23 }
  0x46   : > { %9466 = vst [vmem:[#allocation38_spill] sm:$0xff] %v5151_v24 }
  0x47   : > { %9467 = vst [vmem:[#allocation39_spill] sm:$0xff] %v5153_v25 }
  0x48   : > { %9468 = vst [vmem:[#allocation40_spill] sm:$0xff] %v5155_v26 }
  0x49   : > { %9469 = vst [vmem:[#allocation41_spill] sm:$0xff] %v5157_v27 }
  0x4a   : > { %9470 = vst [vmem:[#allocation42_spill] sm:$0xff] %v5159_v28 }
  0x4b   : > { %9471 = vst [vmem:[#allocation43_spill] sm:$0xff] %v5161_v29 }
  0x4c   : > { %9472 = vst [vmem:[#allocation44_spill] sm:$0xff] %v5163_v30 }
  0x4d   : > { %9473 = vst [vmem:[#allocation45_spill] sm:$0xff] %v5165_v31 }
  0x4e   : > { %9474 = vst [vmem:[#allocation46_spill] sm:$0xff] %v5167_v32 }
  0x4f   : > { %9475 = vst [vmem:[#allocation47_spill] sm:$0xff] %v5169_v33 }
  0x50   : > { %9476 = vst [vmem:[#allocation48_spill] sm:$0xff] %v5171_v34 }
  0x51   : > { %9477 = vst [vmem:[#allocation49_spill] sm:$0xff] %v5173_v35 }
  0x52   : > { %9478 = vst [vmem:[#allocation50_spill] sm:$0xff] %v5175_v36 }
  0x53   : > { %9479 = vst [vmem:[#allocation51_spill] sm:$0xff] %v5177_v37 }
  0x54   : > { %9480 = vst [vmem:[#allocation52_spill] sm:$0xff] %v5182_v38 }
  0x55   : > { %9481 = vst [vmem:[#allocation53_spill] sm:$0xff] %v5187_v39 }
  0x56 LB: >> { %v9486_v23 = vld [vmem:[#allocation37_spill] sm:$0xff]  ;;  %v9487_v24 = vld [vmem:[#allocation38_spill] sm:$0xff]  ;;  %v9489_v22 = vld [vmem:[#allocation36_spill] sm:$0xff]  ;;  %9510 = vst [vmem:[#allocation54_spill] sm:$0xff] %v4898_v40  ;;  %9514 = sst [smem:[#allocation58_spill]] %s4914_s16  ;;  %534 = vmatpush.msra.mxu0 %v4898_v40  ;;  %vm509_vm0 = vcmask 261120   ;;  %v4910_v43 = vphi %v9485_v43, %v4122_v43   ;;  %v4906_v42 = vphi %v9484_v42, %v4123_v42   ;;  %v4902_v41 = vphi %v9483_v41, %v4124_v41   ;;  %v4898_v40 = vphi %v9482_v40, %v4125_v40   ;;  %s4914_s16 = sphi %s5201_s16, %s504_s16  }
  0x57   : >> { %v9491_v26 = vld [vmem:[#allocation40_spill] sm:$0xff]  ;;  %v9493_v32 = vld [vmem:[#allocation46_spill] sm:$0xff]  ;;  %v9494_v25 = vld [vmem:[#allocation39_spill] sm:$0xff]  ;;  %9511 = vst [vmem:[#allocation55_spill] sm:$0xff] %v4902_v41  ;;  %s9188_s18 = smov 48   ;;  %s9196_s21 = smov 64  }
  0x58   : >> { %v9490_v35 = vld [vmem:[#allocation49_spill] sm:$0xff]  ;;  %v9495_v33 = vld [vmem:[#allocation47_spill] sm:$0xff]  ;;  %v9496_v28 = vld [vmem:[#allocation42_spill] sm:$0xff]  ;;  %9512 = vst [vmem:[#allocation56_spill] sm:$0xff] %v4906_v42  ;;  %535 = vmatpush.msra.mxu0 %v4902_v41  ;;  %s9192_s19 = smov 80   ;;  %s9204_s20 = smov 112  }
  0x59   : >> { %v9492_v36 = vld [vmem:[#allocation50_spill] sm:$0xff]  ;;  %v9497_v27 = vld [vmem:[#allocation41_spill] sm:$0xff]  ;;  %v9498_v34 = vld [vmem:[#allocation48_spill] sm:$0xff]  ;;  %9513 = vst [vmem:[#allocation57_spill] sm:$0xff] %v4910_v43  ;;  %s9190_s22 = smov 96   ;;  %s9194_s23 = smov 32  }
  0x5a   : >> { %v9488_v37 = vld [vmem:[#allocation51_spill] sm:$0xff]  ;;  %v9499_v31 = vld [vmem:[#allocation45_spill] sm:$0xff]  ;;  %v9501_v30 = vld [vmem:[#allocation44_spill] sm:$0xff]  ;;  %536 = vmatpush.msra.mxu0 %v4906_v42  ;;  %s9198_s24 = smov 16   ;;  %vm669_vm1 = vcmask 130048   ;;  %s9200_s25 = smov 127  }
  0x5b   : >> { %v9500_v29 = vld [vmem:[#allocation43_spill] sm:$0xff]  ;;  %v9503_v38 = vld [vmem:[#allocation52_spill] sm:$0xff]  ;;  %v9505_v16 = vld [vmem:[#allocation29_spill] sm:$0xff]  ;;  %s9202_s28 = smov 1   ;;  %s4408_s29 = sld [smem:[#allocation2 + $0xd]]  ;;  %vm1287_vm2 = vcmask 1046528  }
  0x5c   : >> { %v9502_v39 = vld [vmem:[#allocation53_spill] sm:$0xff]  ;;  %v9504_v17 = vld [vmem:[#allocation30_spill] sm:$0xff]  ;;  %v9507_v10 = vld [vmem:[#allocation23_spill] sm:$0xff]  ;;  %537 = vmatpush.msra.mxu0 %v4910_v43  ;;  %s4929_s26 = smov 113   ;;  %s5691_s30 = sld [smem:[#allocation2 + $0x10]]  ;;  %vm1184_vm3 = vcmask 1040384  }
  0x5d   : >> { %v9506_v11 = vld [vmem:[#allocation24_spill] sm:$0xff]  ;;  %v9508_v9 = vld [vmem:[#allocation22_spill] sm:$0xff]  ;;  %v9509_v8 = vld [vmem:[#allocation21_spill] sm:$0xff]  ;;  %3883 = vmatpush.msra.mxu2 %v9502_v39  ;;  %4622 = vmatpush.msra.mxu3 %v9502_v39  ;;  %s4930_s27 = smov 111   ;;  %s5703_s13 = sld [smem:[#allocation2 + $0x22]]  ;;  %vm1179_vm4 = vcmask 7168  }
  0x5e   : >> { %4618 = vmatpush.msra.mxu1 %v9506_v11  ;;  %v9515_v4 = vld [vmem:[#allocation17_spill] sm:$0xff]  ;;  %746 = vmatpush.msrb.mxu0 %v9506_v11  ;;  %v9516_v5 = vld [vmem:[#allocation18_spill] sm:$0xff]  ;;  %v9517_v6 = vld [vmem:[#allocation19_spill] sm:$0xff]  ;;  %s5713_s14 = sld [smem:[#allocation2 + $0x58]]  ;;  %s9553_s17 = smov 112   ;;  %vm1504_vm5 = vcmask 121856  }
  0x5f   : >> { %3884 = vmatpush.msra.mxu2 %v9503_v38  ;;  %4623 = vmatpush.msra.mxu3 %v9503_v38  ;;  %v9518_v7 = vld [vmem:[#allocation20_spill] sm:$0xff]  ;;  %s5721_s15 = sld [smem:[#allocation2 + $0x31]]  ;;  %vm3996_vm6 = vcmask 392192   ;;  %vm3999_vm7 = vcmask 523264   ;;  %vm4002_vm8 = vcmask 654336   ;;  %vm4005_vm9 = vcmask 785408  }
  0x60   : >> { %4619 = vmatpush.msra.mxu1 %v9507_v10  ;;  %4278 = vmatmul.msk.f32.vlgmr.msra.gmra.mxu0 %vm509_vm0, %v9515_v4  ;;  %s5782_s0 = sld [smem:[#allocation2 + $0x3a]]  ;;  %vm4008_vm10 = vcmask 916480  }
  0x61   : >> { %3885 = vmatpush.msra.mxu2 %v9504_v17  ;;  %4624 = vmatpush.msra.mxu3 %v9504_v17  ;;  %s5784_s1 = sld [smem:[#allocation2 + $0x19]] }
  0x62   : >> { %4620 = vmatpush.msra.mxu1 %v9508_v9  ;;  %747 = vmatpush.msrb.mxu0 %v9507_v10  ;;  %s5787_s2 = sld [smem:[#allocation2 + $0x3d]] }
  0x63   : >> { %3886 = vmatpush.msra.mxu2 %v9505_v16  ;;  %4625 = vmatpush.msra.mxu3 %v9505_v16  ;;  %s5789_s3 = sld [smem:[#allocation4]] }
  0x64   : >> { %4621 = vmatpush.msra.mxu1 %v9509_v8  ;;  %748 = vmatpush.msrb.mxu0 %v9508_v9  ;;  %s5793_s4 = sld [smem:[#allocation2]] }
  0x65   : >> { %s5795_s5 = sld [smem:[#allocation2 + $0x3]] }
  0x66   : >> { %749 = vmatpush.msrb.mxu0 %v9509_v8  ;;  %9547 = sst [smem:[#allocation87_spill]] %s5782_s0 }
  0x67   : >> { %s5800_s6 = sld [smem:[#allocation2 + $0x27]] }
  0x68   : >> { %4279 = vmatmul.msk.f32.gmra.mxu0 %vm509_vm0, %v9516_v5  ;;  %9548 = sst [smem:[#allocation88_spill]] %s5787_s2 }
  0x69   : >> { %s5802_s7 = sld [smem:[#allocation2 + $0x39]] }
  0x6a   : >> { %s5804_s8 = sld [smem:[#allocation2 + $0x4b]] }
  0x6b   : >> { %s5806_s9 = sld [smem:[#allocation2 + $0x5]] }
  0x6c   : >> { %s5808_s10 = sld [smem:[#allocation2 + $0x2]] }
  0x6d   : >> { %s5811_s11 = sld [smem:[#allocation4 + $0x4]] }
  0x6e   : >> { %s5817_s12 = sld [smem:[#allocation2 + $0x4a]] }
  0x6f   : >> { %s5819_s16 = sld [smem:[#allocation2 + $0x4d]] }
  0x70   : >> { %4280 = vmatmul.msk.f32.gmra.mxu0 %vm509_vm0, %v9517_v6  ;;  %9549 = sst [smem:[#allocation89_spill]] %s5804_s8 }
  0x72   : >> { %9550 = sst [smem:[#allocation90_spill]] %s5808_s10 }
  0x73   : >> { %9551 = sst [smem:[#allocation91_spill]] %s5811_s11 }
  0x74   : >> { %9554 = sst [smem:[#allocation93_spill]] %s5817_s12 }
  0x75   : >> { %9555 = sst [smem:[#allocation94_spill]] %s5819_s16 }
  0x76   : >> { %s5825_s10 = sld [smem:[#allocation2 + $0x6]] }
  0x77   : >> { %s5832_s11 = sld [smem:[#allocation2 + $0x4e]] }
  0x78   : >> { %4281 = vmatmul.msk.f32.gmra.mxu0 %vm509_vm0, %v9518_v7  ;;  %s6013_s12 = sld [smem:[#allocation2 + $0x1e]] }
  0x7d   : >> { %9557 = sst [smem:[#allocation96_spill]] %s5832_s11 }
  0xdd   : >> { %v5246_v44 = vpop.f32.mrf.mxu0 }
  0xe5   : >> { %v5248_v45 = vpop.f32.mrf.mxu0 }
  0xed   : >> { %v545_v46 = vpop.f32.mrf.mxu0 }
  0xee   : >> { %613 = vrot.lane.b32.xlu2 %v545_v46, %s9188_s18  ;;  %609 = vrot.lane.b32.xlu1 %v545_v46, %s9196_s21 }
  0xef   : >> { %605 = vrot.lane.b32.xlu0 %v545_v46, %s9192_s19 }
  0xf5   : >> { %v548_v47 = vpop.f32.mrf.mxu0 }
  0xf6   : >> { %597 = vrot.lane.b32.xlu2 %v545_v46, %s9204_s20  ;;  %567 = vrot.lane.b32.xlu1 %v5248_v45, %s9192_s19 }
  0xf7   : >> { %607 = vrot.lane.b32.xlu0 %v548_v47, %s9192_s19 }
  0xfe   : >> { %571 = vrot.lane.b32.xlu2 %v5246_v44, %s9196_s21  ;;  %611 = vrot.lane.b32.xlu1 %v548_v47, %s9196_s21 }
  0xff   : >> { %565 = vrot.lane.b32.xlu0 %v5246_v44, %s9192_s19  ;;  %s4411_s19 = sld [smem:[#allocation2 + $0x43]] }
 0x106   : >> { %615 = vrot.lane.b32.xlu2 %v548_v47, %s9188_s18  ;;  %601 = vrot.lane.b32.xlu1 %v545_v46, %s9190_s22 }
 0x107   : >> { %617 = vrot.lane.b32.xlu0 %v545_v46, %s9194_s23 }
 0x10e   : >> { %621 = vrot.lane.b32.xlu2 %v545_v46, %s9198_s24 }
 0x10f   : >> { %599 = vrot.lane.b32.xlu0 %v548_v47, %s9204_s20 }
 0x117   : >> { %603 = vrot.lane.b32.xlu0 %v548_v47, %s9190_s22 }
 0x11f   : >> { %623 = vrot.lane.b32.xlu0 %v548_v47, %s9198_s24 }
 0x148   : >> { %v614_v48 = vpop.permute.xlu2 %613 }
 0x150   : >> { %v598_v49 = vpop.permute.xlu2 %597 }
 0x158   : >> { %v5269_v50 = vpop.permute.xlu2 %571 }
 0x160   : >> { %v610_v51 = vpop.permute.xlu1 %609  ;;  %v616_v52 = vpop.permute.xlu2 %615 }
 0x161   : >> { %v606_v53 = vpop.permute.xlu0 %605  ;;  %637 = vrot.lane.b32.xlu0 %v610_v51, %s9198_s24 }
 0x162   : >> { %633 = vrot.lane.b32.xlu1 %v606_v53, %s9198_s24 }
 0x168   : >> { %v622_v54 = vpop.permute.xlu2 %621  ;;  %v568_v57 = vpop.permute.xlu1 %567 }
 0x169   : >> { %v608_v55 = vpop.permute.xlu0 %607  ;;  %553 = vrot.lane.b32.xlu0 %v5246_v44, %s9204_s20  ;;  %v670_v56 = vsel %vm669_vm1, %v5246_v44, %v622_v54 }
 0x16a   : >> { %619 = vrot.lane.b32.xlu1 %v548_v47, %s9194_s23  ;;  %635 = vrot.lane.b32.xlu2 %v608_v55, %s9198_s24 }
 0x16b   : >> { %4282 = vmatmul.msk.f32.vlgmr.msrb.gmra.mxu0 %vm509_vm0, %v670_v56 }
 0x170   : >> { %v612_v59 = vpop.permute.xlu1 %611 }
 0x171   : >> { %v566_v58 = vpop.permute.xlu0 %565  ;;  %583 = vrot.lane.b32.xlu0 %v5246_v44, %s9194_s23 }
 0x172   : >> { %573 = vrot.lane.b32.xlu1 %v5248_v45, %s9196_s21  ;;  %641 = vrot.lane.b32.xlu2 %v614_v48, %s9198_s24  ;;  %s5768_s21 = sld [smem:[#allocation2 + $0x13]] }
 0x178   : >> { %v602_v61 = vpop.permute.xlu1 %601 }
 0x179   : >> { %v618_v60 = vpop.permute.xlu0 %617  ;;  %643 = vrot.lane.b32.xlu0 %v616_v52, %s9198_s24 }
 0x17a   : >> { %577 = vrot.lane.b32.xlu1 %v5246_v44, %s9188_s18  ;;  %639 = vrot.lane.b32.xlu2 %v612_v59, %s9198_s24 }
 0x181   : >> { %v600_v62 = vpop.permute.xlu0 %599  ;;  %629 = vrot.lane.b32.xlu0 %v602_v61, %s9198_s24 }
 0x182   : >> { %625 = vrot.lane.b32.xlu1 %v598_v49, %s9198_s24  ;;  %579 = vrot.lane.b32.xlu2 %v5248_v45, %s9188_s18  ;;  %s5760_s18 = sld [smem:[#allocation2 + $0x49]] }
 0x188   : >> { %9544 = sst [smem:[#allocation84_spill]] %s5760_s18 }
 0x189   : >> { %v604_v63 = vpop.permute.xlu0 %603  ;;  %561 = vrot.lane.b32.xlu0 %v5248_v45, %s9190_s22 }
 0x18a   : >> { %555 = vrot.lane.b32.xlu1 %v5248_v45, %s9204_s20  ;;  %627 = vrot.lane.b32.xlu2 %v600_v62, %s9198_s24 }
 0x191   : >> { %v624_v46 = vpop.permute.xlu0 %623  ;;  %649 = vrot.lane.b32.xlu0 %v622_v54, %s9198_s24 }
 0x192   : >> { %645 = vrot.lane.b32.xlu1 %v618_v60, %s9198_s24  ;;  %559 = vrot.lane.b32.xlu2 %v5246_v44, %s9190_s22  ;;  %v671_v47 = vsel %vm669_vm1, %v5248_v45, %v624_v46  ;;  %s5762_s22 = sld [smem:[#allocation2 + $0x25]] }
 0x193   : >> { %4283 = vmatmul.msk.f32.gmra.mxu0 %vm509_vm0, %v671_v47 }
 0x199   : >> { %975 = vrot.lane.b32.xlu0 %v9489_v22, %s9204_s20 }
 0x19a   : >> { %585 = vrot.lane.b32.xlu1 %v5248_v45, %s9194_s23  ;;  %s5766_s23 = sld [smem:[#allocation2 + $0x16]] }
 0x1a1   : >> { %977 = vrot.lane.b32.xlu0 %v9486_v23, %s9204_s20 }
 0x1a2   : >> { %631 = vrot.lane.b32.xlu1 %v604_v63, %s9198_s24 }
 0x1a9   : >> { %985 = vrot.lane.b32.xlu0 %v9497_v27, %s9204_s20 }
 0x1aa   : >> { %591 = vrot.lane.b32.xlu1 %v5248_v45, %s9198_s24 }
 0x1b1   : >> { %995 = vrot.lane.b32.xlu0 %v9493_v32, %s9204_s20 }
 0x1b2   : >> { %979 = vrot.lane.b32.xlu1 %v9487_v24, %s9204_s20 }
 0x1b9   : >> { %997 = vrot.lane.b32.xlu0 %v9495_v33, %s9204_s20 }
 0x1ba   : >> { %981 = vrot.lane.b32.xlu1 %v9494_v25, %s9204_s20 }
 0x1c1   : >> { %1005 = vrot.lane.b32.xlu0 %v9488_v37, %s9204_s20 }
 0x1c2   : >> { %991 = vrot.lane.b32.xlu1 %v9501_v30, %s9204_s20 }
 0x1c4   : >> { %v636_v45 = vpop.permute.xlu2 %635 }
 0x1c5   : >> { %v677_v55 = vsel %vm669_vm1, %v568_v57, %v636_v45 }
 0x1c9   : >> { %915 = vrot.lane.b32.xlu0 %v9487_v24, %s9198_s24 }
 0x1ca   : >> { %993 = vrot.lane.b32.xlu1 %v9499_v31, %s9204_s20 }
 0x1cc   : >> { %v642_v53 = vpop.permute.xlu2 %641 }
 0x1d1   : >> { %923 = vrot.lane.b32.xlu0 %v9496_v28, %s9198_s24 }
 0x1d2   : >> { %1003 = vrot.lane.b32.xlu1 %v9492_v36, %s9204_s20 }
 0x1d3   : >> { %v638_v48 = vpop.permute.xlu0 %637 }
 0x1d4   : >> { %v634_v49 = vpop.permute.xlu1 %633  ;;  %v678_v59 = vsel %vm669_vm1, %v5269_v50, %v638_v48  ;;  %v640_v60 = vpop.permute.xlu2 %639 }
 0x1d5   : >> { %v676_v51 = vsel %vm669_vm1, %v566_v58, %v634_v49 }
 0x1d6   : >> { %4288 = vmatmul.msk.f32.vlgmr.msra.gmra.mxu1 %vm509_vm0, %v676_v51 }
 0x1d9   : >> { %927 = vrot.lane.b32.xlu0 %v9501_v30, %s9198_s24 }
 0x1da   : >> { %919 = vrot.lane.b32.xlu1 %v9491_v26, %s9198_s24 }
 0x1db   : >> { %v554_v52 = vpop.permute.xlu0 %553 }
 0x1dc   : >> { %v620_v54 = vpop.permute.xlu1 %619 }
 0x1dd   : >> { %647 = vrot.lane.b32.xlu2 %v620_v54, %s9198_s24 }
 0x1de   : >> { %4289 = vmatmul.msk.f32.gmra.mxu1 %vm509_vm0, %v677_v55 }
 0x1e1   : >> { %935 = vrot.lane.b32.xlu0 %v9498_v34, %s9198_s24 }
 0x1e2   : >> { %913 = vrot.lane.b32.xlu1 %v9486_v23, %s9198_s24 }
 0x1e3   : >> { %v584_v56 = vpop.permute.xlu0 %583 }
 0x1e4   : >> { %v574_v58 = vpop.permute.xlu1 %573 }
 0x1e5   : >> { %589 = vrot.lane.b32.xlu2 %v5246_v44, %s9198_s24  ;;  %v679_v62 = vsel %vm669_vm1, %v574_v58, %v640_v60  ;;  %v580_v44 = vpop.permute.xlu2 %579 }
 0x1e6   : >> { %4290 = vmatmul.msk.f32.gmra.mxu1 %vm509_vm0, %v678_v59 }
 0x1e8   : >> { %v5363_v47 = vpop.f32.mrf.mxu0 }
 0x1e9   : >> { %933 = vrot.lane.b32.xlu0 %v9495_v33, %s9198_s24 }
 0x1ea   : >> { %925 = vrot.lane.b32.xlu1 %v9500_v29, %s9198_s24 }
 0x1eb   : >> { %v644_v57 = vpop.permute.xlu0 %643 }
 0x1ec   : >> { %v578_v61 = vpop.permute.xlu1 %577 }
 0x1ed   : >> { %651 = vrot.lane.b32.xlu2 %v624_v46, %s9198_s24  ;;  %v680_v48 = vsel %vm669_vm1, %v578_v61, %v642_v53  ;;  %v5373_v46 = vmul.f32 %v5363_v47, %v9489_v22  ;;  %v628_v49 = vpop.permute.xlu2 %627  ;;  %v681_v53 = vsel %vm669_vm1, %v580_v44, %v644_v57 }
 0x1ee   : >> { %4291 = vmatmul.msk.f32.gmra.mxu1 %vm509_vm0, %v679_v62 }
 0x1f2   : >> { %939 = vrot.lane.b32.xlu1 %v9492_v36, %s9198_s24 }
 0x1f3   : >> { %v630_v50 = vpop.permute.xlu0 %629 }
 0x1f4   : >> { %v626_v63 = vpop.permute.xlu1 %625 }
 0x1f5   : >> { %983 = vrot.lane.b32.xlu2 %v9491_v26, %s9204_s20  ;;  %v672_v45 = vsel %vm669_vm1, %v554_v52, %v626_v63  ;;  %v560_v58 = vpop.permute.xlu2 %559 }
 0x1f6   : >> { %4284 = vmatmul.msk.f32.gmra.mxu0 %vm509_vm0, %v672_v45  ;;  %4292 = vmatmul.msk.f32.gmra.mxu1 %vm509_vm0, %v680_v48  ;;  %v674_v60 = vsel %vm669_vm1, %v560_v58, %v630_v50 }
 0x1fa   : >> { %831 = vrot.lane.b32.xlu1 %v5373_v46, %s9204_s20 }
 0x1fb   : >> { %v562_v51 = vpop.permute.xlu0 %561 }
 0x1fc   : >> { %v556_v54 = vpop.permute.xlu1 %555 }
 0x1fd   : >> { %987 = vrot.lane.b32.xlu2 %v9496_v28, %s9204_s20  ;;  %v673_v52 = vsel %vm669_vm1, %v556_v54, %v628_v49 }
 0x1fe   : >> { %4285 = vmatmul.msk.f32.gmra.mxu0 %vm509_vm0, %v673_v52  ;;  %4293 = vmatmul.msk.f32.gmra.mxu1 %vm509_vm0, %v681_v53 }
 0x203   : >> { %v650_v55 = vpop.permute.xlu0 %649 }
 0x204   : >> { %v646_v59 = vpop.permute.xlu1 %645 }
 0x205   : >> { %989 = vrot.lane.b32.xlu2 %v9500_v29, %s9204_s20  ;;  %v682_v61 = vsel %vm669_vm1, %v584_v56, %v646_v59 }
 0x206   : >> { %4286 = vmatmul.msk.f32.gmra.mxu0 %vm509_vm0, %v674_v60  ;;  %4294 = vmatmul.msk.f32.gmra.mxu1 %vm509_vm0, %v682_v61 }
 0x20b   : >> { %v5389_v57 = vpop.permute.xlu0 %975 }
 0x20c   : >> { %v586_v62 = vpop.permute.xlu1 %585  ;;  %9519 = vst [vmem:[#allocation59_spill] sm:$0xff] %v5389_v57  ;;  %v1023_v60 = vmul.f32 %v5389_v57, %v5363_v47 }
 0x20d   : >> { %999 = vrot.lane.b32.xlu2 %v9498_v34, %s9204_s20 }
 0x210   : >> { %v5393_v44 = vpop.f32.mrf.mxu0 }
 0x211   : >> { %v5397_v63 = vmul.f32 %v5393_v44, %v9486_v23 }
 0x213   : >> { %833 = vrot.lane.b32.xlu1 %v5397_v63, %s9204_s20  ;;  %v5404_v45 = vpop.permute.xlu0 %977 }
 0x214   : >> { %v632_v56 = vpop.permute.xlu1 %631  ;;  %9520 = vst [vmem:[#allocation60_spill] sm:$0xff] %v5404_v45  ;;  %v1024_v48 = vmul.f32 %v5404_v45, %v5393_v44 }
 0x215   : >> { %1001 = vrot.lane.b32.xlu2 %v9490_v35, %s9204_s20  ;;  %v675_v50 = vsel %vm669_vm1, %v562_v51, %v632_v56 }
 0x216   : >> { %4287 = vmatmul.msk.f32.gmra.mxu0 %vm509_vm0, %v675_v50 }
 0x21b   : >> { %1057 = vrot.lane.b32.xlu1 %v1024_v48, %s9198_s24  ;;  %v5414_v49 = vpop.permute.xlu0 %985 }
 0x21c   : >> { %9521 = vst [vmem:[#allocation61_spill] sm:$0xff] %v5414_v49 }
 0x21d   : >> { %911 = vrot.lane.b32.xlu2 %v9489_v22, %s9198_s24 }
 0x223   : >> { %v5418_v51 = vpop.permute.xlu0 %995 }
 0x224   : >> { %9522 = vst [vmem:[#allocation62_spill] sm:$0xff] %v5418_v51 }
 0x225   : >> { %917 = vrot.lane.b32.xlu2 %v9494_v25, %s9198_s24 }
 0x22b   : >> { %v5424_v53 = vpop.permute.xlu0 %997 }
 0x22c   : >> { %9523 = vst [vmem:[#allocation63_spill] sm:$0xff] %v5424_v53 }
 0x22d   : >> { %921 = vrot.lane.b32.xlu2 %v9497_v27, %s9198_s24 }
 0x233   : >> { %v5432_v61 = vpop.permute.xlu0 %1005 }
 0x234   : >> { %9524 = vst [vmem:[#allocation64_spill] sm:$0xff] %v5432_v61 }
 0x235   : >> { %931 = vrot.lane.b32.xlu2 %v9493_v32, %s9198_s24 }
 0x237   : >> { %v648_v54 = vpop.permute.xlu2 %647 }
 0x238   : >> { %v683_v52 = vsel %vm669_vm1, %v586_v62, %v648_v54  ;;  %v592_v62 = vpop.permute.xlu1 %591 }
 0x239   : >> { %4295 = vmatmul.msk.f32.gmra.mxu1 %vm509_vm0, %v683_v52 }
 0x23b   : >> { %v5437_v48 = vpop.permute.xlu0 %915 }
 0x23d   : >> { %929 = vrot.lane.b32.xlu2 %v9499_v31, %s9198_s24 }
 0x23f   : >> { %v590_v58 = vpop.permute.xlu2 %589 }
 0x240   : >> { %v684_v59 = vsel %vm669_vm1, %v590_v58, %v650_v55 }
 0x241   : >> { %4296 = vmatmul.msk.f32.gmra.mxu1 %vm509_vm0, %v684_v59 }
 0x243   : >> { %v5451_v59 = vpop.permute.xlu0 %923 }
 0x245   : >> { %1055 = vrot.lane.b32.xlu2 %v1023_v60, %s9198_s24 }
 0x247   : >> { %v652_v56 = vpop.permute.xlu2 %651 }
 0x248   : >> { %v685_v50 = vsel %vm669_vm1, %v592_v62, %v652_v56  ;;  %v5457_v56 = vpop.permute.xlu1 %979 }
 0x249   : >> { %4297 = vmatmul.msk.f32.gmra.mxu1 %vm509_vm0, %v685_v50  ;;  %9528 = vst [vmem:[#allocation68_spill] sm:$0xff] %v5457_v56 }
 0x24b   : >> { %v928_v4 = vpop.permute.xlu0 %927 }
 0x24f   : >> { %v5439_v54 = vpop.permute.xlu2 %983 }
 0x250   : >> { %9525 = vst [vmem:[#allocation65_spill] sm:$0xff] %v5439_v54  ;;  %v5466_v8 = vpop.permute.xlu1 %981 }
 0x251   : >> { %9530 = vst [vmem:[#allocation70_spill] sm:$0xff] %v5466_v8 }
 0x253   : >> { %v5441_v55 = vpop.f32.mrf.mxu1  ;;  %v936_v42 = vpop.permute.xlu0 %935 }
 0x254   : >> { %v5445_v52 = vmul.f32 %v5441_v55, %v9496_v28 }
 0x256   : >> { %843 = vrot.lane.b32.xlu0 %v5445_v52, %s9204_s20 }
 0x257   : >> { %v5449_v58 = vpop.permute.xlu2 %987 }
 0x258   : >> { %9526 = vst [vmem:[#allocation66_spill] sm:$0xff] %v5449_v58  ;;  %v5474_v17 = vpop.permute.xlu1 %991  ;;  %v1029_v21 = vmul.f32 %v5449_v58, %v5441_v55 }
 0x259   : >> { %9532 = vst [vmem:[#allocation72_spill] sm:$0xff] %v5474_v17 }
 0x25b   : >> { %v5453_v60 = vpop.f32.mrf.mxu1 }
 0x25c   : >> { %v5508_v1 = vmul.f32 %v5453_v60, %v9500_v29 }
 0x25f   : >> { %v5455_v62 = vpop.permute.xlu2 %989 }
 0x260   : >> { %9527 = vst [vmem:[#allocation67_spill] sm:$0xff] %v5455_v62  ;;  %v1030_v50 = vmul.f32 %v5455_v62, %v5453_v60  ;;  %v5497_v2 = vpop.permute.xlu1 %993 }
 0x261   : >> { %9533 = vst [vmem:[#allocation73_spill] sm:$0xff] %v5497_v2 }
 0x262   : >> { %1069 = vrot.lane.b32.xlu1 %v1030_v50, %s9198_s24 }
 0x263   : >> { %v775_v5 = vpop.f32.mrf.mxu1 }
 0x264   : >> { %v5462_v6 = vmul.f32 %v928_v4, %v775_v5  ;;  %v5523_v15 = vmul.f32 %v775_v5, %v9501_v30 }
 0x267   : >> { %v5464_v7 = vpop.permute.xlu2 %999 }
 0x268   : >> { %9529 = vst [vmem:[#allocation69_spill] sm:$0xff] %v5464_v7  ;;  %v5520_v18 = vpop.permute.xlu1 %1003 }
 0x269   : >> { %9534 = vst [vmem:[#allocation74_spill] sm:$0xff] %v5520_v18 }
 0x26b   : >> { %v5468_v9 = vpop.f32.mrf.mxu1 }
 0x26c   : >> { %v5541_v30 = vmul.f32 %v5468_v9, %v9499_v31 }
 0x26f   : >> { %v5470_v10 = vpop.permute.xlu2 %1001 }
 0x270   : >> { %9531 = vst [vmem:[#allocation71_spill] sm:$0xff] %v5470_v10  ;;  %v5537_v13 = vpop.permute.xlu1 %919 }
 0x273   : >> { %v5472_v11 = vpop.f32.mrf.mxu0  ;;  %v781_v16 = vpop.f32.mrf.mxu1 }
 0x274   : >> { %v5478_v38 = vmul.f32 %v5472_v11, %v9487_v24  ;;  %v1025_v4 = vmul.f32 %v5457_v56, %v5472_v11  ;;  %v1033_v62 = vmul.f32 %v5418_v51, %v781_v16  ;;  %v9575_v56 = vstv %s5789_s3 }
 0x276   : >> { %1059 = vrot.lane.b32.xlu0 %v1025_v4, %s9198_s24  ;;  %835 = vrot.lane.b32.xlu2 %v5478_v38, %s9204_s20 }
 0x277   : >> { %v5485_v50 = vpop.permute.xlu2 %911 }
 0x278   : >> { %v5557_v31 = vpop.permute.xlu1 %913 }
 0x27b   : >> { %v5487_v39 = vpop.f32.mrf.mxu0  ;;  %v5489_v3 = vpop.f32.mrf.mxu1 }
 0x27c   : >> { %v5493_v40 = vmul.f32 %v5487_v39, %v9494_v25  ;;  %v1026_v19 = vmul.f32 %v5466_v8, %v5487_v39 }
 0x27e   : >> { %1067 = vrot.lane.b32.xlu0 %v1029_v21, %s9198_s24  ;;  %837 = vrot.lane.b32.xlu2 %v5493_v40, %s9204_s20 }
 0x27f   : >> { %v5502_v4 = vpop.permute.xlu2 %917 }
 0x283   : >> { %v5504_v41 = vpop.f32.mrf.mxu0  ;;  %v787_v20 = vpop.f32.mrf.mxu1 }
 0x284   : >> { %v1027_v0 = vmul.f32 %v5439_v54, %v5504_v41  ;;  %v5514_v21 = vmul.f32 %v936_v42, %v787_v20  ;;  %v5527_v14 = vmul.f32 %v5504_v41, %v9491_v26  ;;  %v1031_v42 = vmul.f32 %v5474_v17, %v775_v5 }
 0x285   : >> { %v1035_v28 = vmul.f32 %v5464_v7, %v787_v20 }
 0x286   : >> { %845 = vrot.lane.b32.xlu0 %v5508_v1, %s9204_s20  ;;  %1061 = vrot.lane.b32.xlu2 %v1026_v19, %s9198_s24 }
 0x287   : >> { %1063 = vrot.lane.b32.xlu1 %v1027_v0, %s9198_s24  ;;  %v922_v43 = vpop.permute.xlu2 %921 }
 0x28e   : >> { %839 = vrot.lane.b32.xlu0 %v5527_v14, %s9204_s20  ;;  %847 = vrot.lane.b32.xlu2 %v5523_v15, %s9204_s20 }
 0x28f   : >> { %1071 = vrot.lane.b32.xlu1 %v1031_v42, %s9198_s24  ;;  %v932_v0 = vpop.permute.xlu2 %931 }
 0x290   : >> { %v5535_v19 = vmul.f32 %v932_v0, %v781_v16 }
 0x293   : >> { %v766_v12 = vpop.f32.mrf.mxu0 }
 0x294   : >> { %v5544_v5 = vmul.f32 %v766_v12, %v9497_v27  ;;  %v5546_v17 = vmul.f32 %v922_v43, %v766_v12  ;;  %v1028_v29 = vmul.f32 %v5414_v49, %v766_v12  ;;  %v5561_v43 = vmul.f32 %v787_v20, %v9498_v34 }
 0x295   : >> { %v5564_v12 = vmul.f32 %v781_v16, %v9493_v32  ;;  %v1032_v20 = vmul.f32 %v5497_v2, %v5468_v9 }
 0x296   : >> { %849 = vrot.lane.b32.xlu2 %v5541_v30, %s9204_s20  ;;  %1065 = vrot.lane.b32.xlu0 %v1028_v29, %s9198_s24  ;;  %v5573_v29 = vmul.f32 %v5489_v3, %v9495_v33 }
 0x297   : >> { %841 = vrot.lane.b32.xlu1 %v5544_v5, %s9204_s20  ;;  %v930_v42 = vpop.permute.xlu2 %929 }
 0x298   : >> { %v5555_v0 = vmul.f32 %v930_v42, %v5468_v9  ;;  %v926_v42 = vpop.permute.xlu1 %925 }
 0x299   : >> { %v966_v9 = vmul.f32 %v926_v42, %v5453_v60  ;;  %v959_v42 = vmul.f32 %v5485_v50, %v5363_v47 }
 0x29e   : >> { %855 = vrot.lane.b32.xlu0 %v5561_v43, %s9204_s20  ;;  %1075 = vrot.lane.b32.xlu2 %v1033_v62, %s9198_s24 }
 0x29f   : >> { %851 = vrot.lane.b32.xlu1 %v5564_v12, %s9204_s20 }
 0x2a0   : >> { %v5577_v34 = vpop.permute.xlu1 %939 }
 0x2a7   : >> { %853 = vrot.lane.b32.xlu1 %v5573_v29, %s9204_s20 }
 0x2a8   : >> { %v5587_v62 = vpop.permute.xlu1 %831 }
 0x2b0   : >> { %v5599_v33 = vpop.permute.xlu1 %833 }
 0x2b6   : >> { %v5579_v16 = vpop.f32.mrf.mxu1 }
 0x2b7   : >> { %v5583_v27 = vmul.f32 %v5579_v16, %v9490_v35 }
 0x2b9   : >> { %857 = vrot.lane.b32.xlu0 %v5583_v27, %s9204_s20 }
 0x2be   : >> { %v5589_v49 = vpop.f32.mrf.mxu1 }
 0x2bf   : >> { %v5594_v58 = vmul.f32 %v5589_v49, %v9492_v36  ;;  %v1037_v8 = vmul.f32 %v5520_v18, %v5589_v49  ;;  %v1056_v36 = vpop.permute.xlu2 %1055  ;;  %v1034_v18 = vmul.f32 %v5424_v53, %v5489_v3 }
 0x2c1   : >> { %1079 = vrot.lane.b32.xlu0 %v1035_v28, %s9198_s24  ;;  %859 = vrot.lane.b32.xlu2 %v5594_v58, %s9204_s20  ;;  %v1058_v28 = vpop.permute.xlu1 %1057 }
 0x2c6   : >> { %v5601_v25 = vpop.f32.mrf.mxu1 }
 0x2c7   : >> { %v5607_v32 = vmul.f32 %v5601_v25, %v9488_v37  ;;  %v1038_v7 = vmul.f32 %v5432_v61, %v5601_v25  ;;  %v1036_v61 = vmul.f32 %v5470_v10, %v5579_v16  ;;  %v1103_v10 = vsub.f32 %v959_v42, %v1056_v36 }
 0x2c9   : >> { %861 = vrot.lane.b32.xlu1 %v5607_v32, %s9204_s20  ;;  %1083 = vrot.lane.b32.xlu0 %v1037_v8, %s9198_s24 }
 0x2ca   : >> { %1073 = vrot.lane.b32.xlu2 %v1032_v20, %s9198_s24  ;;  %v5624_v20 = vpop.permute.xlu0 %933 }
 0x2d0   : >> { %v836_v51 = vpop.permute.xlu2 %835 }
 0x2d1   : >> { %937 = vrot.lane.b32.xlu1 %v9490_v35, %s9198_s24  ;;  %1085 = vrot.lane.b32.xlu0 %v1038_v7, %s9198_s24  ;;  %v962_v7 = vmul.f32 %v5502_v4, %v5487_v39 }
 0x2d2   : >> { %1077 = vrot.lane.b32.xlu2 %v1034_v18, %s9198_s24  ;;  %v844_v18 = vpop.permute.xlu0 %843 }
 0x2d4   : >> { %v1070_v8 = vpop.permute.xlu1 %1069 }
 0x2d5   : >> { %v1110_v2 = vsub.f32 %v966_v9, %v1070_v8  ;;  %v961_v9 = vmul.f32 %v5437_v48, %v5472_v11 }
 0x2d8   : >> { %v5628_v26 = vpop.permute.xlu2 %837 }
 0x2d9   : >> { %941 = vrot.lane.b32.xlu1 %v9488_v37, %s9198_s24 }
 0x2da   : >> { %1081 = vrot.lane.b32.xlu2 %v1036_v61, %s9198_s24  ;;  %v965_v61 = vmul.f32 %v5451_v59, %v5441_v55  ;;  %s5775_s24 = sld [smem:[#allocation2 + $0x4f]] }
 0x2e0   : >> { %v1062_v35 = vpop.permute.xlu2 %1061  ;;  %9545 = sst [smem:[#allocation85_spill]] %s5775_s24 }
 0x2e1   : >> { %v1106_v60 = vsub.f32 %v962_v7, %v1062_v35  ;;  %v963_v35 = vmul.f32 %v5537_v13, %v5504_v41  ;;  %v881_v13 = vadd.f32 %v836_v51, %v5478_v38 }
 0x2e8   : >> { %v1060_v8 = vpop.permute.xlu0 %1059  ;;  %v848_v22 = vpop.permute.xlu2 %847 }
 0x2e9   : >> { %v1105_v53 = vsub.f32 %v961_v9, %v1060_v8  ;;  %v887_v38 = vadd.f32 %v848_v22, %v5523_v15 }
 0x2eb   : >> { %v1121_v54 = vadd.f32 %v1105_v53, %v1103_v10 }
 0x2f0   : >> { %v1068_v37 = vpop.permute.xlu0 %1067  ;;  %v850_v39 = vpop.permute.xlu2 %849 }
 0x2f1   : >> { %v1109_v57 = vsub.f32 %v965_v61, %v1068_v37  ;;  %v960_v37 = vmul.f32 %v5557_v31, %v5393_v44  ;;  %v885_v31 = vadd.f32 %v844_v18, %v5445_v52  ;;  %v882_v52 = vadd.f32 %v5628_v26, %v5493_v40 }
 0x2f3   : >> { %v1104_v59 = vsub.f32 %v960_v37, %v1058_v28 }
 0x2f5   : >> { %v1122_v9 = vadd.f32 %v1106_v60, %v1104_v59 }
 0x2f8   : >> { %v846_v4 = vpop.permute.xlu0 %845  ;;  %v1076_v48 = vpop.permute.xlu2 %1075 }
 0x2f9   : >> { %v1064_v7 = vpop.permute.xlu1 %1063  ;;  %v1113_v53 = vsub.f32 %v5535_v19, %v1076_v48 }
 0x2fa   : >> { %v1107_v47 = vsub.f32 %v963_v35, %v1064_v7 }
 0x2fc   : >> { %v1125_v50 = vadd.f32 %v1121_v54, %v1107_v47  ;;  %v879_v54 = vadd.f32 %v5587_v62, %v5373_v46 }
 0x2fe   : >> { %v1129_v24 = vadd.f32 %v1125_v50, %v1109_v57  ;;  %v1119_v19 = vadd.f32 %v881_v13, %v879_v54  ;;  %v973_v13 = vmul.f32 %v5577_v34, %v5589_v49 }
 0x300   : >> { %v840_v11 = vpop.permute.xlu0 %839 }
 0x301   : >> { %v1072_v36 = vpop.permute.xlu1 %1071 }
 0x302   : >> { %v1111_v10 = vsub.f32 %v5462_v6, %v1072_v36  ;;  %v883_v6 = vadd.f32 %v840_v11, %v5527_v14 }
 0x304   : >> { %v1133_v42 = vadd.f32 %v1129_v24, %v1111_v10  ;;  %v1123_v35 = vadd.f32 %v1119_v19, %v883_v6 }
 0x306   : >> { %v1137_v55 = vadd.f32 %v1133_v42, %v1113_v53  ;;  %v1127_v28 = vadd.f32 %v1123_v35, %v885_v31  ;;  %v2010_v31 = vstv %s5691_s30  ;;  %s4418_s30 = sld [smem:[#allocation2 + $0x34]] }
 0x308   : >> { %v1066_v41 = vpop.permute.xlu0 %1065  ;;  %v1131_v60 = vadd.f32 %v1127_v28, %v887_v38 }
 0x309   : >> { %v842_v8 = vpop.permute.xlu1 %841  ;;  %v1108_v57 = vsub.f32 %v5546_v17, %v1066_v41 }
 0x30a   : >> { %v884_v18 = vadd.f32 %v842_v8, %v5544_v5 }
 0x30b   : >> { %v1126_v61 = vadd.f32 %v1122_v9, %v1108_v57 }
 0x30d   : >> { %v1130_v24 = vadd.f32 %v1126_v61, %v1110_v2 }
 0x310   : >> { %v856_v7 = vpop.permute.xlu0 %855 }
 0x311   : >> { %v852_v44 = vpop.permute.xlu1 %851  ;;  %v891_v47 = vadd.f32 %v856_v7, %v5561_v43  ;;  %v2024_v7 = vstv %s5703_s13  ;;  %s5748_s13 = sld [smem:[#allocation2 + $0x4]] }
 0x312   : >> { %v889_v51 = vadd.f32 %v852_v44, %v5564_v12  ;;  %v880_v12 = vadd.f32 %v5599_v33, %v5397_v63 }
 0x314   : >> { %v1135_v17 = vadd.f32 %v1131_v60, %v889_v51  ;;  %v1120_v36 = vadd.f32 %v882_v52, %v880_v12 }
 0x316   : >> { %v1139_v62 = vadd.f32 %v1135_v17, %v891_v47  ;;  %v1124_v53 = vadd.f32 %v1120_v36, %v884_v18 }
 0x319   : >> { %v854_v42 = vpop.permute.xlu1 %853 }
 0x31a   : >> { %v890_v40 = vadd.f32 %v854_v42, %v5573_v29 }
 0x31b   : >> { %v860_v46 = vpop.permute.xlu2 %859 }
 0x31c   : >> { %v893_v14 = vadd.f32 %v860_v46, %v5594_v58  ;;  %v970_v58 = vmul.f32 %v5624_v20, %v5489_v3  ;;  %v888_v3 = vadd.f32 %v850_v39, %v5541_v30  ;;  %v1892_v39 = vstv %s4408_s29  ;;  %s4409_s29 = sld [smem:[#allocation2 + $0x1f]] }
 0x31d   : >> { %v2066_v46 = vstv %s5713_s14  ;;  %s5894_s14 = sld [smem:[#allocation2 + $0x54]] }
 0x31e   : >> { %v5657_v50 = vadd.f32 %v1139_v62, %v893_v14  ;;  %v1920_v62 = vstv %s5721_s15  ;;  %s5753_s15 = sld [smem:[#allocation2 + $0x4c]] }
 0x320   : >> { %9535 = vst [vmem:[#allocation75_spill] sm:$0xff] %v5657_v50  ;;  %1498 = vrot.lane.b32.xlu0 %v5657_v50, %s9200_s25  ;;  %1173 = vrot.lane.b32.xlu1 %v5657_v50, %s9202_s28 }
 0x323   : >> { %9561 = sst [smem:[#allocation100_spill]] %s5894_s14 }
 0x324   : >> { %v1074_v2 = vpop.permute.xlu2 %1073  ;;  %9543 = sst [smem:[#allocation83_spill]] %s5753_s15 }
 0x325   : >> { %v1112_v15 = vsub.f32 %v5555_v0, %v1074_v2  ;;  %v886_v0 = vadd.f32 %v846_v4, %v5508_v1  ;;  %v1906_v2 = vstv %s4409_s29  ;;  %s5755_s29 = sld [smem:[#allocation2 + $0x28]] }
 0x327   : >> { %v1134_v22 = vadd.f32 %v1130_v24, %v1112_v15  ;;  %v1128_v59 = vadd.f32 %v1124_v53, %v886_v0  ;;  %v1934_v0 = vstv %s4411_s19  ;;  %s5798_s19 = sld [smem:[#allocation2 + $0x15]] }
 0x329   : >> { %v1132_v33 = vadd.f32 %v1128_v59, %v888_v3  ;;  %v1397_v3 = vstv %s5748_s13  ;;  %s5848_s13 = sld [smem:[#allocation2 + $0x24]] }
 0x32b   : >> { %v858_v43 = vpop.permute.xlu0 %857  ;;  %v1136_v5 = vadd.f32 %v1132_v33, %v890_v40  ;;  %v9218_v40 = vstv %s5753_s15  ;;  %s9564_s15 = sld [smem:[#allocation90_spill]] }
 0x32c   : >> { %v1078_v11 = vpop.permute.xlu2 %1077  ;;  %v892_v63 = vadd.f32 %v858_v43, %v5583_v27  ;;  %v2038_v43 = vstv %s4418_s30  ;;  %s5758_s30 = sld [smem:[#allocation2 + $0x1]] }
 0x32d   : >> { %v1114_v48 = vsub.f32 %v970_v58, %v1078_v11 }
 0x32e   : >> { %v1140_v1 = vadd.f32 %v1136_v5, %v892_v63  ;;  %v1409_v63 = vstv %s5755_s29  ;;  %v9219_v5 = vstv %s5760_s18  ;;  %s5897_s29 = sld [smem:[#allocation2 + $0x29]] }
 0x32f   : >> { %v1138_v10 = vadd.f32 %v1134_v22, %v1114_v48  ;;  %s5978_s18 = sld [smem:[#allocation2 + $0x18]] }
 0x332   : >> { %v1349_v33 = vstv %s5758_s30  ;;  %s5916_s30 = sld [smem:[#allocation4 + $0x1]] }
 0x333   : >> { %v1080_v37 = vpop.permute.xlu0 %1079 }
 0x334   : >> { %v1115_v26 = vsub.f32 %v5514_v21, %v1080_v37 }
 0x336   : >> { %v1141_v20 = vadd.f32 %v1137_v55, %v1115_v26  ;;  %v1342_v26 = vrot.slane %v5657_v50, 7 }
 0x33b   : >> { %v862_v41 = vpop.permute.xlu1 %861  ;;  %v1084_v9 = vpop.permute.xlu0 %1083 }
 0x33c   : >> { %v894_v4 = vadd.f32 %v862_v41, %v5607_v32  ;;  %v1117_v8 = vsub.f32 %v973_v13, %v1084_v9  ;;  %v1082_v32 = vpop.permute.xlu2 %1081  ;;  %v1361_v13 = vstv %s5762_s22  ;;  %v1355_v41 = vstv %s5768_s21  ;;  %s5857_s21 = sld [smem:[#allocation2 + $0x2a]] }
 0x33d   : >> { %v1403_v9 = vstv %s5766_s23  ;;  %s5870_s22 = sld [smem:[#allocation2 + $0x26]] }
 0x33e   : >> { %v5679_v57 = vadd.f32 %v1140_v1, %v894_v4  ;;  %v5681_v21 = vadd.f32 %v1141_v20, %v1117_v8  ;;  %v5828_v20 = vsel %vm1184_vm3, 0.0, %v1342_v26  ;;  %v5840_v4 = vmul.f32 %v1397_v3, %v5657_v50  ;;  %s5875_s23 = sld [smem:[#allocation2 + $0xc]] }
 0x33f   : >> { %9556 = vst [vmem:[#allocation95_spill] sm:$0xff] %v5828_v20 }
 0x340   : >> { %9536 = vst [vmem:[#allocation76_spill] sm:$0xff] %v5679_v57  ;;  %1500 = vrot.lane.b32.xlu1 %v5679_v57, %s9200_s25  ;;  %1175 = vrot.lane.b32.xlu2 %v5679_v57, %s9202_s28  ;;  %v1833_v34 = vrot.slane %v5681_v21, 7  ;;  %v2003_v24 = vrot.slane %v5681_v21, 1  ;;  %v1921_v22 = vmul.f32 %v1920_v62, %v5681_v21  ;;  %v1907_v52 = vmul.f32 %v1906_v2, %v5681_v21  ;;  %s5778_s25 = sld [smem:[#allocation2 + $0x2b]] }
 0x341   : >> { %9537 = vst [vmem:[#allocation77_spill] sm:$0xff] %v5681_v21  ;;  %s5780_s28 = sld [smem:[#allocation2 + $0x37]]  ;;  %v1935_v37 = vmul.f32 %v1934_v0, %v5681_v21  ;;  %v1343_v1 = vrot.slane %v5679_v57, 7  ;;  %v1445_v8 = vrot.slane %v5679_v57, 1 }
 0x342   : >> { %v9576_v45 = vstv %s5857_s21 }
 0x343   : >> { %v938_v27 = vpop.permute.xlu1 %937  ;;  %v1086_v54 = vpop.permute.xlu0 %1085  ;;  %9558 = sst [smem:[#allocation97_spill]] %s5870_s22 }
 0x344   : >> { %v972_v30 = vmul.f32 %v938_v27, %v5579_v16  ;;  %v1893_v16 = vmul.f32 %v1892_v39, %v5681_v21  ;;  %v5846_v27 = vmul.f32 %v9218_v40, %v5657_v50  ;;  %s6021_s22 = sld [smem:[#allocation2 + $0x36]] }
 0x346   : >> { %v1116_v49 = vsub.f32 %v972_v30, %v1082_v32  ;;  %v1444_v32 = vrot.slane %v5657_v50, 1 }
 0x347   : >> { %9546 = sst [smem:[#allocation86_spill]] %s5780_s28 }
 0x348   : >> { %1667 = vrot.lane.b32.xlu2 %v5681_v21, %s4929_s26  ;;  %1836 = vrot.lane.b32.xlu1 %v1833_v34, %s9204_s20  ;;  %v1142_v6 = vadd.f32 %v1138_v10, %v1116_v49  ;;  %v5860_v49 = vmul.f32 %v1409_v63, %v5657_v50 }
 0x34a   : >> { %9568 = sst [smem:[#allocation90_spill]] %s6021_s22 }
 0x34b   : >> { %v942_v29 = vpop.permute.xlu1 %941  ;;  %s9587_s22 = sld [smem:[#allocation97_spill]] }
 0x34c   : >> { %v974_v55 = vmul.f32 %v942_v29, %v5601_v25  ;;  %v5865_v29 = vmul.f32 %v9219_v5, %v5828_v20 }
 0x34e   : >> { %v1118_v61 = vsub.f32 %v974_v55, %v1086_v54  ;;  %v9224_v55 = vstv %s5780_s28  ;;  %v9223_v54 = vstv %s5782_s0  ;;  %s5999_s0 = sld [smem:[#allocation2 + $0x2d]] }
 0x34f   : >> { %s6002_s28 = sld [smem:[#allocation2 + $0x8]] }
 0x350   : >> { %v5695_v19 = vadd.f32 %v1142_v6, %v1118_v61  ;;  %2121 = vrot.lane.b32.xlu2 %v5681_v21, %s4930_s27  ;;  %1897 = vrot.lane.b32.xlu1 %v1893_v16, %s9204_s20  ;;  %v5879_v16 = vmul.f32 %v1355_v41, %v5828_v20 }
 0x352   : >> { %9538 = vst [vmem:[#allocation78_spill] sm:$0xff] %v5695_v19  ;;  %1669 = vrot.lane.b32.xlu0 %v5695_v19, %s4929_s26  ;;  %v2004_v35 = vrot.slane %v5695_v19, 1  ;;  %v1834_v28 = vrot.slane %v5695_v19, 7  ;;  %v1894_v38 = vmul.f32 %v1892_v39, %v5695_v19  ;;  %s5729_s26 = sld [smem:[#allocation2 + $0x55]]  ;;  %v1908_v15 = vmul.f32 %v1906_v2, %v5695_v19 }
 0x353   : >> { %v1922_v53 = vmul.f32 %v1920_v62, %v5695_v19  ;;  %v1936_v59 = vmul.f32 %v1934_v0, %v5695_v19  ;;  %v5868_v39 = vmul.f32 %v1361_v13, %v5828_v20  ;;  %v5919_v62 = vmul.f32 %v1403_v9, %v5679_v57 }
 0x354   : >> { %v5706_v25 = vsel %vm1287_vm2, %v2003_v24, %v2004_v35  ;;  %v1835_v51 = vsel %vm1184_vm3, %v1833_v34, %v1834_v28  ;;  %v5718_v60 = vsel %vm1287_vm2, %v2004_v35, 0.0  ;;  %v5854_v34 = vmul.f32 %v1349_v33, %v5828_v20 }
 0x355   : >> { %9539 = vst [vmem:[#allocation79_spill] sm:$0xff] %v5706_v25  ;;  %v2011_v44 = vmul.f32 %v2010_v31, %v5706_v25  ;;  %v2012_v17 = vmul.f32 %v2010_v31, %v5718_v60  ;;  %v2025_v47 = vmul.f32 %v2024_v7, %v5706_v25  ;;  %v5735_v14 = vmul.f32 %v2066_v46, %v5706_v25 }
 0x356   : >> { %9540 = vst [vmem:[#allocation80_spill] sm:$0xff] %v5718_v60  ;;  %v2040_v18 = vmul.f32 %v2038_v43, %v5718_v60  ;;  %v2026_v11 = vmul.f32 %v2024_v7, %v5718_v60  ;;  %v2039_v36 = vmul.f32 %v2038_v43, %v5706_v25  ;;  %v2068_v30 = vmul.f32 %v2066_v46, %v5718_v60 }
 0x357   : >> { %9542 = vst [vmem:[#allocation82_spill] sm:$0xff] %v5735_v14  ;;  %v5882_v24 = vmul.f32 %v1403_v9, %v5657_v50  ;;  %v5885_v35 = vsel %vm1184_vm3, %v1342_v26, %v1343_v1  ;;  %v5888_v31 = vsel %vm1287_vm2, %v1445_v8, 0.0  ;;  %v9216_v28 = vstv %s5775_s24  ;;  %s5967_s24 = sld [smem:[#allocation2 + $0x51]] }
 0x358   : >> { %2015 = vrot.lane.b32.xlu2 %v2011_v44, %s9204_s20  ;;  %1899 = vrot.lane.b32.xlu1 %v1894_v38, %s9204_s20  ;;  %9541 = sst [smem:[#allocation81_spill]] %s5729_s26  ;;  %v9221_v58 = vstv %s5729_s26  ;;  %9559 = vst [vmem:[#allocation98_spill] sm:$0xff] %v5888_v31  ;;  %v5891_v44 = vsel %vm1287_vm2, %v1444_v32, %v1445_v8  ;;  %v1463_v38 = vstv %s5778_s25  ;;  %v5903_v7 = vmul.f32 %v9224_v55, %v5828_v20 }
 0x359   : >> { %v1949_v12 = vmul.f32 %v9221_v58, %v5681_v21  ;;  %s5823_s26 = sld [smem:[#allocation4 + $0x2]]  ;;  %9560 = vst [vmem:[#allocation99_spill] sm:$0xff] %v5891_v44  ;;  %v5914_v46 = vmul.f32 %v1397_v3, %v5679_v57  ;;  %v5922_v2 = vmul.f32 %v1409_v63, %v5679_v57  ;;  %v9222_v43 = vstv %s5787_s2 }
 0x35a   : >> { %1838 = vrot.lane.b32.xlu0 %v1835_v51, %s9204_s20  ;;  %v1457_v51 = vstv %s5784_s1  ;;  %s5935_s1 = sld [smem:[#allocation2 + $0x12]]  ;;  %v5962_v0 = vmul.f32 %v1463_v38, %v5888_v31  ;;  %v5972_v26 = vmul.f32 %v9222_v43, %v5891_v44  ;;  %v9573_v8 = vstv %s5800_s6 }
 0x35b   : >> { %s5947_s25 = sld [smem:[#allocation2 + $0x17]]  ;;  %v9595_v20 = vstv %s9587_s22 }
 0x35c   : >> { %s5992_s2 = sld [smem:[#allocation2 + $0x9]] }
 0x35d   : >> { %9563 = sst [smem:[#allocation102_spill]] %s5967_s24 }
 0x35f   : >> { %v9628_v14 = vstv %s5823_s26 }
 0x360   : >> { %2017 = vrot.lane.b32.xlu2 %v2012_v17, %s9204_s20  ;;  %2029 = vrot.lane.b32.xlu1 %v2025_v47, %s9204_s20  ;;  %v5908_v17 = vmul.f32 %v9223_v54, %v5657_v50  ;;  %v9591_v50 = vstv %s5897_s29 }
 0x362   : >> { %2123 = vrot.lane.b32.xlu0 %v5695_v19, %s4930_s27  ;;  %s4419_s27 = sld [smem:[#allocation2 + $0x46]] }
 0x368   : >> { %1913 = vrot.lane.b32.xlu2 %v1908_v15, %s9204_s20  ;;  %1925 = vrot.lane.b32.xlu1 %v1921_v22, %s9204_s20  ;;  %v2052_v48 = vstv %s4419_s27  ;;  %s5773_s27 = sld [smem:[#allocation2 + $0x7]]  ;;  %v5925_v15 = vmul.f32 %v1349_v33, %v5885_v35 }
 0x369   : >> { %v2054_v10 = vmul.f32 %v2052_v48, %v5718_v60  ;;  %v2053_v42 = vmul.f32 %v2052_v48, %v5706_v25  ;;  %v5950_v48 = vmul.f32 %v1355_v41, %v5885_v35  ;;  %v9622_v25 = vstv %s6002_s28 }
 0x36a   : >> { %1911 = vrot.lane.b32.xlu0 %v1907_v52, %s9204_s20  ;;  %v5933_v52 = vmul.f32 %v9216_v28, %v5891_v44  ;;  %v9230_v28 = vstv %s5848_s13 }
 0x36e   : >> { %v1451_v61 = vstv %s5773_s27  ;;  %s5953_s27 = sld [smem:[#allocation2 + $0x14]] }
 0x36f   : >> { %v5928_v22 = vmul.f32 %v1451_v61, %v5888_v31 }
 0x370   : >> { %1953 = vrot.lane.b32.xlu2 %v1949_v12, %s9204_s20  ;;  %2045 = vrot.lane.b32.xlu1 %v2040_v18, %s9204_s20  ;;  %v5939_v12 = vmul.f32 %v1451_v61, %v5891_v44  ;;  %v5942_v18 = vmul.f32 %v1463_v38, %v5891_v44  ;;  %v9236_v38 = vstv %s5825_s10 }
 0x372   : >> { %2031 = vrot.lane.b32.xlu0 %v2026_v11, %s9204_s20  ;;  %v5945_v11 = vmul.f32 %v1457_v51, %v5891_v44 }
 0x378   : >> { %2043 = vrot.lane.b32.xlu2 %v2039_v36, %s9204_s20  ;;  %2059 = vrot.lane.b32.xlu1 %v2054_v10, %s9204_s20  ;;  %v5956_v10 = vmul.f32 %v1457_v51, %v5888_v31 }
 0x37a   : >> { %1927 = vrot.lane.b32.xlu0 %v1922_v53, %s9204_s20  ;;  %v5959_v53 = vmul.f32 %v1361_v13, %v5885_v35  ;;  %v9234_v13 = vstv %s5804_s8  ;;  %s6085_s8 = sld [smem:[#allocation2 + $0xa]] }
 0x380   : >> { %2057 = vrot.lane.b32.xlu2 %v2053_v42, %s9204_s20  ;;  %v9235_v42 = vstv %s5789_s3  ;;  %s6092_s3 = sld [smem:[#allocation2 + $0x52]] }
 0x382   : >> { %1939 = vrot.lane.b32.xlu0 %v1935_v37, %s9204_s20  ;;  %s5814_s20 = sld [smem:[#allocation2 + $0x48]]  ;;  %v1192_v37 = vstv %s5793_s4 }
 0x383   : >> { %s9566_s4 = sld [smem:[#allocation91_spill]] }
 0x386   : >> { %9581 = sst [smem:[#allocation108_spill]] %s6092_s3 }
 0x388   : >> { %9552 = sst [smem:[#allocation92_spill]] %s5814_s20 }
 0x389   : >> { %v9232_v58 = vstv %s9566_s4  ;;  %s6058_s4 = sld [smem:[#allocation2 + $0x50]] }
 0x38a   : >> { %1941 = vrot.lane.b32.xlu0 %v1936_v59, %s9553_s17  ;;  %v9233_v59 = vstv %s5795_s5 }
 0x38f   : >> { %9571 = sst [smem:[#allocation106_spill]] %s6058_s4 }
 0x392   : >> { %v1174_v6 = vpop.permute.xlu1 %1173  ;;  %2073 = vrot.lane.b32.xlu0 %v2068_v30, %s9553_s17  ;;  %s5985_s17 = sld [smem:[#allocation2 + $0x30]]  ;;  %v1499_v40 = vpop.permute.xlu0 %1498 }
 0x393   : >> { %v5911_v47 = vsel %vm1179_vm4, 0.0, %v1174_v6  ;;  %v9229_v6 = vstv %s5814_s20  ;;  %s6107_s20 = sld [smem:[#allocation2 + $0x2e]] }
 0x394   : >> { %9562 = vst [vmem:[#allocation101_spill] sm:$0xff] %v5911_v47  ;;  %v1185_v36 = vrot.slane %v5911_v47, 7  ;;  %v1288_v51 = vrot.slane %v5911_v47, 1 }
 0x396   : >> { %v5988_v30 = vsel %vm1184_vm3, 0.0, %v1185_v36 }
 0x397   : >> { %v1193_v55 = vmul.f32 %v1192_v37, %v5988_v30  ;;  %v1205_v3 = vmul.f32 %v9230_v28, %v5988_v30 }
 0x399   : >> { %v1195_v33 = vadd.f32 %v1193_v55, %v9235_v42 }
 0x39a   : >> { %v1176_v41 = vpop.permute.xlu2 %1175 }
 0x39b   : >> { %v5982_v1 = vsel %vm1179_vm4, 0.0, %v1176_v41  ;;  %v1217_v41 = vmul.f32 %v9229_v6, %v5988_v30  ;;  %v6024_v6 = vsel %vm1504_vm5, %v1499_v40, 0.0  ;;  %v1265_v40 = vmul.f32 %v9234_v13, %v5911_v47 }
 0x39c   : >> { %9565 = vst [vmem:[#allocation103_spill] sm:$0xff] %v5982_v1  ;;  %v1186_v32 = vrot.slane %v5982_v1, 7  ;;  %v1289_v5 = vrot.slane %v5982_v1, 1  ;;  %v9574_v13 = vstv %s5935_s1 }
 0x39d   : >> { %9569 = vst [vmem:[#allocation105_spill] sm:$0xff] %v6024_v6  ;;  %v1219_v28 = vadd.f32 %v1217_v41, %v9232_v58  ;;  %v9572_v58 = vstv %s5823_s26  ;;  %v1199_v42 = vmul.f32 %v9574_v13, %v5988_v30  ;;  %s6504_s26 = sld [smem:[#allocation2 + $0x23]] }
 0x39e   : >> { %v6017_v9 = vsel %vm1184_vm3, %v1185_v36, %v1186_v32  ;;  %v6032_v36 = vsel %vm1287_vm2, %v1288_v51, %v1289_v5  ;;  %v1241_v51 = vmul.f32 %v9233_v59, %v5911_v47  ;;  %v1207_v54 = vadd.f32 %v1205_v3, %v9572_v58 }
 0x39f   : >> { %9567 = vst [vmem:[#allocation104_spill] sm:$0xff] %v6017_v9  ;;  %v1194_v61 = vmul.f32 %v1192_v37, %v6017_v9  ;;  %v1296_v55 = vmul.f32 %v9236_v38, %v6032_v36  ;;  %v9570_v37 = vstv %s5832_s11  ;;  %v1253_v59 = vmul.f32 %v9573_v8, %v5911_v47  ;;  %s6075_s11 = sld [smem:[#allocation2 + $0x2c]] }
 0x3a0   : >> { %v1320_v41 = vmul.f32 %v9570_v37, %v6032_v36  ;;  %v1243_v38 = vadd.f32 %v1241_v51, %v1195_v33  ;;  %v1267_v37 = vadd.f32 %v1265_v40, %v1219_v28  ;;  %v1308_v44 = vmul.f32 %v9576_v45, %v6032_v36 }
 0x3a1   : >> { %v1196_v23 = vadd.f32 %v1194_v61, %v9575_v56  ;;  %v9577_v58 = vstv %s5798_s19  ;;  %v9578_v8 = vrot.slane %v6024_v6, 7  ;;  %v9580_v56 = vstv %s5795_s5  ;;  %s9585_s5 = sld [smem:[#allocation93_spill]] }
 0x3a2   : >> { %v1668_v63 = vpop.permute.xlu2 %1667  ;;  %v1247_v3 = vmul.f32 %v9577_v58, %v5911_v47  ;;  %v1242_v28 = vmul.f32 %v9580_v56, %v5982_v1  ;;  %v1298_v45 = vadd.f32 %v1296_v55, %v1243_v38  ;;  %v1322_v61 = vadd.f32 %v1320_v41, %v1267_v37 }
 0x3a3   : >> { %v6083_v43 = vsel %vm1184_vm3, 0.0, %v9578_v8  ;;  %v1255_v40 = vadd.f32 %v1253_v59, %v1207_v54  ;;  %v9582_v51 = vstv %s5802_s7  ;;  %v9583_v8 = vstv %s5806_s9 }
 0x3a4   : >> { %9579 = vst [vmem:[#allocation107_spill] sm:$0xff] %v6083_v43  ;;  %v6097_v58 = vmul.f32 %v9582_v51, %v5911_v47  ;;  %v6102_v13 = vmul.f32 %v9583_v8, %v6024_v6  ;;  %v6105_v56 = vsel %vm1287_vm2, %v1289_v5, 0.0  ;;  %v9586_v55 = vstv %s5916_s30 }
 0x3a5   : >> { %9584 = vst [vmem:[#allocation109_spill] sm:$0xff] %v6105_v56  ;;  %v1201_v41 = vadd.f32 %v1199_v42, %v9586_v55  ;;  %v1244_v59 = vadd.f32 %v1242_v28, %v1196_v23  ;;  %v6113_v37 = vsel %vm1179_vm4, 0.0, %v1668_v63  ;;  %v1310_v51 = vadd.f32 %v1308_v44, %v1255_v40 }
 0x3a6   : >> { %9588 = vst [vmem:[#allocation110_spill] sm:$0xff] %v6113_v37  ;;  %v9589_v8 = vstv %s9564_s15  ;;  %v9590_v5 = vstv %s5819_s16  ;;  %v6128_v42 = vmul.f32 %v9591_v50, %v6024_v6  ;;  %v9592_v23 = vstv %s5978_s18  ;;  %s6153_s16 = sld [smem:[#allocation2 + $0x57]] }
 0x3a7   : >> { %v6118_v33 = vmul.f32 %v9589_v8, %v6083_v43  ;;  %v6123_v32 = vmul.f32 %v9590_v5, %v6024_v6  ;;  %v1302_v28 = vmul.f32 %v9592_v23, %v6032_v36  ;;  %v9593_v63 = vstv %s5825_s10  ;;  %s6148_s10 = sld [smem:[#allocation2 + $0x1a]] }
 0x3a8   : >> { %v1297_v44 = vmul.f32 %v9593_v63, %v6105_v56  ;;  %v1352_v40 = vadd.f32 %v5854_v34, %v1298_v45  ;;  %v1376_v55 = vadd.f32 %v5865_v29, %v1322_v61  ;;  %v9594_v54 = vstv %s9585_s5 }
 0x3a9   : >> { %v1541_v50 = vmul.f32 %v9594_v54, %v6083_v43  ;;  %v6146_v23 = vmul.f32 %v9595_v20, %v6083_v43  ;;  %v1249_v47 = vadd.f32 %v1247_v3, %v1201_v41  ;;  %v9596_v63 = vstv %s5798_s19  ;;  %s6219_s19 = sld [smem:[#allocation2 + $0xf]] }
 0x3aa   : >> { %v2122_v38 = vpop.permute.xlu2 %2121  ;;  %v1248_v34 = vmul.f32 %v9596_v63, %v5982_v1  ;;  %v1299_v29 = vadd.f32 %v1297_v44, %v1244_v59  ;;  %v1364_v45 = vadd.f32 %v5868_v39, %v1310_v51  ;;  %v9598_v54 = vstv %s5800_s6  ;;  %s6192_s6 = sld [smem:[#allocation2 + $0x1b]] }
 0x3ab   : >> { %v6160_v8 = vmul.f32 %v9598_v54, %v5982_v1  ;;  %v9599_v20 = vstv %s5802_s7  ;;  %v1304_v5 = vadd.f32 %v1302_v28, %v1249_v47  ;;  %v1400_v59 = vadd.f32 %v5840_v4, %v1352_v40  ;;  %s6199_s7 = sld [smem:[#allocation2 + $0x1c]] }
 0x3ac   : >> { %9597 = sst [smem:[#allocation93_spill]] %s6153_s16  ;;  %v6165_v3 = vmul.f32 %v9599_v20, %v5982_v1  ;;  %v1424_v44 = vadd.f32 %v5846_v27, %v1376_v55  ;;  %v9600_v39 = vstv %s5935_s1  ;;  %v9601_v54 = vrot.slane %v6113_v37, 7 }
 0x3ad   : >> { %v1200_v51 = vmul.f32 %v9600_v39, %v6017_v9  ;;  %v9603_v28 = vstv %s5953_s27  ;;  %v9604_v27 = vstv %s5947_s25  ;;  %v1353_v55 = vadd.f32 %v5925_v15, %v1299_v29  ;;  %s6240_s1 = sld [smem:[#allocation2 + $0x20]] }
 0x3ae   : >> { %v6179_v20 = vsel %vm1184_vm3, 0.0, %v9601_v54  ;;  %v6185_v4 = vmul.f32 %v9603_v28, %v6083_v43  ;;  %v6190_v40 = vmul.f32 %v9604_v27, %v6024_v6  ;;  %v1412_v54 = vadd.f32 %v5860_v49, %v1364_v45 }
 0x3af   : >> { %9602 = vst [vmem:[#allocation111_spill] sm:$0xff] %v6179_v20  ;;  %v9606_v28 = vstv %s5916_s30  ;;  %v9607_v63 = vstv %s5875_s23  ;;  %v1358_v15 = vadd.f32 %v5879_v16, %v1304_v5  ;;  %v9608_v49 = vstv %s5894_s14  ;;  %s6232_s30 = sld [smem:[#allocation2 + $0x1d]] }
 0x3b0   : >> { %v1202_v47 = vadd.f32 %v1200_v51, %v9606_v28  ;;  %v6206_v27 = vmul.f32 %v9607_v63, %v6113_v37  ;;  %v6216_v45 = vmul.f32 %v9608_v49, %v6113_v37  ;;  %v1454_v51 = vadd.f32 %v5939_v12, %v1400_v59  ;;  %s6255_s14 = sld [smem:[#allocation2 + $0xb]] }
 0x3b1   : >> { %v9609_v63 = vstv %s5967_s24  ;;  %v9610_v1 = vstv %s5985_s17  ;;  %v1401_v12 = vadd.f32 %v5914_v46, %v1353_v55  ;;  %v1466_v49 = vadd.f32 %v5942_v18, %v1412_v54  ;;  %s6269_s24 = sld [smem:[#allocation2 + $0xe]] }
 0x3b2   : >> { %v1501_v61 = vpop.permute.xlu1 %1500  ;;  %v6174_v21 = vpop.permute.xlu2 %2015  ;;  %v6224_v28 = vmul.f32 %v9609_v63, %v6179_v20  ;;  %v6229_v16 = vmul.f32 %v9610_v1, %v6113_v37  ;;  %v9612_v1 = vrot.slane %v6024_v6, 7  ;;  %v1406_v46 = vadd.f32 %v5882_v24, %v1358_v15 }
 0x3b3   : >> { %v6196_v39 = vsel %vm1504_vm5, %v1501_v61, 0.0  ;;  %v1478_v61 = vadd.f32 %v5933_v52, %v1424_v44  ;;  %v1250_v52 = vadd.f32 %v1248_v34, %v1202_v47  ;;  %v6235_v44 = vsel %vm1504_vm5, %v2122_v38, 0.0 }
 0x3b4   : >> { %9605 = vst [vmem:[#allocation112_spill] sm:$0xff] %v6196_v39  ;;  %v1510_v41 = vrot.slane %v6196_v39, 7  ;;  %v9614_v29 = vrot.slane %v6196_v39, 1  ;;  %v9615_v34 = vrot.slane %v6024_v6, 1  ;;  %v9616_v18 = vstv %s5978_s18  ;;  %s6280_s18 = sld [smem:[#allocation4 + $0x3]] }
 0x3b5   : >> { %9611 = vst [vmem:[#allocation113_spill] sm:$0xff] %v6235_v44  ;;  %v1303_v47 = vmul.f32 %v9616_v18, %v6105_v56  ;;  %v1519_v55 = vadd.f32 %v6118_v33, %v1454_v51  ;;  %v9617_v54 = vstv %s5992_s2  ;;  %v9620_v51 = vstv %s9564_s15  ;;  %s6302_s15 = sld [smem:[#allocation2 + $0x21]] }
 0x3b6   : >> { %v6245_v63 = vsel %vm1184_vm3, %v9612_v1, %v1510_v41  ;;  %v6252_v38 = vsel %vm1287_vm2, %v9615_v34, %v9614_v29  ;;  %v1543_v41 = vadd.f32 %v1541_v50, %v1478_v61  ;;  %v1685_v1 = vmul.f32 %v9617_v54, %v6179_v20 }
 0x3b7   : >> { %9613 = vst [vmem:[#allocation114_spill] sm:$0xff] %v6245_v63  ;;  %v9618_v29 = vstv %s5999_s0  ;;  %v9619_v50 = vstv %s6013_s12  ;;  %v1305_v61 = vadd.f32 %v1303_v47, %v1250_v52  ;;  %v1518_v54 = vmul.f32 %v9620_v51, %v6245_v63 }
 0x3b8   : >> { %v6267_v34 = vmul.f32 %v9618_v29, %v6179_v20  ;;  %v6278_v33 = vmul.f32 %v9619_v50, %v6113_v37  ;;  %v9621_v29 = vstv %s6058_s4  ;;  %v1619_v59 = vmul.f32 %v9622_v25, %v6252_v38  ;;  %s6332_s4 = sld [smem:[#allocation2 + $0x3c]] }
 0x3b9   : >> { %v1643_v5 = vmul.f32 %v9621_v29, %v6252_v38  ;;  %v1455_v18 = vadd.f32 %v5928_v22, %v1401_v12  ;;  %v1531_v50 = vadd.f32 %v6146_v23, %v1466_v49  ;;  %v1460_v52 = vadd.f32 %v5945_v11, %v1406_v46 }
 0x3ba   : >> { %v1837_v24 = vpop.permute.xlu1 %1836  ;;  %v6271_v15 = vpop.permute.xlu2 %2017  ;;  %v9623_v47 = vstv %s5848_s13  ;;  %v1591_v29 = vadd.f32 %v6123_v32, %v1543_v41  ;;  %v1567_v25 = vadd.f32 %v6102_v13, %v1519_v55  ;;  %v9624_v22 = vrot.slane %v6235_v44, 7  ;;  %s9627_s13 = sld [smem:[#allocation90_spill]] }
 0x3bb   : >> { %v1206_v60 = vmul.f32 %v9623_v47, %v6017_v9  ;;  %v9626_v23 = vstv %s6192_s6  ;;  %v1359_v32 = vadd.f32 %v5950_v48, %v1305_v61  ;;  %v1520_v13 = vadd.f32 %v1518_v54, %v1455_v18 }
 0x3bc   : >> { %v6307_v11 = vsel %vm1184_vm3, 0.0, %v9624_v22  ;;  %v6312_v12 = vmul.f32 %v9626_v23, %v6179_v20  ;;  %v1645_v46 = vadd.f32 %v1643_v5, %v1591_v29  ;;  %v1621_v41 = vadd.f32 %v1619_v59, %v1567_v25 }
 0x3bd   : >> { %9625 = vst [vmem:[#allocation115_spill] sm:$0xff] %v6307_v11  ;;  %v1579_v47 = vadd.f32 %v6128_v42, %v1531_v50  ;;  %v1525_v51 = vadd.f32 %v6185_v4, %v1460_v52  ;;  %v1208_v19 = vadd.f32 %v1206_v60, %v9628_v14  ;;  %v9629_v23 = vstv %s5806_s9  ;;  %s6383_s9 = sld [smem:[#allocation2 + $0x33]] }
 0x3be   : >> { %v1566_v31 = vmul.f32 %v9629_v23, %v6196_v39  ;;  %v9630_v49 = vstv %s6075_s11  ;;  %v9631_v5 = vstv %s5857_s21  ;;  %v9632_v42 = vrot.slane %v6196_v39, 1  ;;  %s6517_s21 = sld [smem:[#allocation2 + $0x2f]] }
 0x3bf   : >> { %v1631_v48 = vmul.f32 %v9630_v49, %v6252_v38  ;;  %v1309_v59 = vmul.f32 %v9631_v5, %v6105_v56  ;;  %v9634_v14 = vstv %s6148_s10  ;;  %v1407_v54 = vadd.f32 %v5919_v62, %v1359_v32 }
 0x3c0   : >> { %v6337_v4 = vsel %vm1287_vm2, %v9632_v42, 0.0  ;;  %v1625_v61 = vmul.f32 %v9634_v14, %v6252_v38  ;;  %v1157_v50 = vstv %s6280_s18  ;;  %v1568_v52 = vadd.f32 %v1566_v31, %v1520_v13  ;;  %s6675_s18 = sld [smem:[#allocation2 + $0x5e]] }
 0x3c1   : >> { %9633 = vst [vmem:[#allocation116_spill] sm:$0xff] %v6337_v4  ;;  %v1711_v29 = vadd.f32 %v6224_v28, %v1645_v46  ;;  %v1687_v25 = vadd.f32 %v1685_v1, %v1621_v41  ;;  %v9635_v49 = vstv %s9627_s13  ;;  %v1573_v42 = vadd.f32 %v6190_v40, %v1525_v51 }
 0x3c2   : >> { %v1898_v60 = vpop.permute.xlu1 %1897  ;;  %v1211_v23 = vmul.f32 %v9635_v49, %v5988_v30  ;;  %v6348_v5 = vpop.permute.xlu2 %1913  ;;  %v9636_v22 = vstv %s5953_s27  ;;  %v9637_v14 = vstv %s5947_s25  ;;  %v1256_v62 = vadd.f32 %v6160_v8, %v1208_v19  ;;  %s6571_s25 = sld [smem:[#allocation2 + $0x35]] }
 0x3c3   : >> { %v1524_v55 = vmul.f32 %v9636_v22, %v6245_v63  ;;  %v1572_v20 = vmul.f32 %v9637_v14, %v6196_v39  ;;  %v9638_v31 = vstv %s6002_s28  ;;  %v1633_v32 = vadd.f32 %v1631_v48, %v1579_v47  ;;  %s6434_s28 = sld [smem:[#allocation2 + $0x38]] }
 0x3c4   : >> { %v1670_v18 = vpop.permute.xlu0 %1669  ;;  %v1620_v28 = vmul.f32 %v9638_v31, %v6337_v4  ;;  %v1627_v46 = vadd.f32 %v1625_v61, %v1573_v42  ;;  %v1461_v19 = vadd.f32 %v5956_v10, %v1407_v54  ;;  %v6369_v41 = vsel %vm1184_vm3, 0.0, %v1837_v24  ;;  %s9685_s27 = sld [smem:[#allocation87_spill]] }
 0x3c5   : >> { %v6362_v1 = vsel %vm1179_vm4, 0.0, %v1670_v18  ;;  %9640 = vst [vmem:[#allocation118_spill] sm:$0xff] %v6369_v41  ;;  %v1759_v47 = vadd.f32 %v6216_v45, %v1711_v29  ;;  %v1735_v22 = vadd.f32 %v6206_v27, %v1687_v25  ;;  %v9641_v48 = vrot.slane %v6113_v37, 7 }
 0x3c6   : >> { %9639 = vst [vmem:[#allocation117_spill] sm:$0xff] %v6362_v1  ;;  %v1678_v40 = vrot.slane %v6362_v1, 7  ;;  %v1780_v51 = vrot.slane %v6362_v1, 1  ;;  %v1622_v8 = vadd.f32 %v1620_v28, %v1568_v52  ;;  %v9643_v61 = vrot.slane %v6113_v37, 1  ;;  %9703 = sst [smem:[#allocation97_spill]] %s6675_s18 }
 0x3c7   : >> { %v1526_v24 = vadd.f32 %v1524_v55, %v1461_v19  ;;  %v1311_v54 = vadd.f32 %v1309_v59, %v1256_v62  ;;  %v9645_v52 = vstv %s6153_s16  ;;  %v9646_v29 = vstv %s5992_s2  ;;  %s6411_s2 = sld [smem:[#allocation2 + $0x11]] }
 0x3c8   : >> { %v6376_v18 = vsel %vm1184_vm3, %v9641_v48, %v1678_v40  ;;  %v6381_v10 = vsel %vm1287_vm2, %v9643_v61, %v1780_v51  ;;  %v9647_v25 = vstv %s6219_s19  ;;  %v1313_v42 = vstv %s6332_s4  ;;  %s6605_s4 = sld [smem:[#allocation2 + $0x40]] }
 0x3c9   : >> { %9642 = vst [vmem:[#allocation119_spill] sm:$0xff] %v6376_v18  ;;  %v1811_v45 = vmul.f32 %v9645_v52, %v6381_v10  ;;  %v1686_v27 = vmul.f32 %v9646_v29, %v6376_v18  ;;  %v1787_v49 = vmul.f32 %v9647_v25, %v6381_v10  ;;  %v9648_v14 = vstv %s6085_s8  ;;  %s6852_s16 = sld [smem:[#allocation2 + $0x6c]] }
 0x3ca   : >> { %9644 = vst [vmem:[#allocation120_spill] sm:$0xff] %v6381_v10  ;;  %v1845_v31 = vmul.f32 %v9648_v14, %v6369_v41  ;;  %v6399_v28 = vsel %vm1287_vm2, %v1780_v51, 0.0  ;;  %v9650_v55 = vstv %s6092_s3  ;;  %v1900_v62 = vpop.permute.xlu1 %1899  ;;  %v1213_v40 = vadd.f32 %v1211_v23, %v1157_v50  ;;  %s6842_s3 = sld [smem:[#allocation2 + $0x84]] }
 0x3cb   : >> { %9649 = vst [vmem:[#allocation121_spill] sm:$0xff] %v6399_v28  ;;  %v1869_v59 = vmul.f32 %v9650_v55, %v6369_v41  ;;  %v9651_v19 = vstv %s5875_s23  ;;  %v1813_v61 = vadd.f32 %v1811_v45, %v1759_v47  ;;  %v1688_v52 = vadd.f32 %v1686_v27, %v1622_v8  ;;  %s9681_s23 = sld [smem:[#allocation86_spill]] }
 0x3cc   : >> { %v1734_v48 = vmul.f32 %v9651_v19, %v6362_v1  ;;  %v1789_v29 = vadd.f32 %v1787_v49, %v1735_v22  ;;  %v6409_v25 = vpop.permute.xlu0 %1838  ;;  %v1574_v51 = vadd.f32 %v1572_v20, %v1526_v24  ;;  %v9653_v14 = vstv %s6148_s10  ;;  %v1954_v49 = vpop.permute.xlu2 %1953  ;;  %s9692_s10 = sld [smem:[#allocation81_spill]] }
 0x3cd   : >> { %9652 = vst [vmem:[#allocation122_spill] sm:$0xff] %v6409_v25  ;;  %v1626_v13 = vmul.f32 %v9653_v14, %v6337_v4  ;;  %v1365_v55 = vadd.f32 %v5959_v53, %v1311_v54  ;;  %v1314_v23 = vmul.f32 %v1313_v42, %v6032_v36  ;;  %v1871_v47 = vadd.f32 %v1869_v59, %v1813_v61 }
 0x3ce   : >> { %v1736_v8 = vadd.f32 %v1734_v48, %v1688_v52  ;;  %v9654_v22 = vstv %s6219_s19  ;;  %v1847_v27 = vadd.f32 %v1845_v31, %v1789_v29  ;;  %v1699_v20 = vadd.f32 %v6267_v34, %v1633_v32  ;;  %s6658_s19 = sld [smem:[#allocation2 + $0x44]] }
 0x3cf   : >> { %v1788_v45 = vmul.f32 %v9654_v22, %v6399_v28  ;;  %v1693_v24 = vadd.f32 %v6312_v12, %v1627_v46  ;;  %v9655_v19 = vstv %s6192_s6  ;;  %v1261_v54 = vadd.f32 %v6097_v58, %v1213_v40  ;;  %s6611_s6 = sld [smem:[#allocation2 + $0x6a]] }
 0x3d0   : >> { %v1692_v53 = vmul.f32 %v9655_v19, %v6376_v18  ;;  %v6429_v59 = vadd.f32 %v1954_v49, %v1871_v47  ;;  %v9656_v61 = vstv %s6085_s8  ;;  %v1903_v52 = vadd.f32 %v1898_v60, %v1847_v27  ;;  %s6483_s8 = sld [smem:[#allocation2 + $0x3b]] }
 0x3d1   : >> { %v1790_v48 = vadd.f32 %v1788_v45, %v1736_v8  ;;  %v1846_v31 = vmul.f32 %v9656_v61, %v6409_v25  ;;  %v9274_v34 = vstv %s6383_s9  ;;  %v9657_v12 = vstv %s6232_s30  ;;  %9737 = sst [smem:[#allocation134_spill]] %s6842_s3 }
 0x3d2   : >> { %v6440_v32 = vmul.f32 %v9657_v12, %v6307_v11  ;;  %v9658_v46 = vstv %s6240_s1  ;;  %v1316_v40 = vadd.f32 %v1314_v23, %v1261_v54  ;;  %v2021_v14 = vadd.f32 %v6174_v21, %v1903_v52  ;;  %9741 = sst [smem:[#allocation137_spill]] %s6852_s16 }
 0x3d3   : >> { %v6445_v58 = vmul.f32 %v9658_v46, %v6235_v44  ;;  %v1848_v29 = vadd.f32 %v1846_v31, %v1790_v48  ;;  %v1628_v47 = vadd.f32 %v1626_v13, %v1574_v51  ;;  %v1413_v60 = vadd.f32 %v5922_v2, %v1365_v55  ;;  %v2030_v51 = vpop.permute.xlu1 %2029  ;;  %s6873_s16 = sld [smem:[#allocation2 + $0x72]] }
 0x3d4   : >> { %v9659_v8 = vstv %s6302_s15  ;;  %v9660_v45 = vstv %s6255_s14  ;;  %v9661_v49 = vstv %s6269_s24  ;;  %v9662_v61 = vstv %s5897_s29  ;;  %v2124_v55 = vpop.permute.xlu0 %2123  ;;  %s6568_s29 = sld [smem:[#allocation2 + $0x45]] }
 0x3d5   : >> { %v1793_v22 = vmul.f32 %v9659_v8, %v6381_v10  ;;  %v2139_v27 = vmul.f32 %v9660_v45, %v6307_v11  ;;  %v2187_v19 = vmul.f32 %v9661_v49, %v6235_v44  ;;  %v1578_v23 = vmul.f32 %v9662_v61, %v6196_v39 }
 0x3d6   : >> { %v9663_v54 = vstv %s6107_s20  ;;  %v1747_v21 = vadd.f32 %v6229_v16, %v1699_v20  ;;  %v1741_v2 = vadd.f32 %v6278_v33, %v1693_v24  ;;  %v1694_v13 = vadd.f32 %v1692_v53, %v1628_v47 }
 0x3d7   : >> { %v1857_v48 = vmul.f32 %v9663_v54, %v6369_v41  ;;  %v2240_v31 = vstv %s6411_s2  ;;  %v9664_v52 = vstv %s6013_s12  ;;  %v9665_v46 = vstv %s9587_s22  ;;  %s6492_s12 = sld [smem:[#allocation2 + $0x3e]] }
 0x3d8   : >> { %v1740_v12 = vmul.f32 %v9664_v52, %v6362_v1  ;;  %v1530_v8 = vmul.f32 %v9665_v46, %v6245_v63  ;;  %v1370_v45 = vadd.f32 %v5903_v7, %v1316_v40  ;;  %v1904_v49 = vadd.f32 %v1900_v62, %v1848_v29  ;;  %s6523_s22 = sld [smem:[#allocation2 + $0x32]] }
 0x3d9   : >> { %v6475_v16 = vsel %vm1504_vm5, %v2124_v55, 0.0  ;;  %v2141_v33 = vadd.f32 %v2139_v27, %v2021_v14  ;;  %v1467_v20 = vadd.f32 %v5962_v0, %v1413_v60  ;;  %v1799_v47 = vmul.f32 %v9274_v34, %v6381_v10  ;;  %s6696_s2 = sld [smem:[#allocation2 + $0x82]] }
 0x3da   : >> { %9666 = vst [vmem:[#allocation123_spill] sm:$0xff] %v6475_v16  ;;  %v2132_v24 = vrot.slane %v6475_v16, 7  ;;  %v2234_v53 = vrot.slane %v6475_v16, 1  ;;  %v1795_v61 = vadd.f32 %v1793_v22, %v1741_v2  ;;  %v9667_v7 = vstv %s6199_s7  ;;  %9749 = sst [smem:[#allocation140_spill]] %s6873_s16 }
 0x3db   : >> { %v1851_v62 = vmul.f32 %v9667_v7, %v6369_v41  ;;  %v1742_v40 = vadd.f32 %v1740_v12, %v1694_v13  ;;  %v9668_v29 = vstv %s6302_s15  ;;  %v1534_v27 = vstv %s6434_s28  ;;  %s6680_s15 = sld [smem:[#allocation2 + $0x5b]] }
 0x3dc   : >> { %v1794_v14 = vmul.f32 %v9668_v29, %v6399_v28  ;;  %v9669_v0 = vrot.slane %v6235_v44, 7  ;;  %v9671_v54 = vrot.slane %v6235_v44, 1  ;;  %v1532_v2 = vadd.f32 %v1530_v8, %v1467_v20  ;;  %s6701_s28 = sld [smem:[#allocation2 + $0x7f]] }
 0x3dd   : >> { %v9673_v13 = vstv %s9627_s13  ;;  %v2189_v52 = vadd.f32 %v2187_v19, %v2141_v33  ;;  %v2022_v46 = vadd.f32 %v6271_v15, %v1904_v49  ;;  %v6515_v29 = vsel %vm1287_vm2, %v2234_v53, 0.0  ;;  %s6687_s13 = sld [smem:[#allocation2 + $0x79]] }
 0x3de   : >> { %v6497_v60 = vsel %vm1184_vm3, %v9669_v0, %v2132_v24  ;;  %v6502_v22 = vsel %vm1287_vm2, %v9671_v54, %v2234_v53  ;;  %v1212_v55 = vmul.f32 %v9673_v13, %v6017_v9  ;;  %v9674_v24 = vstv %s6255_s14  ;;  %9675 = vst [vmem:[#allocation126_spill] sm:$0xff] %v6515_v29  ;;  %v1912_v13 = vpop.permute.xlu0 %1911  ;;  %s9683_s14 = smov 127   ;;  %s6890_s16 = sld [smem:[#allocation2 + $0x62]] }
 0x3df   : >> { %9670 = vst [vmem:[#allocation124_spill] sm:$0xff] %v6497_v60  ;;  %v2241_v12 = vmul.f32 %v2240_v31, %v6502_v22  ;;  %v2140_v7 = vmul.f32 %v9674_v24, %v6497_v60  ;;  %v1801_v8 = vadd.f32 %v1799_v47, %v1747_v21  ;;  %v1853_v20 = vadd.f32 %v1851_v62, %v1795_v61  ;;  %9705 = sst [smem:[#allocation86_spill]] %s6696_s2 }
 0x3e0   : >> { %9672 = vst [vmem:[#allocation125_spill] sm:$0xff] %v6502_v22  ;;  %v1418_v0 = vadd.f32 %v5908_v17, %v1370_v45  ;;  %v9676_v54 = vstv %s6269_s24  ;;  %v1796_v49 = vadd.f32 %v1794_v14, %v1742_v40  ;;  %v9677_v53 = vstv %s6199_s7  ;;  %v1926_v14 = vpop.permute.xlu1 %1925  ;;  %s9680_s24 = smov 1   ;;  %s9698_s7 = smov 112  }
 0x3e1   : >> { %v2243_v19 = vadd.f32 %v2241_v12, %v2189_v52  ;;  %v2142_v33 = vadd.f32 %v2140_v7, %v2022_v46  ;;  %v2188_v15 = vmul.f32 %v9676_v54, %v6475_v16  ;;  %v1852_v24 = vmul.f32 %v9677_v53, %v6409_v25  ;;  %9704 = sst [smem:[#allocation90_spill]] %s6680_s15 }
 0x3e2   : >> { %v1580_v34 = vadd.f32 %v1578_v23, %v1532_v2  ;;  %v9678_v21 = vstv %s6075_s11  ;;  %v1214_v17 = vadd.f32 %v1212_v55, %v1157_v50  ;;  %v1917_v45 = vadd.f32 %v1912_v13, %v1853_v20  ;;  %s6543_s11 = sld [smem:[#allocation2 + $0x3f]] }
 0x3e3   : >> { %v1632_v47 = vmul.f32 %v9678_v21, %v6337_v4  ;;  %v6533_v61 = vmax.f32 %v2243_v19, 0.0  ;;  %v2190_v62 = vadd.f32 %v2188_v15, %v2142_v33  ;;  %v2242_v40 = vmul.f32 %v2240_v31, %v6515_v29  ;;  %9706 = sst [smem:[#allocation87_spill]] %s6701_s28 }
 0x3e4   : >> { %v9679_v52 = vstv %s5999_s0  ;;  %v1472_v23 = vadd.f32 %v5972_v26, %v1418_v0  ;;  %v1535_v2 = vmul.f32 %v1534_v27, %v6083_v43  ;;  %v1262_v50 = vadd.f32 %v6165_v3, %v1214_v17  ;;  %s6558_s0 = sld [smem:[#allocation2 + $0x42]] }
 0x3e5   : >> { %v1698_v12 = vmul.f32 %v9679_v52, %v6376_v18  ;;  %v1859_v55 = vadd.f32 %v1857_v48, %v1801_v8  ;;  %v2035_v46 = vadd.f32 %v2030_v51, %v1917_v45  ;;  %2311 = vrot.lane.b32.xlu2 %v6533_v61, %s9680_s24  ;;  %v2244_v31 = vadd.f32 %v2242_v40, %v2190_v62 }
 0x3e6   : >> { %v1854_v7 = vadd.f32 %v1852_v24, %v1796_v49  ;;  %v2246_v20 = vstv %s6504_s26  ;;  %v1582_v19 = vstv %s6483_s8  ;;  %v1636_v33 = vstv %s6492_s12  ;;  %v2044_v24 = vpop.permute.xlu2 %2043  ;;  %s6703_s8 = sld [smem:[#allocation2 + $0x5d]] }
 0x3e7   : >> { %v1315_v26 = vmul.f32 %v1313_v42, %v6105_v56  ;;  %v1931_v0 = vadd.f32 %v1926_v14, %v1859_v55  ;;  %v2147_v54 = vadd.f32 %v6440_v32, %v2035_v46  ;;  %v6555_v15 = vmax.f32 %v2244_v31, 0.0  ;;  %s6706_s12 = sld [smem:[#allocation2 + $0x6f]] }
 0x3e8   : >> { %v1634_v3 = vadd.f32 %v1632_v47, %v1580_v34  ;;  %v2150_v48 = vstv %s6517_s21  ;;  %v1537_v51 = vadd.f32 %v1535_v2, %v1472_v23  ;;  %v9682_v49 = vstv %s9681_s23  ;;  %v2032_v47 = vpop.permute.xlu0 %2031  ;;  %s6712_s26 = sld [smem:[#allocation2 + $0x5a]] }
 0x3e9   : >> { %v1317_v8 = vadd.f32 %v1315_v26, %v1262_v50  ;;  %v1369_v13 = vmul.f32 %v9682_v49, %v5885_v35  ;;  %v2247_v42 = vmul.f32 %v2246_v20, %v6502_v22  ;;  %v2195_v53 = vadd.f32 %v6445_v58, %v2147_v54  ;;  %2419 = vrot.lane.b32.xlu0 %v6555_v15, %s9683_s14  ;;  %s6714_s21 = sld [smem:[#allocation2 + $0x81]] }
 0x3ea   : >> { %v1918_v34 = vadd.f32 %v6348_v5, %v1854_v7  ;;  %v1700_v32 = vadd.f32 %v1698_v12, %v1634_v3  ;;  %v2198_v21 = vstv %s6523_s22  ;;  %v9684_v17 = vstv %s5985_s17  ;;  %s9689_s17 = sld [smem:[#allocation88_spill]] }
 0x3eb   : >> { %v1746_v45 = vmul.f32 %v9684_v17, %v6362_v1  ;;  %v1583_v58 = vmul.f32 %v1582_v19, %v6024_v6  ;;  %v1637_v5 = vmul.f32 %v1636_v33, %v6252_v38  ;;  %v2049_v62 = vadd.f32 %v2044_v24, %v1931_v0  ;;  %s6724_s22 = sld [smem:[#allocation2 + $0x7c]] }
 0x3ec   : >> { %v2249_v40 = vadd.f32 %v2247_v42, %v2195_v53  ;;  %v9686_v14 = vstv %s6232_s30  ;;  %v2036_v12 = vadd.f32 %v2032_v47, %v1918_v34  ;;  %v2151_v23 = vmul.f32 %v2150_v48, %v6307_v11  ;;  %s6669_s30 = sld [smem:[#allocation2 + $0x47]] }
 0x3ed   : >> { %v2146_v52 = vmul.f32 %v9686_v14, %v6497_v60  ;;  %v1585_v2 = vadd.f32 %v1583_v58, %v1537_v51  ;;  %v1702_v50 = vstv %s6543_s11  ;;  %v1371_v55 = vadd.f32 %v1369_v13, %v1317_v8  ;;  %2417 = vrot.lane.b32.xlu2 %v6533_v61, %s9683_s14  ;;  %v9693_v14 = vld [vmem:[#allocation98_spill] sm:$0xff]  ;;  %s9710_s11 = sld [smem:[#allocation92_spill]] }
 0x3ee   : >> { %v6589_v46 = vmax.f32 %v2249_v40, 0.0  ;;  %v9687_v31 = vstv %s6240_s1  ;;  %v1748_v0 = vadd.f32 %v1746_v45, %v1700_v32  ;;  %v9688_v3 = vstv %s9685_s27  ;;  %v9691_v32 = vld [vmem:[#allocation111_spill] sm:$0xff]  ;;  %s6672_s1 = sld [smem:[#allocation2 + $0x67]] }
 0x3ef   : >> { %v2194_v7 = vmul.f32 %v9687_v31, %v6475_v16  ;;  %v2148_v26 = vadd.f32 %v2146_v52, %v2036_v12  ;;  %v1639_v54 = vadd.f32 %v1637_v5, %v1585_v2  ;;  %v1417_v51 = vmul.f32 %v9688_v3, %v5679_v57  ;;  %9708 = sst [smem:[#allocation88_spill]] %s6712_s26 }
 0x3f0   : >> { %v2153_v49 = vadd.f32 %v2151_v23, %v2049_v62  ;;  %v2248_v8 = vmul.f32 %v2246_v20, %v6515_v29  ;;  %2477 = vrot.lane.b32.xlu1 %v6589_v46, %s9680_s24  ;;  %v9690_v42 = vstv %s6383_s9  ;;  %v2199_v34 = vmul.f32 %v2198_v21, %v6235_v44  ;;  %v1928_v62 = vpop.permute.xlu0 %1927  ;;  %s6692_s9 = sld [smem:[#allocation2 + $0x8b]] }
 0x3f1   : >> { %v2196_v13 = vadd.f32 %v2194_v7, %v2148_v26  ;;  %v1800_v53 = vmul.f32 %v9690_v42, %v6399_v28  ;;  %v1703_v24 = vmul.f32 %v1702_v50, %v9691_v32  ;;  %v1419_v20 = vadd.f32 %v1417_v51, %v1371_v55  ;;  %v9696_v26 = vld [vmem:[#allocation78_spill] sm:$0xff]  ;;  %s6726_s23 = sld [smem:[#allocation2 + $0x8e]] }
 0x3f2   : >> { %v1750_v45 = vstv %s6558_s0  ;;  %v1804_v58 = vstv %s6568_s29  ;;  %v2252_v5 = vstv %s6571_s25  ;;  %v9694_v52 = vstv %s9689_s17  ;;  %s6733_s0 = sld [smem:[#allocation4 + $0x5]] }
 0x3f3   : >> { %v2250_v47 = vadd.f32 %v2248_v8, %v2196_v13  ;;  %v1802_v17 = vadd.f32 %v1800_v53, %v1748_v0  ;;  %v1705_v40 = vadd.f32 %v1703_v24, %v1639_v54  ;;  %v1471_v12 = vmul.f32 %v9694_v52, %v9693_v14  ;;  %v2046_v52 = vpop.permute.xlu1 %2045  ;;  %s6736_s29 = sld [smem:[#allocation2 + $0x61]] }
 0x3f4   : >> { %v1536_v23 = vmul.f32 %v1534_v27, %v6245_v63  ;;  %v2201_v2 = vadd.f32 %v2199_v34, %v2153_v49  ;;  %v9695_v7 = vstv %s6107_s20  ;;  %v9697_v0 = vstv %s9692_s10  ;;  %s6645_s20 = sld [smem:[#allocation2 + $0x41]] }
 0x3f5   : >> { %v6622_v31 = vmax.f32 %v2250_v47, 0.0  ;;  %v1858_v55 = vmul.f32 %v9695_v7, %v6409_v25  ;;  %v1950_v3 = vmul.f32 %v9697_v0, %v9696_v26  ;;  %v1751_v54 = vmul.f32 %v1750_v45, %v6113_v37  ;;  %v9700_v7 = vld [vmem:[#allocation80_spill] sm:$0xff]  ;;  %s6748_s25 = sld [smem:[#allocation2 + $0x85]] }
 0x3f6   : >> { %v1805_v51 = vmul.f32 %v1804_v58, %v6381_v10  ;;  %v1473_v8 = vadd.f32 %v1471_v12, %v1419_v20  ;;  %v2253_v27 = vmul.f32 %v2252_v5, %v6502_v22  ;;  %v1862_v24 = vstv %s6605_s4  ;;  %s9714_s27 = sld [smem:[#allocation91_spill]] }
 0x3f7   : >> { %v1860_v49 = vadd.f32 %v1858_v55, %v1802_v17  ;;  %1955 = vrot.lane.b32.xlu2 %v1950_v3, %s9698_s7  ;;  %2479 = vrot.lane.b32.xlu0 %v6622_v31, %s9680_s24  ;;  %v1753_v13 = vadd.f32 %v1751_v54, %v1705_v40  ;;  %v2080_v20 = vstv %s6611_s6  ;;  %v1584_v17 = vmul.f32 %v1582_v19, %v6196_v39  ;;  %s6753_s17 = sld [smem:[#allocation2 + $0x60]] }
 0x3f8   : >> { %v1538_v42 = vadd.f32 %v1536_v23, %v1473_v8  ;;  %v2255_v53 = vadd.f32 %v2253_v27, %v2201_v2  ;;  %2313 = vrot.lane.b32.xlu1 %v6555_v15, %s9680_s24  ;;  %v1863_v12 = vmul.f32 %v1862_v24, %v6369_v41  ;;  %v2082_v55 = vmul.f32 %v2080_v20, %v9700_v7  ;;  %9711 = sst [smem:[#allocation81_spill]] %s6733_s0 }
 0x3f9   : >> { %v1932_v34 = vadd.f32 %v1928_v62, %v1860_v49  ;;  %v1807_v47 = vadd.f32 %v1805_v51, %v1753_v13  ;;  %v1940_v62 = vpop.permute.xlu0 %1939  ;;  %v1638_v3 = vmul.f32 %v1636_v33, %v6337_v4  ;;  %v1704_v19 = vmul.f32 %v1702_v50, %v6376_v18  ;;  %v9701_v49 = vld [vmem:[#allocation82_spill] sm:$0xff]  ;;  %v2058_v50 = vpop.permute.xlu2 %2057  ;;  %9712 = sst [smem:[#allocation92_spill]] %s6736_s29 }
 0x3fa   : >> { %v1586_v40 = vadd.f32 %v1584_v17, %v1538_v42  ;;  %v6648_v23 = vmax.f32 %v2255_v53, 0.0  ;;  %v2152_v54 = vmul.f32 %v2150_v48, %v6497_v60  ;;  %v2200_v48 = vmul.f32 %v2198_v21, %v6475_v16  ;;  %s9718_s4 = sld [smem:[#allocation89_spill]] }
 0x3fb   : >> { %v2050_v2 = vadd.f32 %v2046_v52, %v1932_v34  ;;  %v1865_v0 = vadd.f32 %v1863_v12, %v1807_v47  ;;  %v2156_v13 = vstv %s6645_s20  ;;  %v1752_v53 = vmul.f32 %v1750_v45, %v6362_v1  ;;  %v9702_v47 = vld [vmem:[#allocation79_spill] sm:$0xff]  ;;  %9713 = sst [smem:[#allocation127_spill]] %s6748_s25 }
 0x3fc   : >> { %9699 = vst [vmem:[#allocation98_spill] sm:$0xff] %v6648_v23  ;;  %v1640_v8 = vadd.f32 %v1638_v3, %v1586_v40  ;;  %v2081_v17 = vmul.f32 %v2080_v20, %v9702_v47  ;;  %v2157_v52 = vmul.f32 %v2156_v13, %v6307_v11  ;;  %v2254_v21 = vmul.f32 %v2252_v5, %v6515_v29  ;;  %s6759_s10 = sld [smem:[#allocation2 + $0x6d]] }
 0x3fd   : >> { %v1945_v51 = vadd.f32 %v1940_v62, %v1865_v0  ;;  %v2154_v27 = vadd.f32 %v2152_v54, %v2050_v2  ;;  %v2204_v40 = vstv %s6658_s19  ;;  %v1806_v20 = vmul.f32 %v1804_v58, %v6399_v28  ;;  %9716 = sst [smem:[#allocation91_spill]] %s6753_s17 }
 0x3fe   : >> { %v1706_v33 = vadd.f32 %v1704_v19, %v1640_v8  ;;  %v2205_v5 = vmul.f32 %v2204_v40, %v6235_v44  ;;  %v1864_v0 = vmul.f32 %v1862_v24, %v6409_v25  ;;  %v1962_v3 = vstv %s6672_s1  ;;  %v9709_v24 = vld [vmem:[#allocation77_spill] sm:$0xff]  ;;  %s6764_s6 = sld [smem:[#allocation2 + $0x70]] }
 0x3ff   : >> { %2087 = vrot.lane.b32.xlu2 %v2082_v55, %s9698_s7  ;;  %2643 = vrot.lane.b32.xlu0 %v6648_v23, %s9680_s24  ;;  %v2063_v42 = vadd.f32 %v2058_v50, %v1945_v51  ;;  %v2202_v34 = vadd.f32 %v2200_v48, %v2154_v27  ;;  %v2258_v55 = vstv %s6669_s30  ;;  %v1963_v27 = vmul.f32 %v1962_v3, %v9709_v24  ;;  %s6770_s1 = sld [smem:[#allocation2 + $0x73]] }
 0x400   : >> { %2071 = vrot.lane.b32.xlu1 %v9701_v49, %s9698_s7  ;;  %v1754_v12 = vadd.f32 %v1752_v53, %v1706_v33  ;;  %v2259_v51 = vmul.f32 %v2258_v55, %v6502_v22  ;;  %v9299_v50 = vrot.slane %v6533_v61, 7  ;;  %v2370_v48 = vrot.slane %v6555_v15, 7  ;;  %s6778_s20 = sld [smem:[#allocation2 + $0x5c]] }
 0x401   : >> { %v2159_v45 = vadd.f32 %v2157_v52, %v2063_v42  ;;  %v2256_v2 = vadd.f32 %v2254_v21, %v2202_v34  ;;  %v1942_v54 = vpop.permute.xlu0 %1941  ;;  %v2399_v42 = vrot.slane %v6533_v61, 1  ;;  %v9298_v53 = vrot.slane %v6555_v15, 1  ;;  %s6808_s19 = sld [smem:[#allocation2 + $0x7e]] }
 0x402   : >> { %v1808_v62 = vadd.f32 %v1806_v20, %v1754_v12  ;;  %v1976_v34 = vstv %s6687_s13  ;;  %v6741_v52 = vsel %vm1184_vm3, %v9299_v50, %v2370_v48  ;;  %9719 = sst [smem:[#allocation89_spill]] %s6759_s10 }
 0x403   : >> { %v2207_v58 = vadd.f32 %v2205_v5, %v2159_v45  ;;  %v6710_v19 = vmax.f32 %v2256_v2, 0.0  ;;  %v6746_v12 = vsel %vm1287_vm2, %v2399_v42, %v9298_v53  ;;  %v9715_v45 = vstv %s9710_s11  ;;  %s6782_s13 = sld [smem:[#allocation2 + $0x5f]]  ;;  %v9759_v53 = vld [vmem:[#allocation99_spill] sm:$0xff] }
 0x404   : >> { %v1866_v8 = vadd.f32 %v1864_v0, %v1808_v62  ;;  %v1218_v20 = vmul.f32 %v9715_v45, %v6017_v9  ;;  %v1977_v5 = vmul.f32 %v1976_v34, %v9709_v24  ;;  %v9276_v62 = vstv %s6712_s26  ;;  %9720 = sst [smem:[#allocation128_spill]] %s6764_s6 }
 0x405   : >> { %9707 = vst [vmem:[#allocation80_spill] sm:$0xff] %v6710_v19  ;;  %v2261_v49 = vadd.f32 %v2259_v51, %v2207_v58  ;;  %v2158_v58 = vmul.f32 %v2156_v13, %v6497_v60  ;;  %v1964_v0 = vmul.f32 %v1962_v3, %v9696_v26  ;;  %9721 = sst [smem:[#allocation129_spill]] %s6770_s1  ;;  %v2094_v51 = vstv %s6724_s22 }
 0x406   : >> { %v1946_v33 = vadd.f32 %v1942_v54, %v1866_v8  ;;  %v9722_v8 = vstv %s9714_s27  ;;  %v1223_v13 = vmul.f32 %v9276_v62, %v5988_v30  ;;  %9723 = sst [smem:[#allocation130_spill]] %s6778_s20  ;;  %v9279_v3 = vstv %s6733_s0  ;;  %v9730_v62 = vld [vmem:[#allocation101_spill] sm:$0xff] }
 0x407   : >> { %2585 = vrot.lane.b32.xlu2 %v6622_v31, %s9683_s14  ;;  %2085 = vrot.lane.b32.xlu0 %v2081_v17, %s9698_s7  ;;  %v2060_v17 = vpop.permute.xlu1 %2059  ;;  %v6755_v2 = vmax.f32 %v2261_v49, 0.0  ;;  %v9725_v49 = vld [vmem:[#allocation103_spill] sm:$0xff]  ;;  %v2206_v42 = vmul.f32 %v2204_v40, %v6475_v16  ;;  %s6790_s11 = sld [smem:[#allocation2 + $0x56]]  ;;  %v2095_v45 = vmul.f32 %v2094_v51, %v9702_v47  ;;  %v9304_v50 = vstv %s6778_s20 }
 0x408   : >> { %2583 = vrot.lane.b32.xlu1 %v6589_v46, %s9683_s14  ;;  %v2064_v21 = vadd.f32 %v2060_v17, %v1946_v33  ;;  %v9726_v33 = vstv %s9718_s4  ;;  %v9305_v17 = vstv %s6703_s8  ;;  %s9727_s27 = sld [smem:[#allocation96_spill]]  ;;  %v1225_v40 = vadd.f32 %v1223_v13, %v9279_v3 }
 0x409   : >> { %9717 = vst [vmem:[#allocation82_spill] sm:$0xff] %v6755_v2  ;;  %9724 = sst [smem:[#allocation131_spill]] %s6782_s13  ;;  %v1266_v48 = vmul.f32 %v9726_v33, %v9725_v49  ;;  %v2565_v33 = vrot.slane %v6589_v46, 1 }
 0x40a   : >> { %v2160_v54 = vadd.f32 %v2158_v58, %v2064_v21  ;;  %v1978_v21 = vmul.f32 %v1976_v34, %v9696_v26  ;;  %s6797_s26 = sld [smem:[#allocation4 + $0x7]]  ;;  %v9284_v58 = vstv %s6753_s17  ;;  %v9282_v34 = vrot.slane %v6622_v31, 1 }
 0x40b   : >> { %s6799_s4 = sld [smem:[#allocation2 + $0x53]] }
 0x40c   : >> { %9729 = sst [smem:[#allocation132_spill]] %s6808_s19  ;;  %v6831_v3 = vsel %vm1287_vm2, %v2565_v33, %v9282_v34  ;;  %v9293_v34 = vstv %s6680_s15 }
 0x40d   : >> { %s9731_s1 = sld [smem:[#allocation84_spill]] }
 0x40e   : >> { %v9732_v13 = vstv %s9727_s27  ;;  %s6819_s0 = sld [smem:[#allocation2 + $0x80]] }
 0x40f   : >> { %2749 = vrot.lane.b32.xlu0 %v6648_v23, %s9683_s14  ;;  %2645 = vrot.lane.b32.xlu2 %v6710_v19, %s9680_s24  ;;  %s6836_s30 = sld [smem:[#allocation2 + $0x83]] }
 0x410   : >> { %1967 = vrot.lane.b32.xlu1 %v1963_v27, %s9698_s7  ;;  %v1220_v27 = vadd.f32 %v1218_v20, %v9722_v8  ;;  %9728 = sst [smem:[#allocation96_spill]] %s6797_s26  ;;  %v2208_v20 = vadd.f32 %v2206_v42, %v2160_v54  ;;  %v2536_v8 = vrot.slane %v6622_v31, 7  ;;  %v1271_v54 = vmul.f32 %v9305_v17, %v9730_v62 }
 0x411   : >> { %s9735_s27 = sld [smem:[#allocation83_spill]]  ;;  %v2108_v17 = vstv %s6726_s23 }
 0x412   : >> { %s6848_s17 = sld [smem:[#allocation2 + $0x63]] }
 0x413   : >> { %s6871_s15 = sld [smem:[#allocation2 + $0x8a]] }
 0x414   : >> { %9733 = sst [smem:[#allocation84_spill]] %s6819_s0 }
 0x415   : >> { %9734 = sst [smem:[#allocation133_spill]] %s6836_s30 }
 0x416   : >> { %s6838_s0 = sld [smem:[#allocation2 + $0x66]] }
 0x417   : >> { %1981 = vrot.lane.b32.xlu0 %v1977_v5, %s9698_s7  ;;  %2809 = vrot.lane.b32.xlu2 %v6755_v2, %s9680_s24  ;;  %v1268_v5 = vadd.f32 %v1266_v48, %v1220_v27  ;;  %v2260_v27 = vmul.f32 %v2258_v55, %v6515_v29  ;;  %v1321_v48 = vmul.f32 %v9732_v13, %v6105_v56  ;;  %s6850_s30 = sld [smem:[#allocation4 + $0x6]] }
 0x418   : >> { %1969 = vrot.lane.b32.xlu1 %v1964_v0, %s9698_s7  ;;  %v9295_v0 = vrot.slane %v6589_v46, 7  ;;  %v1326_v55 = vmul.f32 %v9284_v58, %v6032_v36  ;;  %9739 = sst [smem:[#allocation135_spill]] %s6848_s17 }
 0x419   : >> { %v1323_v13 = vadd.f32 %v1321_v48, %v1268_v5  ;;  %9748 = sst [smem:[#allocation139_spill]] %s6871_s15 }
 0x41a   : >> { %v6826_v42 = vsel %vm1184_vm3, %v9295_v0, %v2536_v8  ;;  %v9738_v8 = vstv %s9731_s1  ;;  %s6859_s1 = sld [smem:[#allocation2 + $0x68]] }
 0x41b   : >> { %v1375_v33 = vmul.f32 %v9738_v8, %v5885_v35  ;;  %s6914_s15 = sld [smem:[#allocation6 + $0x4c]] }
 0x41c   : >> { %9736 = sst [smem:[#allocation83_spill]] %s6838_s0 }
 0x41d   : >> { %9740 = sst [smem:[#allocation136_spill]] %s6850_s30  ;;  %v1377_v5 = vadd.f32 %v1375_v33, %v1323_v13  ;;  %v1990_v33 = vstv %s6692_s9 }
 0x41e   : >> { %s9744_s0 = sld [smem:[#allocation85_spill]] }
 0x41f   : >> { %1983 = vrot.lane.b32.xlu0 %v1978_v21, %s9698_s7  ;;  %2099 = vrot.lane.b32.xlu2 %v2095_v45, %s9698_s7  ;;  %v2262_v21 = vadd.f32 %v2260_v27, %v2208_v20  ;;  %v1273_v45 = vadd.f32 %v1271_v54, %v1225_v40  ;;  %v9743_v27 = vld [vmem:[#allocation95_spill] sm:$0xff]  ;;  %v9746_v54 = vstv %s9735_s27  ;;  %s6865_s30 = sld [smem:[#allocation2 + $0x65]] }
 0x420   : >> { %2751 = vrot.lane.b32.xlu1 %v6710_v19, %s9683_s14  ;;  %v1380_v40 = vmul.f32 %v9293_v34, %v9743_v27  ;;  %9745 = sst [smem:[#allocation85_spill]] %s6859_s1  ;;  %v1423_v48 = vmul.f32 %v9746_v54, %v5679_v57 }
 0x421   : >> { %v1328_v58 = vadd.f32 %v1326_v55, %v1273_v45  ;;  %v6854_v20 = vmax.f32 %v2262_v21, 0.0  ;;  %v9297_v55 = vstv %s6675_s18  ;;  %v9750_v45 = vld [vmem:[#allocation75_spill] sm:$0xff]  ;;  %s6880_s27 = sld [smem:[#allocation2 + $0x87]] }
 0x422   : >> { %v1425_v21 = vadd.f32 %v1423_v48, %v1377_v5  ;;  %v1428_v8 = vmul.f32 %v9297_v55, %v9750_v45  ;;  %v9303_v48 = vstv %s6736_s29  ;;  %s6894_s18 = sld [smem:[#allocation2 + $0x86]]  ;;  %v1991_v55 = vmul.f32 %v1990_v33, %v9709_v24 }
 0x423   : >> { %9742 = vst [vmem:[#allocation79_spill] sm:$0xff] %v6854_v20  ;;  %v1382_v13 = vadd.f32 %v1380_v40, %v1328_v58  ;;  %v9753_v40 = vstv %s9585_s5  ;;  %s6897_s9 = sld [smem:[#allocation2 + $0x59]]  ;;  %v1282_v24 = vstv %s6714_s21 }
 0x424   : >> { %v9752_v54 = vstv %s9744_s0  ;;  %v1542_v5 = vmul.f32 %v9753_v40, %v6245_v63  ;;  %s6903_s5 = sld [smem:[#allocation2 + $0x69]] }
 0x425   : >> { %9747 = sst [smem:[#allocation138_spill]] %s6865_s30  ;;  %v1477_v58 = vmul.f32 %v9752_v54, %v9693_v14  ;;  %v1430_v34 = vadd.f32 %v1428_v8, %v1382_v13  ;;  %v1482_v54 = vmul.f32 %v9303_v48, %v9759_v53  ;;  %v2096_v13 = vmul.f32 %v2094_v51, %v9700_v7 }
 0x426   : >> { %s6909_s0 = sld [smem:[#allocation6 + $0x4]]  ;;  %v1547_v51 = vmul.f32 %v9304_v50, %v6083_v43 }
 0x427   : >> { %2915 = vrot.lane.b32.xlu2 %v6755_v2, %s9683_s14  ;;  %2917 = vrot.lane.b32.xlu0 %v6854_v20, %s9683_s14  ;;  %9751 = sst [smem:[#allocation141_spill]] %s6880_s27  ;;  %v1479_v0 = vadd.f32 %v1477_v58, %v1425_v21  ;;  %v1484_v21 = vadd.f32 %v1482_v54, %v1430_v34  ;;  %v9309_v34 = vstv %s6782_s13 }
 0x428   : >> { %2811 = vrot.lane.b32.xlu1 %v6854_v20, %s9680_s24  ;;  %s9754_s14 = sld [smem:[#allocation94_spill]] }
 0x429   : >> { %9755 = sst [smem:[#allocation94_spill]] %s6890_s16  ;;  %v1544_v40 = vadd.f32 %v1542_v5, %v1479_v0  ;;  %v1549_v54 = vadd.f32 %v1547_v51, %v1484_v21  ;;  %v1992_v5 = vmul.f32 %v1990_v33, %v9696_v26  ;;  %v1595_v21 = vmul.f32 %v9309_v34, %v6024_v6 }
 0x42a   : >> { %s6892_s24 = sld [smem:[#allocation2 + $0x64]]  ;;  %v9768_v51 = vstv %s6890_s16  ;;  %v9771_v33 = vstv %s6764_s6  ;;  %v9319_v34 = vstv %s6808_s19 }
 0x42b   : >> { %9757 = sst [smem:[#allocation143_spill]] %s6894_s18  ;;  %v6962_v26 = vmul.f32 %v9771_v33, %v9750_v45  ;;  %v9321_v33 = vstv %s6848_s17 }
 0x42c   : >> { %9758 = sst [smem:[#allocation144_spill]] %s6897_s9 }
 0x42d   : >> { %9760 = sst [smem:[#allocation145_spill]] %s6903_s5 }
 0x42e   : >> { %s9761_s18 = sld [smem:[#allocation106_spill]]  ;;  %v9762_v8 = vstv %s9754_s14 }
 0x42f   : >> { %1995 = vrot.lane.b32.xlu2 %v1991_v55, %s9698_s7  ;;  %s9763_s29 = sld [smem:[#allocation102_spill]]  ;;  %v1590_v58 = vmul.f32 %v9762_v8, %v6196_v39  ;;  %v1276_v8 = vstv %s6706_s12 }
 0x430   : >> { %9756 = sst [smem:[#allocation142_spill]] %s6892_s24  ;;  %2101 = vrot.lane.b32.xlu1 %v2096_v13, %s9698_s7  ;;  %v9769_v13 = vstv %s6701_s28  ;;  %v6984_v2 = vmul.f32 %v1276_v8, %v9730_v62 }
 0x431   : >> { %s6917_s9 = sld [smem:[#allocation6 + $0x1]]  ;;  %v1592_v0 = vadd.f32 %v1590_v58, %v1544_v40 }
 0x432   : >> { %s6922_s22 = sld [smem:[#allocation6 + $0x49]] }
 0x433   : >> { %s6927_s14 = sld [smem:[#allocation6 + $0x7]] }
 0x434   : >> { %v9765_v48 = vstv %s9761_s18  ;;  %s6938_s20 = sld [smem:[#allocation6 + $0x4f]] }
 0x435   : >> { %v1644_v50 = vmul.f32 %v9765_v48, %v6337_v4  ;;  %v9766_v40 = vstv %s9763_s29  ;;  %v1649_v48 = vmul.f32 %v9768_v51, %v6252_v38  ;;  %s6957_s18 = sld [smem:[#allocation6 + $0xd]]  ;;  %v6966_v51 = vmul.f32 %v2108_v17, %v9700_v7 }
 0x436   : >> { %v1710_v58 = vmul.f32 %v9766_v40, %v6376_v18  ;;  %v6953_v40 = vmul.f32 %v9769_v13, %v9743_v27  ;;  %s6968_s23 = sld [smem:[#allocation6 + $0x55]]  ;;  %v1597_v13 = vadd.f32 %v1595_v21, %v1549_v54  ;;  %v1283_v54 = vmul.f32 %v1282_v24, %v9730_v62 }
 0x437   : >> { %v1646_v55 = vadd.f32 %v1644_v50, %v1592_v0  ;;  %1997 = vrot.lane.b32.xlu2 %v1992_v5, %s9698_s7  ;;  %s9772_s29 = sld [smem:[#allocation100_spill]]  ;;  %v9773_v50 = vstv %s6759_s10  ;;  %v6980_v5 = vmul.f32 %v2108_v17, %v9702_v47  ;;  %v9323_v21 = vstv %s6799_s4 }
 0x438   : >> { %9764 = sst [smem:[#allocation106_spill]] %s6922_s22  ;;  %9770 = vst [vmem:[#allocation103_spill] sm:$0xff] %v6953_v40  ;;  %v6974_v0 = vmul.f32 %v9773_v50, %v9743_v27  ;;  %v1651_v27 = vadd.f32 %v1649_v48, %v1597_v13  ;;  %v6996_v47 = vmul.f32 %v1276_v8, %v9725_v49  ;;  %v1235_v62 = vmul.f32 %v9319_v34, %v5988_v30 }
 0x439   : >> { %s6942_s22 = sld [smem:[#allocation6 + $0x16]]  ;;  %v1712_v20 = vadd.f32 %v1710_v58, %v1646_v55  ;;  %9775 = vst [vmem:[#allocation101_spill] sm:$0xff] %v6980_v5  ;;  %v9777_v55 = vstv %s6703_s8  ;;  %v7007_v48 = vmul.f32 %v1282_v24, %v9725_v49  ;;  %v2210_v13 = vstv %s6790_s11 }
 0x43a   : >> { %s6976_s12 = sld [smem:[#allocation6 + $0x13]]  ;;  %v6993_v58 = vmul.f32 %v9777_v55, %v9725_v49  ;;  %9779 = vst [vmem:[#allocation146_spill] sm:$0xff] %v6996_v47  ;;  %v1715_v8 = vmul.f32 %v9321_v33, %v9691_v32  ;;  %v9331_v55 = vstv %s6797_s26  ;;  %v7019_v7 = vmul.f32 %v9323_v21, %v6307_v11 }
 0x43b   : >> { %s9776_s21 = sld [smem:[#allocation83_spill]]  ;;  %9781 = vst [vmem:[#allocation147_spill] sm:$0xff] %v7007_v48  ;;  %v1237_v40 = vadd.f32 %v1235_v62, %v9331_v55  ;;  %v7045_v33 = vmul.f32 %v2210_v13, %v6235_v44  ;;  %v9795_v49 = vstv %s6892_s24  ;;  %v9810_v18 = vrot.slane %v6533_v61, 7 }
 0x43c   : >> { %s6988_s16 = sld [smem:[#allocation6 + $0xa]]  ;;  %9778 = vst [vmem:[#allocation95_spill] sm:$0xff] %v6993_v58  ;;  %v1717_v34 = vadd.f32 %v1715_v8, %v1651_v27  ;;  %v1875_v24 = vmul.f32 %v9795_v49, %v6369_v41  ;;  %v2554_v4 = vstv %s6957_s18  ;;  %v9821_v58 = vrot.slane %v6589_v46, 7 }
 0x43d   : >> { %v9780_v17 = vstv %s9772_s29  ;;  %s7001_s13 = sld [smem:[#allocation6 + $0x52]]  ;;  %v7198_v63 = vmul.f32 %v2554_v4, %v6589_v46 }
 0x43e   : >> { %v1758_v50 = vmul.f32 %v9780_v17, %v6362_v1  ;;  %s9782_s8 = sld [smem:[#allocation93_spill]]  ;;  %v2374_v1 = vsel %vm1184_vm3, 0.0, %v9810_v18  ;;  %v9817_v18 = vrot.slane %v6555_v15, 1 }
 0x43f   : >> { %9767 = sst [smem:[#allocation102_spill]] %s6942_s22  ;;  %9820 = vst [vmem:[#allocation154_spill] sm:$0xff] %v7198_v63 }
 0x440   : >> { %9774 = sst [smem:[#allocation100_spill]] %s6976_s12  ;;  %v1760_v17 = vadd.f32 %v1758_v50, %v1712_v20 }
 0x441   : >> { %s7010_s7 = sld [smem:[#allocation6 + $0x5b]]  ;;  %v9790_v20 = vstv %s9776_s21 }
 0x442   : >> { %s9784_s29 = sld [smem:[#allocation137_spill]]  ;;  %v1763_v45 = vmul.f32 %v9790_v20, %v6113_v37  ;;  %v7070_v20 = vpop.permute.xlu2 %2311  ;;  %v2542_v56 = vstv %s6988_s16 }
 0x443   : >> { %s9785_s19 = sld [smem:[#allocation108_spill]] }
 0x444   : >> { %s7021_s10 = sld [smem:[#allocation6 + $0x5e]]  ;;  %v9787_v50 = vstv %s9782_s8 }
 0x445   : >> { %s7025_s11 = sld [smem:[#allocation7]]  ;;  %v1812_v21 = vmul.f32 %v9787_v50, %v6399_v28  ;;  %v9792_v50 = vstv %s6903_s5 }
 0x446   : >> { %s7030_s17 = sld [smem:[#allocation7 + $0x1]]  ;;  %v1817_v62 = vmul.f32 %v9792_v50, %v6381_v10  ;;  %v1765_v50 = vadd.f32 %v1763_v45, %v1717_v34  ;;  %v2376_v45 = vstv %s6917_s9 }
 0x447   : >> { %9783 = sst [smem:[#allocation93_spill]] %s7010_s7  ;;  %v1814_v55 = vadd.f32 %v1812_v21, %v1760_v17  ;;  %v9801_v21 = vstv %s6842_s3 }
 0x448   : >> { %s7039_s25 = sld [smem:[#allocation6]]  ;;  %v7075_v17 = vmul.f32 %v9801_v21, %v6032_v36  ;;  %v7090_v21 = vmul.f32 %v2210_v13, %v6475_v16  ;;  %v1819_v49 = vadd.f32 %v1817_v62, %v1765_v50 }
 0x449   : >> { %v9789_v27 = vstv %s9785_s19  ;;  %s9793_s8 = sld [smem:[#allocation136_spill]] }
 0x44a   : >> { %9786 = sst [smem:[#allocation108_spill]] %s7021_s10  ;;  %v1870_v8 = vmul.f32 %v9789_v27, %v6409_v25  ;;  %v9796_v27 = vstv %s6865_s30  ;;  %v9798_v25 = vstv %s6859_s1  ;;  %9802 = vst [vmem:[#allocation150_spill] sm:$0xff] %v7075_v17  ;;  %v2388_v17 = vstv %s6909_s0 }
 0x44b   : >> { %s7053_s26 = sld [smem:[#allocation6 + $0x48]]  ;;  %v7061_v47 = vmul.f32 %v9796_v27, %v6307_v11  ;;  %v7066_v48 = vmul.f32 %v9798_v25, %v6235_v44  ;;  %v9803_v27 = vstv %s9784_s29  ;;  %v7083_v25 = vadd.f32 %v1283_v54, %v1237_v40 }
 0x44c   : >> { %s9794_s28 = sld [smem:[#allocation144_spill]]  ;;  %v1229_v28 = vmul.f32 %v9803_v27, %v5988_v30  ;;  %v7095_v27 = vadd.f32 %v1870_v8, %v1814_v55  ;;  %v2394_v40 = vstv %s6914_s15  ;;  %v9813_v8 = vstv %s6799_s4 }
 0x44d   : >> { %9797 = vst [vmem:[#allocation148_spill] sm:$0xff] %v7061_v47  ;;  %s7068_s5 = sld [smem:[#allocation6 + $0x3]]  ;;  %v7117_v50 = vmul.f32 %v9813_v8, %v6497_v60  ;;  %v7126_v54 = vmul.f32 %v2388_v17, %v6533_v61  ;;  %v7129_v16 = vmul.f32 %v2394_v40, %v6533_v61  ;;  %v2406_v61 = vstv %s6927_s14  ;;  %v7148_v60 = vpop.permute.xlu2 %2417  ;;  %v2074_v47 = vpop.permute.xlu0 %2073 }
 0x44e   : >> { %9799 = vst [vmem:[#allocation149_spill] sm:$0xff] %v7066_v48  ;;  %s7081_s1 = sld [smem:[#allocation6 + $0x4b]]  ;;  %v9829_v41 = vstv %s7021_s10  ;;  %v9833_v48 = vstv %s7010_s7 }
 0x44f   : >> { %9806 = vst [vmem:[#allocation151_spill] sm:$0xff] %v7083_v25  ;;  %s9807_s24 = sld [smem:[#allocation106_spill]]  ;;  %v9812_v25 = vstv %s9793_s8  ;;  %v7237_v44 = vmul.f32 %v9829_v41, %v6648_v23  ;;  %v9836_v41 = vrot.slane %v6622_v31, 1 }
 0x450   : >> { %s7092_s6 = sld [smem:[#allocation6 + $0x10]]  ;;  %v1231_v62 = vadd.f32 %v1229_v28, %v9812_v25  ;;  %v7133_v28 = vadd.f32 %v1875_v24, %v1819_v49  ;;  %v7151_v24 = vmul.f32 %v2388_v17, %v6555_v15  ;;  %v7154_v49 = vmul.f32 %v2394_v40, %v6555_v15 }
 0x451   : >> { %s9808_s29 = sld [smem:[#allocation140_spill]]  ;;  %v2412_v25 = vstv %s6938_s20  ;;  %9830 = vst [vmem:[#allocation160_spill] sm:$0xff] %v7237_v44 }
 0x452   : >> { %v2264_v34 = vstv %s9794_s28  ;;  %s7099_s3 = sld [smem:[#allocation6 + $0x58]]  ;;  %9816 = vst [vmem:[#allocation153_spill] sm:$0xff] %v7133_v28 }
 0x453   : >> { %s9809_s2 = sld [smem:[#allocation129_spill]]  ;;  %v7112_v55 = vmul.f32 %v2264_v34, %v6515_v29  ;;  %v7120_v30 = vmul.f32 %v2264_v34, %v6502_v22  ;;  %v7138_v34 = vmul.f32 %v2376_v45, %v2374_v1  ;;  %v2404_v29 = vsel %vm1287_vm2, %v9817_v18, 0.0 }
 0x454   : >> { %9805 = sst [smem:[#allocation144_spill]] %s7081_s1  ;;  %v7161_v18 = vmul.f32 %v2376_v45, %v6741_v52  ;;  %v7178_v45 = vmul.f32 %v2406_v61, %v6746_v12 }
 0x455   : >> { %v2382_v13 = vstv %s9807_s24  ;;  %s7107_s28 = sld [smem:[#allocation2 + $0x6b]]  ;;  %v1956_v9 = vpop.permute.xlu2 %1955 }
 0x456   : >> { %s7122_s15 = sld [smem:[#allocation6 + $0x19]]  ;;  %v7140_v8 = vmul.f32 %v2382_v13, %v2374_v1  ;;  %v1279_v1 = vadd.f32 %v6984_v2, %v1231_v62  ;;  %v7175_v2 = vmul.f32 %v2382_v13, %v6741_v52  ;;  %v7180_v62 = vmul.f32 %v2406_v61, %v2404_v29 }
 0x457   : >> { %s7131_s24 = sld [smem:[#allocation6 + $0x61]]  ;;  %v9818_v39 = vstv %s9808_s29  ;;  %v2560_v61 = vstv %s6968_s23  ;;  %v9827_v52 = vstv %s6942_s22 }
 0x458   : >> { %s7136_s4 = sld [smem:[#allocation6 + $0x2]]  ;;  %v1332_v17 = vmul.f32 %v9818_v39, %v6032_v36  ;;  %v7186_v36 = vmul.f32 %v2412_v25, %v6746_v12  ;;  %v7188_v39 = vmul.f32 %v2412_v25, %v2404_v29  ;;  %v2548_v12 = vstv %s7001_s13 }
 0x459   : >> { %s7146_s9 = sld [smem:[#allocation6 + $0x4a]]  ;;  %v9819_v15 = vstv %s9809_s2  ;;  %v2540_v29 = vsel %vm1184_vm3, 0.0, %v9821_v58  ;;  %v7221_v58 = vmul.f32 %v2560_v61, %v6589_v46  ;;  %v7232_v11 = vmul.f32 %v9827_v52, %v6648_v23 }
 0x45a   : >> { %s7158_s0 = sld [smem:[#allocation6 + $0x5]]  ;;  %v7170_v40 = vmul.f32 %v9819_v15, %v9759_v53  ;;  %v9823_v53 = vrot.slane %v6648_v23, 7  ;;  %v1334_v25 = vadd.f32 %v1332_v17, %v1279_v1  ;;  %v7227_v13 = vmul.f32 %v2548_v12, %v2540_v29 }
 0x45b   : >> { %9811 = sst [smem:[#allocation106_spill]] %s7107_s28  ;;  %9825 = vst [vmem:[#allocation157_spill] sm:$0xff] %v7221_v58  ;;  %v1960_v46 = vadd.f32 %v1956_v9, %v7095_v27  ;;  %v9831_v1 = vstv %s6976_s12  ;;  %v2572_v52 = vstv %s7092_s6  ;;  %v2570_v9 = vsel %vm1287_vm2, %v9836_v41, 0.0 }
 0x45c   : >> { %9814 = sst [smem:[#allocation129_spill]] %s7122_s15  ;;  %v2706_v15 = vsel %vm1184_vm3, 0.0, %v9823_v53  ;;  %v7225_v53 = vmul.f32 %v2542_v56, %v2540_v29  ;;  %9826 = vst [vmem:[#allocation158_spill] sm:$0xff] %v7227_v13  ;;  %v2731_v27 = vrot.slane %v6648_v23, 1  ;;  %v1388_v29 = vadd.f32 %v6974_v0, %v1334_v25 }
 0x45d   : >> { %9815 = sst [smem:[#allocation152_spill]] %s7131_s24  ;;  %9828 = vst [vmem:[#allocation159_spill] sm:$0xff] %v7232_v11  ;;  %v7244_v17 = vmul.f32 %v9831_v1, %v2706_v15  ;;  %v7248_v10 = vmul.f32 %v9833_v48, %v2706_v15  ;;  %v7255_v11 = vmul.f32 %v2554_v4, %v6622_v31  ;;  %v7263_v1 = vsel %vm1179_vm4, 0.0, %v7070_v20 }
 0x45e   : >> { %s7172_s20 = sld [smem:[#allocation6 + $0x4d]]  ;;  %v2078_v48 = vadd.f32 %v2074_v47, %v1960_v46  ;;  %v2578_v15 = vstv %s7099_s3  ;;  %v7272_v4 = vmul.f32 %v2542_v56, %v6826_v42  ;;  %v7275_v41 = vmul.f32 %v2560_v61, %v6622_v31  ;;  %v7338_v61 = vpop.permute.xlu2 %2087 }
 0x45f   : >> { %s7183_s14 = sld [smem:[#allocation6 + $0x8]]  ;;  %9832 = vst [vmem:[#allocation161_spill] sm:$0xff] %v7244_v17  ;;  %v9386_v23 = vrot.slane %v6710_v19, 1  ;;  %v9842_v20 = vstv %s7107_s28  ;;  %v7287_v0 = vmul.f32 %v2548_v12, %v6826_v42  ;;  %v7290_v56 = vmul.f32 %v2572_v52, %v6831_v3 }
 0x460   : >> { %s7194_s18 = sld [smem:[#allocation6 + $0x50]]  ;;  %9834 = vst [vmem:[#allocation162_spill] sm:$0xff] %v7248_v10  ;;  %v7281_v47 = vmul.f32 %v9842_v20, %v6502_v22  ;;  %v2166_v46 = vadd.f32 %v7117_v50, %v2078_v48  ;;  %v7292_v31 = vmul.f32 %v2572_v52, %v2570_v9  ;;  %v7298_v25 = vmul.f32 %v2578_v15, %v6831_v3 }
 0x461   : >> { %s7206_s19 = sld [smem:[#allocation2 + $0x71]]  ;;  %9835 = vst [vmem:[#allocation163_spill] sm:$0xff] %v7255_v11  ;;  %v7300_v50 = vmul.f32 %v2578_v15, %v2570_v9  ;;  %v1436_v52 = vadd.f32 %v6962_v26, %v1388_v29  ;;  %v9882_v19 = vstv %s7053_s26  ;;  %v9925_v11 = vrot.slane %v7263_v1, 1 }
 0x462   : >> { %s7214_s23 = sld [smem:[#allocation2 + $0x6e]]  ;;  %9839 = vst [vmem:[#allocation164_spill] sm:$0xff] %v7272_v4  ;;  %v2214_v48 = vadd.f32 %v7090_v21, %v2166_v46  ;;  %v2733_v21 = vsel %vm1287_vm2, %v2731_v27, %v9386_v23 }
 0x463   : >> { %s7218_s16 = sld [smem:[#allocation6 + $0xe]]  ;;  %9840 = vst [vmem:[#allocation165_spill] sm:$0xff] %v7275_v41 }
 0x464   : >> { %s7223_s13 = sld [smem:[#allocation6 + $0x56]]  ;;  %9844 = vst [vmem:[#allocation166_spill] sm:$0xff] %v7281_v47 }
 0x465   : >> { %s7240_s27 = sld [smem:[#allocation6 + $0x11]]  ;;  %9846 = vst [vmem:[#allocation167_spill] sm:$0xff] %v7287_v0 }
 0x466   : >> { %s7251_s22 = sld [smem:[#allocation6 + $0x59]]  ;;  %9848 = vst [vmem:[#allocation168_spill] sm:$0xff] %v7290_v56 }
 0x467   : >> { %9822 = sst [smem:[#allocation155_spill]] %s7206_s19  ;;  %9850 = vst [vmem:[#allocation169_spill] sm:$0xff] %v7292_v31 }
 0x468   : >> { %9824 = sst [smem:[#allocation156_spill]] %s7214_s23  ;;  %9851 = vst [vmem:[#allocation170_spill] sm:$0xff] %v7298_v25 }
 0x469   : >> { %s7265_s10 = sld [smem:[#allocation6 + $0x9]]  ;;  %9852 = vst [vmem:[#allocation171_spill] sm:$0xff] %v7300_v50  ;;  %v9911_v50 = vstv %s7218_s16 }
 0x46a   : >> { %s9837_s7 = sld [smem:[#allocation90_spill]]  ;;  %9865 = vst [vmem:[#allocation177_spill] sm:$0xff] %v7338_v61  ;;  %v9875_v61 = vstv %s7131_s24  ;;  %v9913_v31 = vstv %s7223_s13 }
 0x46b   : >> { %s7269_s6 = sld [smem:[#allocation6 + $0x51]] }
 0x46c   : >> { %s9841_s12 = sld [smem:[#allocation97_spill]] }
 0x46d   : >> { %s9843_s29 = sld [smem:[#allocation92_spill]] }
 0x46e   : >> { %s7284_s3 = sld [smem:[#allocation6 + $0xc]] }
 0x46f   : >> { %s9847_s30 = sld [smem:[#allocation87_spill]] }
 0x470   : >> { %s9849_s8 = sld [smem:[#allocation86_spill]]  ;;  %v9853_v42 = vstv %s9837_s7 }
 0x471   : >> { %9838 = sst [smem:[#allocation90_spill]] %s7269_s6  ;;  %v7305_v12 = vmul.f32 %v9853_v42, %v5885_v35 }
 0x472   : >> { %s7295_s28 = sld [smem:[#allocation6 + $0x54]]  ;;  %v9857_v20 = vstv %s9841_s12 }
 0x473   : >> { %s9854_s21 = sld [smem:[#allocation127_spill]]  ;;  %9855 = vst [vmem:[#allocation172_spill] sm:$0xff] %v7305_v12  ;;  %v7314_v3 = vmul.f32 %v9857_v20, %v5679_v57  ;;  %v9859_v9 = vstv %s9843_s29 }
 0x474   : >> { %9845 = sst [smem:[#allocation97_spill]] %s7284_s3  ;;  %v7319_v15 = vmul.f32 %v9859_v9, %v9693_v14  ;;  %v2268_v9 = vadd.f32 %v7112_v55, %v2214_v48  ;;  %v7377_v48 = vmul.f32 %v9875_v61, %v2733_v21 }
 0x475   : >> { %s9856_s3 = sld [smem:[#allocation128_spill]]  ;;  %9858 = vst [vmem:[#allocation173_spill] sm:$0xff] %v7314_v3  ;;  %v9861_v26 = vstv %s9847_s30 }
 0x476   : >> { %s7308_s6 = sld [smem:[#allocation6 + $0x15]]  ;;  %9860 = vst [vmem:[#allocation174_spill] sm:$0xff] %v7319_v15  ;;  %v7330_v29 = vmul.f32 %v9861_v26, %v5885_v35  ;;  %v9863_v42 = vstv %s9849_s8  ;;  %s9883_s8 = smov 127   ;;  %v1490_v15 = vadd.f32 %v7170_v40, %v1436_v52  ;;  %v9894_v40 = vstv %s7158_s0 }
 0x477   : >> { %s7321_s7 = sld [smem:[#allocation6 + $0x5d]]  ;;  %v7335_v20 = vmul.f32 %v9863_v42, %v5679_v57  ;;  %v9871_v42 = vrot.slane %v7263_v1, 7  ;;  %9876 = vst [vmem:[#allocation182_spill] sm:$0xff] %v7377_v48 }
 0x478   : >> { %9862 = vst [vmem:[#allocation175_spill] sm:$0xff] %v7330_v29  ;;  %s7340_s12 = sld [smem:[#allocation6 + $0x18]] }
 0x479   : >> { %9864 = vst [vmem:[#allocation176_spill] sm:$0xff] %v7335_v20  ;;  %v9866_v27 = vstv %s9854_s21  ;;  %s9869_s30 = sld [smem:[#allocation89_spill]]  ;;  %v2326_v55 = vsel %vm1184_vm3, 0.0, %v9871_v42  ;;  %v7364_v20 = vmax.f32 %v2268_v9, 0.0 }
 0x47a   : >> { %v7346_v23 = vmul.f32 %v9866_v27, %v9693_v14  ;;  %s7359_s29 = sld [smem:[#allocation6 + $0x60]]  ;;  %v2335_v29 = vmul.f32 %v9882_v19, %v2326_v55 }
 0x47b   : >> { %v9868_v26 = vstv %s9856_s3  ;;  %9872 = vst [vmem:[#allocation180_spill] sm:$0xff] %v7364_v20  ;;  %s7366_s3 = sld [smem:[#allocation6 + $0xf]]  ;;  %3083 = vrot.lane.b32.xlu2 %v7364_v20, %s9883_s8 }
 0x47c   : >> { %9867 = vst [vmem:[#allocation178_spill] sm:$0xff] %v7346_v23  ;;  %v7351_v46 = vmul.f32 %v9868_v26, %v5679_v57  ;;  %v2423_v23 = vsel %vm1504_vm5, %v7148_v60, 0.0  ;;  %v9873_v26 = vstv %s7122_s15  ;;  %s7373_s21 = sld [smem:[#allocation6 + $0x57]]  ;;  %v9879_v60 = vstv %s9809_s2 }
 0x47d   : >> { %v7370_v57 = vmul.f32 %v9873_v26, %v2733_v21  ;;  %v7387_v9 = vmul.f32 %v9879_v60, %v9693_v14  ;;  %v9881_v26 = vstv %s7039_s25  ;;  %s7401_s2 = sld [smem:[#allocation6 + $0x6]]  ;;  %v2457_v14 = vrot.slane %v2423_v23, 1 }
 0x47e   : >> { %9870 = vst [vmem:[#allocation179_spill] sm:$0xff] %v7351_v46  ;;  %v2420_v46 = vpop.permute.xlu0 %2419  ;;  %v2329_v42 = vmul.f32 %v9881_v26, %v2326_v55  ;;  %s7405_s24 = sld [smem:[#allocation2 + $0x75]]  ;;  %v9885_v21 = vstv %s7068_s5  ;;  %v9886_v55 = vstv %s7081_s1  ;;  %v9890_v26 = vstv %s7030_s17 }
 0x47f   : >> { %9874 = vst [vmem:[#allocation181_spill] sm:$0xff] %v7370_v57  ;;  %v9877_v27 = vstv %s9869_s30  ;;  %v7395_v3 = vsel %vm1504_vm5, %v2420_v46, 0.0  ;;  %s9884_s30 = smov 1   ;;  %v2341_v46 = vmul.f32 %v9885_v21, %v7263_v1  ;;  %s7415_s15 = sld [smem:[#allocation2 + $0x78]]  ;;  %v2478_v57 = vpop.permute.xlu1 %2477  ;;  %v9892_v21 = vstv %s7206_s19 }
 0x480   : >> { %v7382_v22 = vmul.f32 %v9877_v27, %v5885_v35  ;;  %9880 = vst [vmem:[#allocation184_spill] sm:$0xff] %v7387_v9  ;;  %2977 = vrot.lane.b32.xlu0 %v7364_v20, %s9884_s30  ;;  %v2427_v35 = vrot.slane %v2423_v23, 7  ;;  %v2428_v19 = vrot.slane %v7395_v3, 7  ;;  %v2458_v61 = vrot.slane %v7395_v3, 1  ;;  %s9887_s8 = sld [smem:[#allocation90_spill]]  ;;  %s9893_s19 = smov 112  }
 0x481   : >> { %v2347_v27 = vmul.f32 %v9886_v55, %v7263_v1  ;;  %s9888_s30 = sld [smem:[#allocation97_spill]]  ;;  %v9889_v55 = vstv %s7025_s11  ;;  %v1601_v10 = vmul.f32 %v9892_v21, %v6024_v6 }
 0x482   : >> { %9878 = vst [vmem:[#allocation183_spill] sm:$0xff] %v7382_v22  ;;  %v2429_v20 = vsel %vm1184_vm3, %v2427_v35, %v2428_v19  ;;  %v7420_v9 = vsel %vm1287_vm2, %v2457_v14, %v2458_v61  ;;  %s7423_s1 = sld [smem:[#allocation6 + $0x4e]]  ;;  %v2331_v60 = vadd.f32 %v2329_v42, %v9889_v55  ;;  %v2337_v22 = vadd.f32 %v2335_v29, %v9890_v26  ;;  %v2586_v42 = vpop.permute.xlu2 %2585 }
 0x483   : >> { %v9891_v14 = vstv %s7214_s23  ;;  %v2432_v52 = vsel %vm1184_vm3, 0.0, %v2427_v35  ;;  %v7456_v26 = vmul.f32 %v9894_v40, %v2423_v23  ;;  %v9895_v35 = vstv %s7172_s20  ;;  %s7475_s23 = sld [smem:[#allocation2 + $0x74]] }
 0x484   : >> { %v1553_v44 = vmul.f32 %v9891_v14, %v6083_v43  ;;  %v7447_v12 = vadd.f32 %v2341_v46, %v2331_v60  ;;  %v7449_v21 = vadd.f32 %v2347_v27, %v2337_v22  ;;  %v7460_v19 = vmul.f32 %v9895_v35, %v2423_v23  ;;  %s7513_s0 = sld [smem:[#allocation6 + $0x63]] }
 0x485   : >> { %v7463_v14 = vsel %vm1504_vm5, %v2586_v42, 0.0  ;;  %v9397_v46 = vstv %s7405_s24  ;;  %v9896_v22 = vstv %s7136_s4  ;;  %v9897_v60 = vstv %s7146_s9 }
 0x486   : >> { %v1555_v55 = vadd.f32 %v1553_v44, %v1490_v15  ;;  %v7468_v27 = vmul.f32 %v9896_v22, %v2432_v52  ;;  %v9400_v15 = vstv %s7415_s15  ;;  %v2483_v23 = vsel %vm1179_vm4, 0.0, %v2478_v57  ;;  %v2480_v42 = vpop.permute.xlu0 %2479 }
 0x487   : >> { %v2358_v35 = vstv %s7401_s2  ;;  %v7484_v22 = vsel %vm1179_vm4, 0.0, %v2480_v42  ;;  %v7493_v57 = vmul.f32 %v9397_v46, %v9691_v32  ;;  %v9901_v44 = vstv %s7172_s20  ;;  %v2314_v48 = vpop.permute.xlu1 %2313  ;;  %s9922_s20 = sld [smem:[#allocation144_spill]] }
 0x488   : >> { %2115 = vrot.lane.b32.xlu0 %v6966_v51, %s9893_s19  ;;  %v7472_v51 = vmul.f32 %v9897_v60, %v2432_v52  ;;  %s7486_s19 = sld [smem:[#allocation6 + $0x1b]]  ;;  %v7488_v52 = vadd.f32 %v1601_v10, %v1555_v55  ;;  %v9900_v60 = vmov %v9894_v40  ;;  %v7503_v29 = vmul.f32 %v9901_v44, %v7395_v3 }
 0x489   : >> { %9899 = vst [vmem:[#allocation186_spill] sm:$0xff] %v7493_v57  ;;  %v7498_v40 = vmul.f32 %v9900_v60, %v7395_v3  ;;  %v2462_v42 = vsel %vm1287_vm2, %v2458_v61, 0.0  ;;  %v7509_v10 = vmul.f32 %v9400_v15, %v6113_v37  ;;  %v2487_v55 = vrot.slane %v2483_v23, 7  ;;  %s10011_s2 = sld [smem:[#allocation135_spill]] }
 0x48a   : >> { %9898 = vst [vmem:[#allocation185_spill] sm:$0xff] %v7488_v52  ;;  %v2517_v46 = vrot.slane %v2483_v23, 1  ;;  %v2488_v32 = vrot.slane %v7484_v22, 7  ;;  %v9903_v3 = vstv %s7136_s4  ;;  %v9904_v44 = vstv %s7146_s9  ;;  %s7568_s4 = sld [smem:[#allocation6 + $0x12]] }
 0x48b   : >> { %9902 = vst [vmem:[#allocation187_spill] sm:$0xff] %v7509_v10  ;;  %v7517_v61 = vmul.f32 %v9903_v3, %v2429_v20  ;;  %v7521_v6 = vmul.f32 %v9904_v44, %v2429_v20  ;;  %v9905_v15 = vstv %s7183_s14  ;;  %v2318_v43 = vsel %vm1179_vm4, 0.0, %v2314_v48  ;;  %s7583_s9 = sld [smem:[#allocation6 + $0x5a]] }
 0x48c   : >> { %v7526_v37 = vmul.f32 %v9905_v15, %v7420_v9  ;;  %v9906_v17 = vmov %v9905_v15  ;;  %v9907_v47 = vrot.slane %v7463_v14, 1  ;;  %v7537_v20 = vsel %vm1184_vm3, %v2487_v55, %v2488_v32  ;;  %v2646_v32 = vpop.permute.xlu2 %2645  ;;  %s7591_s14 = sld [smem:[#allocation6 + $0xb]] }
 0x48d   : >> { %v7531_v60 = vmul.f32 %v9906_v17, %v2462_v42  ;;  %v9908_v44 = vrot.slane %v7484_v22, 1  ;;  %v9909_v10 = vstv %s7194_s18  ;;  %v7562_v5 = vmul.f32 %v9913_v31, %v7463_v14  ;;  %s7601_s18 = sld [smem:[#allocation6 + $0x53]] }
 0x48e   : >> { %v2628_v3 = vsel %vm1287_vm2, %v9907_v47, 0.0  ;;  %v7547_v48 = vmul.f32 %v9909_v10, %v7420_v9  ;;  %v9910_v57 = vmov %v9909_v10  ;;  %v7557_v47 = vmul.f32 %v9911_v50, %v7463_v14 }
 0x48f   : >> { %v7542_v15 = vsel %vm1287_vm2, %v2517_v46, %v9908_v44  ;;  %v7551_v17 = vmul.f32 %v9910_v57, %v2462_v42  ;;  %9914 = vst [vmem:[#allocation189_spill] sm:$0xff] %v7562_v5  ;;  %v9915_v46 = vstv %s9888_s30  ;;  %v2322_v9 = vrot.slane %v2318_v43, 7 }
 0x490   : >> { %9912 = vst [vmem:[#allocation188_spill] sm:$0xff] %v7557_v47  ;;  %v7566_v44 = vmul.f32 %v9915_v46, %v2483_v23  ;;  %v9916_v42 = vstv %s7240_s27  ;;  %v9918_v50 = vstv %s7251_s22  ;;  %v9920_v47 = vstv %s7295_s28  ;;  %v2644_v46 = vpop.permute.xlu0 %2643 }
 0x491   : >> { %v7573_v10 = vmul.f32 %v9916_v42, %v2628_v3  ;;  %v7577_v28 = vmul.f32 %v9918_v50, %v2628_v3  ;;  %v7581_v41 = vmul.f32 %v9920_v47, %v2483_v23  ;;  %v2352_v31 = vrot.slane %v2318_v43, 1 }
 0x492   : >> { %v2492_v5 = vsel %vm1184_vm3, 0.0, %v2487_v55  ;;  %v2650_v57 = vsel %vm1179_vm4, 0.0, %v2646_v32  ;;  %v9921_v42 = vrot.slane %v7263_v1, 7  ;;  %v9923_v47 = vstv %s7039_s25  ;;  %v2072_v32 = vpop.permute.xlu1 %2071  ;;  %s9946_s25 = smov 1  }
 0x493   : >> { %9917 = vst [vmem:[#allocation190_spill] sm:$0xff] %v7573_v10  ;;  %v2353_v55 = vsel %vm1287_vm2, %v9925_v11, %v2352_v31  ;;  %v2356_v25 = vsel %vm1287_vm2, %v2352_v31, 0.0  ;;  %v9928_v1 = vstv %s7030_s17  ;;  %v9929_v11 = vstv %s7068_s5  ;;  %s7762_s17 = sld [smem:[#allocation2 + $0x7b]] }
 0x494   : >> { %9919 = vst [vmem:[#allocation191_spill] sm:$0xff] %v7577_v28  ;;  %v2323_v3 = vsel %vm1184_vm3, %v9921_v42, %v2322_v9  ;;  %v9924_v28 = vstv %s7053_s26  ;;  %v2359_v56 = vmul.f32 %v2358_v35, %v2353_v55  ;;  %v9926_v9 = vstv %s7423_s1  ;;  %s7638_s26 = sld [smem:[#allocation2 + $0x77]] }
 0x495   : >> { %v2330_v50 = vmul.f32 %v9923_v47, %v2323_v3  ;;  %v2336_v10 = vmul.f32 %v9924_v28, %v2323_v3  ;;  %v2365_v42 = vmul.f32 %v9926_v9, %v2353_v55  ;;  %v7607_v47 = vsel %vm1179_vm4, 0.0, %v2644_v46  ;;  %s7792_s5 = sld [smem:[#allocation6 + $0x14]] }
 0x496   : >> { %v9927_v28 = vstv %s7025_s11  ;;  %v2342_v4 = vmul.f32 %v9929_v11, %v2318_v43  ;;  %v9930_v31 = vstv %s9922_s20  ;;  %v2654_v63 = vrot.slane %v2650_v57, 7  ;;  %s9981_s11 = smov 127   ;;  %s10017_s20 = sld [smem:[#allocation134_spill]] }
 0x497   : >> { %v2332_v3 = vadd.f32 %v2330_v50, %v9927_v28  ;;  %v2338_v0 = vadd.f32 %v2336_v10, %v9928_v1  ;;  %v2348_v58 = vmul.f32 %v9930_v31, %v2318_v43  ;;  %v2360_v52 = vmul.f32 %v2358_v35, %v2356_v25 }
 0x498   : >> { %v2361_v13 = vadd.f32 %v2359_v56, %v7447_v12  ;;  %v2367_v55 = vadd.f32 %v2365_v42, %v7449_v21  ;;  %v9931_v23 = vstv %s7423_s1  ;;  %v2653_v10 = vrot.slane %v7607_v47, 7  ;;  %s7786_s1 = sld [smem:[#allocation2 + $0x76]] }
 0x499   : >> { %v2344_v9 = vadd.f32 %v2342_v4, %v2332_v3  ;;  %v2350_v46 = vadd.f32 %v2348_v58, %v2338_v0  ;;  %v2366_v50 = vmul.f32 %v9931_v23, %v2356_v25  ;;  %v9932_v28 = vstv %s7265_s10 }
 0x49a   : >> { %v2495_v1 = vmul.f32 %v9932_v28, %v2492_v5  ;;  %v9933_v11 = vstv %s9887_s8  ;;  %v2379_v35 = vadd.f32 %v7138_v34, %v2361_v13  ;;  %v2385_v56 = vadd.f32 %v7140_v8, %v2367_v55  ;;  %v2584_v3 = vpop.permute.xlu1 %2583 }
 0x49b   : >> { %v2501_v43 = vmul.f32 %v9933_v11, %v2492_v5  ;;  %v2362_v12 = vadd.f32 %v2360_v52, %v2344_v9  ;;  %v2368_v21 = vadd.f32 %v2366_v50, %v2350_v46  ;;  %v2660_v42 = vstv %s7568_s4  ;;  %s10013_s4 = sld [smem:[#allocation83_spill]] }
 0x49c   : >> { %v7632_v58 = vsel %vm1184_vm3, %v2653_v10, %v2654_v63  ;;  %v2391_v4 = vadd.f32 %v7126_v54, %v2379_v35  ;;  %v2397_v0 = vadd.f32 %v7129_v16, %v2385_v56  ;;  %v2666_v25 = vstv %s7583_s9  ;;  %s10015_s9 = sld [smem:[#allocation145_spill]] }
 0x49d   : >> { %v2600_v5 = vstv %s7591_s14  ;;  %v9934_v34 = vstv %s7308_s6  ;;  %v2380_v8 = vadd.f32 %v7161_v18, %v2362_v12  ;;  %v2386_v52 = vadd.f32 %v7175_v2, %v2368_v21  ;;  %s10018_s14 = sld [smem:[#allocation137_spill]] }
 0x49e   : >> { %v7642_v13 = vmul.f32 %v9934_v34, %v2650_v57  ;;  %v2606_v23 = vstv %s7601_s18  ;;  %v9935_v63 = vstv %s7321_s7  ;;  %v2684_v54 = vrot.slane %v2650_v57, 1  ;;  %s10019_s18 = sld [smem:[#allocation142_spill]] }
 0x49f   : >> { %v7649_v31 = vmul.f32 %v9935_v63, %v2650_v57  ;;  %v2409_v16 = vadd.f32 %v7178_v45, %v2391_v4  ;;  %v2415_v55 = vadd.f32 %v7186_v36, %v2397_v0  ;;  %v2392_v9 = vadd.f32 %v7151_v24, %v2380_v8 }
 0x4a0   : >> { %v2398_v46 = vadd.f32 %v7154_v49, %v2386_v52  ;;  %v2683_v50 = vrot.slane %v7607_v47, 1  ;;  %v2077_v18 = vadd.f32 %v2072_v32, %v6429_v59  ;;  %v9936_v2 = vstv %s9888_s30  ;;  %s10010_s30 = sld [smem:[#allocation94_spill]] }
 0x4a1   : >> { %v2508_v28 = vmul.f32 %v9936_v2, %v7484_v22  ;;  %v2437_v11 = vadd.f32 %v7468_v27, %v2409_v16  ;;  %v2443_v57 = vadd.f32 %v7472_v51, %v2415_v55  ;;  %v7663_v45 = vsel %vm1504_vm5, %v2584_v3, 0.0  ;;  %v2810_v55 = vpop.permute.xlu2 %2809 }
 0x4a2   : >> { %v2410_v24 = vadd.f32 %v7180_v62, %v2392_v9  ;;  %v2416_v49 = vadd.f32 %v7188_v39, %v2398_v46  ;;  %v7668_v36 = vsel %vm1287_vm2, %v2683_v50, %v2684_v54  ;;  %v2165_v59 = vadd.f32 %v7019_v7, %v2077_v18 }
 0x4a3   : >> { %v2688_v32 = vsel %vm1287_vm2, %v2684_v54, 0.0  ;;  %v9937_v27 = vstv %s7295_s28  ;;  %v2449_v35 = vadd.f32 %v7456_v26, %v2437_v11  ;;  %v2455_v56 = vadd.f32 %v7460_v19, %v2443_v57  ;;  %s7830_s28 = sld [smem:[#allocation2 + $0x7a]] }
 0x4a4   : >> { %v2514_v51 = vmul.f32 %v9937_v27, %v7484_v22  ;;  %v2438_v12 = vadd.f32 %v7517_v61, %v2410_v24  ;;  %v2444_v62 = vadd.f32 %v7521_v6, %v2416_v49  ;;  %v2213_v39 = vadd.f32 %v7045_v33, %v2165_v59 }
 0x4a5   : >> { %v2593_v21 = vrot.slane %v7663_v45, 7  ;;  %v2467_v7 = vadd.f32 %v7526_v37, %v2449_v35  ;;  %v2473_v4 = vadd.f32 %v7547_v48, %v2455_v56  ;;  %v9938_v0 = vstv %s7475_s23 }
 0x4a6   : >> { %v1655_v34 = vmul.f32 %v9938_v0, %v6252_v38  ;;  %v9405_v26 = vstv %s7638_s26  ;;  %v2450_v19 = vadd.f32 %v7498_v40, %v2438_v12  ;;  %v2456_v61 = vadd.f32 %v7503_v29, %v2444_v62 }
 0x4a7   : >> { %v2267_v6 = vadd.f32 %v7120_v30, %v2213_v39  ;;  %v9939_v33 = vrot.slane %v7463_v14, 7  ;;  %v9940_v37 = vstv %s7265_s10  ;;  %v9941_v52 = vrot.slane %v7484_v22, 1  ;;  %s9962_s10 = smov 112  }
 0x4a8   : >> { %v2496_v48 = vmul.f32 %v9940_v37, %v7537_v20  ;;  %v2497_v63 = vadd.f32 %v2495_v1, %v2467_v7  ;;  %v2503_v54 = vadd.f32 %v2501_v43, %v2473_v4  ;;  %v9942_v40 = vstv %s9887_s8  ;;  %s9982_s8 = sld [smem:[#allocation88_spill]] }
 0x4a9   : >> { %v2595_v8 = vsel %vm1184_vm3, %v2593_v21, %v9939_v33  ;;  %v2522_v3 = vsel %vm1287_vm2, %v9941_v52, 0.0  ;;  %v2502_v29 = vmul.f32 %v9942_v40, %v7537_v20  ;;  %v2468_v16 = vadd.f32 %v7531_v60, %v2450_v19  ;;  %v9951_v19 = vld [vmem:[#allocation158_spill] sm:$0xff]  ;;  %v9954_v52 = vld [vmem:[#allocation157_spill] sm:$0xff]  ;;  %v9956_v40 = vld [vmem:[#allocation167_spill] sm:$0xff]  ;;  %9984 = sst [smem:[#allocation92_spill]] %s7830_s28 }
 0x4aa   : >> { %v2474_v30 = vadd.f32 %v7551_v17, %v2456_v61  ;;  %v7704_v9 = vmax.f32 %v2267_v6, 0.0  ;;  %v9943_v46 = vstv %s7366_s3  ;;  %v9944_v22 = vstv %s7373_s21  ;;  %s7797_s21 = sld [smem:[#allocation6 + $0x5c]] }
 0x4ab   : >> { %v2525_v50 = vmul.f32 %v9943_v46, %v7542_v15  ;;  %v2531_v18 = vmul.f32 %v9944_v22, %v7542_v15  ;;  %v2509_v1 = vadd.f32 %v7566_v44, %v2497_v63  ;;  %v2515_v43 = vadd.f32 %v7581_v41, %v2503_v54  ;;  %v7724_v15 = vpop.permute.xlu0 %2085  ;;  %v9955_v54 = vld [vmem:[#allocation164_spill] sm:$0xff]  ;;  %s10009_s3 = sld [smem:[#allocation96_spill]] }
 0x4ac   : >> { %v9945_v2 = vmov %v9943_v46  ;;  %v2498_v60 = vadd.f32 %v2496_v48, %v2468_v16  ;;  %v2504_v11 = vadd.f32 %v2502_v29, %v2474_v30  ;;  %v2623_v17 = vrot.slane %v7663_v45, 1  ;;  %2975 = vrot.lane.b32.xlu1 %v7704_v9, %s9946_s25  ;;  %v9958_v30 = vld [vmem:[#allocation170_spill] sm:$0xff] }
 0x4ad   : >> { %v2526_v20 = vmul.f32 %v9945_v2, %v2522_v3  ;;  %v9947_v57 = vmov %v9944_v22  ;;  %v7722_v49 = vsel %vm1179_vm4, 0.0, %v2810_v55  ;;  %v2527_v44 = vadd.f32 %v2525_v50, %v2509_v1  ;;  %v9960_v1 = vld [vmem:[#allocation163_spill] sm:$0xff]  ;;  %v9961_v2 = vld [vmem:[#allocation165_spill] sm:$0xff] }
 0x4ae   : >> { %v2532_v24 = vmul.f32 %v9947_v57, %v2522_v3  ;;  %v2533_v41 = vadd.f32 %v2531_v18, %v2515_v43  ;;  %v2658_v59 = vsel %vm1184_vm3, 0.0, %v2653_v10  ;;  %v2510_v27 = vadd.f32 %v2508_v28, %v2498_v60  ;;  %v9963_v60 = vld [vmem:[#allocation101_spill] sm:$0xff] }
 0x4af   : >> { %v2516_v35 = vadd.f32 %v2514_v51, %v2504_v11  ;;  %v9948_v56 = vrot.slane %v7463_v14, 1  ;;  %v9949_v62 = vstv %s7340_s12  ;;  %v9950_v7 = vstv %s7359_s29  ;;  %v9952_v14 = vld [vmem:[#allocation185_spill] sm:$0xff] }
 0x4b0   : >> { %v7734_v39 = vmul.f32 %v9949_v62, %v2688_v32  ;;  %v7738_v4 = vmul.f32 %v9950_v7, %v2688_v32  ;;  %v2545_v0 = vadd.f32 %v7225_v53, %v2527_v44  ;;  %v2551_v61 = vadd.f32 %v9951_v19, %v2533_v41  ;;  %v9953_v32 = vld [vmem:[#allocation154_spill] sm:$0xff]  ;;  %v1968_v44 = vpop.permute.xlu1 %1967  ;;  %v9966_v41 = vld [vmem:[#allocation169_spill] sm:$0xff] }
 0x4b1   : >> { %v2625_v12 = vsel %vm1287_vm2, %v2623_v17, %v9948_v56  ;;  %v2528_v10 = vadd.f32 %v2526_v20, %v2510_v27  ;;  %v2534_v28 = vadd.f32 %v2532_v24, %v2516_v35  ;;  %v2598_v51 = vsel %vm1184_vm3, 0.0, %v2593_v21  ;;  %v9967_v27 = vld [vmem:[#allocation171_spill] sm:$0xff] }
 0x4b2   : >> { %v1657_v6 = vadd.f32 %v1655_v34, %v9952_v14  ;;  %v9406_v33 = vrot.slane %v7722_v49, 7  ;;  %v2661_v37 = vmul.f32 %v2660_v42, %v2658_v59  ;;  %v2557_v48 = vadd.f32 %v9953_v32, %v2545_v0  ;;  %v9957_v34 = vld [vmem:[#allocation168_spill] sm:$0xff] }
 0x4b3   : >> { %v2563_v53 = vadd.f32 %v9954_v52, %v2551_v61  ;;  %v2662_v3 = vmul.f32 %v2660_v42, %v7632_v58  ;;  %v2667_v63 = vmul.f32 %v2666_v25, %v2658_v59  ;;  %v2546_v21 = vadd.f32 %v9955_v54, %v2528_v10 }
 0x4b4   : >> { %v2552_v29 = vadd.f32 %v9956_v40, %v2534_v28  ;;  %v2575_v16 = vadd.f32 %v9957_v34, %v2557_v48  ;;  %v2601_v46 = vmul.f32 %v2600_v5, %v2598_v51  ;;  %v2607_v50 = vmul.f32 %v2606_v23, %v2598_v51  ;;  %2113 = vrot.lane.b32.xlu1 %v9963_v60, %s9962_s10  ;;  %v9975_v34 = vld [vmem:[#allocation189_spill] sm:$0xff]  ;;  %s10033_s10 = sld [smem:[#allocation136_spill]] }
 0x4b5   : >> { %v2581_v55 = vadd.f32 %v9958_v30, %v2563_v53  ;;  %v2668_v42 = vmul.f32 %v2666_v25, %v7632_v58  ;;  %v9959_v22 = vstv %s7308_s6  ;;  %v2558_v43 = vadd.f32 %v9960_v1, %v2546_v21  ;;  %s7855_s6 = sld [smem:[#allocation2 + $0x7d]] }
 0x4b6   : >> { %v2673_v18 = vmul.f32 %v9959_v22, %v7607_v47  ;;  %v2564_v20 = vadd.f32 %v9961_v2, %v2552_v29  ;;  %v2603_v11 = vadd.f32 %v2601_v46, %v2575_v16  ;;  %v9964_v57 = vstv %s7218_s16  ;;  %v9974_v29 = vld [vmem:[#allocation188_spill] sm:$0xff]  ;;  %s9986_s16 = sld [smem:[#allocation81_spill]] }
 0x4b7   : >> { %v2609_v17 = vadd.f32 %v2607_v50, %v2581_v55  ;;  %v2613_v24 = vmul.f32 %v9964_v57, %v7663_v45  ;;  %v9965_v58 = vstv %s7223_s13  ;;  %v2576_v59 = vadd.f32 %v9966_v41, %v2558_v43  ;;  %v9977_v43 = vld [vmem:[#allocation190_spill] sm:$0xff]  ;;  %v9985_v41 = vld [vmem:[#allocation149_spill] sm:$0xff]  ;;  %s9994_s13 = sld [smem:[#allocation91_spill]] }
 0x4b8   : >> { %v2619_v25 = vmul.f32 %v9965_v58, %v7663_v45  ;;  %v2582_v35 = vadd.f32 %v9967_v27, %v2564_v20  ;;  %v2602_v56 = vmul.f32 %v2600_v5, %v2595_v8  ;;  %v2608_v62 = vmul.f32 %v2606_v23, %v2595_v8  ;;  %v2750_v45 = vpop.permute.xlu0 %2749  ;;  %v9971_v5 = vld [vmem:[#allocation153_spill] sm:$0xff]  ;;  %v9980_v57 = vld [vmem:[#allocation120_spill] sm:$0xff] }
 0x4b9   : >> { %v2615_v7 = vadd.f32 %v2613_v24, %v2603_v11  ;;  %v9968_v19 = vstv %s7240_s27  ;;  %v9969_v10 = vstv %s7251_s22  ;;  %v9970_v51 = vstv %s7321_s7  ;;  %s7810_s27 = sld [smem:[#allocation6 + $0x17]]  ;;  %v9978_v20 = vld [vmem:[#allocation191_spill] sm:$0xff] }
 0x4ba   : >> { %v2621_v0 = vadd.f32 %v2619_v25, %v2609_v17  ;;  %v2631_v61 = vmul.f32 %v9968_v19, %v2625_v12  ;;  %v2637_v28 = vmul.f32 %v9969_v10, %v2625_v12  ;;  %v2679_v14 = vmul.f32 %v9970_v51, %v7607_v47  ;;  %v7806_v12 = vpop.permute.xlu2 %2099  ;;  %s7816_s22 = sld [smem:[#allocation6 + $0x5f]]  ;;  %v9979_v11 = vld [vmem:[#allocation148_spill] sm:$0xff] }
 0x4bb   : >> { %v2604_v32 = vadd.f32 %v2602_v56, %v2576_v59  ;;  %v2610_v48 = vadd.f32 %v2608_v62, %v2582_v35  ;;  %v1973_v23 = vadd.f32 %v1968_v44, %v9971_v5  ;;  %v9972_v8 = vstv %s7340_s12  ;;  %v9987_v62 = vld [vmem:[#allocation115_spill] sm:$0xff]  ;;  %v9993_v5 = vld [vmem:[#allocation118_spill] sm:$0xff]  ;;  %s10004_s7 = sld [smem:[#allocation132_spill]] }
 0x4bc   : >> { %v2691_v52 = vmul.f32 %v9972_v8, %v7668_v36  ;;  %v9973_v53 = vstv %s7359_s29  ;;  %v2633_v21 = vadd.f32 %v2631_v61, %v2615_v7  ;;  %v2639_v40 = vadd.f32 %v2637_v28, %v2621_v0  ;;  %3081 = vrot.lane.b32.xlu1 %v7704_v9, %s9981_s11  ;;  %v9988_v61 = vld [vmem:[#allocation166_spill] sm:$0xff]  ;;  %s10007_s12 = sld [smem:[#allocation130_spill]] }
 0x4bd   : >> { %v2697_v54 = vmul.f32 %v9973_v53, %v7668_v36  ;;  %v2616_v47 = vadd.f32 %v9974_v29, %v2604_v32  ;;  %v2622_v16 = vadd.f32 %v9975_v34, %v2610_v48  ;;  %v7813_v30 = vsel %vm1504_vm5, %v2750_v45, 0.0  ;;  %v9976_v36 = vld [vmem:[#allocation186_spill] sm:$0xff]  ;;  %v9991_v45 = vld [vmem:[#allocation161_spill] sm:$0xff]  ;;  %s10008_s29 = sld [smem:[#allocation131_spill]] }
 0x4be   : >> { %v2091_v55 = vadd.f32 %v7724_v15, %v1973_v23  ;;  %v2663_v46 = vadd.f32 %v2661_v37, %v2633_v21  ;;  %v2669_v50 = vadd.f32 %v2667_v63, %v2639_v40  ;;  %v1723_v22 = vadd.f32 %v9976_v36, %v1657_v6  ;;  %v9983_v63 = vld [vmem:[#allocation187_spill] sm:$0xff] }
 0x4bf   : >> { %v9408_v1 = vstv %s7762_s17  ;;  %v2634_v2 = vadd.f32 %v9977_v43, %v2616_v47  ;;  %v2640_v60 = vadd.f32 %v9978_v20, %v2622_v16  ;;  %v2759_v6 = vrot.slane %v7813_v30, 7  ;;  %v9997_v47 = vld [vmem:[#allocation159_spill] sm:$0xff]  ;;  %v9998_v16 = vld [vmem:[#allocation160_spill] sm:$0xff] }
 0x4c0   : >> { %v2171_v17 = vadd.f32 %v9979_v11, %v2091_v55  ;;  %v1823_v24 = vmul.f32 %v9408_v1, %v9980_v57  ;;  %v2675_v15 = vadd.f32 %v2673_v18, %v2663_v46  ;;  %v2681_v37 = vadd.f32 %v2679_v14, %v2669_v50  ;;  %v9992_v14 = vld [vmem:[#allocation162_spill] sm:$0xff]  ;;  %v9999_v43 = vld [vmem:[#allocation95_spill] sm:$0xff] }
 0x4c1   : >> { %v1771_v58 = vadd.f32 %v9983_v63, %v1723_v22  ;;  %v7832_v25 = vadd.f32 %v2662_v3, %v2634_v2  ;;  %v7834_v44 = vadd.f32 %v2668_v42, %v2640_v60  ;;  %v9407_v27 = vstv %s7786_s1  ;;  %v9989_v3 = vld [vmem:[#allocation104_spill] sm:$0xff]  ;;  %v10000_v20 = vld [vmem:[#allocation109_spill] sm:$0xff] }
 0x4c2   : >> { %v2219_v59 = vadd.f32 %v9985_v41, %v2171_v17  ;;  %v2693_v35 = vadd.f32 %v2691_v52, %v2675_v15  ;;  %v2699_v56 = vadd.f32 %v2697_v54, %v2681_v37  ;;  %v2175_v7 = vmul.f32 %v9405_v26, %v9987_v62  ;;  %v1982_v54 = vpop.permute.xlu0 %1981  ;;  %v2916_v29 = vpop.permute.xlu2 %2915  ;;  %v10002_v17 = vld [vmem:[#allocation181_spill] sm:$0xff]  ;;  %v10003_v15 = vld [vmem:[#allocation182_spill] sm:$0xff] }
 0x4c3   : >> { %v1825_v18 = vadd.f32 %v1823_v24, %v1771_v58  ;;  %v9411_v0 = vstv %s7792_s5  ;;  %v9410_v19 = vstv %s7797_s21  ;;  %v9990_v28 = vstv %s9982_s8  ;;  %s10021_s8 = sld [smem:[#allocation138_spill]]  ;;  %v10049_v26 = vld [vmem:[#allocation124_spill] sm:$0xff] }
 0x4c4   : >> { %v2273_v10 = vadd.f32 %v9988_v61, %v2219_v59  ;;  %v1224_v42 = vmul.f32 %v9990_v28, %v9989_v3  ;;  %v2711_v51 = vadd.f32 %v9991_v45, %v2693_v35  ;;  %v2717_v32 = vadd.f32 %v9992_v14, %v2699_v56  ;;  %v10012_v14 = vld [vmem:[#allocation113_spill] sm:$0xff] }
 0x4c5   : >> { %v2764_v48 = vsel %vm1184_vm3, 0.0, %v2759_v6  ;;  %v1881_v23 = vmul.f32 %v9407_v27, %v9993_v5  ;;  %v2824_v8 = vsel %vm1184_vm3, 0.0, %v9406_v33  ;;  %v9412_v52 = vstv %s7810_s27 }
 0x4c6   : >> { %v7861_v53 = vmax.f32 %v2273_v10, 0.0  ;;  %v9996_v21 = vstv %s9986_s16  ;;  %v2723_v34 = vadd.f32 %v9997_v47, %v2711_v51  ;;  %v2729_v55 = vadd.f32 %v9998_v16, %v2717_v32  ;;  %v10020_v16 = vld [vmem:[#allocation173_spill] sm:$0xff]  ;;  %s10024_s16 = sld [smem:[#allocation85_spill]] }
 0x4c7   : >> { %v1226_v40 = vadd.f32 %v1224_v42, %v9996_v21  ;;  %v9409_v46 = vstv %s7816_s22  ;;  %v1883_v50 = vadd.f32 %v1881_v23, %v1825_v18  ;;  %v2767_v36 = vmul.f32 %v9411_v0, %v2764_v48 }
 0x4c8   : >> { %9995 = vst [vmem:[#allocation158_spill] sm:$0xff] %v7861_v53  ;;  %v2773_v22 = vmul.f32 %v9410_v19, %v2764_v48  ;;  %v10001_v60 = vstv %s9994_s13  ;;  %3247 = vrot.lane.b32.xlu2 %v7861_v53, %s9981_s11  ;;  %v2741_v24 = vadd.f32 %v10002_v17, %v2723_v34  ;;  %v2747_v37 = vadd.f32 %v10003_v15, %v2729_v55  ;;  %v10014_v48 = vld [vmem:[#allocation172_spill] sm:$0xff]  ;;  %s7927_s13 = sld [smem:[#allocation6 + $0x1a]] }
 0x4c9   : >> { %v1274_v2 = vadd.f32 %v9999_v43, %v1226_v40  ;;  %v1327_v11 = vmul.f32 %v10001_v60, %v10000_v20  ;;  %v9404_v63 = vstv %s7830_s28  ;;  %v1987_v58 = vadd.f32 %v1982_v54, %v1883_v50  ;;  %3141 = vrot.lane.b32.xlu0 %v7861_v53, %s9946_s25  ;;  %v10022_v50 = vld [vmem:[#allocation114_spill] sm:$0xff]  ;;  %v10025_v43 = vld [vmem:[#allocation112_spill] sm:$0xff]  ;;  %s10043_s28 = sld [smem:[#allocation156_spill]] }
 0x4ca   : >> { %v10005_v41 = vstv %s7486_s19  ;;  %v10006_v35 = vstv %s7513_s0  ;;  %v7892_v18 = vsel %vm1504_vm5, %v2916_v29, 0.0  ;;  %v2769_v10 = vadd.f32 %v2767_v36, %v2741_v24  ;;  %v10028_v24 = vld [vmem:[#allocation116_spill] sm:$0xff] }
 0x4cb   : >> { %v7885_v59 = vmul.f32 %v10005_v41, %v2824_v8  ;;  %v7889_v56 = vmul.f32 %v10006_v35, %v2824_v8  ;;  %v1329_v61 = vadd.f32 %v1327_v11, %v1274_v2  ;;  %v2775_v28 = vadd.f32 %v2773_v22, %v2747_v37  ;;  %v7907_v8 = vpop.permute.xlu1 %1969  ;;  %v10031_v41 = vld [vmem:[#allocation119_spill] sm:$0xff]  ;;  %v10034_v35 = vld [vmem:[#allocation117_spill] sm:$0xff] }
 0x4cc   : >> { %v2779_v42 = vmul.f32 %v9412_v52, %v7813_v30  ;;  %v2785_v45 = vmul.f32 %v9409_v46, %v7813_v30  ;;  %v7904_v32 = vmul.f32 %v9404_v63, %v10012_v14  ;;  %v10016_v54 = vstv %s10004_s7  ;;  %s10030_s7 = sld [smem:[#allocation84_spill]]  ;;  %v10060_v46 = vld [vmem:[#allocation146_spill] sm:$0xff] }
 0x4cd   : >> { %v1383_v23 = vadd.f32 %v10014_v48, %v1329_v61  ;;  %v1236_v21 = vmul.f32 %v10016_v54, %v9989_v3  ;;  %v2105_v34 = vadd.f32 %v7806_v12, %v1987_v58  ;;  %v10023_v36 = vstv %s10007_s12  ;;  %s10036_s12 = sld [smem:[#allocation133_spill]]  ;;  %v10040_v48 = vld [vmem:[#allocation174_spill] sm:$0xff] }
 0x4ce   : >> { %v7912_v40 = vadd.f32 %v2779_v42, %v2769_v10  ;;  %v7914_v29 = vadd.f32 %v2785_v45, %v2775_v28  ;;  %v1548_v22 = vmul.f32 %v10023_v36, %v10022_v50  ;;  %v10026_v2 = vstv %s10008_s29  ;;  %v10037_v28 = vld [vmem:[#allocation121_spill] sm:$0xff]  ;;  %s10039_s29 = sld [smem:[#allocation143_spill]]  ;;  %v10042_v54 = vld [vmem:[#allocation147_spill] sm:$0xff] }
 0x4cf   : >> { %v1431_v55 = vadd.f32 %v10020_v16, %v1383_v23  ;;  %v1596_v60 = vmul.f32 %v10026_v2, %v10025_v43  ;;  %v10027_v11 = vstv %s10009_s3  ;;  %v10029_v15 = vstv %s10010_s30  ;;  %s10041_s3 = sld [smem:[#allocation140_spill]] }
 0x4d0   : >> { %v1238_v17 = vadd.f32 %v1236_v21, %v10027_v11  ;;  %v1650_v37 = vmul.f32 %v10029_v15, %v10028_v24  ;;  %v10032_v12 = vstv %s10011_s2  ;;  %v10035_v61 = vstv %s10013_s4  ;;  %s10048_s30 = sld [smem:[#allocation155_spill]] }
 0x4d1   : >> { %v1716_v58 = vmul.f32 %v10032_v12, %v10031_v41  ;;  %v1764_v10 = vmul.f32 %v10035_v61, %v10034_v35  ;;  %v10038_v42 = vstv %s10015_s9  ;;  %v1485_v23 = vadd.f32 %v10040_v48, %v1431_v55  ;;  %v10046_v12 = vld [vmem:[#allocation122_spill] sm:$0xff]  ;;  %v10051_v55 = vld [vmem:[#allocation123_spill] sm:$0xff]  ;;  %s7964_s2 = sld [smem:[#allocation6 + $0x62]] }
 0x4d2   : >> { %v1818_v45 = vmul.f32 %v10038_v42, %v10037_v28  ;;  %v1286_v21 = vadd.f32 %v10042_v54, %v1238_v17  ;;  %v10044_v16 = vstv %s10017_s20  ;;  %v10045_v2 = vstv %s10018_s14  ;;  %s10066_s4 = sld [smem:[#allocation102_spill]] }
 0x4d3   : >> { %v1339_v36 = vmul.f32 %v10044_v16, %v10000_v20  ;;  %v1230_v11 = vmul.f32 %v10045_v2, %v9989_v3  ;;  %v7949_v15 = vadd.f32 %v2175_v7, %v2105_v34  ;;  %v10047_v61 = vstv %s10019_s18  ;;  %s10072_s9 = sld [smem:[#allocation129_spill]] }
 0x4d4   : >> { %v1876_v63 = vmul.f32 %v10047_v61, %v10046_v12  ;;  %v10050_v42 = vstv %s10021_s8  ;;  %v10052_v48 = vstv %s10024_s16  ;;  %v1550_v54 = vadd.f32 %v1548_v22, %v1485_v23  ;;  %s8049_s20 = sld [smem:[#allocation6 + $0x1e]] }
 0x4d5   : >> { %v7957_v33 = vmul.f32 %v10050_v42, %v10049_v26  ;;  %v7962_v17 = vmul.f32 %v10052_v48, %v10051_v55  ;;  %v1341_v16 = vadd.f32 %v1339_v36, %v1286_v21  ;;  %v10053_v7 = vstv %s10030_s7  ;;  %v10059_v36 = vld [vmem:[#allocation175_spill] sm:$0xff]  ;;  %s8054_s14 = sld [smem:[#allocation6 + $0x66]] }
 0x4d6   : >> { %v1560_v3 = vmul.f32 %v10053_v7, %v10022_v50  ;;  %v10054_v34 = vstv %s10033_s10  ;;  %v10055_v61 = vstv %s10036_s12  ;;  %v10056_v42 = vstv %s10039_s29  ;;  %s10063_s10 = sld [smem:[#allocation100_spill]] }
 0x4d7   : >> { %v1232_v2 = vadd.f32 %v1230_v11, %v10054_v34  ;;  %v1608_v27 = vmul.f32 %v10055_v61, %v10025_v43  ;;  %v7977_v1 = vmul.f32 %v10056_v42, %v10028_v24  ;;  %v10057_v48 = vstv %s10041_s3  ;;  %s10097_s18 = sld [smem:[#allocation139_spill]] }
 0x4d8   : >> { %v1333_v47 = vmul.f32 %v10057_v48, %v10000_v20  ;;  %v10058_v22 = vstv %s10043_s28  ;;  %v1598_v21 = vadd.f32 %v1596_v60, %v1550_v54  ;;  %v1395_v7 = vadd.f32 %v10059_v36, %v1341_v16  ;;  %s10065_s28 = sld [smem:[#allocation93_spill]]  ;;  %v2752_v48 = vpop.permute.xlu1 %2751  ;;  %v10070_v36 = vld [vmem:[#allocation98_spill] sm:$0xff] }
 0x4d9   : >> { %v1554_v23 = vmul.f32 %v10058_v22, %v10022_v50  ;;  %v1280_v51 = vadd.f32 %v10060_v46, %v1232_v2  ;;  %v10061_v11 = vstv %s10048_s30  ;;  %v10062_v61 = vstv %s7475_s23  ;;  %v10064_v50 = vld [vmem:[#allocation80_spill] sm:$0xff]  ;;  %v10068_v22 = vld [vmem:[#allocation176_spill] sm:$0xff]  ;;  %s10069_s23 = sld [smem:[#allocation108_spill]] }
 0x4da   : >> { %v1602_v34 = vmul.f32 %v10061_v11, %v10025_v43  ;;  %v1656_v19 = vmul.f32 %v10062_v61, %v10028_v24  ;;  %v2676_v42 = vadd.f32 %v7642_v13, %v7832_v25  ;;  %v2682_v20 = vadd.f32 %v7649_v31, %v7834_v44  ;;  %s8095_s8 = sld [smem:[#allocation6 + $0x69]] }
 0x4db   : >> { %v2702_v60 = vrot.slane %v10064_v50, 7  ;;  %v1652_v54 = vadd.f32 %v1650_v37, %v1598_v21  ;;  %v1335_v46 = vadd.f32 %v1333_v47, %v1280_v51  ;;  %v10067_v16 = vstv %s7405_s24  ;;  %v10073_v37 = vld [vmem:[#allocation183_spill] sm:$0xff]  ;;  %s10077_s24 = sld [smem:[#allocation152_spill]] }
 0x4dc   : >> { %v1722_v43 = vmul.f32 %v10067_v16, %v10031_v41  ;;  %v2796_v2 = vstv %s7927_s13  ;;  %v1443_v24 = vadd.f32 %v10068_v22, %v1395_v7  ;;  %v2694_v13 = vadd.f32 %v7734_v39, %v2676_v42  ;;  %s10104_s16 = sld [smem:[#allocation86_spill]] }
 0x4dd   : >> { %v2700_v25 = vadd.f32 %v7738_v4, %v2682_v20  ;;  %v10071_v31 = vrot.slane %v10070_v36, 7  ;;  %v1718_v11 = vadd.f32 %v1716_v58, %v1652_v54  ;;  %v1389_v51 = vadd.f32 %v10073_v37, %v1335_v46  ;;  %v10079_v36 = vld [vmem:[#allocation179_spill] sm:$0xff]  ;;  %v8022_v54 = vpop.permute.xlu0 %1983  ;;  %s8110_s13 = sld [smem:[#allocation6 + $0x1c]] }
 0x4de   : >> { %v10074_v47 = vstv %s10063_s10  ;;  %v10075_v61 = vrot.slane %v10064_v50, 1  ;;  %v2802_v7 = vstv %s7964_s2  ;;  %v10076_v22 = vstv %s10065_s28  ;;  %s8125_s3 = sld [smem:[#allocation6 + $0x1f]] }
 0x4df   : >> { %v2703_v44 = vsel %vm1184_vm3, %v10071_v31, %v2702_v60  ;;  %v10078_v4 = vstv %s10066_s4  ;;  %v2756_v20 = vsel %vm1504_vm5, %v2752_v48, 0.0  ;;  %v1766_v60 = vadd.f32 %v1764_v10, %v1718_v11  ;;  %v10083_v48 = vld [vmem:[#allocation184_spill] sm:$0xff]  ;;  %s8147_s30 = sld [smem:[#allocation6 + $0x67]] }
 0x4e0   : >> { %v2710_v21 = vmul.f32 %v10074_v47, %v2703_v44  ;;  %v2736_v16 = vsel %vm1287_vm2, %v10075_v61, 0.0  ;;  %v2716_v39 = vmul.f32 %v10076_v22, %v2703_v44  ;;  %v2722_v42 = vmul.f32 %v10078_v4, %v10064_v50  ;;  %v10081_v47 = vld [vmem:[#allocation178_spill] sm:$0xff]  ;;  %s8152_s2 = sld [smem:[#allocation6 + $0x22]] }
 0x4e1   : >> { %v1437_v58 = vadd.f32 %v10079_v36, %v1389_v51  ;;  %v10080_v31 = vstv %s10069_s23  ;;  %v1497_v61 = vadd.f32 %v10081_v47, %v1443_v24  ;;  %v10082_v52 = vstv %s10072_s9  ;;  %s8173_s10 = sld [smem:[#allocation6 + $0x1d]] }
 0x4e2   : >> { %v2712_v46 = vadd.f32 %v2710_v21, %v2694_v13  ;;  %v2728_v37 = vmul.f32 %v10080_v31, %v10064_v50  ;;  %v2718_v0 = vadd.f32 %v2716_v39, %v2700_v25  ;;  %v2740_v44 = vmul.f32 %v10082_v52, %v2736_v16  ;;  %s8193_s28 = sld [smem:[#allocation6 + $0x20]] }
 0x4e3   : >> { %v2760_v22 = vrot.slane %v2756_v20, 7  ;;  %v1820_v4 = vadd.f32 %v1818_v45, %v1766_v60  ;;  %v1491_v10 = vadd.f32 %v10083_v48, %v1437_v58  ;;  %v10084_v51 = vstv %s10077_s24  ;;  %s8200_s4 = sld [smem:[#allocation6 + $0x68]] }
 0x4e4   : >> { %v2724_v11 = vadd.f32 %v2722_v42, %v2712_v46  ;;  %v2746_v36 = vmul.f32 %v10084_v51, %v2736_v16  ;;  %v1562_v13 = vadd.f32 %v1560_v3, %v1497_v61  ;;  %v2730_v21 = vadd.f32 %v2728_v37, %v2718_v0  ;;  %s8223_s23 = sld [smem:[#allocation2 + $0x8c]] }
 0x4e5   : >> { %v2761_v50 = vsel %vm1184_vm3, %v2759_v6, %v2760_v22  ;;  %v2790_v24 = vrot.slane %v2756_v20, 1  ;;  %v1878_v25 = vadd.f32 %v1876_v63, %v1820_v4  ;;  %v1556_v39 = vadd.f32 %v1554_v23, %v1491_v10  ;;  %s8232_s9 = sld [smem:[#allocation2 + $0x8f]] }
 0x4e6   : >> { %v2742_v31 = vadd.f32 %v2740_v44, %v2724_v11  ;;  %v10085_v52 = vstv %s7810_s27  ;;  %v2748_v53 = vadd.f32 %v2746_v36, %v2730_v21  ;;  %v10086_v45 = vstv %s7792_s5  ;;  %s10090_s27 = sld [smem:[#allocation141_spill]] }
 0x4e7   : >> { %v2780_v47 = vmul.f32 %v10085_v52, %v2756_v20  ;;  %v2768_v60 = vmul.f32 %v10086_v45, %v2761_v50  ;;  %v10087_v58 = vstv %s7797_s21  ;;  %v10088_v46 = vrot.slane %v7813_v30, 1  ;;  %s10091_s5 = sld [smem:[#allocation106_spill]]  ;;  %v10092_v30 = vld [vmem:[#allocation177_spill] sm:$0xff]  ;;  %v10098_v52 = vld [vmem:[#allocation151_spill] sm:$0xff] }
 0x4e8   : >> { %v2774_v42 = vmul.f32 %v10087_v58, %v2761_v50  ;;  %v1974_v0 = vadd.f32 %v7907_v8, %v1878_v25  ;;  %v1604_v16 = vadd.f32 %v1602_v34, %v1556_v39  ;;  %v10089_v37 = vstv %s7816_s22  ;;  %s8051_s21 = sld [smem:[#allocation2 + $0x8d]]  ;;  %v2918_v50 = vpop.permute.xlu0 %2917 }
 0x4e9   : >> { %v2791_v3 = vsel %vm1287_vm2, %v10088_v46, %v2790_v24  ;;  %v2786_v6 = vmul.f32 %v10089_v37, %v2756_v20  ;;  %v2794_v63 = vsel %vm1287_vm2, %v2790_v24, 0.0  ;;  %v1610_v23 = vadd.f32 %v1608_v27, %v1562_v13  ;;  %s8070_s22 = sld [smem:[#allocation2 + $0x88]] }
 0x4ea   : >> { %v2770_v61 = vadd.f32 %v2768_v60, %v2742_v31  ;;  %v2776_v44 = vadd.f32 %v2774_v42, %v2748_v53  ;;  %v2797_v22 = vmul.f32 %v2796_v2, %v2791_v3  ;;  %v2092_v4 = vadd.f32 %v10092_v30, %v1974_v0  ;;  %s8234_s24 = sld [smem:[#allocation6 + $0x23]] }
 0x4eb   : >> { %v1658_v48 = vadd.f32 %v1656_v19, %v1604_v16  ;;  %v2798_v10 = vmul.f32 %v2796_v2, %v2794_v63  ;;  %v2803_v8 = vmul.f32 %v2802_v7, %v2791_v3  ;;  %v2804_v51 = vmul.f32 %v2802_v7, %v2794_v63  ;;  %v10094_v19 = vld [vmem:[#allocation126_spill] sm:$0xff]  ;;  %v10100_v3 = vld [vmem:[#allocation125_spill] sm:$0xff] }
 0x4ec   : >> { %v2782_v34 = vadd.f32 %v2780_v47, %v2770_v61  ;;  %v2788_v20 = vadd.f32 %v2786_v6, %v2776_v44  ;;  %v2799_v11 = vadd.f32 %v2797_v22, %v7912_v40  ;;  %v2172_v27 = vadd.f32 %v7957_v33, %v2092_v4  ;;  %v10099_v47 = vld [vmem:[#allocation150_spill] sm:$0xff]  ;;  %v2812_v4 = vpop.permute.xlu1 %2811 }
 0x4ed   : >> { %v10093_v53 = vstv %s10090_s27  ;;  %v1724_v13 = vadd.f32 %v1722_v43, %v1658_v48  ;;  %v2805_v21 = vadd.f32 %v2803_v8, %v7914_v29  ;;  %v10095_v2 = vstv %s10091_s5  ;;  %s8334_s5 = sld [smem:[#allocation6 + $0x27]] }
 0x4ee   : >> { %v1728_v36 = vmul.f32 %v10093_v53, %v10031_v41  ;;  %v2272_v24 = vmul.f32 %v10095_v2, %v10094_v19  ;;  %v8065_v25 = vadd.f32 %v2798_v10, %v2782_v34  ;;  %v8067_v39 = vadd.f32 %v2804_v51, %v2788_v20  ;;  %v10105_v34 = vld [vmem:[#allocation103_spill] sm:$0xff] }
 0x4ef   : >> { %v2829_v40 = vadd.f32 %v7885_v59, %v2799_v11  ;;  %v2220_v33 = vadd.f32 %v7962_v17, %v2172_v27  ;;  %v1664_v41 = vadd.f32 %v7977_v1, %v1610_v23  ;;  %v10096_v29 = vstv %s7415_s15  ;;  %s8087_s15 = sld [smem:[#allocation6 + $0x21]]  ;;  %v10106_v11 = vld [vmem:[#allocation75_spill] sm:$0xff] }
 0x4f0   : >> { %v1770_v43 = vmul.f32 %v10096_v29, %v10034_v35  ;;  %v2835_v7 = vadd.f32 %v7889_v56, %v2805_v21  ;;  %v2925_v31 = vrot.slane %v7892_v18, 7  ;;  %v1340_v45 = vadd.f32 %v10099_v47, %v10098_v52 }
 0x4f1   : >> { %v2225_v59 = vadd.f32 %v7904_v32, %v7949_v15  ;;  %v8084_v60 = vsel %vm1504_vm5, %v2918_v50, 0.0  ;;  %v2274_v1 = vadd.f32 %v2272_v24, %v2220_v33  ;;  %v1730_v17 = vadd.f32 %v1728_v36, %v1664_v41 }
 0x4f2   : >> { %v1772_v58 = vadd.f32 %v1770_v43, %v1724_v13  ;;  %v2926_v56 = vrot.slane %v8084_v60, 7  ;;  %v2838_v42 = vstv %s8049_s20  ;;  %v2955_v46 = vrot.slane %v7892_v18, 1  ;;  %s10118_s20 = sld [smem:[#allocation127_spill]] }
 0x4f3   : >> { %v10101_v0 = vstv %s7855_s6  ;;  %v2956_v32 = vrot.slane %v8084_v60, 1  ;;  %v8097_v15 = vmax.f32 %v2274_v1, 0.0  ;;  %v10102_v37 = vstv %s10097_s18 }
 0x4f4   : >> { %v2277_v16 = vmul.f32 %v10101_v0, %v10100_v3  ;;  %v1776_v6 = vmul.f32 %v10102_v37, %v10034_v35  ;;  %v10103_v63 = vstv %s7762_s17  ;;  %v8108_v61 = vsel %vm1184_vm3, %v2925_v31, %v2926_v56  ;;  %s8119_s17 = sld [smem:[#allocation6 + $0x64]]  ;;  %v10111_v0 = vld [vmem:[#allocation79_spill] sm:$0xff]  ;;  %v8165_v37 = vpop.permute.xlu2 %1995 }
 0x4f5   : >> { %v1824_v23 = vmul.f32 %v10103_v63, %v10037_v28  ;;  %v2844_v44 = vstv %s8054_s14  ;;  %v1828_v22 = vstv %s8051_s21  ;;  %v8117_v35 = vsel %vm1287_vm2, %v2955_v46, %v2956_v32  ;;  %3143 = vrot.lane.b32.xlu1 %v8097_v15, %s9946_s25  ;;  %3249 = vrot.lane.b32.xlu0 %v8097_v15, %s9981_s11  ;;  %s4520_s14 = sld [smem:[#allocation6 + $0x24]] }
 0x4f6   : >> { %v2279_v30 = vadd.f32 %v2277_v16, %v2225_v59  ;;  %v1778_v48 = vadd.f32 %v1776_v6, %v1730_v17  ;;  %v2839_v8 = vmul.f32 %v2838_v42, %v7722_v49  ;;  %v8129_v20 = vadd.f32 %v10105_v34, %v1340_v45  ;;  %v10109_v59 = vld [vmem:[#allocation82_spill] sm:$0xff]  ;;  %s8380_s21 = sld [smem:[#allocation6 + $0x25]] }
 0x4f7   : >> { %v1826_v10 = vadd.f32 %v1824_v23, %v1772_v58  ;;  %v10107_v51 = vstv %s10104_s16  ;;  %v2845_v53 = vmul.f32 %v2844_v44, %v7722_v49  ;;  %v1886_v36 = vstv %s8070_s22  ;;  %s8382_s22 = sld [smem:[#allocation6 + $0x6d]] }
 0x4f8   : >> { %v8134_v27 = vmul.f32 %v10107_v51, %v10106_v11  ;;  %v1830_v13 = vmul.f32 %v1828_v22, %v10037_v28  ;;  %v10108_v21 = vstv %s7786_s1  ;;  %v2849_v2 = vrot.slane %v7722_v49, 1  ;;  %s8159_s1 = sld [smem:[#allocation6 + $0x6a]] }
 0x4f9   : >> { %v1882_v50 = vmul.f32 %v10108_v21, %v10046_v12  ;;  %v8145_v24 = vmax.f32 %v2279_v30, 0.0  ;;  %v2816_v33 = vsel %vm1179_vm4, 0.0, %v2812_v4  ;;  %v2841_v41 = vadd.f32 %v2839_v8, %v2829_v40  ;;  %s8392_s16 = sld [smem:[#allocation6 + $0x2c]] }
 0x4fa   : >> { %v8150_v29 = vadd.f32 %v1830_v13, %v1778_v48  ;;  %v2820_v28 = vrot.slane %v2816_v33, 7  ;;  %v2847_v52 = vadd.f32 %v2845_v53, %v2835_v7  ;;  %v2856_v47 = vstv %s8087_s15  ;;  %v2102_v13 = vpop.permute.xlu1 %2101  ;;  %s8348_s15 = sld [smem:[#allocation6 + $0x72]] }
 0x4fb   : >> { %v1884_v43 = vadd.f32 %v1882_v50, %v1826_v10  ;;  %v2862_v45 = vstv %s8095_s8  ;;  %v2867_v1 = vrot.slane %v10109_v59, 7  ;;  %v2850_v17 = vrot.slane %v2816_v33, 1  ;;  %s8390_s8 = sld [smem:[#allocation6 + $0x71]] }
 0x4fc   : >> { %v2874_v56 = vstv %s8110_s13  ;;  %v10110_v40 = vrot.slane %v7722_v49, 7  ;;  %v2868_v16 = vrot.slane %v10111_v0, 7  ;;  %v2880_v7 = vstv %s8119_s17  ;;  %s8394_s13 = sld [smem:[#allocation6 + $0x74]] }
 0x4fd   : >> { %v1988_v58 = vadd.f32 %v8022_v54, %v1884_v43  ;;  %v10112_v6 = vstv %s7486_s19  ;;  %v10113_v23 = vstv %s7513_s0  ;;  %v2851_v4 = vsel %vm1287_vm2, %v2849_v2, %v2850_v17  ;;  %3413 = vrot.lane.b32.xlu0 %v8145_v24, %s9981_s11  ;;  %3307 = vrot.lane.b32.xlu1 %v8145_v24, %s9946_s25  ;;  %s8183_s19 = sld [smem:[#allocation6 + $0x65]] }
 0x4fe   : >> { %v2821_v46 = vsel %vm1184_vm3, %v10110_v40, %v2820_v28  ;;  %v2886_v54 = vstv %s8125_s3  ;;  %v2854_v48 = vsel %vm1287_vm2, %v2850_v17, 0.0  ;;  %v2857_v10 = vmul.f32 %v2856_v47, %v2851_v4  ;;  %s10114_s0 = sld [smem:[#allocation92_spill]] }
 0x4ff   : >> { %v2828_v63 = vmul.f32 %v10112_v6, %v2821_v46  ;;  %v2834_v30 = vmul.f32 %v10113_v23, %v2821_v46  ;;  %v2863_v49 = vmul.f32 %v2862_v45, %v2851_v4  ;;  %v2840_v51 = vmul.f32 %v2838_v42, %v2816_v33  ;;  %s8397_s17 = sld [smem:[#allocation6 + $0x28]] }
 0x500   : >> { %v2846_v53 = vmul.f32 %v2844_v44, %v2816_v33  ;;  %v8185_v21 = vadd.f32 %v2857_v10, %v2841_v41  ;;  %v2858_v2 = vmul.f32 %v2856_v47, %v2854_v48  ;;  %v2864_v33 = vmul.f32 %v2862_v45, %v2854_v48  ;;  %s8399_s3 = sld [smem:[#allocation6 + $0x70]] }
 0x501   : >> { %v2830_v8 = vadd.f32 %v2828_v63, %v8065_v25  ;;  %v2836_v34 = vadd.f32 %v2834_v30, %v8067_v39  ;;  %v8187_v50 = vadd.f32 %v2863_v49, %v2847_v52  ;;  %v2869_v25 = vsel %vm1184_vm3, %v2867_v1, %v2868_v16  ;;  %v8206_v16 = vpop.permute.xlu0 %2977 }
 0x502   : >> { %v2898_v39 = vrot.slane %v10111_v0, 1  ;;  %v2892_v41 = vstv %s8147_s30  ;;  %v2904_v43 = vstv %s8152_s2  ;;  %v10115_v28 = vstv %s7638_s26  ;;  %s8215_s26 = sld [smem:[#allocation2 + $0x89]] }
 0x503   : >> { %v2842_v42 = vadd.f32 %v2840_v51, %v2830_v8  ;;  %v2848_v44 = vadd.f32 %v2846_v53, %v2836_v34  ;;  %v2176_v52 = vmul.f32 %v10115_v28, %v10049_v26  ;;  %v2106_v17 = vadd.f32 %v2102_v13, %v1988_v58  ;;  %s8401_s30 = sld [smem:[#allocation6 + $0x26]] }
 0x504   : >> { %v2876_v47 = vmul.f32 %v2874_v56, %v2869_v25  ;;  %v2882_v45 = vmul.f32 %v2880_v7, %v2869_v25  ;;  %v2910_v6 = vstv %s8159_s1  ;;  %v2902_v63 = vsel %vm1287_vm2, %v2898_v39, 0.0  ;;  %v1998_v25 = vpop.permute.xlu2 %1997  ;;  %s8412_s2 = sld [smem:[#allocation6 + $0x2b]] }
 0x505   : >> { %v2860_v40 = vadd.f32 %v2858_v2, %v2842_v42  ;;  %v2866_v46 = vadd.f32 %v2864_v33, %v2848_v44  ;;  %v10116_v58 = vstv %s10114_s0  ;;  %v2178_v30 = vadd.f32 %v2176_v52, %v2106_v17  ;;  %s8420_s1 = sld [smem:[#allocation6 + $0x73]] }
 0x506   : >> { %v2224_v23 = vmul.f32 %v10116_v58, %v10051_v55  ;;  %v2888_v10 = vmul.f32 %v2886_v54, %v10111_v0  ;;  %v2894_v49 = vmul.f32 %v2892_v41, %v10111_v0  ;;  %v2932_v8 = vstv %s8173_s10  ;;  %s8424_s10 = sld [smem:[#allocation6 + $0x2f]] }
 0x507   : >> { %v2878_v4 = vadd.f32 %v2876_v47, %v2860_v40  ;;  %v2884_v48 = vadd.f32 %v2882_v45, %v2866_v46  ;;  %v1888_v34 = vmul.f32 %v1886_v36, %v10046_v12  ;;  %v10117_v51 = vstv %s7855_s6  ;;  %s8242_s6 = sld [smem:[#allocation6 + $0x6b]] }
 0x508   : >> { %v2278_v53 = vmul.f32 %v10117_v51, %v10094_v19  ;;  %v2226_v13 = vadd.f32 %v2224_v23, %v2178_v30  ;;  %v2906_v2 = vmul.f32 %v2904_v43, %v2902_v63  ;;  %v2912_v33 = vmul.f32 %v2910_v6, %v2902_v63  ;;  %v10119_v23 = vld [vmem:[#allocation99_spill] sm:$0xff]  ;;  %s8442_s0 = sld [smem:[#allocation6 + $0x7a]] }
 0x509   : >> { %v2890_v42 = vadd.f32 %v2888_v10, %v2878_v4  ;;  %v2896_v44 = vadd.f32 %v2894_v49, %v2884_v48  ;;  %v2938_v28 = vstv %s8183_s19  ;;  %v1890_v12 = vadd.f32 %v1888_v34, %v8150_v29  ;;  %s8437_s19 = sld [smem:[#allocation6 + $0x32]] }
 0x50a   : >> { %v2872_v52 = vsel %vm1184_vm3, 0.0, %v2867_v1  ;;  %v2280_v17 = vadd.f32 %v2278_v53, %v2226_v13  ;;  %v2934_v40 = vmul.f32 %v2932_v8, %v8108_v61  ;;  %v2940_v46 = vmul.f32 %v2938_v28, %v8108_v61  ;;  %v2116_v61 = vpop.permute.xlu0 %2115 }
 0x50b   : >> { %v2908_v47 = vadd.f32 %v2906_v2, %v2890_v42  ;;  %v2914_v45 = vadd.f32 %v2912_v33, %v2896_v44  ;;  %v2002_v63 = vadd.f32 %v1998_v25, %v1890_v12  ;;  %v1442_v58 = vadd.f32 %v8134_v27, %v8129_v20 }
 0x50c   : >> { %v8251_v29 = vmax.f32 %v2280_v17, 0.0  ;;  %v10120_v1 = vstv %s10118_s20  ;;  %v2875_v10 = vmul.f32 %v2874_v56, %v2872_v52  ;;  %v2881_v49 = vmul.f32 %v2880_v7, %v2872_v52  ;;  %s8496_s20 = sld [smem:[#allocation6 + $0x3c]] }
 0x50d   : >> { %v1494_v30 = vmul.f32 %v10120_v1, %v10119_v23  ;;  %v2936_v4 = vadd.f32 %v2934_v40, %v2908_v47  ;;  %v2942_v48 = vadd.f32 %v2940_v46, %v2914_v45  ;;  %v2180_v20 = vstv %s8215_s26  ;;  %s8470_s26 = sld [smem:[#allocation6 + $0x30]] }
 0x50e   : >> { %3415 = vrot.lane.b32.xlu1 %v8251_v29, %s9981_s11  ;;  %3309 = vrot.lane.b32.xlu2 %v8251_v29, %s9946_s25  ;;  %v2120_v27 = vadd.f32 %v2116_v61, %v2002_v63  ;;  %v2944_v34 = vstv %s8193_s28  ;;  %v2950_v51 = vstv %s8200_s4  ;;  %v2930_v56 = vsel %vm1184_vm3, 0.0, %v2925_v31  ;;  %s8454_s28 = sld [smem:[#allocation6 + $0x2d]] }
 0x50f   : >> { %v2182_v7 = vmul.f32 %v2180_v20, %v10049_v26  ;;  %v2877_v53 = vadd.f32 %v2875_v10, %v8185_v21  ;;  %v2883_v13 = vadd.f32 %v2881_v49, %v8187_v50  ;;  %v2228_v25 = vstv %s8223_s23  ;;  %s8468_s4 = sld [smem:[#allocation6 + $0x75]] }
 0x510   : >> { %v2282_v42 = vstv %s8232_s9  ;;  %v2962_v44 = vstv %s8234_s24  ;;  %v2960_v2 = vsel %vm1287_vm2, %v2956_v32, 0.0  ;;  %v2230_v33 = vmul.f32 %v2228_v25, %v10051_v55  ;;  %s8480_s23 = sld [smem:[#allocation6 + $0x78]] }
 0x511   : >> { %v2184_v12 = vadd.f32 %v2182_v7, %v2120_v27  ;;  %v2968_v52 = vstv %s8242_s6  ;;  %v2946_v31 = vmul.f32 %v2944_v34, %v8084_v60  ;;  %v2887_v26 = vmul.f32 %v2886_v54, %v10109_v59  ;;  %s8484_s9 = sld [smem:[#allocation6 + $0x39]] }
 0x512   : >> { %v2893_v21 = vmul.f32 %v2892_v41, %v10109_v59  ;;  %v2952_v50 = vmul.f32 %v2950_v51, %v8084_v60  ;;  %v2284_v32 = vmul.f32 %v2282_v42, %v10094_v19  ;;  %v2897_v55 = vrot.slane %v10109_v59, 1  ;;  %s8490_s24 = sld [smem:[#allocation6 + $0x81]] }
 0x513   : >> { %v2232_v17 = vadd.f32 %v2230_v33, %v2184_v12  ;;  %v2964_v40 = vmul.f32 %v2962_v44, %v2960_v2  ;;  %v2889_v46 = vadd.f32 %v2887_v26, %v2877_v53  ;;  %v2948_v45 = vadd.f32 %v2946_v31, %v2936_v4  ;;  %s8504_s6 = sld [smem:[#allocation6 + $0x84]] }
 0x514   : >> { %v2895_v47 = vadd.f32 %v2893_v21, %v2883_v13  ;;  %v2970_v63 = vmul.f32 %v2968_v52, %v2960_v2  ;;  %v2899_v54 = vsel %vm1287_vm2, %v2897_v55, %v2898_v39  ;;  %v2954_v41 = vadd.f32 %v2952_v50, %v2942_v48  ;;  %v10121_v39 = vld [vmem:[#allocation107_spill] sm:$0xff]  ;;  %v10123_v2 = vld [vmem:[#allocation105_spill] sm:$0xff] }
 0x515   : >> { %v2286_v23 = vadd.f32 %v2284_v32, %v2232_v17  ;;  %v2905_v60 = vmul.f32 %v2904_v43, %v2899_v54  ;;  %v2911_v19 = vmul.f32 %v2910_v6, %v2899_v54  ;;  %v8306_v1 = vadd.f32 %v2964_v40, %v2948_v45  ;;  %v10127_v50 = vld [vmem:[#allocation77_spill] sm:$0xff] }
 0x516   : >> { %v1496_v61 = vadd.f32 %v1494_v30, %v1442_v58  ;;  %v8310_v10 = vadd.f32 %v2970_v63, %v2954_v41  ;;  %v2933_v4 = vmul.f32 %v2932_v8, %v2930_v56  ;;  %v2939_v49 = vmul.f32 %v2938_v28, %v2930_v56 }
 0x517   : >> { %v8308_v59 = vmax.f32 %v2286_v23, 0.0  ;;  %v2907_v0 = vadd.f32 %v2905_v60, %v2889_v46  ;;  %v2913_v27 = vadd.f32 %v2911_v19, %v2895_v47  ;;  %v10122_v48 = vstv %s10030_s7  ;;  %s10126_s7 = smov 112  }
 0x518   : >> { %v1559_v7 = vmul.f32 %v10122_v48, %v10121_v39  ;;  %v2945_v43 = vmul.f32 %v2944_v34, %v7892_v18  ;;  %v2951_v6 = vmul.f32 %v2950_v51, %v7892_v18  ;;  %v2963_v8 = vmul.f32 %v2962_v44, %v8117_v35  ;;  %v10128_v44 = vld [vmem:[#allocation111_spill] sm:$0xff] }
 0x519   : >> { %3475 = vrot.lane.b32.xlu0 %v8308_v59, %s9946_s25  ;;  %v2935_v58 = vadd.f32 %v2933_v4, %v2907_v0  ;;  %v2941_v30 = vadd.f32 %v2939_v49, %v2913_v27  ;;  %v2969_v28 = vmul.f32 %v2968_v52, %v8117_v35  ;;  %v10124_v33 = vstv %s10036_s12  ;;  %s8336_s12 = sld [smem:[#allocation6 + $0x6f]]  ;;  %v10130_v52 = vld [vmem:[#allocation110_spill] sm:$0xff] }
 0x51a   : >> { %v1561_v53 = vadd.f32 %v1559_v7, %v1496_v61  ;;  %v1607_v12 = vmul.f32 %v10124_v33, %v10123_v2  ;;  %v10125_v31 = vstv %s10039_s29  ;;  %v10129_v32 = vstv %s10090_s27  ;;  %s8344_s29 = sld [smem:[#allocation6 + $0x2a]] }
 0x51b   : >> { %v2947_v56 = vadd.f32 %v2945_v43, %v2935_v58  ;;  %v2953_v13 = vadd.f32 %v2951_v6, %v2941_v30  ;;  %v1661_v34 = vmul.f32 %v10125_v31, %v6252_v38  ;;  %v1727_v17 = vmul.f32 %v10129_v32, %v10128_v44  ;;  %s4521_s27 = sld [smem:[#allocation6 + $0x6c]] }
 0x51c   : >> { %v1609_v18 = vadd.f32 %v1607_v12, %v1561_v53  ;;  %v10131_v55 = vstv %s10097_s18  ;;  %v1829_v40 = vmul.f32 %v1828_v22, %v9980_v57  ;;  %v2982_v47 = vsel %vm1179_vm4, 0.0, %v8206_v16  ;;  %s8388_s18 = sld [smem:[#allocation6 + $0x29]] }
 0x51d   : >> { %v2965_v26 = vadd.f32 %v2963_v8, %v2947_v56  ;;  %v2971_v21 = vadd.f32 %v2969_v28, %v2953_v13  ;;  %v1775_v38 = vmul.f32 %v10131_v55, %v10130_v52  ;;  %v3016_v63 = vrot.slane %v2982_v47, 1 }
 0x51e   : >> { %v1663_v51 = vadd.f32 %v1661_v34, %v1609_v18  ;;  %v1887_v23 = vmul.f32 %v1886_v36, %v9993_v5  ;;  %v2976_v54 = vpop.permute.xlu1 %2975  ;;  %v3004_v57 = vstv %s8334_s5  ;;  %v2986_v61 = vrot.slane %v2982_v47, 7  ;;  %s8515_s5 = sld [smem:[#allocation6 + $0x33]] }
 0x51f   : >> { %v2981_v22 = vsel %vm1179_vm4, 0.0, %v2976_v54  ;;  %v3010_v60 = vstv %s8336_s12  ;;  %v3020_v4 = vsel %vm1287_vm2, %v3016_v63, 0.0  ;;  %v2992_v16 = vstv %s4520_s14  ;;  %s8521_s12 = sld [smem:[#allocation6 + $0x7b]] }
 0x520   : >> { %v1729_v35 = vadd.f32 %v1727_v17, %v1663_v51  ;;  %v3022_v19 = vstv %s8344_s29  ;;  %v2985_v0 = vrot.slane %v2981_v22, 7  ;;  %v3015_v27 = vrot.slane %v2981_v22, 1  ;;  %s8524_s29 = sld [smem:[#allocation6 + $0x2e]] }
 0x521   : >> { %3639 = vrot.lane.b32.xlu0 %v10127_v50, %s10126_s7  ;;  %v2998_v49 = vstv %s4521_s27  ;;  %v3028_v48 = vstv %s8348_s15  ;;  %v3006_v7 = vmul.f32 %v3004_v57, %v2982_v47  ;;  %v3012_v43 = vmul.f32 %v3010_v60, %v2982_v47  ;;  %s8528_s14 = sld [smem:[#allocation6 + $0x31]] }
 0x522   : >> { %v1777_v46 = vadd.f32 %v1775_v38, %v1729_v35  ;;  %v3024_v5 = vmul.f32 %v3022_v19, %v3020_v4  ;;  %v2987_v36 = vsel %vm1184_vm3, %v2985_v0, %v2986_v61  ;;  %v2990_v6 = vsel %vm1184_vm3, 0.0, %v2985_v0  ;;  %s8536_s27 = sld [smem:[#allocation6 + $0x79]] }
 0x523   : >> { %v2993_v58 = vmul.f32 %v2992_v16, %v2990_v6  ;;  %v2994_v30 = vmul.f32 %v2992_v16, %v2987_v36  ;;  %v2999_v53 = vmul.f32 %v2998_v49, %v2990_v6  ;;  %v3000_v8 = vmul.f32 %v2998_v49, %v2987_v36  ;;  %s8546_s15 = sld [smem:[#allocation6 + $0x76]] }
 0x524   : >> { %v1831_v45 = vadd.f32 %v1829_v40, %v1777_v46  ;;  %v3030_v28 = vmul.f32 %v3028_v48, %v3020_v4  ;;  %v3005_v56 = vmul.f32 %v3004_v57, %v2981_v22  ;;  %v3011_v13 = vmul.f32 %v3010_v60, %v2981_v22 }
 0x525   : >> { %v3017_v2 = vsel %vm1287_vm2, %v3015_v27, %v3016_v63  ;;  %v2996_v33 = vadd.f32 %v2994_v30, %v8306_v1  ;;  %v3001_v12 = vadd.f32 %v2999_v53, %v2971_v21  ;;  %v3002_v31 = vadd.f32 %v3000_v8, %v8310_v10  ;;  %v10132_v63 = vld [vmem:[#allocation78_spill] sm:$0xff] }
 0x526   : >> { %v1889_v41 = vadd.f32 %v1887_v23, %v1831_v45  ;;  %v2114_v34 = vpop.permute.xlu1 %2113  ;;  %v3023_v18 = vmul.f32 %v3022_v19, %v3017_v2  ;;  %v3029_v51 = vmul.f32 %v3028_v48, %v3017_v2  ;;  %v2181_v50 = vmul.f32 %v2180_v20, %v9987_v62 }
 0x527   : >> { %v3008_v17 = vadd.f32 %v3006_v7, %v2996_v33  ;;  %v3013_v35 = vadd.f32 %v3011_v13, %v3001_v12  ;;  %v3014_v52 = vadd.f32 %v3012_v43, %v3002_v31  ;;  %v2283_v40 = vmul.f32 %v2282_v42, %v10100_v3  ;;  %v10133_v7 = vld [vmem:[#allocation180_spill] sm:$0xff] }
 0x528   : >> { %v2001_v39 = vadd.f32 %v8165_v37, %v1889_v41  ;;  %v2995_v37 = vadd.f32 %v2993_v58, %v2965_v26  ;;  %v2229_v26 = vmul.f32 %v2228_v25, %v10012_v14  ;;  %v3033_v14 = vrot.slane %v7704_v9, 7  ;;  %v3084_v25 = vpop.permute.xlu2 %3083 }
 0x529   : >> { %v8371_v21 = vadd.f32 %v3024_v5, %v3008_v17  ;;  %v3031_v10 = vadd.f32 %v3029_v51, %v3013_v35  ;;  %v8373_v38 = vadd.f32 %v3030_v28, %v3014_v52  ;;  %v3040_v47 = vstv %s8380_s21  ;;  %s8564_s21 = sld [smem:[#allocation6 + $0x34]] }
 0x52a   : >> { %v2119_v44 = vadd.f32 %v2114_v34, %v2001_v39  ;;  %v3007_v32 = vadd.f32 %v3005_v56, %v2995_v37  ;;  %v3038_v42 = vsel %vm1184_vm3, 0.0, %v3033_v14  ;;  %v3046_v45 = vstv %s8382_s22  ;;  %s8576_s22 = sld [smem:[#allocation6 + $0x7c]] }
 0x52b   : >> { %v8418_v54 = vsel %vm1504_vm5, %v3084_v25, 0.0  ;;  %v3041_v41 = vmul.f32 %v3040_v47, %v3038_v42  ;;  %v3047_v57 = vmul.f32 %v3046_v45, %v3038_v42  ;;  %v3110_v22 = vstv %s8388_s18  ;;  %s8588_s18 = sld [smem:[#allocation6 + $0x35]] }
 0x52c   : >> { %v2183_v55 = vadd.f32 %v2181_v50, %v2119_v44  ;;  %v3025_v1 = vadd.f32 %v3023_v18, %v3007_v32  ;;  %v3116_v60 = vstv %s8390_s8  ;;  %v3063_v19 = vrot.slane %v7704_v9, 1  ;;  %s8594_s8 = sld [smem:[#allocation6 + $0x7d]] }
 0x52d   : >> { %v3128_v4 = vstv %s8392_s16  ;;  %v3122_v16 = vrot.slane %v8418_v54, 1  ;;  %v3049_v0 = vadd.f32 %v3047_v57, %v3031_v10  ;;  %v3134_v27 = vstv %s8394_s13  ;;  %s8609_s16 = sld [smem:[#allocation6 + $0x36]] }
 0x52e   : >> { %v2231_v46 = vadd.f32 %v2229_v26, %v2183_v55  ;;  %v3082_v3 = vpop.permute.xlu1 %3081  ;;  %v3043_v49 = vadd.f32 %v3041_v41, %v3025_v1  ;;  %v3052_v39 = vstv %s8397_s17  ;;  %v3058_v48 = vstv %s8399_s3  ;;  %s8615_s13 = sld [smem:[#allocation6 + $0x7e]] }
 0x52f   : >> { %v8415_v23 = vsel %vm1504_vm5, %v3082_v3, 0.0  ;;  %v3064_v43 = vrot.slane %v10133_v7, 1  ;;  %v3092_v5 = vrot.slane %v8418_v54, 7  ;;  %v3034_v36 = vrot.slane %v10133_v7, 7  ;;  %s8669_s17 = sld [smem:[#allocation6 + $0x37]] }
 0x530   : >> { %v2285_v62 = vadd.f32 %v2283_v40, %v2231_v46  ;;  %v3091_v61 = vrot.slane %v8415_v23, 7  ;;  %v3053_v6 = vmul.f32 %v3052_v39, %v7704_v9  ;;  %v3059_v58 = vmul.f32 %v3058_v48, %v7704_v9  ;;  %v3248_v1 = vpop.permute.xlu2 %3247  ;;  %s8672_s3 = sld [smem:[#allocation6 + $0x7f]] }
 0x531   : >> { %v3098_v30 = vstv %s8401_s30  ;;  %v3065_v8 = vsel %vm1287_vm2, %v3063_v19, %v3064_v43  ;;  %v3126_v56 = vsel %vm1287_vm2, %v3122_v16, 0.0  ;;  %v3035_v13 = vsel %vm1184_vm3, %v3033_v14, %v3034_v36  ;;  %s8684_s30 = sld [smem:[#allocation6 + $0x3a]] }
 0x532   : >> { %v8378_v20 = vmax.f32 %v2285_v62, 0.0  ;;  %v3096_v28 = vsel %vm1184_vm3, 0.0, %v3091_v61  ;;  %v3055_v2 = vadd.f32 %v3053_v6, %v3043_v49  ;;  %v3061_v9 = vadd.f32 %v3059_v58, %v3049_v0 }
 0x533   : >> { %v8459_v37 = vmul.f32 %v3110_v22, %v8418_v54  ;;  %v8464_v33 = vmul.f32 %v3116_v60, %v8418_v54  ;;  %v3070_v12 = vstv %s8412_s2  ;;  %v3076_v31 = vstv %s8420_s1  ;;  %s8707_s2 = sld [smem:[#allocation6 + $0x3d]] }
 0x534   : >> { %3579 = vrot.lane.b32.xlu1 %v8378_v20, %s9981_s11  ;;  %3473 = vrot.lane.b32.xlu2 %v8378_v20, %s9946_s25  ;;  %s8406_s25 = sld [smem:[#allocation6 + $0x6e]]  ;;  %v3071_v34 = vmul.f32 %v3070_v12, %v3065_v8  ;;  %v3077_v18 = vmul.f32 %v3076_v31, %v3065_v8  ;;  %v3099_v51 = vmul.f32 %v3098_v30, %v3096_v28  ;;  %v3264_v26 = vstv %s8424_s10 }
 0x535   : >> { %v8474_v44 = vmul.f32 %v3128_v4, %v3126_v56  ;;  %v8478_v32 = vmul.f32 %v3134_v27, %v3126_v56  ;;  %v3042_v17 = vmul.f32 %v3040_v47, %v3035_v13  ;;  %v3048_v35 = vmul.f32 %v3046_v45, %v3035_v13  ;;  %s8714_s1 = sld [smem:[#allocation6 + $0x85]] }
 0x536   : >> { %v3073_v10 = vadd.f32 %v3071_v34, %v3055_v2  ;;  %v3079_v40 = vadd.f32 %v3077_v18, %v3061_v9  ;;  %v3068_v14 = vsel %vm1287_vm2, %v3064_v43, 0.0  ;;  %v3121_v3 = vrot.slane %v8415_v23, 1  ;;  %s8719_s10 = sld [smem:[#allocation6 + $0x38]] }
 0x537   : >> { %v3044_v46 = vadd.f32 %v3042_v17, %v8371_v21  ;;  %v3050_v62 = vadd.f32 %v3048_v35, %v8373_v38  ;;  %v3276_v25 = vstv %s8437_s19  ;;  %v8500_v21 = vsel %vm1504_vm5, %v3248_v1, 0.0  ;;  %s8731_s19 = sld [smem:[#allocation6 + $0x3b]] }
 0x538   : >> { %v3101_v42 = vadd.f32 %v3099_v51, %v3073_v10  ;;  %v3054_v38 = vmul.f32 %v3052_v39, %v10133_v7  ;;  %v3060_v41 = vmul.f32 %v3058_v48, %v10133_v7  ;;  %v3072_v57 = vmul.f32 %v3070_v12, %v3068_v14 }
 0x539   : >> { %v3093_v19 = vsel %vm1184_vm3, %v3091_v61, %v3092_v5  ;;  %v3111_v49 = vmul.f32 %v3110_v22, %v8415_v23  ;;  %v3117_v0 = vmul.f32 %v3116_v60, %v8415_v23  ;;  %v3123_v7 = vsel %vm1287_vm2, %v3121_v3, %v3122_v16 }
 0x53a   : >> { %v3104_v53 = vstv %s8406_s25  ;;  %v3056_v39 = vadd.f32 %v3054_v38, %v3044_v46  ;;  %v3062_v48 = vadd.f32 %v3060_v41, %v3050_v62  ;;  %v3257_v22 = vrot.slane %v8500_v21, 7  ;;  %s8688_s25 = sld [smem:[#allocation6 + $0x82]] }
 0x53b   : >> { %v3105_v50 = vmul.f32 %v3104_v53, %v3096_v28  ;;  %v3142_v52 = vpop.permute.xlu0 %3141  ;;  %v3078_v23 = vmul.f32 %v3076_v31, %v3068_v14  ;;  %v3113_v60 = vadd.f32 %v3111_v49, %v3101_v42  ;;  %v3100_v5 = vmul.f32 %v3098_v30, %v3093_v19 }
 0x53c   : >> { %3641 = vrot.lane.b32.xlu1 %v10132_v63, %s10126_s7  ;;  %3581 = vrot.lane.b32.xlu2 %v8308_v59, %s9981_s11  ;;  %s8430_s11 = sld [smem:[#allocation6 + $0x77]]  ;;  %v8494_v45 = vsel %vm1179_vm4, 0.0, %v3142_v52  ;;  %v3282_v63 = vstv %s8442_s0  ;;  %v3106_v36 = vmul.f32 %v3104_v53, %v3093_v19  ;;  %v3158_v54 = vstv %s8454_s28 }
 0x53d   : >> { %v3107_v47 = vadd.f32 %v3105_v50, %v3079_v40  ;;  %v3151_v61 = vrot.slane %v8494_v45, 7  ;;  %v3164_v6 = vstv %s8468_s4  ;;  %v3129_v16 = vmul.f32 %v3128_v4, %v3123_v7  ;;  %v10134_v40 = vld [vmem:[#allocation158_spill] sm:$0xff]  ;;  %s8735_s0 = sld [smem:[#allocation6 + $0x83]] }
 0x53e   : >> { %v3135_v58 = vmul.f32 %v3134_v27, %v3123_v7  ;;  %v3170_v8 = vstv %s8470_s26  ;;  %v3176_v28 = vstv %s8480_s23  ;;  %v8541_v30 = vmul.f32 %v3276_v25, %v8500_v21  ;;  %s8738_s28 = sld [smem:[#allocation6 + $0x3e]] }
 0x53f   : >> { %v3119_v43 = vadd.f32 %v3117_v0, %v3107_v47  ;;  %v3074_v53 = vadd.f32 %v3072_v57, %v3056_v39  ;;  %v3080_v56 = vadd.f32 %v3078_v23, %v3062_v48  ;;  %v3156_v4 = vsel %vm1184_vm3, 0.0, %v3151_v61  ;;  %s8741_s4 = sld [smem:[#allocation6 + $0x86]] }
 0x540   : >> { %v3262_v27 = vsel %vm1184_vm3, 0.0, %v3257_v22  ;;  %v8554_v13 = vmul.f32 %v3282_v63, %v8500_v21  ;;  %v3131_v2 = vadd.f32 %v3129_v16, %v3113_v60  ;;  %v3287_v12 = vrot.slane %v8500_v21, 1  ;;  %s8746_s26 = sld [smem:[#allocation6 + $0x3f]] }
 0x541   : >> { %v3137_v9 = vadd.f32 %v3135_v58, %v3119_v43  ;;  %v3102_v31 = vadd.f32 %v3100_v5, %v3074_v53  ;;  %v3108_v34 = vadd.f32 %v3106_v36, %v3080_v56  ;;  %v3336_v18 = vstv %s8484_s9  ;;  %s8749_s23 = sld [smem:[#allocation6 + $0x87]] }
 0x542   : >> { %v3270_v55 = vstv %s8430_s11  ;;  %v3159_v51 = vmul.f32 %v3158_v54, %v3156_v4  ;;  %v3165_v50 = vmul.f32 %v3164_v6, %v3156_v4  ;;  %v3342_v17 = vstv %s8490_s24  ;;  %s8721_s11 = sld [smem:[#allocation6 + $0x80]] }
 0x543   : >> { %v8568_v52 = vmul.f32 %v3264_v26, %v3262_v27  ;;  %v8572_v1 = vmul.f32 %v3270_v55, %v3262_v27  ;;  %v3199_v46 = vrot.slane %v10134_v40, 7  ;;  %v3171_v3 = vmul.f32 %v3170_v8, %v8494_v45  ;;  %s8756_s9 = sld [smem:[#allocation6 + $0x42]] }
 0x544   : >> { %v3161_v62 = vadd.f32 %v3159_v51, %v3131_v2  ;;  %v3167_v14 = vadd.f32 %v3165_v50, %v3137_v9  ;;  %v3200_v42 = vrot.slane %v8097_v15, 7  ;;  %v3177_v47 = vmul.f32 %v3176_v28, %v8494_v45  ;;  %s8758_s24 = sld [smem:[#allocation6 + $0x8a]] }
 0x545   : >> { %v3181_v38 = vrot.slane %v8494_v45, 1  ;;  %v3114_v41 = vadd.f32 %v8459_v37, %v3102_v31  ;;  %v3120_v57 = vadd.f32 %v8464_v33, %v3108_v34  ;;  %v3188_v19 = vstv %s8515_s5  ;;  %s8770_s5 = sld [smem:[#allocation6 + $0x40]] }
 0x546   : >> { %v3218_v49 = vstv %s8528_s14  ;;  %v3224_v0 = vstv %s8536_s27  ;;  %v3230_v39 = vrot.slane %v8097_v15, 1  ;;  %v3194_v48 = vstv %s8521_s12  ;;  %s8773_s12 = sld [smem:[#allocation6 + $0x88]] }
 0x547   : >> { %v3206_v7 = vstv %s8524_s29  ;;  %v3212_v23 = vstv %s8546_s15  ;;  %v3204_v60 = vsel %vm1184_vm3, 0.0, %v3199_v46  ;;  %v3173_v43 = vadd.f32 %v3171_v3, %v3161_v62  ;;  %s8776_s29 = sld [smem:[#allocation6 + $0x44]] }
 0x548   : >> { %v3179_v5 = vadd.f32 %v3177_v47, %v3167_v14  ;;  %v3201_v37 = vsel %vm1184_vm3, %v3199_v46, %v3200_v42  ;;  %v3229_v33 = vrot.slane %v10134_v40, 1  ;;  %v3132_v36 = vadd.f32 %v8474_v44, %v3114_v41  ;;  %s8779_s14 = sld [smem:[#allocation6 + $0x8c]] }
 0x549   : >> { %v3138_v16 = vadd.f32 %v8478_v32, %v3120_v57  ;;  %v3219_v58 = vmul.f32 %v3218_v49, %v10134_v40  ;;  %v3225_v53 = vmul.f32 %v3224_v0, %v10134_v40  ;;  %v3207_v4 = vmul.f32 %v3206_v7, %v3204_v60  ;;  %s8784_s27 = sld [smem:[#allocation6 + $0x43]] }
 0x54a   : >> { %v3231_v27 = vsel %vm1287_vm2, %v3229_v33, %v3230_v39  ;;  %v3234_v2 = vsel %vm1287_vm2, %v3230_v39, 0.0  ;;  %v3236_v9 = vstv %s8564_s21  ;;  %v3208_v34 = vmul.f32 %v3206_v7, %v3201_v37  ;;  %s8787_s15 = sld [smem:[#allocation6 + $0x8b]] }
 0x54b   : >> { %v3213_v44 = vmul.f32 %v3212_v23, %v3204_v60  ;;  %v3242_v32 = vstv %s8576_s22  ;;  %v3214_v50 = vmul.f32 %v3212_v23, %v3201_v37  ;;  %v3220_v40 = vmul.f32 %v3218_v49, %v8097_v15  ;;  %s8790_s21 = sld [smem:[#allocation6 + $0x46]] }
 0x54c   : >> { %v3226_v46 = vmul.f32 %v3224_v0, %v8097_v15  ;;  %v3237_v42 = vmul.f32 %v3236_v9, %v3231_v27  ;;  %v3238_v47 = vmul.f32 %v3236_v9, %v3234_v2  ;;  %v3294_v41 = vstv %s8588_s18  ;;  %s8793_s22 = sld [smem:[#allocation6 + $0x8e]] }
 0x54d   : >> { %v3243_v39 = vmul.f32 %v3242_v32, %v3231_v27  ;;  %v3244_v7 = vmul.f32 %v3242_v32, %v3234_v2  ;;  %v3300_v23 = vstv %s8594_s8  ;;  %s8798_s18 = sld [smem:[#allocation6 + $0x41]] }
 0x54e   : >> { %s8800_s8 = sld [smem:[#allocation6 + $0x89]] }
 0x567   : >> { %v3144_v56 = vpop.permute.xlu1 %3143  ;;  %v3250_v62 = vpop.permute.xlu0 %3249 }
 0x568   : >> { %v3148_v31 = vsel %vm1179_vm4, 0.0, %v3144_v56  ;;  %v3310_v14 = vpop.permute.xlu2 %3309  ;;  %v3254_v60 = vsel %vm1504_vm5, %v3250_v62, 0.0 }
 0x569   : >> { %v3152_v51 = vrot.slane %v3148_v31, 7  ;;  %v3182_v3 = vrot.slane %v3148_v31, 1  ;;  %v8629_v37 = vsel %vm1179_vm4, 0.0, %v3310_v14  ;;  %v3172_v2 = vmul.f32 %v3170_v8, %v3148_v31 }
 0x56a   : >> { %v3258_v32 = vrot.slane %v3254_v60, 7  ;;  %v3288_v8 = vrot.slane %v3254_v60, 1 }
 0x56b   : >> { %v3153_v57 = vsel %vm1184_vm3, %v3151_v61, %v3152_v51  ;;  %v3183_v0 = vsel %vm1287_vm2, %v3181_v38, %v3182_v3  ;;  %v3186_v45 = vsel %vm1287_vm2, %v3182_v3, 0.0  ;;  %v3324_v38 = vstv %s8609_s16  ;;  %s8802_s16 = sld [smem:[#allocation6 + $0x47]] }
 0x56c   : >> { %v3160_v15 = vmul.f32 %v3158_v54, %v3153_v57  ;;  %v3166_v49 = vmul.f32 %v3164_v6, %v3153_v57  ;;  %v3189_v33 = vmul.f32 %v3188_v19, %v3183_v0  ;;  %v3195_v56 = vmul.f32 %v3194_v48, %v3183_v0 }
 0x56d   : >> { %v3178_v54 = vmul.f32 %v3176_v28, %v3148_v31  ;;  %v3190_v57 = vmul.f32 %v3188_v19, %v3186_v45  ;;  %v3196_v14 = vmul.f32 %v3194_v48, %v3186_v45  ;;  %v3348_v3 = vrot.slane %v8629_v37, 1 }
 0x56e   : >> { %v3162_v61 = vadd.f32 %v3160_v15, %v3132_v36  ;;  %v3168_v27 = vadd.f32 %v3166_v49, %v3138_v16  ;;  %v3191_v9 = vadd.f32 %v3189_v33, %v3173_v43  ;;  %v3197_v6 = vadd.f32 %v3195_v56, %v3179_v5 }
 0x56f   : >> { %v3308_v10 = vpop.permute.xlu1 %3307  ;;  %v3330_v15 = vstv %s8615_s13  ;;  %v3318_v43 = vrot.slane %v8629_v37, 7  ;;  %v3366_v48 = vrot.slane %v8251_v29, 7  ;;  %v3352_v45 = vsel %vm1287_vm2, %v3348_v3, 0.0  ;;  %s8805_s13 = sld [smem:[#allocation6 + $0x8f]] }
 0x570   : >> { %v3174_v51 = vadd.f32 %v3172_v2, %v3162_v61  ;;  %v3180_v62 = vadd.f32 %v3178_v54, %v3168_v27  ;;  %v3209_v35 = vadd.f32 %v3207_v4, %v3191_v9  ;;  %v3215_v36 = vadd.f32 %v3213_v44, %v3197_v6 }
 0x571   : >> { %v3313_v28 = vsel %vm1179_vm4, 0.0, %v3308_v10  ;;  %v3259_v4 = vsel %vm1184_vm3, %v3257_v22, %v3258_v32  ;;  %v3278_v10 = vmul.f32 %v3276_v25, %v3254_v60 }
 0x572   : >> { %v3192_v16 = vadd.f32 %v3190_v57, %v3174_v51  ;;  %v3198_v49 = vadd.f32 %v3196_v14, %v3180_v62  ;;  %v3221_v5 = vadd.f32 %v3219_v58, %v3209_v35  ;;  %v3227_v19 = vadd.f32 %v3225_v53, %v3215_v36 }
 0x573   : >> { %v3317_v44 = vrot.slane %v3313_v28, 7  ;;  %v3266_v22 = vmul.f32 %v3264_v26, %v3259_v4  ;;  %v3272_v56 = vmul.f32 %v3270_v55, %v3259_v4  ;;  %v3337_v51 = vmul.f32 %v3336_v18, %v3313_v28 }
 0x574   : >> { %v3210_v31 = vadd.f32 %v3208_v34, %v3192_v16  ;;  %v3216_v0 = vadd.f32 %v3214_v50, %v3198_v49  ;;  %v3239_v35 = vadd.f32 %v3237_v42, %v3221_v5  ;;  %v3245_v58 = vadd.f32 %v3243_v39, %v3227_v19 }
 0x575   : >> { %v3284_v34 = vmul.f32 %v3282_v63, %v3254_v60  ;;  %v3289_v50 = vsel %vm1287_vm2, %v3287_v12, %v3288_v8  ;;  %v3343_v62 = vmul.f32 %v3342_v17, %v3313_v28  ;;  %v10135_v5 = vstv %s8496_s20  ;;  %s8761_s20 = sld [smem:[#allocation6 + $0x45]] }
 0x576   : >> { %v3222_v53 = vadd.f32 %v3220_v40, %v3210_v31  ;;  %v3228_v33 = vadd.f32 %v3226_v46, %v3216_v0  ;;  %v3267_v61 = vadd.f32 %v8568_v52, %v3239_v35  ;;  %v3273_v27 = vadd.f32 %v8572_v1, %v3245_v58 }
 0x577   : >> { %v3292_v40 = vsel %vm1287_vm2, %v3288_v8, 0.0  ;;  %v3322_v46 = vsel %vm1184_vm3, 0.0, %v3317_v44  ;;  %v3295_v63 = vmul.f32 %v3294_v41, %v3289_v50  ;;  %v3301_v21 = vmul.f32 %v3300_v23, %v3289_v50 }
 0x578   : >> { %v3240_v25 = vadd.f32 %v3238_v47, %v3222_v53  ;;  %v3246_v42 = vadd.f32 %v3244_v7, %v3228_v33  ;;  %v3279_v26 = vadd.f32 %v8541_v30, %v3267_v61  ;;  %v3285_v55 = vadd.f32 %v8554_v13, %v3273_v27  ;;  %v3414_v27 = vpop.permute.xlu0 %3413 }
 0x579   : >> { %v3319_v1 = vsel %vm1184_vm3, %v3317_v44, %v3318_v43  ;;  %v3347_v47 = vrot.slane %v3313_v28, 1  ;;  %v3325_v60 = vmul.f32 %v3324_v38, %v3322_v46  ;;  %v3331_v30 = vmul.f32 %v3330_v15, %v3322_v46 }
 0x57a   : >> { %v3268_v12 = vadd.f32 %v3266_v22, %v3240_v25  ;;  %v3274_v52 = vadd.f32 %v3272_v56, %v3246_v42  ;;  %v3297_v39 = vadd.f32 %v3295_v63, %v3279_v26  ;;  %v3303_v7 = vadd.f32 %v3301_v21, %v3285_v55 }
 0x57b   : >> { %v3296_v54 = vmul.f32 %v3294_v41, %v3292_v40  ;;  %v3302_v9 = vmul.f32 %v3300_v23, %v3292_v40  ;;  %v3326_v36 = vmul.f32 %v3324_v38, %v3319_v1  ;;  %v3332_v16 = vmul.f32 %v3330_v15, %v3319_v1 }
 0x57c   : >> { %v3280_v13 = vadd.f32 %v3278_v10, %v3268_v12  ;;  %v3286_v2 = vadd.f32 %v3284_v34, %v3274_v52  ;;  %v3327_v6 = vadd.f32 %v3325_v60, %v3297_v39  ;;  %v3333_v32 = vadd.f32 %v3331_v30, %v3303_v7 }
 0x57d   : >> { %v3338_v41 = vmul.f32 %v3336_v18, %v8629_v37  ;;  %v3344_v23 = vmul.f32 %v3342_v17, %v8629_v37  ;;  %v3349_v49 = vsel %vm1287_vm2, %v3347_v47, %v3348_v3  ;;  %v3365_v8 = vrot.slane %v8145_v24, 7 }
 0x57e   : >> { %v3298_v57 = vadd.f32 %v3296_v54, %v3280_v13  ;;  %v3304_v14 = vadd.f32 %v3302_v9, %v3286_v2  ;;  %v3339_v15 = vadd.f32 %v3337_v51, %v3327_v6  ;;  %v3345_v43 = vadd.f32 %v3343_v62, %v3333_v32 }
 0x57f   : >> { %v3356_v19 = vmul.f32 %v10135_v5, %v3352_v45  ;;  %v3367_v31 = vsel %vm1184_vm3, %v3365_v8, %v3366_v48  ;;  %v10136_v4 = vmov %v10135_v5  ;;  %v10137_v44 = vstv %s8504_s6  ;;  %s8766_s6 = sld [smem:[#allocation6 + $0x8d]] }
 0x580   : >> { %v3328_v38 = vadd.f32 %v3326_v36, %v3298_v57  ;;  %v3334_v28 = vadd.f32 %v3332_v16, %v3304_v14  ;;  %v3355_v17 = vmul.f32 %v10136_v4, %v3349_v49  ;;  %v3361_v37 = vmul.f32 %v10137_v44, %v3349_v49  ;;  %v3416_v50 = vpop.permute.xlu1 %3415 }
 0x581   : >> { %v10138_v3 = vmov %v10137_v44  ;;  %v3372_v35 = vstv %s8669_s17  ;;  %v3378_v58 = vstv %s8672_s3  ;;  %v3370_v53 = vsel %vm1184_vm3, 0.0, %v3365_v8  ;;  %s10146_s17 = smov 16   ;;  %s10173_s3 = smov 64  }
 0x582   : >> { %v3340_v18 = vadd.f32 %v3338_v41, %v3328_v38  ;;  %v3346_v0 = vadd.f32 %v3344_v23, %v3334_v28  ;;  %v3362_v10 = vmul.f32 %v10138_v3, %v3352_v45  ;;  %v3357_v33 = vadd.f32 %v3355_v17, %v3339_v15 }
 0x583   : >> { %v3363_v34 = vadd.f32 %v3361_v37, %v3345_v43  ;;  %v3374_v56 = vmul.f32 %v3372_v35, %v3367_v31  ;;  %v3384_v61 = vstv %s8684_s30  ;;  %v3373_v25 = vmul.f32 %v3372_v35, %v3370_v53  ;;  %s10174_s30 = smov 32  }
 0x584   : >> { %v3358_v48 = vadd.f32 %v3356_v19, %v3340_v18  ;;  %v3364_v22 = vadd.f32 %v3362_v10, %v3346_v0  ;;  %v3379_v42 = vmul.f32 %v3378_v58, %v3370_v53  ;;  %v3390_v40 = vstv %s8688_s25  ;;  %s10175_s25 = smov 80  }
 0x585   : >> { %v3396_v45 = vrot.slane %v8251_v29, 1  ;;  %v3380_v46 = vmul.f32 %v3378_v58, %v3367_v31  ;;  %v3420_v21 = vsel %vm1504_vm5, %v3416_v50, 0.0  ;;  %v3375_v26 = vadd.f32 %v3373_v25, %v3357_v33 }
 0x586   : >> { %v3376_v63 = vadd.f32 %v3374_v56, %v3358_v48  ;;  %v3381_v55 = vadd.f32 %v3379_v42, %v3363_v34  ;;  %v3395_v12 = vrot.slane %v8145_v24, 1  ;;  %v3419_v52 = vsel %vm1504_vm5, %v3414_v27, 0.0 }
 0x587   : >> { %v3385_v1 = vmul.f32 %v3384_v61, %v8145_v24  ;;  %v3391_v47 = vmul.f32 %v3390_v40, %v8145_v24  ;;  %v3382_v39 = vadd.f32 %v3380_v46, %v3364_v22  ;;  %v3386_v7 = vmul.f32 %v3384_v61, %v8251_v29 }
 0x588   : >> { %v3397_v60 = vsel %vm1287_vm2, %v3395_v12, %v3396_v45  ;;  %v3402_v30 = vstv %s8707_s2  ;;  %v3400_v13 = vsel %vm1287_vm2, %v3396_v45, 0.0  ;;  %v3424_v2 = vrot.slane %v3420_v21, 7  ;;  %s10176_s2 = smov 96  }
 0x589   : >> { %v3408_v54 = vstv %s8714_s1  ;;  %v3423_v9 = vrot.slane %v3419_v52, 7  ;;  %v3388_v6 = vadd.f32 %v3386_v7, %v3376_v63  ;;  %v3392_v24 = vmul.f32 %v3390_v40, %v8251_v29  ;;  %s10177_s1 = smov 48  }
 0x58a   : >> { %v3387_v32 = vadd.f32 %v3385_v1, %v3375_v26  ;;  %v3393_v51 = vadd.f32 %v3391_v47, %v3381_v55  ;;  %v3404_v57 = vmul.f32 %v3402_v30, %v3400_v13  ;;  %v3403_v14 = vmul.f32 %v3402_v30, %v3397_v60 }
 0x58b   : >> { %v3394_v62 = vadd.f32 %v3392_v24, %v3382_v39  ;;  %v3409_v36 = vmul.f32 %v3408_v54, %v3397_v60  ;;  %v3430_v16 = vstv %s8719_s10  ;;  %v3425_v41 = vsel %vm1184_vm3, %v3423_v9, %v3424_v2  ;;  %v3476_v10 = vpop.permute.xlu0 %3475  ;;  %s10179_s10 = sld [smem:[#allocation31_spill]] }
 0x58c   : >> { %v3436_v23 = vstv %s8721_s11  ;;  %v3428_v49 = vsel %vm1184_vm3, 0.0, %v3423_v9  ;;  %v3406_v8 = vadd.f32 %v3404_v57, %v3388_v6  ;;  %v3410_v29 = vmul.f32 %v3408_v54, %v3400_v13 }
 0x58d   : >> { %v3405_v38 = vadd.f32 %v3403_v14, %v3387_v32  ;;  %v3411_v28 = vadd.f32 %v3409_v36, %v3393_v51  ;;  %v3432_v43 = vmul.f32 %v3430_v16, %v3425_v41  ;;  %v3454_v5 = vrot.slane %v3420_v21, 1 }
 0x58e   : >> { %v3412_v15 = vadd.f32 %v3410_v29, %v3394_v62  ;;  %v3442_v19 = vstv %s8731_s19  ;;  %v3431_v31 = vmul.f32 %v3430_v16, %v3428_v49  ;;  %v3437_v18 = vmul.f32 %v3436_v23, %v3428_v49  ;;  %v3474_v45 = vpop.permute.xlu2 %3473 }
 0x58f   : >> { %v3448_v0 = vstv %s8735_s0  ;;  %v3453_v4 = vrot.slane %v3419_v52, 1  ;;  %v3434_v17 = vadd.f32 %v3432_v43, %v3406_v8  ;;  %v3438_v44 = vmul.f32 %v3436_v23, %v3425_v41 }
 0x590   : >> { %v3433_v37 = vadd.f32 %v3431_v31, %v3405_v38  ;;  %v3439_v3 = vadd.f32 %v3437_v18, %v3411_v28  ;;  %v3460_v35 = vstv %s8738_s28  ;;  %v3444_v53 = vmul.f32 %v3442_v19, %v3420_v21 }
 0x591   : >> { %v3440_v58 = vadd.f32 %v3438_v44, %v3412_v15  ;;  %v3455_v33 = vsel %vm1287_vm2, %v3453_v4, %v3454_v5  ;;  %v3443_v48 = vmul.f32 %v3442_v19, %v3419_v52  ;;  %v3449_v34 = vmul.f32 %v3448_v0, %v3419_v52 }
 0x592   : >> { %v3466_v50 = vstv %s8741_s4  ;;  %v3458_v22 = vsel %vm1287_vm2, %v3454_v5, 0.0  ;;  %v3446_v56 = vadd.f32 %v3444_v53, %v3434_v17  ;;  %v3450_v61 = vmul.f32 %v3448_v0, %v3420_v21 }
 0x593   : >> { %v3480_v27 = vsel %vm1179_vm4, 0.0, %v3476_v10  ;;  %v3445_v25 = vadd.f32 %v3443_v48, %v3433_v37  ;;  %v3451_v42 = vadd.f32 %v3449_v34, %v3439_v3  ;;  %v3461_v40 = vmul.f32 %v3460_v35, %v3455_v33 }
 0x594   : >> { %v3452_v46 = vadd.f32 %v3450_v61, %v3440_v58  ;;  %v3462_v63 = vmul.f32 %v3460_v35, %v3458_v22  ;;  %v3467_v26 = vmul.f32 %v3466_v50, %v3455_v33  ;;  %v3479_v55 = vsel %vm1179_vm4, 0.0, %v3474_v45 }
 0x595   : >> { %v3484_v12 = vrot.slane %v3480_v27, 7  ;;  %v3490_v52 = vstv %s8746_s26  ;;  %v3496_v1 = vstv %s8749_s23  ;;  %v3483_v21 = vrot.slane %v3479_v55, 7 }
 0x596   : >> { %v3464_v47 = vadd.f32 %v3462_v63, %v3446_v56  ;;  %v3468_v39 = vmul.f32 %v3466_v50, %v3458_v22  ;;  %v3463_v7 = vadd.f32 %v3461_v40, %v3445_v25  ;;  %v3469_v60 = vadd.f32 %v3467_v26, %v3451_v42 }
 0x597   : >> { %v3485_v30 = vsel %vm1184_vm3, %v3483_v21, %v3484_v12  ;;  %v3488_v13 = vsel %vm1184_vm3, 0.0, %v3483_v21  ;;  %v3502_v32 = vstv %s8756_s9  ;;  %v3514_v51 = vrot.slane %v3480_v27, 1 }
 0x598   : >> { %v3491_v2 = vmul.f32 %v3490_v52, %v3488_v13  ;;  %v3492_v54 = vmul.f32 %v3490_v52, %v3485_v30  ;;  %v3497_v9 = vmul.f32 %v3496_v1, %v3488_v13  ;;  %v3498_v6 = vmul.f32 %v3496_v1, %v3485_v30 }
 0x599   : >> { %v3470_v24 = vadd.f32 %v3468_v39, %v3452_v46  ;;  %v3513_v62 = vrot.slane %v3479_v55, 1  ;;  %v3508_v57 = vstv %s8758_s24  ;;  %v3520_v23 = vstv %s8761_s20 }
 0x59a   : >> { %v3493_v14 = vadd.f32 %v3491_v2, %v3463_v7  ;;  %v3494_v36 = vadd.f32 %v3492_v54, %v3464_v47  ;;  %v3499_v16 = vadd.f32 %v3497_v9, %v3469_v60  ;;  %v3504_v49 = vmul.f32 %v3502_v32, %v3480_v27 }
 0x59b   : >> { %v3500_v41 = vadd.f32 %v3498_v6, %v3470_v24  ;;  %v3503_v8 = vmul.f32 %v3502_v32, %v3479_v55  ;;  %v3509_v29 = vmul.f32 %v3508_v57, %v3479_v55  ;;  %v3510_v38 = vmul.f32 %v3508_v57, %v3480_v27  ;;  %v3582_v27 = vpop.permute.xlu2 %3581 }
 0x59c   : >> { %v3518_v28 = vsel %vm1287_vm2, %v3514_v51, 0.0  ;;  %v3531_v15 = vrot.slane %v8378_v20, 7  ;;  %v3515_v43 = vsel %vm1287_vm2, %v3513_v62, %v3514_v51  ;;  %v3526_v5 = vstv %s8766_s6 }
 0x59d   : >> { %v3505_v19 = vadd.f32 %v3503_v8, %v3493_v14  ;;  %v3506_v31 = vadd.f32 %v3504_v49, %v3494_v36  ;;  %v3511_v18 = vadd.f32 %v3509_v29, %v3499_v16  ;;  %v3512_v0 = vadd.f32 %v3510_v38, %v3500_v41 }
 0x59e   : >> { %v3532_v4 = vrot.slane %v8308_v59, 7  ;;  %v3522_v17 = vmul.f32 %v3520_v23, %v3518_v28  ;;  %v3538_v44 = vstv %s8770_s5  ;;  %v3521_v37 = vmul.f32 %v3520_v23, %v3515_v43 }
 0x59f   : >> { %v3527_v3 = vmul.f32 %v3526_v5, %v3515_v43  ;;  %v3528_v10 = vmul.f32 %v3526_v5, %v3518_v28  ;;  %v3536_v35 = vsel %vm1184_vm3, 0.0, %v3531_v15  ;;  %v3544_v58 = vstv %s8773_s12 }
 0x5a0   : >> { %v3533_v53 = vsel %vm1184_vm3, %v3531_v15, %v3532_v4  ;;  %v3523_v33 = vadd.f32 %v3521_v37, %v3505_v19  ;;  %v3524_v48 = vadd.f32 %v3522_v17, %v3506_v31  ;;  %v3539_v22 = vmul.f32 %v3538_v44, %v3536_v35 }
 0x5a1   : >> { %v3529_v34 = vadd.f32 %v3527_v3, %v3511_v18  ;;  %v3530_v50 = vadd.f32 %v3528_v10, %v3512_v0  ;;  %v3545_v56 = vmul.f32 %v3544_v58, %v3536_v35  ;;  %v3540_v61 = vmul.f32 %v3538_v44, %v3533_v53 }
 0x5a2   : >> { %v3561_v25 = vrot.slane %v8378_v20, 1  ;;  %v3608_v42 = vstv %s8776_s29  ;;  %v3550_v40 = vstv %s8784_s27  ;;  %v3562_v45 = vrot.slane %v8308_v59, 1 }
 0x5a3   : >> { %v3546_v46 = vmul.f32 %v3544_v58, %v3533_v53  ;;  %v3541_v63 = vadd.f32 %v3539_v22, %v3523_v33  ;;  %v3542_v26 = vadd.f32 %v3540_v61, %v3524_v48  ;;  %v3547_v55 = vadd.f32 %v3545_v56, %v3529_v34 }
 0x5a4   : >> { %v3556_v12 = vstv %s8787_s15  ;;  %v3614_v52 = vstv %s8779_s14  ;;  %v3586_v1 = vsel %vm1504_vm5, %v3582_v27, 0.0  ;;  %v3551_v21 = vmul.f32 %v3550_v40, %v8378_v20 }
 0x5a5   : >> { %v3548_v47 = vadd.f32 %v3546_v46, %v3530_v50  ;;  %v3557_v39 = vmul.f32 %v3556_v12, %v8378_v20  ;;  %v3568_v7 = vstv %s8790_s21  ;;  %v3552_v60 = vmul.f32 %v3550_v40, %v8308_v59 }
 0x5a6   : >> { %v3563_v30 = vsel %vm1287_vm2, %v3561_v25, %v3562_v45  ;;  %v3574_v13 = vstv %s8793_s22  ;;  %v3596_v2 = vstv %s8798_s18  ;;  %v3566_v54 = vsel %vm1287_vm2, %v3562_v45, 0.0  ;;  %v3580_v57 = vpop.permute.xlu1 %3579 }
 0x5a7   : >> { %v3558_v9 = vmul.f32 %v3556_v12, %v8308_v59  ;;  %v3620_v6 = vrot.slane %v3586_v1, 1  ;;  %v3553_v24 = vadd.f32 %v3551_v21, %v3541_v63  ;;  %v3554_v32 = vadd.f32 %v3552_v60, %v3542_v26  ;;  %v3640_v12 = vpop.permute.xlu0 %3639 }
 0x5a8   : >> { %v3559_v51 = vadd.f32 %v3557_v39, %v3547_v55  ;;  %v3602_v62 = vstv %s8800_s8  ;;  %v3569_v14 = vmul.f32 %v3568_v7, %v3563_v30  ;;  %v3626_v20 = vstv %s8802_s16 }
 0x5a9   : >> { %v3560_v36 = vadd.f32 %v3558_v9, %v3548_v47  ;;  %v3570_v16 = vmul.f32 %v3568_v7, %v3566_v54  ;;  %v3575_v41 = vmul.f32 %v3574_v13, %v3563_v30  ;;  %v3585_v23 = vsel %vm1504_vm5, %v3580_v57, 0.0  ;;  %v10140_v7 = vld [vmem:[#allocation60_spill] sm:$0xff]  ;;  %v10141_v30 = vld [vmem:[#allocation37_spill] sm:$0xff]  ;;  %v10143_v9 = vld [vmem:[#allocation38_spill] sm:$0xff] }
 0x5aa   : >> { %v3632_v49 = vstv %s8805_s13  ;;  %v3590_v8 = vrot.slane %v3586_v1, 7  ;;  %v3589_v29 = vrot.slane %v3585_v23, 7  ;;  %v3619_v38 = vrot.slane %v3585_v23, 1 }
 0x5ab   : >> { %v3576_v28 = vmul.f32 %v3574_v13, %v3566_v54  ;;  %v3571_v15 = vadd.f32 %v3569_v14, %v3553_v24  ;;  %v3572_v59 = vadd.f32 %v3570_v16, %v3554_v32  ;;  %v3577_v43 = vadd.f32 %v3575_v41, %v3559_v51  ;;  %v10145_v32 = vld [vmem:[#allocation36_spill] sm:$0xff] }
 0x5ac   : >> { %v3624_v5 = vsel %vm1287_vm2, %v3620_v6, 0.0  ;;  %v3591_v19 = vsel %vm1184_vm3, %v3589_v29, %v3590_v8  ;;  %v3594_v31 = vsel %vm1184_vm3, 0.0, %v3589_v29  ;;  %v3621_v0 = vsel %vm1287_vm2, %v3619_v38, %v3620_v6  ;;  %v10144_v6 = vld [vmem:[#allocation59_spill] sm:$0xff]  ;;  %v10148_v16 = vld [vmem:[#allocation40_spill] sm:$0xff]  ;;  %v10151_v38 = vld [vmem:[#allocation70_spill] sm:$0xff] }
 0x5ad   : >> { %v3578_v18 = vadd.f32 %v3576_v28, %v3560_v36  ;;  %v3597_v4 = vmul.f32 %v3596_v2, %v3594_v31  ;;  %v3598_v17 = vmul.f32 %v3596_v2, %v3591_v19  ;;  %v3603_v44 = vmul.f32 %v3602_v62, %v3594_v31  ;;  %v10142_v2 = vld [vmem:[#allocation68_spill] sm:$0xff]  ;;  %v10150_v8 = vld [vmem:[#allocation46_spill] sm:$0xff] }
 0x5ae   : >> { %v3604_v37 = vmul.f32 %v3602_v62, %v3591_v19  ;;  %v3610_v3 = vmul.f32 %v3608_v42, %v3586_v1  ;;  %v3616_v10 = vmul.f32 %v3614_v52, %v3586_v1  ;;  %v3609_v35 = vmul.f32 %v3608_v42, %v3585_v23  ;;  %v3642_v1 = vpop.permute.xlu1 %3641  ;;  %v10153_v31 = vld [vmem:[#allocation63_spill] sm:$0xff] }
 0x5af   : >> { %v3615_v58 = vmul.f32 %v3614_v52, %v3585_v23  ;;  %v3599_v53 = vadd.f32 %v3597_v4, %v3571_v15  ;;  %v3600_v33 = vadd.f32 %v3598_v17, %v3572_v59  ;;  %v3605_v48 = vadd.f32 %v3603_v44, %v3577_v43  ;;  %v10139_v52 = vld [vmem:[#allocation76_spill] sm:$0xff]  ;;  %v10149_v23 = vld [vmem:[#allocation62_spill] sm:$0xff] }
 0x5b0   : >> { %v3606_v34 = vadd.f32 %v3604_v37, %v3578_v18  ;;  %v3627_v50 = vmul.f32 %v3626_v20, %v3621_v0  ;;  %v3628_v22 = vmul.f32 %v3626_v20, %v3624_v5  ;;  %v3633_v56 = vmul.f32 %v3632_v49, %v3621_v0  ;;  %v10147_v20 = vld [vmem:[#allocation65_spill] sm:$0xff]  ;;  %v10152_v15 = vld [vmem:[#allocation39_spill] sm:$0xff]  ;;  %v10155_v17 = vld [vmem:[#allocation66_spill] sm:$0xff] }
 0x5b1   : >> { %v3634_v61 = vmul.f32 %v3632_v49, %v3624_v5  ;;  %v3611_v27 = vadd.f32 %v3609_v35, %v3599_v53  ;;  %v3617_v25 = vadd.f32 %v3615_v58, %v3605_v48  ;;  %v3612_v40 = vadd.f32 %v3610_v3, %v3600_v33  ;;  %v10154_v0 = vld [vmem:[#allocation47_spill] sm:$0xff]  ;;  %v10156_v37 = vld [vmem:[#allocation42_spill] sm:$0xff]  ;;  %v10158_v58 = vld [vmem:[#allocation41_spill] sm:$0xff] }
 0x5b2   : >> { %v3618_v45 = vadd.f32 %v3616_v10, %v3606_v34  ;;  %v10157_v10 = vld [vmem:[#allocation61_spill] sm:$0xff] }
 0x5b3   : >> { %v3629_v46 = vadd.f32 %v3627_v50, %v3611_v27  ;;  %v3630_v63 = vadd.f32 %v3628_v22, %v3612_v40  ;;  %v3635_v26 = vadd.f32 %v3633_v56, %v3617_v25  ;;  %v10159_v50 = vld [vmem:[#allocation67_spill] sm:$0xff]  ;;  %v10160_v56 = vld [vmem:[#allocation43_spill] sm:$0xff]  ;;  %v10162_v40 = vld [vmem:[#allocation49_spill] sm:$0xff] }
 0x5b4   : >> { %v3636_v55 = vadd.f32 %v3634_v61, %v3618_v45  ;;  %v10161_v27 = vld [vmem:[#allocation71_spill] sm:$0xff] }
 0x5b5   : >> { %v8831_v42 = vadd.f32 %v3629_v46, %v10106_v11  ;;  %v8834_v21 = vadd.f32 %v3630_v63, %v10139_v52  ;;  %v8836_v47 = vadd.f32 %v3640_v12, %v3635_v26  ;;  %v10163_v46 = vld [vmem:[#allocation69_spill] sm:$0xff] }
 0x5b6   : >> { %v8838_v39 = vadd.f32 %v3642_v1, %v3636_v55  ;;  %v10164_v26 = vld [vmem:[#allocation48_spill] sm:$0xff] }
 0x5b7   : >> { %v3654_v60 = vmul.f32 %v8834_v21, %v10140_v7  ;;  %v3665_v54 = vmul.f32 %v8831_v42, %v10142_v2  ;;  %v3667_v11 = vmul.f32 %v8836_v47, %v10143_v9  ;;  %v3653_v24 = vmul.f32 %v8831_v42, %v10144_v6 }
 0x5b8   : >> { %v3656_v13 = vmul.f32 %v8838_v39, %v10141_v30  ;;  %v3655_v51 = vmul.f32 %v8836_v47, %v10145_v32  ;;  %v3677_v36 = vmul.f32 %v8831_v42, %v10147_v20  ;;  %v3679_v41 = vmul.f32 %v8836_v47, %v10148_v16 }
 0x5b9   : >> { %v3669_v57 = vadd.f32 %v3667_v11, %v3665_v54  ;;  %v3713_v49 = vmul.f32 %v8831_v42, %v10149_v23  ;;  %v3715_v29 = vmul.f32 %v8836_v47, %v10150_v8  ;;  %v3666_v28 = vmul.f32 %v8834_v21, %v10151_v38  ;;  %v10166_v54 = vld [vmem:[#allocation50_spill] sm:$0xff] }
 0x5ba   : >> { %v3658_v62 = vadd.f32 %v3656_v13, %v3654_v60  ;;  %v3657_v14 = vadd.f32 %v3655_v51, %v3653_v24  ;;  %v3668_v59 = vmul.f32 %v8838_v39, %v10152_v15  ;;  %v3681_v43 = vadd.f32 %v3679_v41, %v3677_v36  ;;  %v10165_v60 = vld [vmem:[#allocation74_spill] sm:$0xff]  ;;  %v10167_v24 = vld [vmem:[#allocation73_spill] sm:$0xff] }
 0x5bb   : >> { %3763 = vrot.lane.b32.xlu1 %v3669_v57, %s10146_s17  ;;  %v3717_v5 = vadd.f32 %v3715_v29, %v3713_v49  ;;  %v3714_v18 = vmul.f32 %v8834_v21, %v10153_v31  ;;  %v3716_v4 = vmul.f32 %v8838_v39, %v10154_v0  ;;  %v3689_v44 = vmul.f32 %v8831_v42, %v10155_v17  ;;  %v10170_v41 = vld [vmem:[#allocation44_spill] sm:$0xff] }
 0x5bc   : >> { %3761 = vrot.lane.b32.xlu0 %v3658_v62, %s10146_s17  ;;  %3759 = vrot.lane.b32.xlu2 %v3657_v14, %s10146_s17  ;;  %v3670_v19 = vadd.f32 %v3668_v59, %v3666_v28  ;;  %v3691_v3 = vmul.f32 %v8836_v47, %v10156_v37  ;;  %v3678_v35 = vmul.f32 %v8834_v21, %v10157_v10  ;;  %v10168_v62 = vld [vmem:[#allocation45_spill] sm:$0xff]  ;;  %v10169_v14 = vld [vmem:[#allocation72_spill] sm:$0xff] }
 0x5bd   : >> { %v3680_v53 = vmul.f32 %v8838_v39, %v10158_v58  ;;  %v3718_v33 = vadd.f32 %v3716_v4, %v3714_v18  ;;  %v3690_v22 = vmul.f32 %v8834_v21, %v10159_v50  ;;  %v3692_v61 = vmul.f32 %v8838_v39, %v10160_v56 }
 0x5be   : >> { %v3693_v48 = vadd.f32 %v3691_v3, %v3689_v44  ;;  %v3726_v25 = vmul.f32 %v8834_v21, %v10161_v27  ;;  %v3728_v45 = vmul.f32 %v8838_v39, %v10162_v40  ;;  %v3725_v63 = vmul.f32 %v8831_v42, %v10163_v46 }
 0x5bf   : >> { %v3682_v34 = vadd.f32 %v3680_v53, %v3678_v35  ;;  %v3727_v55 = vmul.f32 %v8836_v47, %v10164_v26  ;;  %v3694_v12 = vadd.f32 %v3692_v61, %v3690_v22  ;;  %v3737_v13 = vmul.f32 %v8831_v42, %v10165_v60 }
 0x5c0   : >> { %v3730_v1 = vadd.f32 %v3728_v45, %v3726_v25  ;;  %v3739_v11 = vmul.f32 %v8836_v47, %v10166_v54  ;;  %v3702_v51 = vmul.f32 %v8834_v21, %v10167_v24  ;;  %v3704_v57 = vmul.f32 %v8838_v39, %v10168_v62 }
 0x5c1   : >> { %v3729_v52 = vadd.f32 %v3727_v55, %v3725_v63  ;;  %v3701_v36 = vmul.f32 %v8831_v42, %v10169_v14  ;;  %v3703_v49 = vmul.f32 %v8836_v47, %v10170_v41  ;;  %v3647_v44 = vmul.f32 %v8831_v42, %v10145_v32 }
 0x5c2   : >> { %v3741_v29 = vadd.f32 %v3739_v11, %v3737_v13  ;;  %v3706_v28 = vadd.f32 %v3704_v57, %v3702_v51  ;;  %v3649_v3 = vmul.f32 %v8836_v47, %v10144_v6  ;;  %v3659_v6 = vmul.f32 %v8831_v42, %v10143_v9 }
 0x5c3   : >> { %3779 = vrot.lane.b32.xlu1 %v3717_v5, %s10146_s17  ;;  %v3705_v59 = vadd.f32 %v3703_v49, %v3701_v36  ;;  %v3661_v63 = vmul.f32 %v8836_v47, %v10142_v2  ;;  %v3660_v2 = vmul.f32 %v8834_v21, %v10152_v15  ;;  %v3662_v9 = vmul.f32 %v8838_v39, %v10151_v38 }
 0x5c4   : >> { %3767 = vrot.lane.b32.xlu0 %v3681_v43, %s10146_s17  ;;  %3765 = vrot.lane.b32.xlu2 %v3670_v19, %s10146_s17  ;;  %v10171_v43 = vld [vmem:[#allocation64_spill] sm:$0xff]  ;;  %v3651_v35 = vsub.f32 %v3647_v44, %v3649_v3  ;;  %v3671_v38 = vmul.f32 %v8831_v42, %v10148_v16  ;;  %v3673_v15 = vmul.f32 %v8836_v47, %v10147_v20 }
 0x5c5   : >> { %v3738_v5 = vmul.f32 %v8834_v21, %v10171_v43  ;;  %v10172_v19 = vld [vmem:[#allocation51_spill] sm:$0xff]  ;;  %v3663_v55 = vsub.f32 %v3659_v6, %v3661_v63  ;;  %v3664_v57 = vsub.f32 %v3660_v2, %v3662_v9  ;;  %v3672_v20 = vmul.f32 %v8834_v21, %v10158_v58 }
 0x5c6   : >> { %v3740_v18 = vmul.f32 %v8838_v39, %v10172_v19  ;;  %v3674_v16 = vmul.f32 %v8838_v39, %v10157_v10  ;;  %v3683_v10 = vmul.f32 %v8831_v42, %v10156_v37  ;;  %v3685_v58 = vmul.f32 %v8836_v47, %v10155_v17 }
 0x5c7   : >> { %v3684_v17 = vmul.f32 %v8834_v21, %v10160_v56  ;;  %v3686_v37 = vmul.f32 %v8838_v39, %v10159_v50  ;;  %v3695_v50 = vmul.f32 %v8831_v42, %v10170_v41  ;;  %v3697_v56 = vmul.f32 %v8836_v47, %v10169_v14 }
 0x5c8   : >> { %v3742_v4 = vadd.f32 %v3740_v18, %v3738_v5  ;;  %v3675_v18 = vsub.f32 %v3671_v38, %v3673_v15 }
 0x5cb   : >> { %3771 = vrot.lane.b32.xlu1 %v3693_v48, %s10146_s17  ;;  %v3648_v48 = vmul.f32 %v8834_v21, %v10141_v30  ;;  %v3707_v30 = vmul.f32 %v8831_v42, %v10150_v8  ;;  %v3710_v8 = vmul.f32 %v8838_v39, %v10153_v31  ;;  %v3719_v31 = vmul.f32 %v8831_v42, %v10164_v26 }
 0x5cc   : >> { %3781 = vrot.lane.b32.xlu0 %v3718_v33, %s10146_s17  ;;  %3769 = vrot.lane.b32.xlu2 %v3682_v34, %s10146_s17  ;;  %v3650_v34 = vmul.f32 %v8838_v39, %v10140_v7  ;;  %v3709_v7 = vmul.f32 %v8836_v47, %v10149_v23  ;;  %v3708_v23 = vmul.f32 %v8834_v21, %v10154_v0 }
 0x5cd   : >> { %v3721_v0 = vmul.f32 %v8836_v47, %v10163_v46  ;;  %v3720_v46 = vmul.f32 %v8834_v21, %v10162_v40  ;;  %v3722_v26 = vmul.f32 %v8838_v39, %v10161_v27  ;;  %v3731_v27 = vmul.f32 %v8831_v42, %v10166_v54 }
 0x5ce   : >> { %v3652_v22 = vsub.f32 %v3648_v48, %v3650_v34  ;;  %v3712_v36 = vsub.f32 %v3708_v23, %v3710_v8  ;;  %v3733_v40 = vmul.f32 %v8836_v47, %v10165_v60  ;;  %v3732_v60 = vmul.f32 %v8834_v21, %v10172_v19 }
 0x5cf   : >> { %v3724_v48 = vsub.f32 %v3720_v46, %v3722_v26  ;;  %v3734_v54 = vmul.f32 %v8838_v39, %v10171_v43  ;;  %v3699_v19 = vsub.f32 %v3695_v50, %v3697_v56 }
 0x5d3   : >> { %3785 = vrot.lane.b32.xlu1 %v3730_v1, %s10146_s17 }
 0x5d4   : >> { %3773 = vrot.lane.b32.xlu0 %v3694_v12, %s10146_s17  ;;  %3783 = vrot.lane.b32.xlu2 %v3729_v52, %s10146_s17  ;;  %v3711_v12 = vsub.f32 %v3707_v30, %v3709_v7  ;;  %v3688_v7 = vsub.f32 %v3684_v17, %v3686_v37 }
 0x5db   : >> { %3777 = vrot.lane.b32.xlu1 %v3706_v28, %s10146_s17 }
 0x5dc   : >> { %3787 = vrot.lane.b32.xlu0 %v3741_v29, %s10146_s17  ;;  %3775 = vrot.lane.b32.xlu2 %v3705_v59, %s10146_s17 }
 0x5e4   : >> { %3789 = vrot.lane.b32.xlu2 %v3742_v4, %s10146_s17  ;;  %v3723_v4 = vsub.f32 %v3719_v31, %v3721_v0 }
 0x616   : >> { %v3760_v53 = vpop.permute.xlu2 %3759 }
 0x617   : >> { %v3807_v33 = vsel %vm669_vm1, %v3651_v35, %v3760_v53 }
 0x618   : >> { %4592 = vmatmul.msk.f32.vlgmr.msra.gmra.mxu2 %vm509_vm0, %v3807_v33  ;;  %v3676_v33 = vsub.f32 %v3672_v20, %v3674_v16 }
 0x61e   : >> { %v3766_v45 = vpop.permute.xlu2 %3765 }
 0x61f   : >> { %v3810_v29 = vsel %vm669_vm1, %v3664_v57, %v3766_v45  ;;  %v3735_v45 = vsub.f32 %v3731_v27, %v3733_v40 }
 0x626   : >> { %v3770_v51 = vpop.permute.xlu2 %3769 }
 0x627   : >> { %v3812_v34 = vsel %vm669_vm1, %v3676_v33, %v3770_v51 }
 0x62d   : >> { %v3764_v61 = vpop.permute.xlu1 %3763 }
 0x62e   : >> { %v3762_v25 = vpop.permute.xlu0 %3761  ;;  %v3809_v13 = vsel %vm669_vm1, %v3663_v55, %v3764_v61  ;;  %v3784_v5 = vpop.permute.xlu2 %3783  ;;  %v3736_v55 = vsub.f32 %v3732_v60, %v3734_v54 }
 0x62f   : >> { %v3808_v32 = vsel %vm669_vm1, %v3652_v22, %v3762_v25  ;;  %v3819_v3 = vsel %vm669_vm1, %v3723_v4, %v3784_v5 }
 0x630   : >> { %4593 = vmatmul.msk.f32.gmra.mxu2 %vm509_vm0, %v3808_v32  ;;  %v3687_v32 = vsub.f32 %v3683_v10, %v3685_v58 }
 0x635   : >> { %v3780_v1 = vpop.permute.xlu1 %3779 }
 0x636   : >> { %v3768_v52 = vpop.permute.xlu0 %3767  ;;  %v3817_v11 = vsel %vm669_vm1, %v3711_v12, %v3780_v1  ;;  %v3776_v61 = vpop.permute.xlu2 %3775 }
 0x637   : >> { %4602 = vmatmul.msk.f32.vlgmr.msra.gmra.mxu3 %vm509_vm0, %v3817_v11  ;;  %v3811_v44 = vsel %vm669_vm1, %v3675_v18, %v3768_v52  ;;  %v3815_v43 = vsel %vm669_vm1, %v3699_v19, %v3776_v61  ;;  %v3696_v52 = vmul.f32 %v8834_v21, %v10168_v62 }
 0x638   : >> { %4594 = vmatmul.msk.f32.gmra.mxu2 %vm509_vm0, %v3809_v13  ;;  %v3698_v13 = vmul.f32 %v8838_v39, %v10167_v24 }
 0x63a   : >> { %v3700_v2 = vsub.f32 %v3696_v52, %v3698_v13 }
 0x63d   : >> { %v3772_v59 = vpop.permute.xlu1 %3771 }
 0x63e   : >> { %v3782_v49 = vpop.permute.xlu0 %3781  ;;  %v3813_v6 = vsel %vm669_vm1, %v3687_v32, %v3772_v59  ;;  %v3790_v30 = vpop.permute.xlu2 %3789 }
 0x63f   : >> { %v3818_v28 = vsel %vm669_vm1, %v3712_v36, %v3782_v49  ;;  %v3822_v1 = vsel %vm669_vm1, %v3736_v55, %v3790_v30 }
 0x640   : >> { %4595 = vmatmul.msk.f32.gmra.mxu2 %vm509_vm0, %v3810_v29  ;;  %4603 = vmatmul.msk.f32.gmra.mxu3 %vm509_vm0, %v3818_v28 }
 0x645   : >> { %v3786_v53 = vpop.permute.xlu1 %3785 }
 0x646   : >> { %v3774_v35 = vpop.permute.xlu0 %3773  ;;  %v3820_v22 = vsel %vm669_vm1, %v3724_v48, %v3786_v53 }
 0x647   : >> { %v3814_v12 = vsel %vm669_vm1, %v3688_v7, %v3774_v35 }
 0x648   : >> { %4596 = vmatmul.msk.f32.gmra.mxu2 %vm509_vm0, %v3811_v44  ;;  %4604 = vmatmul.msk.f32.gmra.mxu3 %vm509_vm0, %v3819_v3 }
 0x64d   : >> { %v3778_v11 = vpop.permute.xlu1 %3777 }
 0x64e   : >> { %v3788_v25 = vpop.permute.xlu0 %3787  ;;  %v3816_v9 = vsel %vm669_vm1, %v3700_v2, %v3778_v11 }
 0x64f   : >> { %v3821_v63 = vsel %vm669_vm1, %v3735_v45, %v3788_v25 }
 0x650   : >> { %4597 = vmatmul.msk.f32.gmra.mxu2 %vm509_vm0, %v3812_v34  ;;  %4605 = vmatmul.msk.f32.gmra.mxu3 %vm509_vm0, %v3820_v22 }
 0x658   : >> { %4598 = vmatmul.msk.f32.gmra.mxu2 %vm509_vm0, %v3813_v6  ;;  %4606 = vmatmul.msk.f32.gmra.mxu3 %vm509_vm0, %v3821_v63 }
 0x660   : >> { %4599 = vmatmul.msk.f32.gmra.mxu2 %vm509_vm0, %v3814_v12  ;;  %4607 = vmatmul.msk.f32.gmra.mxu3 %vm509_vm0, %v3822_v1 }
 0x668   : >> { %4600 = vmatmul.msk.f32.gmra.mxu2 %vm509_vm0, %v3815_v43 }
 0x670   : >> { %4601 = vmatmul.msk.f32.gmra.mxu2 %vm509_vm0, %v3816_v9 }
 0x69b   : >> { %v3888_v42 = vpop.f32.mrf.mxu2 }
 0x6b3   : >> { %v3891_v41 = vpop.f32.mrf.mxu2 }
 0x6b4   : >> { %v4726_v47 = vpack.i.bf16 %v3888_v42, %v3891_v41 }
 0x6b6   : >> { %4727 = vrot.lane.b32.xlu0 %v4726_v47, %s10126_s7 }
 0x6ba   : >> { %v3918_v23 = vpop.f32.mrf.mxu3 }
 0x6bb   : >> { %v3894_v14 = vpop.f32.mrf.mxu2 }
 0x6c3   : >> { %v3897_v8 = vpop.f32.mrf.mxu2  ;;  %v3921_v51 = vpop.f32.mrf.mxu3 }
 0x6c4   : >> { %v4736_v57 = vpack.i.bf16 %v3894_v14, %v3897_v8  ;;  %v4731_v21 = vpack.i.bf16 %v3918_v23, %v3921_v51 }
 0x6c6   : >> { %4737 = vrot.lane.b32.xlu1 %v4736_v57, %s10146_s17  ;;  %4732 = vrot.lane.b32.xlu2 %v4731_v21, %s10173_s3 }
 0x6cb   : >> { %v3900_v39 = vpop.f32.mrf.mxu2  ;;  %v3924_v24 = vpop.f32.mrf.mxu3 }
 0x6d3   : >> { %v3903_v62 = vpop.f32.mrf.mxu2  ;;  %v3927_v36 = vpop.f32.mrf.mxu3 }
 0x6d4   : >> { %v4751_v49 = vpack.i.bf16 %v3900_v39, %v3903_v62  ;;  %v4741_v29 = vpack.i.bf16 %v3924_v24, %v3927_v36 }
 0x6d6   : >> { %4752 = vrot.lane.b32.xlu0 %v4751_v49, %s10174_s30  ;;  %4742 = vrot.lane.b32.xlu1 %v4741_v29, %s10175_s25 }
 0x6db   : >> { %v3906_v28 = vpop.f32.mrf.mxu2  ;;  %v3930_v38 = vpop.f32.mrf.mxu3 }
 0x6de   : >> { %4747 = vrot.lane.b32.xlu1 %v4751_v49, %s10146_s17 }
 0x6e3   : >> { %v3909_v15 = vpop.f32.mrf.mxu2  ;;  %v3933_v31 = vpop.f32.mrf.mxu3 }
 0x6e4   : >> { %v4761_v0 = vpack.i.bf16 %v3906_v28, %v3909_v15  ;;  %v4756_v59 = vpack.i.bf16 %v3930_v38, %v3933_v31 }
 0x6e6   : >> { %4762 = vrot.lane.b32.xlu2 %v4761_v0, %s10174_s30  ;;  %4757 = vrot.lane.b32.xlu0 %v4756_v59, %s10176_s2 }
 0x6eb   : >> { %v3912_v5 = vpop.f32.mrf.mxu2 }
 0x6ee   : >> { %4767 = vrot.lane.b32.xlu2 %v4761_v0, %s10177_s1 }
 0x6f3   : >> { %v3915_v18 = vpop.f32.mrf.mxu2 }
 0x6f4   : >> { %v4776_v4 = vpack.i.bf16 %v3912_v5, %v3915_v18 }
 0x6f6   : >> { %4782 = vrot.lane.b32.xlu2 %v4731_v21, %s10175_s25  ;;  %4777 = vrot.lane.b32.xlu1 %v4776_v4, %s10173_s3 }
 0x6f7   : >> { %4772 = vrot.lane.b32.xlu0 %v4776_v4, %s10177_s1 }
 0x6fe   : >> { %4792 = vrot.lane.b32.xlu1 %v4756_v59, %s10126_s7  ;;  %s10178_s7 = sld [smem:[#allocation58_spill]] }
 0x6ff   : >> { %4787 = vrot.lane.b32.xlu0 %v4741_v29, %s10176_s2 }
 0x704   : >> { %s4612_s11 = sshll.u32 %s10178_s7, 5  ;;  %s504_s16 = sadd.s32 1, %s10178_s7  }
 0x705   : >> { %s4127_s19 = scalar_lea.vmem %s10179_s10, %s4612_s11  ;;  %p501_p7 = scmp.ge.s32.totalorder %s504_s16, 4  }
 0x720   : >> { %v4733_v20 = vpop.permute.xlu2 %4732 }
 0x721   : >> { %v4735_v40 = vunpack.i.h.bf16 %v4733_v20  ;;  %v4734_v61 = vunpack.i.l.bf16 %v4733_v20 }
 0x728   : >> { %v4728_v3 = vpop.permute.xlu0 %4727 }
 0x729   : >> { %v4730_v33 = vunpack.i.h.bf16 %v4728_v3  ;;  %v4729_v48 = vunpack.i.l.bf16 %v4728_v3 }
 0x72b   : >> { %v4055_v32 = vsel %vm669_vm1, %v4730_v33, %v3894_v14  ;;  %v4056_v45 = vsel %vm669_vm1, %v4729_v48, %v3897_v8  ;;  %v10182_v33 = vld [vmem:[#allocation27_spill] sm:$0xff]  ;;  %v10183_v48 = vld [vmem:[#allocation28_spill] sm:$0xff] }
 0x738   : >> { %v4738_v44 = vpop.permute.xlu1 %4737 }
 0x739   : >> { %v4740_v34 = vunpack.i.h.bf16 %v4738_v44  ;;  %v4739_v22 = vunpack.i.l.bf16 %v4738_v44 }
 0x73b   : >> { %v3992_v63 = vsel %vm669_vm1, %v3888_v42, %v4740_v34  ;;  %v3993_v17 = vsel %vm669_vm1, %v3891_v41, %v4739_v22  ;;  %v10184_v34 = vld [vmem:[#allocation32_spill] sm:$0xff]  ;;  %v10185_v22 = vld [vmem:[#allocation57_spill] sm:$0xff] }
 0x740   : >> { %v4763_v26 = vpop.permute.xlu2 %4762 }
 0x741   : >> { %v4765_v37 = vunpack.i.h.bf16 %v4763_v26  ;;  %v4764_v60 = vunpack.i.l.bf16 %v4763_v26 }
 0x748   : >> { %v4743_v16 = vpop.permute.xlu1 %4742  ;;  %v4753_v46 = vpop.permute.xlu0 %4752 }
 0x749   : >> { %v4768_v10 = vpop.permute.xlu2 %4767  ;;  %v4755_v25 = vunpack.i.h.bf16 %v4753_v46  ;;  %v4754_v6 = vunpack.i.l.bf16 %v4753_v46  ;;  %v4745_v54 = vunpack.i.h.bf16 %v4743_v16  ;;  %v4744_v12 = vunpack.i.l.bf16 %v4743_v16 }
 0x74a   : >> { %v4770_v1 = vunpack.i.h.bf16 %v4768_v10  ;;  %v4769_v50 = vunpack.i.l.bf16 %v4768_v10  ;;  %v4110_v10 = vsub.f32 %v10185_v22, %v10184_v34 }
 0x74b   : >> { %v3994_v56 = vsel %vm509_vm0, %v3992_v63, %v4755_v25  ;;  %v3995_v43 = vsel %vm509_vm0, %v3993_v17, %v4754_v6  ;;  %v10189_v6 = vld [vmem:[#allocation14_spill] sm:$0xff]  ;;  %v10190_v17 = vld [vmem:[#allocation34_spill] sm:$0xff] }
 0x74c   : >> { %v3997_v24 = vsel %vm3996_vm6, %v3994_v56, %v4770_v1  ;;  %v3998_v62 = vsel %vm3996_vm6, %v3995_v43, %v4769_v50  ;;  %v10194_v1 = vld [vmem:[#allocation54_spill] sm:$0xff] }
 0x750   : >> { %v4748_v35 = vpop.permute.xlu1 %4747 }
 0x751   : >> { %v4750_v58 = vunpack.i.h.bf16 %v4748_v35  ;;  %v4749_v27 = vunpack.i.l.bf16 %v4748_v35  ;;  %v4783_v51 = vpop.permute.xlu2 %4782  ;;  %v10180_v35 = vld [vmem:[#allocation25_spill] sm:$0xff] }
 0x752   : >> { %v4785_v38 = vunpack.i.h.bf16 %v4783_v51  ;;  %v4784_v15 = vunpack.i.l.bf16 %v4783_v51 }
 0x753   : >> { %v4057_v30 = vsel %vm509_vm0, %v4055_v32, %v4750_v58  ;;  %v4058_v7 = vsel %vm509_vm0, %v4056_v45, %v4749_v27  ;;  %v10186_v58 = vld [vmem:[#allocation13_spill] sm:$0xff] }
 0x754   : >> { %v4059_v11 = vsel %vm3996_vm6, %v4057_v30, %v4765_v37  ;;  %v4060_v2 = vsel %vm3996_vm6, %v4058_v7, %v4764_v60  ;;  %v4114_v27 = vmul.f32 %v4110_v10, %v10186_v58  ;;  %v10191_v37 = vld [vmem:[#allocation55_spill] sm:$0xff]  ;;  %v10192_v7 = vld [vmem:[#allocation15_spill] sm:$0xff] }
 0x755   : >> { %v4112_v60 = vsub.f32 %v10191_v37, %v10190_v17 }
 0x756   : >> { %v4118_v32 = vsub.f32 %v10185_v22, %v4114_v27 }
 0x758   : >> { %v4758_v53 = vpop.permute.xlu0 %4757 }
 0x759   : >> { %v4759_v14 = vunpack.i.l.bf16 %v4758_v53  ;;  %v4760_v39 = vunpack.i.h.bf16 %v4758_v53  ;;  %v10181_v53 = vld [vmem:[#allocation26_spill] sm:$0xff] }
 0x768   : >> { %v4778_v55 = vpop.permute.xlu1 %4777 }
 0x769   : >> { %v4773_v19 = vpop.permute.xlu0 %4772  ;;  %v4780_v9 = vunpack.i.h.bf16 %v4778_v55  ;;  %v4779_v42 = vunpack.i.l.bf16 %v4778_v55  ;;  %v4116_v55 = vmul.f32 %v4112_v60, %v10192_v7 }
 0x76a   : >> { %v4775_v52 = vunpack.i.h.bf16 %v4773_v19  ;;  %v4774_v13 = vunpack.i.l.bf16 %v4773_v19 }
 0x76b   : >> { %v4000_v49 = vsel %vm3999_vm7, %v3997_v24, %v4780_v9  ;;  %v4001_v29 = vsel %vm3999_vm7, %v3998_v62, %v4779_v42  ;;  %v4120_v56 = vsub.f32 %v10191_v37, %v4116_v55 }
 0x76c   : >> { %v4061_v41 = vsel %vm3999_vm7, %v4059_v11, %v4775_v52  ;;  %v4062_v47 = vsel %vm3999_vm7, %v4060_v2, %v4774_v13  ;;  %v4004_v44 = vsel %vm4002_vm8, %v4001_v29, %v4784_v15  ;;  %v4003_v3 = vsel %vm4002_vm8, %v4000_v49, %v4785_v38  ;;  %v10195_v52 = vld [vmem:[#allocation16_spill] sm:$0xff] }
 0x76d   : >> { %v4064_v23 = vsel %vm4002_vm8, %v4062_v47, %v4734_v61  ;;  %v4063_v8 = vsel %vm4002_vm8, %v4061_v41, %v4735_v40  ;;  %v10187_v40 = vld [vmem:[#allocation33_spill] sm:$0xff]  ;;  %v10188_v61 = vld [vmem:[#allocation56_spill] sm:$0xff] }
 0x76e   : >> { %v4066_v57 = vsel %vm4005_vm9, %v4064_v23, %v4744_v12  ;;  %v4065_v21 = vsel %vm4005_vm9, %v4063_v8, %v4745_v54  ;;  %v4111_v25 = vsub.f32 %v10188_v61, %v10187_v40  ;;  %v10193_v12 = vld [vmem:[#allocation35_spill] sm:$0xff] }
 0x76f   : >> { %v4068_v36 = vsel %vm4008_vm10, %v4066_v57, %v4759_v14  ;;  %v4067_v59 = vsel %vm4008_vm10, %v4065_v21, %v4760_v39  ;;  %v4113_v50 = vsub.f32 %v10194_v1, %v10193_v12 }
 0x770   : >> { %4093 = vmatpush.msrb.mxu3 %v4068_v36  ;;  %v4793_v28 = vpop.permute.xlu1 %4792  ;;  %v4115_v63 = vmul.f32 %v4111_v25, %v10189_v6 }
 0x771   : >> { %v4794_v31 = vunpack.i.l.bf16 %v4793_v28  ;;  %v4788_v0 = vpop.permute.xlu0 %4787  ;;  %v4795_v4 = vunpack.i.h.bf16 %v4793_v28  ;;  %v4117_v13 = vmul.f32 %v4113_v50, %v10195_v52 }
 0x772   : >> { %v4790_v5 = vunpack.i.h.bf16 %v4788_v0  ;;  %v4789_v18 = vunpack.i.l.bf16 %v4788_v0  ;;  %4094 = vmatpush.msrb.mxu3 %v4067_v59  ;;  %v4119_v54 = vsub.f32 %v10188_v61, %v4115_v63 }
 0x773   : >> { %v4121_v11 = vsub.f32 %v10194_v1, %v4117_v13 }
 0x774   : >> { %v4007_v20 = vsel %vm4005_vm9, %v4004_v44, %v4789_v18  ;;  %v4006_v16 = vsel %vm4005_vm9, %v4003_v3, %v4790_v5 }
 0x775   : >> { %v4010_v46 = vsel %vm4008_vm10, %v4007_v20, %v4794_v31  ;;  %v4009_v26 = vsel %vm4008_vm10, %v4006_v16, %v4795_v4 }
 0x776   : >> { %4095 = vmatpush.msrb.mxu3 %v4010_v46 }
 0x778   : >> { %4096 = vmatpush.msrb.mxu3 %v4009_v26 }
 0x779   : >> { %4608 = vmatmul.msk.f32.vlgmr.msrb.gmra.mxu3 %vm509_vm0, %v10180_v35 }
 0x781   : >> { %4609 = vmatmul.msk.f32.gmra.mxu3 %vm509_vm0, %v10181_v53 }
 0x789   : >> { %4610 = vmatmul.msk.f32.gmra.mxu3 %vm509_vm0, %v10182_v33 }
 0x791   : >> { %4611 = vmatmul.msk.f32.gmra.mxu3 %vm509_vm0, %v10183_v48 }
 0x7fc   : >> { %v4098_v45 = vpop.f32.mrf.mxu3 }
 0x7fd   : >> { %v4122_v43 = vsub.f32 %v4118_v32, %v4098_v45  }
 0x7ff   : >> { %4128 = vst [vmem:[%s4127_s19] sm:$0xff] %v4122_v43 }
 0x804   : >> { %v4101_v30 = vpop.f32.mrf.mxu3 }
 0x805   : >> { %v4123_v42 = vsub.f32 %v4119_v54, %v4101_v30  }
 0x807   : >> { %4129 = vst [vmem:[%s4127_s19 + $0x8] sm:$0xff] %v4123_v42 }
 0x80c   : >> { %v4104_v19 = vpop.f32.mrf.mxu3 }
 0x80d   : >> { %v4124_v41 = vsub.f32 %v4120_v56, %v4104_v19  }
 0x80f   : >> { %4130 = vst [vmem:[%s4127_s19 + $0x10] sm:$0xff] %v4124_v41 }
 0x813   : > { %503 = sbr.rel (!%p501_p7) target bundleno = 86 (0x56), region = 122 }
 0x814   : >> { %v4107_v2 = vpop.f32.mrf.mxu3 }
 0x815   : >> { %v4125_v40 = vsub.f32 %v4121_v11, %v4107_v2  }
 0x817   : >> { %4131 = vst [vmem:[%s4127_s19 + $0x18] sm:$0xff] %v4125_v40 }
 0x818 PF: > { %s10196_s0 = sld [smem:[#allocation12_spill]] }
 0x81e   : > { %s24_s17 = sadd.s32 1, %s10196_s0  }
 0x81f   : > { %p21_p8 = scmp.ge.s32.totalorder %s24_s17, 4  }
 0x821   :  { %23 = sbr.rel (!%p21_p8) target bundleno = 16 (0x10), region = 133 }
 0x826   :  { %4153 = vsyncpa [#allocation3], 1 }
 0x827   :  { %4155 = vsyncpa [#allocation3 + $0x1], 1 }
 0x828   :  { %4156 = vsyncpa [#allocation5], 1 }
 0x829   :  { %4157 = vsyncpa [#allocation8], 1 }

</bundles_post_ra>
